<compile_context>
chip_gen: v7x
topology: tpu7x:2x2x1
jax: 0.10.0
libtpu: 0.0.40
codegen_flags: <defaults>
</compile_context>

<pallas_src>
import functools

import jax
import jax.numpy as jnp
from jax import lax
from jax.experimental import pallas as pl
from jax.experimental.pallas import tpu as pltpu


def _rup128(c):
    return ((c + 127) // 128) * 128


def _pick_tile(m, cap=512):
    """Largest tile <= cap that divides m (multiple of 8), else full m."""
    if m <= cap:
        return m
    for t in range(cap, 7, -8):
        if m % t == 0:
            return t
    return m


# ----------------------------------------------------------------------------
# Pallas kernels
# ----------------------------------------------------------------------------
def _bgemm_kernel(a_ref, b_ref, o_ref, *, fuse_tanh):
    """One lane-dense GEMM tile: (TM, K)bf16 @ (K, N)bf16 -> (TM, N)f32.

    Optional fused tanh epilogue (final DCGAN layer) -- runs on the EUP slot
    while the MXU/DMA are the binding units, so it is essentially free.
    """
    acc = jnp.dot(a_ref[0], b_ref[0], preferred_element_type=jnp.float32)
    if fuse_tanh:
        acc = jnp.tanh(acc)
    o_ref[0] = acc


def _bn_relu_kernel(x_ref, g_ref, b_ref, o_ref, sum_ref, sq_ref, *, m_total):
    """Tiled two-phase BatchNorm2d (batch stats, biased var) + ReLU.

    grid = (2, m_tiles); phase 0 accumulates per-channel sum / sum-of-squares
    over all M tiles into VMEM scratch, phase 1 normalizes + ReLUs each tile.
    """
    p = pl.program_id(0)
    i = pl.program_id(1)

    @pl.when((p == 0) & (i == 0))
    def _():
        sum_ref[...] = jnp.zeros_like(sum_ref)
        sq_ref[...] = jnp.zeros_like(sq_ref)

    @pl.when(p == 0)
    def _():
        x = x_ref[...]
        sum_ref[...] += jnp.sum(x, axis=0, keepdims=True)
        sq_ref[...] += jnp.sum(x * x, axis=0, keepdims=True)

    @pl.when(p == 1)
    def _():
        x = x_ref[...]
        mean = sum_ref[...] * (1.0 / m_total)
        # clamp guards E[x^2]-mean^2 cancellation before rsqrt
        var = jnp.maximum(sq_ref[...] * (1.0 / m_total) - mean * mean, 0.0)
        scale = lax.rsqrt(var + 1e-5) * g_ref[...]
        y = (x - mean) * scale + b_ref[...]
        o_ref[...] = jnp.maximum(y, 0.0)


# ----------------------------------------------------------------------------
# Pallas wrappers
# ----------------------------------------------------------------------------
def _batched_gemm(a, b, fuse_tanh=False):
    """a: (P, M, K) bf16, b: (P, K, N) bf16 -> (P, M, N) f32."""
    p_dim, m_dim, k_dim = a.shape
    n_dim = b.shape[-1]
    tm = _pick_tile(m_dim)
    kern = functools.partial(_bgemm_kernel, fuse_tanh=fuse_tanh)
    return pl.pallas_call(
        kern,
        out_shape=jax.ShapeDtypeStruct((p_dim, m_dim, n_dim), jnp.float32),
        grid_spec=pltpu.PrefetchScalarGridSpec(
            num_scalar_prefetch=0,
            grid=(p_dim, m_dim // tm),
            in_specs=[
                pl.BlockSpec((1, tm, k_dim), lambda p, m: (p, m, 0)),
                pl.BlockSpec((1, k_dim, n_dim), lambda p, m: (p, 0, 0)),
            ],
            out_specs=pl.BlockSpec((1, tm, n_dim), lambda p, m: (p, m, 0)),
        ),
        compiler_params=pltpu.CompilerParams(
            dimension_semantics=("parallel", "parallel"),
            vmem_limit_bytes=48 * 1024 * 1024,
        ),
    )(a, b)


def conv_t_first(z_flat, w_pt, cinp, coutp):
    """ConvTranspose2d(k=4, s=1, p=0) on a 1x1 input == one GEMM.

    z_flat: (N, cinp) f32 channel-padded latent.  w_pt: (Cin, Cout, 4, 4).
    Returns (N, 4, 4, coutp) f32.
    """
    n = z_flat.shape[0]
    cin, cout = w_pt.shape[0], w_pt.shape[1]
    wmat = jnp.zeros((cinp, 4, 4, coutp), jnp.float32)
    wmat = wmat.at[:cin, :, :, :cout].set(jnp.transpose(w_pt, (0, 2, 3, 1)))
    wmat = wmat.reshape(cinp, 16 * coutp)
    out = _batched_gemm(z_flat[None].astype(jnp.bfloat16),
                        wmat[None].astype(jnp.bfloat16))
    return out.reshape(n, 4, 4, coutp)


def conv_t_stride2(x, w_pt, coutp, fuse_tanh=False):
    """ConvTranspose2d(k=4, s=2, p=1) via sub-pixel phase decomposition.

    x: (N, H, W, Cinp) f32 channel-padded NHWC.  w_pt: (Cin, Cout, 4, 4).
    Each of the 4 output phases (ry, rx) is a 2x2 conv over the (pad=1) input
    whose taps are folded into the GEMM contraction dim (K = 4*Cinp).
    Returns (N, 2H, 2W, coutp) f32.
    """
    n, h, w, cinp = x.shape
    cin, cout = w_pt.shape[0], w_pt.shape[1]
    wp = jnp.zeros((cinp, coutp, 4, 4), jnp.float32).at[:cin, :cout].set(w_pt)
    xp = jnp.pad(x, ((0, 0), (1, 1), (1, 1), (0, 0)))

    a_list, b_list = [], []
    for ry in (0, 1):
        for rx in (0, 1):
            taps = [xp[:, ry + dy: ry + dy + h, rx + dx: rx + dx + w, :]
                    for dy in (0, 1) for dx in (0, 1)]
            a_list.append(
                jnp.concatenate(taps, axis=-1).reshape(n * h * w, 4 * cinp))
            wt = [wp[:, :, 3 - ry - 2 * dy, 3 - rx - 2 * dx]
                  for dy in (0, 1) for dx in (0, 1)]
            b_list.append(jnp.concatenate(wt, axis=0))
    a = jnp.stack(a_list, 0).astype(jnp.bfloat16)   # (4, N*H*W, 4*Cinp)
    b = jnp.stack(b_list, 0).astype(jnp.bfloat16)   # (4, 4*Cinp, Coutp)

    out = _batched_gemm(a, b, fuse_tanh=fuse_tanh)   # (4, N*H*W, Coutp) f32
    # interleave phases: out[n, 2p+ry, 2q+rx, c] = phase[ry*2+rx][n, p, q, c]
    out = out.reshape(2, 2, n, h, w, coutp)
    out = out.transpose(2, 3, 0, 4, 1, 5).reshape(n, 2 * h, 2 * w, coutp)
    return out


def batchnorm_relu(x, gamma, beta):
    """Training-mode BatchNorm2d + ReLU on channel-padded NHWC."""
    n, h, w, cp = x.shape
    c = gamma.shape[0]
    gp = jnp.zeros((1, cp), jnp.float32).at[0, :c].set(gamma)
    bp = jnp.zeros((1, cp), jnp.float32).at[0, :c].set(beta)
    m = n * h * w
    tm = _pick_tile(m)
    xf = x.reshape(m, cp)
    kern = functools.partial(_bn_relu_kernel, m_total=float(m))
    out = pl.pallas_call(
        kern,
        out_shape=jax.ShapeDtypeStruct((m, cp), jnp.float32),
        grid_spec=pltpu.PrefetchScalarGridSpec(
            num_scalar_prefetch=0,
            grid=(2, m // tm),
            in_specs=[
                pl.BlockSpec((tm, cp), lambda p, i: (i, 0)),
                pl.BlockSpec((1, cp), lambda p, i: (0, 0)),
                pl.BlockSpec((1, cp), lambda p, i: (0, 0)),
            ],
            # phase 0 never writes; map all its steps to block 0 so no
            # uninitialized buffers are written back (phase 1 writes every block)
            out_specs=pl.BlockSpec((tm, cp), lambda p, i: (i * p, 0)),
            scratch_shapes=[pltpu.VMEM((1, cp), jnp.float32),
                            pltpu.VMEM((1, cp), jnp.float32)],
        ),
        compiler_params=pltpu.CompilerParams(
            dimension_semantics=("arbitrary", "arbitrary")),
    )(xf, gp, bp)
    return out.reshape(n, h, w, cp)


# ----------------------------------------------------------------------------
# DCGAN generator
# ----------------------------------------------------------------------------
def init_params(key, nz, ngf, nc):
    # ConvTranspose2d weight shapes (Cin, Cout, 4, 4); BN gamma=1, beta=0
    chans = [nz, ngf * 8, ngf * 4, ngf * 2, ngf, nc]
    params = {}
    for i in range(5):
        key, k = jax.random.split(key)
        params[f"w{i}"] = 0.02 * jax.random.normal(
            k, (chans[i], chans[i + 1], 4, 4), jnp.float32)
        if i < 4:
            params[f"gamma{i}"] = jnp.ones((chans[i + 1],), jnp.float32)
            params[f"beta{i}"] = jnp.zeros((chans[i + 1],), jnp.float32)
    return params


def dcgan_generator(z_nchw, params):
    """Accepts NCHW latent (N, nz, 1, 1), returns NCHW image (N, nc, 64, 64)."""
    n = z_nchw.shape[0]
    nz = params["w0"].shape[0]
    nc = params["w4"].shape[1]
    chans = [params[f"w{i}"].shape[0] for i in range(5)] + [nc]
    cp = [_rup128(c) for c in chans]

    # channel-padded latent, channels on the lane axis
    zf = jnp.zeros((n, cp[0]), jnp.float32).at[:, :nz].set(
        z_nchw.reshape(n, nz).astype(jnp.float32))

    x = conv_t_first(zf, params["w0"], cp[0], cp[1])            # (N, 4, 4, C)
    x = batchnorm_relu(x, params["gamma0"], params["beta0"])
    for i in range(1, 4):
        x = conv_t_stride2(x, params[f"w{i}"], cp[i + 1])
        x = batchnorm_relu(x, params[f"gamma{i}"], params[f"beta{i}"])
    x = conv_t_stride2(x, params["w4"], cp[5], fuse_tanh=True)  # (N, 64, 64, C)
    x = x[:, :, :, :nc]                                         # drop padding
    return jnp.transpose(x, (0, 3, 1, 2))                       # back to NCHW


# ----------------------------------------------------------------------------
# Pure-JAX reference (PyTorch semantics) for correctness verification
# ----------------------------------------------------------------------------
def dcgan_generator_ref(z_nchw, params):
    x = z_nchw.astype(jnp.float32)
    strides = [1, 2, 2, 2, 2]
    pads = [0, 1, 1, 1, 1]
    for i in range(5):
        w = params[f"w{i}"]
        k = w.shape[-1]
        q = k - 1 - pads[i]
        x = lax.conv_general_dilated(
            x, jnp.flip(w, (2, 3)).transpose(1, 0, 2, 3),
            window_strides=(1, 1),
            padding=((q, q), (q, q)),
            lhs_dilation=(strides[i], strides[i]),
            dimension_numbers=("NCHW", "OIHW", "NCHW"),
            precision=lax.Precision.HIGHEST)
        if i < 4:
            mean = jnp.mean(x, axis=(0, 2, 3), keepdims=True)
            var = jnp.mean((x - mean) ** 2, axis=(0, 2, 3), keepdims=True)
            x = (x - mean) * lax.rsqrt(var + 1e-5)
            x = x * params[f"gamma{i}"].reshape(1, -1, 1, 1)
            x = x + params[f"beta{i}"].reshape(1, -1, 1, 1)
            x = jnp.maximum(x, 0.0)
        else:
            x = jnp.tanh(x)
    return x


if __name__ == "__main__":
    nz, ngf, nc, batch = 8, 8, 3, 2
    key = jax.random.PRNGKey(0)
    key, kz = jax.random.split(key)
    z = jax.random.normal(kz, (batch, nz, 1, 1), jnp.float32)
    params = init_params(key, nz, ngf, nc)

    out = jax.jit(dcgan_generator)(z, params)
    out = jax.block_until_ready(out)

    assert out.shape == (batch, nc, 64, 64), out.shape
    assert bool(jnp.all(jnp.isfinite(out)))
    assert bool(jnp.all(jnp.abs(out) <= 1.0))  # tanh output range

    ref = dcgan_generator_ref(z, params)
    max_err = float(jnp.max(jnp.abs(out - ref)))
    assert max_err < 5e-2, f"mismatch vs reference: {max_err}"

    print("KERNEL_OK")
</pallas_src>

<mosaic_0001>
module attributes {stable_mosaic.version = 11 : i64} {
  func.func @_bn_relu_kernel(%arg0: i32, %arg1: i32, %arg2: memref<32x128xf32, #tpu.memory_space<vmem>>, %arg3: memref<1x128xf32, #tpu.memory_space<vmem>>, %arg4: memref<1x128xf32, #tpu.memory_space<vmem>>, %arg5: memref<32x128xf32, #tpu.memory_space<vmem>>, %arg6: memref<1x128xf32, #tpu.memory_space<vmem>>, %arg7: memref<1x128xf32, #tpu.memory_space<vmem>>) attributes {dimension_semantics = [#tpu.dimension_semantics<arbitrary>, #tpu.dimension_semantics<arbitrary>], iteration_bounds = array<i64: 2, 1>, scalar_prefetch = 0 : i64, scratch_operands = 2 : i64, tpu.core_type = #tpu.core_type<tc>, window_params = [{transform_indices = @transform_0, window_bounds = array<i64: 32, 128>}, {pipeline_mode = #tpu.pipeline_mode<synchronous>, transform_indices = @transform_1, window_bounds = array<i64: 1, 128>}, {pipeline_mode = #tpu.pipeline_mode<synchronous>, transform_indices = @transform_2, window_bounds = array<i64: 1, 128>}, {transform_indices = @transform_3, window_bounds = array<i64: 32, 128>}]} {
    %c0_i32 = arith.constant 0 : i32
    %0 = arith.cmpi eq, %arg0, %c0_i32 : i32
    %c0_i32_0 = arith.constant 0 : i32
    %1 = arith.cmpi eq, %arg1, %c0_i32_0 : i32
    %2 = arith.andi %0, %1 : i1
    %3 = arith.extui %2 : i1 to i32
    %c0_i32_1 = arith.constant 0 : i32
    %4 = arith.cmpi ne, %3, %c0_i32_1 : i32
    scf.if %4 {
      %cst = arith.constant 0.000000e+00 : f32
      %11 = vector.broadcast %cst : f32 to vector<1x128xf32>
      %c0 = arith.constant 0 : index
      %c0_5 = arith.constant 0 : index
      %12 = vector.load %arg6[%c0, %c0_5] : memref<1x128xf32, #tpu.memory_space<vmem>>, vector<1x128xf32>
      tpu.vector_store %arg6[%c0, %c0_5], %11 {strides = array<i32>} : memref<1x128xf32, #tpu.memory_space<vmem>>, vector<1x128xf32>,
      %cst_6 = arith.constant 0.000000e+00 : f32
      %13 = vector.broadcast %cst_6 : f32 to vector<1x128xf32>
      %c0_7 = arith.constant 0 : index
      %c0_8 = arith.constant 0 : index
      %14 = vector.load %arg7[%c0_7, %c0_8] : memref<1x128xf32, #tpu.memory_space<vmem>>, vector<1x128xf32>
      tpu.vector_store %arg7[%c0_7, %c0_8], %13 {strides = array<i32>} : memref<1x128xf32, #tpu.memory_space<vmem>>, vector<1x128xf32>,
    } else {
    }
    %c0_i32_2 = arith.constant 0 : i32
    %5 = arith.cmpi eq, %arg0, %c0_i32_2 : i32
    %6 = arith.extui %5 : i1 to i32
    %c0_i32_3 = arith.constant 0 : i32
    %7 = arith.cmpi ne, %6, %c0_i32_3 : i32
    scf.if %7 {
      %c0 = arith.constant 0 : index
      %c0_5 = arith.constant 0 : index
      %11 = vector.load %arg2[%c0, %c0_5] : memref<32x128xf32, #tpu.memory_space<vmem>>, vector<32x128xf32>
      %c0_6 = arith.constant 0 : index
      %c0_7 = arith.constant 0 : index
      %12 = vector.load %arg6[%c0_6, %c0_7] : memref<1x128xf32, #tpu.memory_space<vmem>>, vector<1x128xf32>
      %cst = arith.constant dense<0.000000e+00> : vector<128xf32>
      %13 = vector.multi_reduction <add>, %11, %cst [0] : vector<32x128xf32> to vector<128xf32>
      %14 = vector.shape_cast %13 : vector<128xf32> to vector<1x128xf32>
      %15 = arith.addf %12, %14 : vector<1x128xf32>
      %c0_8 = arith.constant 0 : index
      %c0_9 = arith.constant 0 : index
      %16 = vector.load %arg6[%c0_8, %c0_9] : memref<1x128xf32, #tpu.memory_space<vmem>>, vector<1x128xf32>
      tpu.vector_store %arg6[%c0_8, %c0_9], %15 {strides = array<i32>} : memref<1x128xf32, #tpu.memory_space<vmem>>, vector<1x128xf32>,
      %c0_10 = arith.constant 0 : index
      %c0_11 = arith.constant 0 : index
      %17 = vector.load %arg7[%c0_10, %c0_11] : memref<1x128xf32, #tpu.memory_space<vmem>>, vector<1x128xf32>
      %18 = arith.mulf %11, %11 : vector<32x128xf32>
      %cst_12 = arith.constant dense<0.000000e+00> : vector<128xf32>
      %19 = vector.multi_reduction <add>, %18, %cst_12 [0] : vector<32x128xf32> to vector<128xf32>
      %20 = vector.shape_cast %19 : vector<128xf32> to vector<1x128xf32>
      %21 = arith.addf %17, %20 : vector<1x128xf32>
      %c0_13 = arith.constant 0 : index
      %c0_14 = arith.constant 0 : index
      %22 = vector.load %arg7[%c0_13, %c0_14] : memref<1x128xf32, #tpu.memory_space<vmem>>, vector<1x128xf32>
      tpu.vector_store %arg7[%c0_13, %c0_14], %21 {strides = array<i32>} : memref<1x128xf32, #tpu.memory_space<vmem>>, vector<1x128xf32>,
    } else {
    }
    %c1_i32 = arith.constant 1 : i32
    %8 = arith.cmpi eq, %arg0, %c1_i32 : i32
    %9 = arith.extui %8 : i1 to i32
    %c0_i32_4 = arith.constant 0 : i32
    %10 = arith.cmpi ne, %9, %c0_i32_4 : i32
    scf.if %10 {
      %c0 = arith.constant 0 : index
      %c0_5 = arith.constant 0 : index
      %11 = vector.load %arg2[%c0, %c0_5] : memref<32x128xf32, #tpu.memory_space<vmem>>, vector<32x128xf32>
      %c0_6 = arith.constant 0 : index
      %c0_7 = arith.constant 0 : index
      %12 = vector.load %arg6[%c0_6, %c0_7] : memref<1x128xf32, #tpu.memory_space<vmem>>, vector<1x128xf32>
      %cst = arith.constant 3.125000e-02 : f32
      %13 = vector.broadcast %cst : f32 to vector<1x128xf32>
      %14 = arith.mulf %12, %13 : vector<1x128xf32>
      %c0_8 = arith.constant 0 : index
      %c0_9 = arith.constant 0 : index
      %15 = vector.load %arg7[%c0_8, %c0_9] : memref<1x128xf32, #tpu.memory_space<vmem>>, vector<1x128xf32>
      %cst_10 = arith.constant 3.125000e-02 : f32
      %16 = vector.broadcast %cst_10 : f32 to vector<1x128xf32>
      %17 = arith.mulf %15, %16 : vector<1x128xf32>
      %18 = arith.mulf %14, %14 : vector<1x128xf32>
      %19 = arith.subf %17, %18 : vector<1x128xf32>
      %cst_11 = arith.constant 0.000000e+00 : f32
      %20 = vector.broadcast %cst_11 : f32 to vector<1x128xf32>
      %21 = arith.maximumf %19, %20 : vector<1x128xf32>
      %cst_12 = arith.constant 9.99999974E-6 : f32
      %22 = vector.broadcast %cst_12 : f32 to vector<1x128xf32>
      %23 = arith.addf %21, %22 : vector<1x128xf32>
      %24 = math.rsqrt %23 : vector<1x128xf32>
      %c0_13 = arith.constant 0 : index
      %c0_14 = arith.constant 0 : index
      %25 = vector.load %arg3[%c0_13, %c0_14] : memref<1x128xf32, #tpu.memory_space<vmem>>, vector<1x128xf32>
      %26 = arith.mulf %24, %25 : vector<1x128xf32>
      %27 = vector.broadcast %14 : vector<1x128xf32> to vector<32x128xf32>
      %28 = arith.subf %11, %27 : vector<32x128xf32>
      %29 = vector.broadcast %26 : vector<1x128xf32> to vector<32x128xf32>
      %30 = arith.mulf %28, %29 : vector<32x128xf32>
      %c0_15 = arith.constant 0 : index
      %c0_16 = arith.constant 0 : index
      %31 = vector.load %arg4[%c0_15, %c0_16] : memref<1x128xf32, #tpu.memory_space<vmem>>, vector<1x128xf32>
      %32 = vector.broadcast %31 : vector<1x128xf32> to vector<32x128xf32>
      %33 = arith.addf %30, %32 : vector<32x128xf32>
      %cst_17 = arith.constant 0.000000e+00 : f32
      %34 = vector.broadcast %cst_17 : f32 to vector<32x128xf32>
      %35 = arith.maximumf %33, %34 : vector<32x128xf32>
      %c0_18 = arith.constant 0 : index
      %c0_19 = arith.constant 0 : index
      %36 = vector.load %arg5[%c0_18, %c0_19] : memref<32x128xf32, #tpu.memory_space<vmem>>, vector<32x128xf32>
      tpu.vector_store %arg5[%c0_18, %c0_19], %35 {strides = array<i32>} : memref<32x128xf32, #tpu.memory_space<vmem>>, vector<32x128xf32>,
    } else {
    }
    return
  }
  func.func @transform_0(%arg0: i32, %arg1: i32) -> (i32, i32) {
    %c0_i32 = arith.constant 0 : i32
    %c0_i32_0 = arith.constant 0 : i32
    return %arg1, %c0_i32 : i32, i32
  }
  func.func @transform_1(%arg0: i32, %arg1: i32) -> (i32, i32) {
    %c0_i32 = arith.constant 0 : i32
    %c0_i32_0 = arith.constant 0 : i32
    %c0_i32_1 = arith.constant 0 : i32
    return %c0_i32, %c0_i32_0 : i32, i32
  }
  func.func @transform_2(%arg0: i32, %arg1: i32) -> (i32, i32) {
    %c0_i32 = arith.constant 0 : i32
    %c0_i32_0 = arith.constant 0 : i32
    %c0_i32_1 = arith.constant 0 : i32
    return %c0_i32, %c0_i32_0 : i32, i32
  }
  func.func @transform_3(%arg0: i32, %arg1: i32) -> (i32, i32) {
    %0 = arith.muli %arg1, %arg0 : i32
    %c0_i32 = arith.constant 0 : i32
    %c0_i32_0 = arith.constant 0 : i32
    return %0, %c0_i32 : i32, i32
  }
}

module attributes {stable_mosaic.version = 11 : i64} {
  func.func @_bgemm_kernel(%arg0: i32, %arg1: i32, %arg2: memref<1x2x128xbf16, #tpu.memory_space<vmem>>, %arg3: memref<1x128x2048xbf16, #tpu.memory_space<vmem>>, %arg4: memref<1x2x2048xf32, #tpu.memory_space<vmem>>) attributes {dimension_semantics = [#tpu.dimension_semantics<parallel>, #tpu.dimension_semantics<parallel>], iteration_bounds = array<i64: 1, 1>, scalar_prefetch = 0 : i64, scratch_operands = 0 : i64, tpu.core_type = #tpu.core_type<tc>, window_params = [{transform_indices = @transform_0, window_bounds = array<i64: 1, 2, 128>}, {transform_indices = @transform_1, window_bounds = array<i64: 1, 128, 2048>}, {transform_indices = @transform_2, window_bounds = array<i64: 1, 2, 2048>}]} {
    %c0 = arith.constant 0 : index
    %c0_0 = arith.constant 0 : index
    %c0_1 = arith.constant 0 : index
    %0 = vector.load %arg2[%c0, %c0_0, %c0_1] : memref<1x2x128xbf16, #tpu.memory_space<vmem>>, vector<1x2x128xbf16>
    %1 = vector.shape_cast %0 : vector<1x2x128xbf16> to vector<2x128xbf16>
    %c0_2 = arith.constant 0 : index
    %c0_3 = arith.constant 0 : index
    %c0_4 = arith.constant 0 : index
    %2 = vector.load %arg3[%c0_2, %c0_3, %c0_4] : memref<1x128x2048xbf16, #tpu.memory_space<vmem>>, vector<1x128x2048xbf16>
    %3 = vector.shape_cast %2 : vector<1x128x2048xbf16> to vector<128x2048xbf16>
    %cst = arith.constant dense<0.000000e+00> : vector<2x2048xf32>
    %4 = tpu.matmul %1, %3, %cst {dimension_numbers = #tpu.dot_dimension_numbers<[1], [0], [0], [1], [0, 0, 1, 1], [], []>} : vector<2x128xbf16>, vector<128x2048xbf16>, vector<2x2048xf32> -> vector<2x2048xf32>
    %c0_5 = arith.constant 0 : index
    %c0_6 = arith.constant 0 : index
    %c0_7 = arith.constant 0 : index
    %5 = vector.load %arg4[%c0_5, %c0_6, %c0_7] : memref<1x2x2048xf32, #tpu.memory_space<vmem>>, vector<1x2x2048xf32>
    %6 = vector.shape_cast %5 : vector<1x2x2048xf32> to vector<2x2048xf32>
    %7 = vector.shape_cast %4 : vector<2x2048xf32> to vector<1x2x2048xf32>
    tpu.vector_store %arg4[%c0_5, %c0_6, %c0_7], %7 {strides = array<i32>} : memref<1x2x2048xf32, #tpu.memory_space<vmem>>, vector<1x2x2048xf32>,
    return
  }
  func.func @transform_0(%arg0: i32, %arg1: i32) -> (i32, i32, i32) {
    %c0_i32 = arith.constant 0 : i32
    %c0_i32_0 = arith.constant 0 : i32
    return %arg0, %arg1, %c0_i32 : i32, i32, i32
  }
  func.func @transform_1(%arg0: i32, %arg1: i32) -> (i32, i32, i32) {
    %c0_i32 = arith.constant 0 : i32
    %c0_i32_0 = arith.constant 0 : i32
    %c0_i32_1 = arith.constant 0 : i32
    return %arg0, %c0_i32, %c0_i32_0 : i32, i32, i32
  }
  func.func @transform_2(%arg0: i32, %arg1: i32) -> (i32, i32, i32) {
    %c0_i32 = arith.constant 0 : i32
    %c0_i32_0 = arith.constant 0 : i32
    return %arg0, %arg1, %c0_i32 : i32, i32, i32
  }
}

module attributes {stable_mosaic.version = 11 : i64} {
  func.func @_bgemm_kernel(%arg0: i32, %arg1: i32, %arg2: memref<1x32x512xbf16, #tpu.memory_space<vmem>>, %arg3: memref<1x512x128xbf16, #tpu.memory_space<vmem>>, %arg4: memref<1x32x128xf32, #tpu.memory_space<vmem>>) attributes {dimension_semantics = [#tpu.dimension_semantics<parallel>, #tpu.dimension_semantics<parallel>], iteration_bounds = array<i64: 4, 1>, scalar_prefetch = 0 : i64, scratch_operands = 0 : i64, tpu.core_type = #tpu.core_type<tc>, window_params = [{transform_indices = @transform_0, window_bounds = array<i64: 1, 32, 512>}, {transform_indices = @transform_1, window_bounds = array<i64: 1, 512, 128>}, {transform_indices = @transform_2, window_bounds = array<i64: 1, 32, 128>}]} {
    %c0 = arith.constant 0 : index
    %c0_0 = arith.constant 0 : index
    %c0_1 = arith.constant 0 : index
    %0 = vector.load %arg2[%c0, %c0_0, %c0_1] : memref<1x32x512xbf16, #tpu.memory_space<vmem>>, vector<1x32x512xbf16>
    %1 = vector.shape_cast %0 : vector<1x32x512xbf16> to vector<32x512xbf16>
    %c0_2 = arith.constant 0 : index
    %c0_3 = arith.constant 0 : index
    %c0_4 = arith.constant 0 : index
    %2 = vector.load %arg3[%c0_2, %c0_3, %c0_4] : memref<1x512x128xbf16, #tpu.memory_space<vmem>>, vector<1x512x128xbf16>
    %3 = vector.shape_cast %2 : vector<1x512x128xbf16> to vector<512x128xbf16>
    %cst = arith.constant dense<0.000000e+00> : vector<32x128xf32>
    %4 = tpu.matmul %1, %3, %cst {dimension_numbers = #tpu.dot_dimension_numbers<[1], [0], [0], [1], [0, 0, 1, 1], [], []>} : vector<32x512xbf16>, vector<512x128xbf16>, vector<32x128xf32> -> vector<32x128xf32>
    %c0_5 = arith.constant 0 : index
    %c0_6 = arith.constant 0 : index
    %c0_7 = arith.constant 0 : index
    %5 = vector.load %arg4[%c0_5, %c0_6, %c0_7] : memref<1x32x128xf32, #tpu.memory_space<vmem>>, vector<1x32x128xf32>
    %6 = vector.shape_cast %5 : vector<1x32x128xf32> to vector<32x128xf32>
    %7 = vector.shape_cast %4 : vector<32x128xf32> to vector<1x32x128xf32>
    tpu.vector_store %arg4[%c0_5, %c0_6, %c0_7], %7 {strides = array<i32>} : memref<1x32x128xf32, #tpu.memory_space<vmem>>, vector<1x32x128xf32>,
    return
  }
  func.func @transform_0(%arg0: i32, %arg1: i32) -> (i32, i32, i32) {
    %c0_i32 = arith.constant 0 : i32
    %c0_i32_0 = arith.constant 0 : i32
    return %arg0, %arg1, %c0_i32 : i32, i32, i32
  }
  func.func @transform_1(%arg0: i32, %arg1: i32) -> (i32, i32, i32) {
    %c0_i32 = arith.constant 0 : i32
    %c0_i32_0 = arith.constant 0 : i32
    %c0_i32_1 = arith.constant 0 : i32
    return %arg0, %c0_i32, %c0_i32_0 : i32, i32, i32
  }
  func.func @transform_2(%arg0: i32, %arg1: i32) -> (i32, i32, i32) {
    %c0_i32 = arith.constant 0 : i32
    %c0_i32_0 = arith.constant 0 : i32
    return %arg0, %arg1, %c0_i32 : i32, i32, i32
  }
}

module attributes {stable_mosaic.version = 11 : i64} {
  func.func @_bn_relu_kernel(%arg0: i32, %arg1: i32, %arg2: memref<128x128xf32, #tpu.memory_space<vmem>>, %arg3: memref<1x128xf32, #tpu.memory_space<vmem>>, %arg4: memref<1x128xf32, #tpu.memory_space<vmem>>, %arg5: memref<128x128xf32, #tpu.memory_space<vmem>>, %arg6: memref<1x128xf32, #tpu.memory_space<vmem>>, %arg7: memref<1x128xf32, #tpu.memory_space<vmem>>) attributes {dimension_semantics = [#tpu.dimension_semantics<arbitrary>, #tpu.dimension_semantics<arbitrary>], iteration_bounds = array<i64: 2, 1>, scalar_prefetch = 0 : i64, scratch_operands = 2 : i64, tpu.core_type = #tpu.core_type<tc>, window_params = [{transform_indices = @transform_0, window_bounds = array<i64: 128, 128>}, {pipeline_mode = #tpu.pipeline_mode<synchronous>, transform_indices = @transform_1, window_bounds = array<i64: 1, 128>}, {pipeline_mode = #tpu.pipeline_mode<synchronous>, transform_indices = @transform_2, window_bounds = array<i64: 1, 128>}, {transform_indices = @transform_3, window_bounds = array<i64: 128, 128>}]} {
    %c0_i32 = arith.constant 0 : i32
    %0 = arith.cmpi eq, %arg0, %c0_i32 : i32
    %c0_i32_0 = arith.constant 0 : i32
    %1 = arith.cmpi eq, %arg1, %c0_i32_0 : i32
    %2 = arith.andi %0, %1 : i1
    %3 = arith.extui %2 : i1 to i32
    %c0_i32_1 = arith.constant 0 : i32
    %4 = arith.cmpi ne, %3, %c0_i32_1 : i32
    scf.if %4 {
      %cst = arith.constant 0.000000e+00 : f32
      %11 = vector.broadcast %cst : f32 to vector<1x128xf32>
      %c0 = arith.constant 0 : index
      %c0_5 = arith.constant 0 : index
      %12 = vector.load %arg6[%c0, %c0_5] : memref<1x128xf32, #tpu.memory_space<vmem>>, vector<1x128xf32>
      tpu.vector_store %arg6[%c0, %c0_5], %11 {strides = array<i32>} : memref<1x128xf32, #tpu.memory_space<vmem>>, vector<1x128xf32>,
      %cst_6 = arith.constant 0.000000e+00 : f32
      %13 = vector.broadcast %cst_6 : f32 to vector<1x128xf32>
      %c0_7 = arith.constant 0 : index
      %c0_8 = arith.constant 0 : index
      %14 = vector.load %arg7[%c0_7, %c0_8] : memref<1x128xf32, #tpu.memory_space<vmem>>, vector<1x128xf32>
      tpu.vector_store %arg7[%c0_7, %c0_8], %13 {strides = array<i32>} : memref<1x128xf32, #tpu.memory_space<vmem>>, vector<1x128xf32>,
    } else {
    }
    %c0_i32_2 = arith.constant 0 : i32
    %5 = arith.cmpi eq, %arg0, %c0_i32_2 : i32
    %6 = arith.extui %5 : i1 to i32
    %c0_i32_3 = arith.constant 0 : i32
    %7 = arith.cmpi ne, %6, %c0_i32_3 : i32
    scf.if %7 {
      %c0 = arith.constant 0 : index
      %c0_5 = arith.constant 0 : index
      %11 = vector.load %arg2[%c0, %c0_5] : memref<128x128xf32, #tpu.memory_space<vmem>>, vector<128x128xf32>
      %c0_6 = arith.constant 0 : index
      %c0_7 = arith.constant 0 : index
      %12 = vector.load %arg6[%c0_6, %c0_7] : memref<1x128xf32, #tpu.memory_space<vmem>>, vector<1x128xf32>
      %cst = arith.constant dense<0.000000e+00> : vector<128xf32>
      %13 = vector.multi_reduction <add>, %11, %cst [0] : vector<128x128xf32> to vector<128xf32>
      %14 = vector.shape_cast %13 : vector<128xf32> to vector<1x128xf32>
      %15 = arith.addf %12, %14 : vector<1x128xf32>
      %c0_8 = arith.constant 0 : index
      %c0_9 = arith.constant 0 : index
      %16 = vector.load %arg6[%c0_8, %c0_9] : memref<1x128xf32, #tpu.memory_space<vmem>>, vector<1x128xf32>
      tpu.vector_store %arg6[%c0_8, %c0_9], %15 {strides = array<i32>} : memref<1x128xf32, #tpu.memory_space<vmem>>, vector<1x128xf32>,
      %c0_10 = arith.constant 0 : index
      %c0_11 = arith.constant 0 : index
      %17 = vector.load %arg7[%c0_10, %c0_11] : memref<1x128xf32, #tpu.memory_space<vmem>>, vector<1x128xf32>
      %18 = arith.mulf %11, %11 : vector<128x128xf32>
      %cst_12 = arith.constant dense<0.000000e+00> : vector<128xf32>
      %19 = vector.multi_reduction <add>, %18, %cst_12 [0] : vector<128x128xf32> to vector<128xf32>
      %20 = vector.shape_cast %19 : vector<128xf32> to vector<1x128xf32>
      %21 = arith.addf %17, %20 : vector<1x128xf32>
      %c0_13 = arith.constant 0 : index
      %c0_14 = arith.constant 0 : index
      %22 = vector.load %arg7[%c0_13, %c0_14] : memref<1x128xf32, #tpu.memory_space<vmem>>, vector<1x128xf32>
      tpu.vector_store %arg7[%c0_13, %c0_14], %21 {strides = array<i32>} : memref<1x128xf32, #tpu.memory_space<vmem>>, vector<1x128xf32>,
    } else {
    }
    %c1_i32 = arith.constant 1 : i32
    %8 = arith.cmpi eq, %arg0, %c1_i32 : i32
    %9 = arith.extui %8 : i1 to i32
    %c0_i32_4 = arith.constant 0 : i32
    %10 = arith.cmpi ne, %9, %c0_i32_4 : i32
    scf.if %10 {
      %c0 = arith.constant 0 : index
      %c0_5 = arith.constant 0 : index
      %11 = vector.load %arg2[%c0, %c0_5] : memref<128x128xf32, #tpu.memory_space<vmem>>, vector<128x128xf32>
      %c0_6 = arith.constant 0 : index
      %c0_7 = arith.constant 0 : index
      %12 = vector.load %arg6[%c0_6, %c0_7] : memref<1x128xf32, #tpu.memory_space<vmem>>, vector<1x128xf32>
      %cst = arith.constant 7.812500e-03 : f32
      %13 = vector.broadcast %cst : f32 to vector<1x128xf32>
      %14 = arith.mulf %12, %13 : vector<1x128xf32>
      %c0_8 = arith.constant 0 : index
      %c0_9 = arith.constant 0 : index
      %15 = vector.load %arg7[%c0_8, %c0_9] : memref<1x128xf32, #tpu.memory_space<vmem>>, vector<1x128xf32>
      %cst_10 = arith.constant 7.812500e-03 : f32
      %16 = vector.broadcast %cst_10 : f32 to vector<1x128xf32>
      %17 = arith.mulf %15, %16 : vector<1x128xf32>
      %18 = arith.mulf %14, %14 : vector<1x128xf32>
      %19 = arith.subf %17, %18 : vector<1x128xf32>
      %cst_11 = arith.constant 0.000000e+00 : f32
      %20 = vector.broadcast %cst_11 : f32 to vector<1x128xf32>
      %21 = arith.maximumf %19, %20 : vector<1x128xf32>
      %cst_12 = arith.constant 9.99999974E-6 : f32
      %22 = vector.broadcast %cst_12 : f32 to vector<1x128xf32>
      %23 = arith.addf %21, %22 : vector<1x128xf32>
      %24 = math.rsqrt %23 : vector<1x128xf32>
      %c0_13 = arith.constant 0 : index
      %c0_14 = arith.constant 0 : index
      %25 = vector.load %arg3[%c0_13, %c0_14] : memref<1x128xf32, #tpu.memory_space<vmem>>, vector<1x128xf32>
      %26 = arith.mulf %24, %25 : vector<1x128xf32>
      %27 = vector.broadcast %14 : vector<1x128xf32> to vector<128x128xf32>
      %28 = arith.subf %11, %27 : vector<128x128xf32>
      %29 = vector.broadcast %26 : vector<1x128xf32> to vector<128x128xf32>
      %30 = arith.mulf %28, %29 : vector<128x128xf32>
      %c0_15 = arith.constant 0 : index
      %c0_16 = arith.constant 0 : index
      %31 = vector.load %arg4[%c0_15, %c0_16] : memref<1x128xf32, #tpu.memory_space<vmem>>, vector<1x128xf32>
      %32 = vector.broadcast %31 : vector<1x128xf32> to vector<128x128xf32>
      %33 = arith.addf %30, %32 : vector<128x128xf32>
      %cst_17 = arith.constant 0.000000e+00 : f32
      %34 = vector.broadcast %cst_17 : f32 to vector<128x128xf32>
      %35 = arith.maximumf %33, %34 : vector<128x128xf32>
      %c0_18 = arith.constant 0 : index
      %c0_19 = arith.constant 0 : index
      %36 = vector.load %arg5[%c0_18, %c0_19] : memref<128x128xf32, #tpu.memory_space<vmem>>, vector<128x128xf32>
      tpu.vector_store %arg5[%c0_18, %c0_19], %35 {strides = array<i32>} : memref<128x128xf32, #tpu.memory_space<vmem>>, vector<128x128xf32>,
    } else {
    }
    return
  }
  func.func @transform_0(%arg0: i32, %arg1: i32) -> (i32, i32) {
    %c0_i32 = arith.constant 0 : i32
    %c0_i32_0 = arith.constant 0 : i32
    return %arg1, %c0_i32 : i32, i32
  }
  func.func @transform_1(%arg0: i32, %arg1: i32) -> (i32, i32) {
    %c0_i32 = arith.constant 0 : i32
    %c0_i32_0 = arith.constant 0 : i32
    %c0_i32_1 = arith.constant 0 : i32
    return %c0_i32, %c0_i32_0 : i32, i32
  }
  func.func @transform_2(%arg0: i32, %arg1: i32) -> (i32, i32) {
    %c0_i32 = arith.constant 0 : i32
    %c0_i32_0 = arith.constant 0 : i32
    %c0_i32_1 = arith.constant 0 : i32
    return %c0_i32, %c0_i32_0 : i32, i32
  }
  func.func @transform_3(%arg0: i32, %arg1: i32) -> (i32, i32) {
    %0 = arith.muli %arg1, %arg0 : i32
    %c0_i32 = arith.constant 0 : i32
    %c0_i32_0 = arith.constant 0 : i32
    return %0, %c0_i32 : i32, i32
  }
}

module attributes {stable_mosaic.version = 11 : i64} {
  func.func @_bgemm_kernel(%arg0: i32, %arg1: i32, %arg2: memref<1x128x512xbf16, #tpu.memory_space<vmem>>, %arg3: memref<1x512x128xbf16, #tpu.memory_space<vmem>>, %arg4: memref<1x128x128xf32, #tpu.memory_space<vmem>>) attributes {dimension_semantics = [#tpu.dimension_semantics<parallel>, #tpu.dimension_semantics<parallel>], iteration_bounds = array<i64: 4, 1>, scalar_prefetch = 0 : i64, scratch_operands = 0 : i64, tpu.core_type = #tpu.core_type<tc>, window_params = [{transform_indices = @transform_0, window_bounds = array<i64: 1, 128, 512>}, {transform_indices = @transform_1, window_bounds = array<i64: 1, 512, 128>}, {transform_indices = @transform_2, window_bounds = array<i64: 1, 128, 128>}]} {
    %c0 = arith.constant 0 : index
    %c0_0 = arith.constant 0 : index
    %c0_1 = arith.constant 0 : index
    %0 = vector.load %arg2[%c0, %c0_0, %c0_1] : memref<1x128x512xbf16, #tpu.memory_space<vmem>>, vector<1x128x512xbf16>
    %1 = vector.shape_cast %0 : vector<1x128x512xbf16> to vector<128x512xbf16>
    %c0_2 = arith.constant 0 : index
    %c0_3 = arith.constant 0 : index
    %c0_4 = arith.constant 0 : index
    %2 = vector.load %arg3[%c0_2, %c0_3, %c0_4] : memref<1x512x128xbf16, #tpu.memory_space<vmem>>, vector<1x512x128xbf16>
    %3 = vector.shape_cast %2 : vector<1x512x128xbf16> to vector<512x128xbf16>
    %cst = arith.constant dense<0.000000e+00> : vector<128x128xf32>
    %4 = tpu.matmul %1, %3, %cst {dimension_numbers = #tpu.dot_dimension_numbers<[1], [0], [0], [1], [0, 0, 1, 1], [], []>} : vector<128x512xbf16>, vector<512x128xbf16>, vector<128x128xf32> -> vector<128x128xf32>
    %c0_5 = arith.constant 0 : index
    %c0_6 = arith.constant 0 : index
    %c0_7 = arith.constant 0 : index
    %5 = vector.load %arg4[%c0_5, %c0_6, %c0_7] : memref<1x128x128xf32, #tpu.memory_space<vmem>>, vector<1x128x128xf32>
    %6 = vector.shape_cast %5 : vector<1x128x128xf32> to vector<128x128xf32>
    %7 = vector.shape_cast %4 : vector<128x128xf32> to vector<1x128x128xf32>
    tpu.vector_store %arg4[%c0_5, %c0_6, %c0_7], %7 {strides = array<i32>} : memref<1x128x128xf32, #tpu.memory_space<vmem>>, vector<1x128x128xf32>,
    return
  }
  func.func @transform_0(%arg0: i32, %arg1: i32) -> (i32, i32, i32) {
    %c0_i32 = arith.constant 0 : i32
    %c0_i32_0 = arith.constant 0 : i32
    return %arg0, %arg1, %c0_i32 : i32, i32, i32
  }
  func.func @transform_1(%arg0: i32, %arg1: i32) -> (i32, i32, i32) {
    %c0_i32 = arith.constant 0 : i32
    %c0_i32_0 = arith.constant 0 : i32
    %c0_i32_1 = arith.constant 0 : i32
    return %arg0, %c0_i32, %c0_i32_0 : i32, i32, i32
  }
  func.func @transform_2(%arg0: i32, %arg1: i32) -> (i32, i32, i32) {
    %c0_i32 = arith.constant 0 : i32
    %c0_i32_0 = arith.constant 0 : i32
    return %arg0, %arg1, %c0_i32 : i32, i32, i32
  }
}

module attributes {stable_mosaic.version = 11 : i64} {
  func.func @_bn_relu_kernel(%arg0: i32, %arg1: i32, %arg2: memref<512x128xf32, #tpu.memory_space<vmem>>, %arg3: memref<1x128xf32, #tpu.memory_space<vmem>>, %arg4: memref<1x128xf32, #tpu.memory_space<vmem>>, %arg5: memref<512x128xf32, #tpu.memory_space<vmem>>, %arg6: memref<1x128xf32, #tpu.memory_space<vmem>>, %arg7: memref<1x128xf32, #tpu.memory_space<vmem>>) attributes {dimension_semantics = [#tpu.dimension_semantics<arbitrary>, #tpu.dimension_semantics<arbitrary>], iteration_bounds = array<i64: 2, 1>, scalar_prefetch = 0 : i64, scratch_operands = 2 : i64, tpu.core_type = #tpu.core_type<tc>, window_params = [{transform_indices = @transform_0, window_bounds = array<i64: 512, 128>}, {pipeline_mode = #tpu.pipeline_mode<synchronous>, transform_indices = @transform_1, window_bounds = array<i64: 1, 128>}, {pipeline_mode = #tpu.pipeline_mode<synchronous>, transform_indices = @transform_2, window_bounds = array<i64: 1, 128>}, {transform_indices = @transform_3, window_bounds = array<i64: 512, 128>}]} {
    %c0_i32 = arith.constant 0 : i32
    %0 = arith.cmpi eq, %arg0, %c0_i32 : i32
    %c0_i32_0 = arith.constant 0 : i32
    %1 = arith.cmpi eq, %arg1, %c0_i32_0 : i32
    %2 = arith.andi %0, %1 : i1
    %3 = arith.extui %2 : i1 to i32
    %c0_i32_1 = arith.constant 0 : i32
    %4 = arith.cmpi ne, %3, %c0_i32_1 : i32
    scf.if %4 {
      %cst = arith.constant 0.000000e+00 : f32
      %11 = vector.broadcast %cst : f32 to vector<1x128xf32>
      %c0 = arith.constant 0 : index
      %c0_5 = arith.constant 0 : index
      %12 = vector.load %arg6[%c0, %c0_5] : memref<1x128xf32, #tpu.memory_space<vmem>>, vector<1x128xf32>
      tpu.vector_store %arg6[%c0, %c0_5], %11 {strides = array<i32>} : memref<1x128xf32, #tpu.memory_space<vmem>>, vector<1x128xf32>,
      %cst_6 = arith.constant 0.000000e+00 : f32
      %13 = vector.broadcast %cst_6 : f32 to vector<1x128xf32>
      %c0_7 = arith.constant 0 : index
      %c0_8 = arith.constant 0 : index
      %14 = vector.load %arg7[%c0_7, %c0_8] : memref<1x128xf32, #tpu.memory_space<vmem>>, vector<1x128xf32>
      tpu.vector_store %arg7[%c0_7, %c0_8], %13 {strides = array<i32>} : memref<1x128xf32, #tpu.memory_space<vmem>>, vector<1x128xf32>,
    } else {
    }
    %c0_i32_2 = arith.constant 0 : i32
    %5 = arith.cmpi eq, %arg0, %c0_i32_2 : i32
    %6 = arith.extui %5 : i1 to i32
    %c0_i32_3 = arith.constant 0 : i32
    %7 = arith.cmpi ne, %6, %c0_i32_3 : i32
    scf.if %7 {
      %c0 = arith.constant 0 : index
      %c0_5 = arith.constant 0 : index
      %11 = vector.load %arg2[%c0, %c0_5] : memref<512x128xf32, #tpu.memory_space<vmem>>, vector<512x128xf32>
      %c0_6 = arith.constant 0 : index
      %c0_7 = arith.constant 0 : index
      %12 = vector.load %arg6[%c0_6, %c0_7] : memref<1x128xf32, #tpu.memory_space<vmem>>, vector<1x128xf32>
      %cst = arith.constant dense<0.000000e+00> : vector<128xf32>
      %13 = vector.multi_reduction <add>, %11, %cst [0] : vector<512x128xf32> to vector<128xf32>
      %14 = vector.shape_cast %13 : vector<128xf32> to vector<1x128xf32>
      %15 = arith.addf %12, %14 : vector<1x128xf32>
      %c0_8 = arith.constant 0 : index
      %c0_9 = arith.constant 0 : index
      %16 = vector.load %arg6[%c0_8, %c0_9] : memref<1x128xf32, #tpu.memory_space<vmem>>, vector<1x128xf32>
      tpu.vector_store %arg6[%c0_8, %c0_9], %15 {strides = array<i32>} : memref<1x128xf32, #tpu.memory_space<vmem>>, vector<1x128xf32>,
      %c0_10 = arith.constant 0 : index
      %c0_11 = arith.constant 0 : index
      %17 = vector.load %arg7[%c0_10, %c0_11] : memref<1x128xf32, #tpu.memory_space<vmem>>, vector<1x128xf32>
      %18 = arith.mulf %11, %11 : vector<512x128xf32>
      %cst_12 = arith.constant dense<0.000000e+00> : vector<128xf32>
      %19 = vector.multi_reduction <add>, %18, %cst_12 [0] : vector<512x128xf32> to vector<128xf32>
      %20 = vector.shape_cast %19 : vector<128xf32> to vector<1x128xf32>
      %21 = arith.addf %17, %20 : vector<1x128xf32>
      %c0_13 = arith.constant 0 : index
      %c0_14 = arith.constant 0 : index
      %22 = vector.load %arg7[%c0_13, %c0_14] : memref<1x128xf32, #tpu.memory_space<vmem>>, vector<1x128xf32>
      tpu.vector_store %arg7[%c0_13, %c0_14], %21 {strides = array<i32>} : memref<1x128xf32, #tpu.memory_space<vmem>>, vector<1x128xf32>,
    } else {
    }
    %c1_i32 = arith.constant 1 : i32
    %8 = arith.cmpi eq, %arg0, %c1_i32 : i32
    %9 = arith.extui %8 : i1 to i32
    %c0_i32_4 = arith.constant 0 : i32
    %10 = arith.cmpi ne, %9, %c0_i32_4 : i32
    scf.if %10 {
      %c0 = arith.constant 0 : index
      %c0_5 = arith.constant 0 : index
      %11 = vector.load %arg2[%c0, %c0_5] : memref<512x128xf32, #tpu.memory_space<vmem>>, vector<512x128xf32>
      %c0_6 = arith.constant 0 : index
      %c0_7 = arith.constant 0 : index
      %12 = vector.load %arg6[%c0_6, %c0_7] : memref<1x128xf32, #tpu.memory_space<vmem>>, vector<1x128xf32>
      %cst = arith.constant 0.001953125 : f32
      %13 = vector.broadcast %cst : f32 to vector<1x128xf32>
      %14 = arith.mulf %12, %13 : vector<1x128xf32>
      %c0_8 = arith.constant 0 : index
      %c0_9 = arith.constant 0 : index
      %15 = vector.load %arg7[%c0_8, %c0_9] : memref<1x128xf32, #tpu.memory_space<vmem>>, vector<1x128xf32>
      %cst_10 = arith.constant 0.001953125 : f32
      %16 = vector.broadcast %cst_10 : f32 to vector<1x128xf32>
      %17 = arith.mulf %15, %16 : vector<1x128xf32>
      %18 = arith.mulf %14, %14 : vector<1x128xf32>
      %19 = arith.subf %17, %18 : vector<1x128xf32>
      %cst_11 = arith.constant 0.000000e+00 : f32
      %20 = vector.broadcast %cst_11 : f32 to vector<1x128xf32>
      %21 = arith.maximumf %19, %20 : vector<1x128xf32>
      %cst_12 = arith.constant 9.99999974E-6 : f32
      %22 = vector.broadcast %cst_12 : f32 to vector<1x128xf32>
      %23 = arith.addf %21, %22 : vector<1x128xf32>
      %24 = math.rsqrt %23 : vector<1x128xf32>
      %c0_13 = arith.constant 0 : index
      %c0_14 = arith.constant 0 : index
      %25 = vector.load %arg3[%c0_13, %c0_14] : memref<1x128xf32, #tpu.memory_space<vmem>>, vector<1x128xf32>
      %26 = arith.mulf %24, %25 : vector<1x128xf32>
      %27 = vector.broadcast %14 : vector<1x128xf32> to vector<512x128xf32>
      %28 = arith.subf %11, %27 : vector<512x128xf32>
      %29 = vector.broadcast %26 : vector<1x128xf32> to vector<512x128xf32>
      %30 = arith.mulf %28, %29 : vector<512x128xf32>
      %c0_15 = arith.constant 0 : index
      %c0_16 = arith.constant 0 : index
      %31 = vector.load %arg4[%c0_15, %c0_16] : memref<1x128xf32, #tpu.memory_space<vmem>>, vector<1x128xf32>
      %32 = vector.broadcast %31 : vector<1x128xf32> to vector<512x128xf32>
      %33 = arith.addf %30, %32 : vector<512x128xf32>
      %cst_17 = arith.constant 0.000000e+00 : f32
      %34 = vector.broadcast %cst_17 : f32 to vector<512x128xf32>
      %35 = arith.maximumf %33, %34 : vector<512x128xf32>
      %c0_18 = arith.constant 0 : index
      %c0_19 = arith.constant 0 : index
      %36 = vector.load %arg5[%c0_18, %c0_19] : memref<512x128xf32, #tpu.memory_space<vmem>>, vector<512x128xf32>
      tpu.vector_store %arg5[%c0_18, %c0_19], %35 {strides = array<i32>} : memref<512x128xf32, #tpu.memory_space<vmem>>, vector<512x128xf32>,
    } else {
    }
    return
  }
  func.func @transform_0(%arg0: i32, %arg1: i32) -> (i32, i32) {
    %c0_i32 = arith.constant 0 : i32
    %c0_i32_0 = arith.constant 0 : i32
    return %arg1, %c0_i32 : i32, i32
  }
  func.func @transform_1(%arg0: i32, %arg1: i32) -> (i32, i32) {
    %c0_i32 = arith.constant 0 : i32
    %c0_i32_0 = arith.constant 0 : i32
    %c0_i32_1 = arith.constant 0 : i32
    return %c0_i32, %c0_i32_0 : i32, i32
  }
  func.func @transform_2(%arg0: i32, %arg1: i32) -> (i32, i32) {
    %c0_i32 = arith.constant 0 : i32
    %c0_i32_0 = arith.constant 0 : i32
    %c0_i32_1 = arith.constant 0 : i32
    return %c0_i32, %c0_i32_0 : i32, i32
  }
  func.func @transform_3(%arg0: i32, %arg1: i32) -> (i32, i32) {
    %0 = arith.muli %arg1, %arg0 : i32
    %c0_i32 = arith.constant 0 : i32
    %c0_i32_0 = arith.constant 0 : i32
    return %0, %c0_i32 : i32, i32
  }
}

module attributes {stable_mosaic.version = 11 : i64} {
  func.func @_bgemm_kernel(%arg0: i32, %arg1: i32, %arg2: memref<1x512x512xbf16, #tpu.memory_space<vmem>>, %arg3: memref<1x512x128xbf16, #tpu.memory_space<vmem>>, %arg4: memref<1x512x128xf32, #tpu.memory_space<vmem>>) attributes {dimension_semantics = [#tpu.dimension_semantics<parallel>, #tpu.dimension_semantics<parallel>], iteration_bounds = array<i64: 4, 1>, scalar_prefetch = 0 : i64, scratch_operands = 0 : i64, tpu.core_type = #tpu.core_type<tc>, window_params = [{transform_indices = @transform_0, window_bounds = array<i64: 1, 512, 512>}, {transform_indices = @transform_1, window_bounds = array<i64: 1, 512, 128>}, {transform_indices = @transform_2, window_bounds = array<i64: 1, 512, 128>}]} {
    %c0 = arith.constant 0 : index
    %c0_0 = arith.constant 0 : index
    %c0_1 = arith.constant 0 : index
    %0 = vector.load %arg2[%c0, %c0_0, %c0_1] : memref<1x512x512xbf16, #tpu.memory_space<vmem>>, vector<1x512x512xbf16>
    %1 = vector.shape_cast %0 : vector<1x512x512xbf16> to vector<512x512xbf16>
    %c0_2 = arith.constant 0 : index
    %c0_3 = arith.constant 0 : index
    %c0_4 = arith.constant 0 : index
    %2 = vector.load %arg3[%c0_2, %c0_3, %c0_4] : memref<1x512x128xbf16, #tpu.memory_space<vmem>>, vector<1x512x128xbf16>
    %3 = vector.shape_cast %2 : vector<1x512x128xbf16> to vector<512x128xbf16>
    %cst = arith.constant dense<0.000000e+00> : vector<512x128xf32>
    %4 = tpu.matmul %1, %3, %cst {dimension_numbers = #tpu.dot_dimension_numbers<[1], [0], [0], [1], [0, 0, 1, 1], [], []>} : vector<512x512xbf16>, vector<512x128xbf16>, vector<512x128xf32> -> vector<512x128xf32>
    %c0_5 = arith.constant 0 : index
    %c0_6 = arith.constant 0 : index
    %c0_7 = arith.constant 0 : index
    %5 = vector.load %arg4[%c0_5, %c0_6, %c0_7] : memref<1x512x128xf32, #tpu.memory_space<vmem>>, vector<1x512x128xf32>
    %6 = vector.shape_cast %5 : vector<1x512x128xf32> to vector<512x128xf32>
    %7 = vector.shape_cast %4 : vector<512x128xf32> to vector<1x512x128xf32>
    tpu.vector_store %arg4[%c0_5, %c0_6, %c0_7], %7 {strides = array<i32>} : memref<1x512x128xf32, #tpu.memory_space<vmem>>, vector<1x512x128xf32>,
    return
  }
  func.func @transform_0(%arg0: i32, %arg1: i32) -> (i32, i32, i32) {
    %c0_i32 = arith.constant 0 : i32
    %c0_i32_0 = arith.constant 0 : i32
    return %arg0, %arg1, %c0_i32 : i32, i32, i32
  }
  func.func @transform_1(%arg0: i32, %arg1: i32) -> (i32, i32, i32) {
    %c0_i32 = arith.constant 0 : i32
    %c0_i32_0 = arith.constant 0 : i32
    %c0_i32_1 = arith.constant 0 : i32
    return %arg0, %c0_i32, %c0_i32_0 : i32, i32, i32
  }
  func.func @transform_2(%arg0: i32, %arg1: i32) -> (i32, i32, i32) {
    %c0_i32 = arith.constant 0 : i32
    %c0_i32_0 = arith.constant 0 : i32
    return %arg0, %arg1, %c0_i32 : i32, i32, i32
  }
}

module attributes {stable_mosaic.version = 11 : i64} {
  func.func @_bn_relu_kernel(%arg0: i32, %arg1: i32, %arg2: memref<512x128xf32, #tpu.memory_space<vmem>>, %arg3: memref<1x128xf32, #tpu.memory_space<vmem>>, %arg4: memref<1x128xf32, #tpu.memory_space<vmem>>, %arg5: memref<512x128xf32, #tpu.memory_space<vmem>>, %arg6: memref<1x128xf32, #tpu.memory_space<vmem>>, %arg7: memref<1x128xf32, #tpu.memory_space<vmem>>) attributes {dimension_semantics = [#tpu.dimension_semantics<arbitrary>, #tpu.dimension_semantics<arbitrary>], iteration_bounds = array<i64: 2, 4>, scalar_prefetch = 0 : i64, scratch_operands = 2 : i64, tpu.core_type = #tpu.core_type<tc>, window_params = [{transform_indices = @transform_0, window_bounds = array<i64: 512, 128>}, {pipeline_mode = #tpu.pipeline_mode<synchronous>, transform_indices = @transform_1, window_bounds = array<i64: 1, 128>}, {pipeline_mode = #tpu.pipeline_mode<synchronous>, transform_indices = @transform_2, window_bounds = array<i64: 1, 128>}, {transform_indices = @transform_3, window_bounds = array<i64: 512, 128>}]} {
    %c0_i32 = arith.constant 0 : i32
    %0 = arith.cmpi eq, %arg0, %c0_i32 : i32
    %c0_i32_0 = arith.constant 0 : i32
    %1 = arith.cmpi eq, %arg1, %c0_i32_0 : i32
    %2 = arith.andi %0, %1 : i1
    %3 = arith.extui %2 : i1 to i32
    %c0_i32_1 = arith.constant 0 : i32
    %4 = arith.cmpi ne, %3, %c0_i32_1 : i32
    scf.if %4 {
      %cst = arith.constant 0.000000e+00 : f32
      %11 = vector.broadcast %cst : f32 to vector<1x128xf32>
      %c0 = arith.constant 0 : index
      %c0_5 = arith.constant 0 : index
      %12 = vector.load %arg6[%c0, %c0_5] : memref<1x128xf32, #tpu.memory_space<vmem>>, vector<1x128xf32>
      tpu.vector_store %arg6[%c0, %c0_5], %11 {strides = array<i32>} : memref<1x128xf32, #tpu.memory_space<vmem>>, vector<1x128xf32>,
      %cst_6 = arith.constant 0.000000e+00 : f32
      %13 = vector.broadcast %cst_6 : f32 to vector<1x128xf32>
      %c0_7 = arith.constant 0 : index
      %c0_8 = arith.constant 0 : index
      %14 = vector.load %arg7[%c0_7, %c0_8] : memref<1x128xf32, #tpu.memory_space<vmem>>, vector<1x128xf32>
      tpu.vector_store %arg7[%c0_7, %c0_8], %13 {strides = array<i32>} : memref<1x128xf32, #tpu.memory_space<vmem>>, vector<1x128xf32>,
    } else {
    }
    %c0_i32_2 = arith.constant 0 : i32
    %5 = arith.cmpi eq, %arg0, %c0_i32_2 : i32
    %6 = arith.extui %5 : i1 to i32
    %c0_i32_3 = arith.constant 0 : i32
    %7 = arith.cmpi ne, %6, %c0_i32_3 : i32
    scf.if %7 {
      %c0 = arith.constant 0 : index
      %c0_5 = arith.constant 0 : index
      %11 = vector.load %arg2[%c0, %c0_5] : memref<512x128xf32, #tpu.memory_space<vmem>>, vector<512x128xf32>
      %c0_6 = arith.constant 0 : index
      %c0_7 = arith.constant 0 : index
      %12 = vector.load %arg6[%c0_6, %c0_7] : memref<1x128xf32, #tpu.memory_space<vmem>>, vector<1x128xf32>
      %cst = arith.constant dense<0.000000e+00> : vector<128xf32>
      %13 = vector.multi_reduction <add>, %11, %cst [0] : vector<512x128xf32> to vector<128xf32>
      %14 = vector.shape_cast %13 : vector<128xf32> to vector<1x128xf32>
      %15 = arith.addf %12, %14 : vector<1x128xf32>
      %c0_8 = arith.constant 0 : index
      %c0_9 = arith.constant 0 : index
      %16 = vector.load %arg6[%c0_8, %c0_9] : memref<1x128xf32, #tpu.memory_space<vmem>>, vector<1x128xf32>
      tpu.vector_store %arg6[%c0_8, %c0_9], %15 {strides = array<i32>} : memref<1x128xf32, #tpu.memory_space<vmem>>, vector<1x128xf32>,
      %c0_10 = arith.constant 0 : index
      %c0_11 = arith.constant 0 : index
      %17 = vector.load %arg7[%c0_10, %c0_11] : memref<1x128xf32, #tpu.memory_space<vmem>>, vector<1x128xf32>
      %18 = arith.mulf %11, %11 : vector<512x128xf32>
      %cst_12 = arith.constant dense<0.000000e+00> : vector<128xf32>
      %19 = vector.multi_reduction <add>, %18, %cst_12 [0] : vector<512x128xf32> to vector<128xf32>
      %20 = vector.shape_cast %19 : vector<128xf32> to vector<1x128xf32>
      %21 = arith.addf %17, %20 : vector<1x128xf32>
      %c0_13 = arith.constant 0 : index
      %c0_14 = arith.constant 0 : index
      %22 = vector.load %arg7[%c0_13, %c0_14] : memref<1x128xf32, #tpu.memory_space<vmem>>, vector<1x128xf32>
      tpu.vector_store %arg7[%c0_13, %c0_14], %21 {strides = array<i32>} : memref<1x128xf32, #tpu.memory_space<vmem>>, vector<1x128xf32>,
    } else {
    }
    %c1_i32 = arith.constant 1 : i32
    %8 = arith.cmpi eq, %arg0, %c1_i32 : i32
    %9 = arith.extui %8 : i1 to i32
    %c0_i32_4 = arith.constant 0 : i32
    %10 = arith.cmpi ne, %9, %c0_i32_4 : i32
    scf.if %10 {
      %c0 = arith.constant 0 : index
      %c0_5 = arith.constant 0 : index
      %11 = vector.load %arg2[%c0, %c0_5] : memref<512x128xf32, #tpu.memory_space<vmem>>, vector<512x128xf32>
      %c0_6 = arith.constant 0 : index
      %c0_7 = arith.constant 0 : index
      %12 = vector.load %arg6[%c0_6, %c0_7] : memref<1x128xf32, #tpu.memory_space<vmem>>, vector<1x128xf32>
      %cst = arith.constant 4.8828125E-4 : f32
      %13 = vector.broadcast %cst : f32 to vector<1x128xf32>
      %14 = arith.mulf %12, %13 : vector<1x128xf32>
      %c0_8 = arith.constant 0 : index
      %c0_9 = arith.constant 0 : index
      %15 = vector.load %arg7[%c0_8, %c0_9] : memref<1x128xf32, #tpu.memory_space<vmem>>, vector<1x128xf32>
      %cst_10 = arith.constant 4.8828125E-4 : f32
      %16 = vector.broadcast %cst_10 : f32 to vector<1x128xf32>
      %17 = arith.mulf %15, %16 : vector<1x128xf32>
      %18 = arith.mulf %14, %14 : vector<1x128xf32>
      %19 = arith.subf %17, %18 : vector<1x128xf32>
      %cst_11 = arith.constant 0.000000e+00 : f32
      %20 = vector.broadcast %cst_11 : f32 to vector<1x128xf32>
      %21 = arith.maximumf %19, %20 : vector<1x128xf32>
      %cst_12 = arith.constant 9.99999974E-6 : f32
      %22 = vector.broadcast %cst_12 : f32 to vector<1x128xf32>
      %23 = arith.addf %21, %22 : vector<1x128xf32>
      %24 = math.rsqrt %23 : vector<1x128xf32>
      %c0_13 = arith.constant 0 : index
      %c0_14 = arith.constant 0 : index
      %25 = vector.load %arg3[%c0_13, %c0_14] : memref<1x128xf32, #tpu.memory_space<vmem>>, vector<1x128xf32>
      %26 = arith.mulf %24, %25 : vector<1x128xf32>
      %27 = vector.broadcast %14 : vector<1x128xf32> to vector<512x128xf32>
      %28 = arith.subf %11, %27 : vector<512x128xf32>
      %29 = vector.broadcast %26 : vector<1x128xf32> to vector<512x128xf32>
      %30 = arith.mulf %28, %29 : vector<512x128xf32>
      %c0_15 = arith.constant 0 : index
      %c0_16 = arith.constant 0 : index
      %31 = vector.load %arg4[%c0_15, %c0_16] : memref<1x128xf32, #tpu.memory_space<vmem>>, vector<1x128xf32>
      %32 = vector.broadcast %31 : vector<1x128xf32> to vector<512x128xf32>
      %33 = arith.addf %30, %32 : vector<512x128xf32>
      %cst_17 = arith.constant 0.000000e+00 : f32
      %34 = vector.broadcast %cst_17 : f32 to vector<512x128xf32>
      %35 = arith.maximumf %33, %34 : vector<512x128xf32>
      %c0_18 = arith.constant 0 : index
      %c0_19 = arith.constant 0 : index
      %36 = vector.load %arg5[%c0_18, %c0_19] : memref<512x128xf32, #tpu.memory_space<vmem>>, vector<512x128xf32>
      tpu.vector_store %arg5[%c0_18, %c0_19], %35 {strides = array<i32>} : memref<512x128xf32, #tpu.memory_space<vmem>>, vector<512x128xf32>,
    } else {
    }
    return
  }
  func.func @transform_0(%arg0: i32, %arg1: i32) -> (i32, i32) {
    %c0_i32 = arith.constant 0 : i32
    %c0_i32_0 = arith.constant 0 : i32
    return %arg1, %c0_i32 : i32, i32
  }
  func.func @transform_1(%arg0: i32, %arg1: i32) -> (i32, i32) {
    %c0_i32 = arith.constant 0 : i32
    %c0_i32_0 = arith.constant 0 : i32
    %c0_i32_1 = arith.constant 0 : i32
    return %c0_i32, %c0_i32_0 : i32, i32
  }
  func.func @transform_2(%arg0: i32, %arg1: i32) -> (i32, i32) {
    %c0_i32 = arith.constant 0 : i32
    %c0_i32_0 = arith.constant 0 : i32
    %c0_i32_1 = arith.constant 0 : i32
    return %c0_i32, %c0_i32_0 : i32, i32
  }
  func.func @transform_3(%arg0: i32, %arg1: i32) -> (i32, i32) {
    %0 = arith.muli %arg1, %arg0 : i32
    %c0_i32 = arith.constant 0 : i32
    %c0_i32_0 = arith.constant 0 : i32
    return %0, %c0_i32 : i32, i32
  }
}

module attributes {stable_mosaic.version = 11 : i64} {
  func.func @_bgemm_kernel(%arg0: i32, %arg1: i32, %arg2: memref<1x512x512xbf16, #tpu.memory_space<vmem>>, %arg3: memref<1x512x128xbf16, #tpu.memory_space<vmem>>, %arg4: memref<1x512x128xf32, #tpu.memory_space<vmem>>) attributes {dimension_semantics = [#tpu.dimension_semantics<parallel>, #tpu.dimension_semantics<parallel>], iteration_bounds = array<i64: 4, 4>, scalar_prefetch = 0 : i64, scratch_operands = 0 : i64, tpu.core_type = #tpu.core_type<tc>, window_params = [{transform_indices = @transform_0, window_bounds = array<i64: 1, 512, 512>}, {transform_indices = @transform_1, window_bounds = array<i64: 1, 512, 128>}, {transform_indices = @transform_2, window_bounds = array<i64: 1, 512, 128>}]} {
    %c0 = arith.constant 0 : index
    %c0_0 = arith.constant 0 : index
    %c0_1 = arith.constant 0 : index
    %0 = vector.load %arg2[%c0, %c0_0, %c0_1] : memref<1x512x512xbf16, #tpu.memory_space<vmem>>, vector<1x512x512xbf16>
    %1 = vector.shape_cast %0 : vector<1x512x512xbf16> to vector<512x512xbf16>
    %c0_2 = arith.constant 0 : index
    %c0_3 = arith.constant 0 : index
    %c0_4 = arith.constant 0 : index
    %2 = vector.load %arg3[%c0_2, %c0_3, %c0_4] : memref<1x512x128xbf16, #tpu.memory_space<vmem>>, vector<1x512x128xbf16>
    %3 = vector.shape_cast %2 : vector<1x512x128xbf16> to vector<512x128xbf16>
    %cst = arith.constant dense<0.000000e+00> : vector<512x128xf32>
    %4 = tpu.matmul %1, %3, %cst {dimension_numbers = #tpu.dot_dimension_numbers<[1], [0], [0], [1], [0, 0, 1, 1], [], []>} : vector<512x512xbf16>, vector<512x128xbf16>, vector<512x128xf32> -> vector<512x128xf32>
    %5 = math.tanh %4 : vector<512x128xf32>
    %c0_5 = arith.constant 0 : index
    %c0_6 = arith.constant 0 : index
    %c0_7 = arith.constant 0 : index
    %6 = vector.load %arg4[%c0_5, %c0_6, %c0_7] : memref<1x512x128xf32, #tpu.memory_space<vmem>>, vector<1x512x128xf32>
    %7 = vector.shape_cast %6 : vector<1x512x128xf32> to vector<512x128xf32>
    %8 = vector.shape_cast %5 : vector<512x128xf32> to vector<1x512x128xf32>
    tpu.vector_store %arg4[%c0_5, %c0_6, %c0_7], %8 {strides = array<i32>} : memref<1x512x128xf32, #tpu.memory_space<vmem>>, vector<1x512x128xf32>,
    return
  }
  func.func @transform_0(%arg0: i32, %arg1: i32) -> (i32, i32, i32) {
    %c0_i32 = arith.constant 0 : i32
    %c0_i32_0 = arith.constant 0 : i32
    return %arg0, %arg1, %c0_i32 : i32, i32, i32
  }
  func.func @transform_1(%arg0: i32, %arg1: i32) -> (i32, i32, i32) {
    %c0_i32 = arith.constant 0 : i32
    %c0_i32_0 = arith.constant 0 : i32
    %c0_i32_1 = arith.constant 0 : i32
    return %arg0, %c0_i32, %c0_i32_0 : i32, i32, i32
  }
  func.func @transform_2(%arg0: i32, %arg1: i32) -> (i32, i32, i32) {
    %c0_i32 = arith.constant 0 : i32
    %c0_i32_0 = arith.constant 0 : i32
    return %arg0, %arg1, %c0_i32 : i32, i32, i32
  }
}

</mosaic_0001>

<bundles_post_ra>
// kernel: dcgan_generator.10
= control target key start
LH: loop header
LB: loop body
LE: loop exit
PB: predicated region body
PF: predicated region fallthrough
CT: control target
= control target key end

     0   :  { %s449_s12 = smov 0   ;;  %s451_s13 = smov 0   ;;  %s523_s0 = inlined_call_operand.vmem [shape: f32[32,128], index: 0, kind: input, shape index: {}]   ;;  %s524_s1 = inlined_call_operand.vmem [shape: f32[1,128], index: 1, kind: input, shape index: {}]   ;;  %s525_s2 = inlined_call_operand.vmem [shape: f32[1,128], index: 2, kind: input, shape index: {}]   ;;  %s526_s3 = inlined_call_operand.vmem [shape: f32[32,128], index: 3, kind: output, shape index: {}]  }
   0x1   :  { %s453_s14 = smov 0  }
   0x2 LB: > { %s25_s15 = sadd.s32 1, %s422_s13  ;;  %p367_p0 = scmp.ge.s32.totalorder %s426_s14, 1  ;;  %s426_s14 = sphi %s453_s14, %s13_s14   ;;  %s422_s13 = sphi %s451_s13, %s528_s13   ;;  %s418_s12 = sphi %s449_s12, %s527_s12  }
   0x3   : > { %p27_p1 = scmp.ge.s32.totalorder %s25_s15, 2  ;;  %p152_p2 = scmp.lt.s32.totalorder %s426_s14, 3 }
   0x5   : > { %s530_s15 = smov (%p27_p1, %s25_s15), 0  ;;  %p153_p3 = pnand %p367_p0, %p152_p2 }
   0x6   : > { %p191_p4 = scmp.eq.s32.totalorder (!%p153_p3), %s418_s12, 0 }
   0x7   : > { %156 = sbr.rel (%p153_p3) target bundleno = 84 (0x54), region = 32 }
   0xe   : > { %196 = sbr.rel (!%p191_p4) target bundleno = 21 (0x15), region = 36  ;;  %v428_v0 = vmov (%p191_p4), 0.0  }
   0xf   : > { %197 = vst [vmem:[#allocation2] sm:$0x1] (%p191_p4), %v428_v0  ;;  %198 = vst [vmem:[#allocation3] sm:$0x1] (%p191_p4), %v428_v0 }
  0x15 PF: > { %p369_p5 = scmp.ne.s32.totalorder %s418_s12, 0 }
  0x16   : > { %v202_v1 = vld [vmem:[%s523_s0] sm:$0xff] (!%p369_p5)  ;;  %v203_v2 = vld [vmem:[%s523_s0 + $0x8] sm:$0xff] (!%p369_p5)  ;;  %v204_v3 = vld [vmem:[%s523_s0 + $0x10] sm:$0xff] (!%p369_p5) }
  0x17   : > { %201 = sbr.rel (%p369_p5) target bundleno = 46 (0x2e), region = 40  ;;  %v205_v4 = vld [vmem:[%s523_s0 + $0x18] sm:$0xff] (!%p369_p5)  ;;  %v207_v5 = vadd.f32 (!%p369_p5), %v203_v2, %v202_v1  ;;  %v219_v6 = vmul.f32 (!%p369_p5), %v202_v1, %v202_v1  ;;  %v220_v7 = vmul.f32 (!%p369_p5), %v203_v2, %v203_v2  ;;  %v221_v8 = vmul.f32 (!%p369_p5), %v204_v3, %v204_v3  ;;  %v206_v24 = vld [vmem:[#allocation2] sm:$0x1] (!%p369_p5)  ;;  %v218_v27 = vld [vmem:[#allocation3] sm:$0x1] (!%p369_p5) }
  0x18   : > { %v222_v10 = vmul.f32 (!%p369_p5), %v205_v4, %v205_v4 }
  0x19   : > { %v208_v9 = vadd.f32 (!%p369_p5), %v207_v5, %v204_v3  ;;  %v223_v11 = vadd.f32 (!%p369_p5), %v220_v7, %v219_v6 }
  0x1b   : > { %v209_v12 = vadd.f32 (!%p369_p5), %v208_v9, %v205_v4  ;;  %v224_v13 = vadd.f32 (!%p369_p5), %v223_v11, %v221_v8 }
  0x1d   : > { %v210_v14 = vrot.slane (!%p369_p5), %v209_v12, 4  ;;  %v225_v15 = vadd.f32 (!%p369_p5), %v224_v13, %v222_v10 }
  0x1f   : > { %v211_v16 = vadd.f32 %v210_v14, %v209_v12  ;;  %v226_v17 = vrot.slane %v225_v15, 4 }
  0x21   : > { %v212_v18 = vrot.slane %v211_v16, 2  ;;  %v227_v19 = vadd.f32 %v226_v17, %v225_v15 }
  0x23   : > { %v213_v20 = vadd.f32 %v212_v18, %v211_v16  ;;  %v228_v21 = vrot.slane %v227_v19, 2 }
  0x25   : > { %v214_v22 = vrot.slane %v213_v20, 1  ;;  %v229_v23 = vadd.f32 %v228_v21, %v227_v19 }
  0x27   : > { %v215_v25 = vadd.f32 %v214_v22, %v213_v20  ;;  %v230_v26 = vrot.slane %v229_v23, 1 }
  0x29   : > { %v216_v28 = vadd.f32 %v215_v25, %v206_v24  ;;  %v231_v29 = vadd.f32 %v230_v26, %v229_v23 }
  0x2b   : > { %217 = vst [vmem:[#allocation2] sm:$0x1] %v216_v28  ;;  %v232_v30 = vadd.f32 %v231_v29, %v218_v27 }
  0x2d   : > { %233 = vst [vmem:[#allocation3] sm:$0x1] %v232_v30 }
  0x2e PF: > { %p370_p6 = scmp.ne.s32.totalorder %s418_s12, 1 }
  0x2f   : > { %v254_v37 = vlaneseq (!%p370_p6)  ;;  %v238_v43 = vld [vmem:[%s523_s0] sm:$0xff] (!%p370_p6)  ;;  %v239_v45 = vld [vmem:[%s523_s0 + $0x8] sm:$0xff] (!%p370_p6)  ;;  %v240_v46 = vld [vmem:[%s523_s0 + $0x10] sm:$0xff] (!%p370_p6) }
  0x30   : > { %237 = sbr.rel (%p370_p6) target bundleno = 84 (0x54), region = 44  ;;  %v251_v44 = vld [vmem:[%s524_s1] sm:$0x1] (!%p370_p6)  ;;  %v241_v47 = vld [vmem:[%s523_s0 + $0x18] sm:$0xff] (!%p370_p6) }
  0x31   : > { %v255_v40 = vshrl.u32 (!%p370_p6), %v254_v37, 7  ;;  %v371_v55 = vld [vmem:[%s525_s2] ss:$0 sm:$0xff] (!%p370_p6) }
  0x32   : > { %v242_v31 = vld [vmem:[#allocation2] sm:$0x1] (!%p370_p6) }
  0x33   : > { %v243_v33 = vmul.f32 (!%p370_p6), 0.03125, %v242_v31  ;;  %v256_v41 = vsub.s32 (!%p370_p6), 0, %v255_v40 }
  0x34   : > { %v244_v32 = vld [vmem:[#allocation3] sm:$0x1] (!%p370_p6) }
  0x35   : > { %v245_v34 = vmul.f32 (!%p370_p6), 0.03125, %v244_v32  ;;  %v246_v35 = vmul.f32 (!%p370_p6), %v243_v33, %v243_v33  ;;  %v257_v42 = vrot.slane (!%p370_p6), %v243_v33, %v256_v41 }
  0x37   : > { %v247_v36 = vsub.f32 %v245_v34, %v246_v35  ;;  %v259_v49 = vsub.f32 %v238_v43, %v257_v42  ;;  %v260_v51 = vsub.f32 %v239_v45, %v257_v42  ;;  %v261_v52 = vsub.f32 %v240_v46, %v257_v42 }
  0x38   : > { %v262_v53 = vsub.f32 %v241_v47, %v257_v42 }
  0x39   : > { %v248_v38 = vmax.f32 %v247_v36, 0.0 }
  0x3b   : > { %v249_v39 = vadd.f32 1e-05, %v248_v38 }
  0x3d   : > { %402 = vrsqrt.f32 %v249_v39 }
  0x47   : > { %v403_v48 = vpop.eup %402 }
  0x48   : > { %v252_v50 = vmul.f32 %v403_v48, %v251_v44 }
  0x4a   : > { %v267_v54 = vrot.slane %v252_v50, %v256_v41 }
  0x4c   : > { %v269_v56 = vmul.f32 %v267_v54, %v259_v49  ;;  %v270_v57 = vmul.f32 %v267_v54, %v260_v51  ;;  %v271_v58 = vmul.f32 %v267_v54, %v261_v52  ;;  %v272_v59 = vmul.f32 %v267_v54, %v262_v53 }
  0x4e   : > { %v280_v60 = vadd.f32 %v371_v55, %v269_v56  ;;  %v281_v61 = vadd.f32 %v371_v55, %v270_v57  ;;  %v282_v62 = vadd.f32 %v371_v55, %v271_v58  ;;  %v283_v63 = vadd.f32 %v371_v55, %v272_v59 }
  0x50   : > { %v284_v0 = vmax.f32 %v280_v60, 0.0  ;;  %v285_v1 = vmax.f32 %v281_v61, 0.0  ;;  %v286_v2 = vmax.f32 %v282_v62, 0.0  ;;  %v287_v3 = vmax.f32 %v283_v63, 0.0 }
  0x52   : > { %288 = vst [vmem:[%s526_s3] sm:$0xff] %v284_v0  ;;  %289 = vst [vmem:[%s526_s3 + $0x8] sm:$0xff] %v285_v1 }
  0x53   : > { %290 = vst [vmem:[%s526_s3 + $0x10] sm:$0xff] %v286_v2  ;;  %291 = vst [vmem:[%s526_s3 + $0x18] sm:$0xff] %v287_v3 }
  0x54 PF: > { %s13_s14 = sadd.s32 1, %s426_s14   ;;  %s527_s12 = smov %s422_s13 }
  0x55   : > { %p10_p7 = scmp.ge.s32.totalorder %s13_s14, 4   ;;  %s528_s13 = smov %s530_s15 }
  0x57   :  { %12 = sbr.rel (!%p10_p7) target bundleno = 2 (0x2), region = 74 }

// kernel: dcgan_generator.9
= control target key start
LH: loop header
LB: loop body
LE: loop exit
PB: predicated region body
PF: predicated region fallthrough
CT: control target
= control target key end

     0   :  { %v1335_v3 = vmov 0   ;;  %s1769_s1 = inlined_call_operand.vmem [shape: bf16[1,128,2048], index: 1, kind: input, shape index: {}]   ;;  %s1770_s0 = inlined_call_operand.vmem [shape: bf16[1,2,128], index: 0, kind: input, shape index: {}]   ;;  %s1771_s2 = inlined_call_operand.vmem [shape: f32[1,2,2048], index: 2, kind: output, shape index: {}]  }
   0x1   :  { %v13_v0 = vld [vmem:[%s1769_s1] sm:$0xff]  ;;  %v14_v2 = vld [vmem:[%s1769_s1 + $0x8] sm:$0xff]  ;;  %813 = vmatprep.mubr.bf16.mxu0 %v1335_v3  ;;  %854 = vmatprep.mubr.bf16.mxu1 %v1335_v3  ;;  %v15_v63 = vld [vmem:[%s1769_s1 + $0x10] sm:$0xff] }
   0x2   :  { %v21_v1 = vld [vmem:[%s1769_s1 + $0x40] sm:$0xff]  ;;  %v22_v5 = vld [vmem:[%s1769_s1 + $0x48] sm:$0xff] }
   0x3   :  { %v1206_v4 = vcombine.high %v13_v0, %v21_v1  ;;  %v1205_v6 = vcombine.low %v13_v0, %v21_v1  ;;  %v29_v7 = vld [vmem:[%s1769_s1 + $0x80] sm:$0xff]  ;;  %v1208_v9 = vcombine.high %v14_v2, %v22_v5  ;;  %v1207_v10 = vcombine.low %v14_v2, %v22_v5  ;;  %v30_v12 = vld [vmem:[%s1769_s1 + $0x88] sm:$0xff]  ;;  %v23_v0 = vld [vmem:[%s1769_s1 + $0x50] sm:$0xff] }
   0x4   :  { %v37_v8 = vld [vmem:[%s1769_s1 + $0xc0] sm:$0xff]  ;;  %v38_v13 = vld [vmem:[%s1769_s1 + $0xc8] sm:$0xff]  ;;  %v16_v1 = vld [vmem:[%s1769_s1 + $0x18] sm:$0xff] }
   0x5   :  { %v1222_v11 = vcombine.high %v29_v7, %v37_v8  ;;  %v45_v14 = vld [vmem:[%s1769_s1 + $0x100] sm:$0xff]  ;;  %781 = vmatprep.subr.bf16.mxu0 %v1206_v4  ;;  %v1224_v15 = vcombine.high %v30_v12, %v38_v13  ;;  %v46_v17 = vld [vmem:[%s1769_s1 + $0x108] sm:$0xff]  ;;  %822 = vmatprep.subr.bf16.mxu1 %v1208_v9  ;;  %v1221_v19 = vcombine.low %v29_v7, %v37_v8  ;;  %v24_v2 = vld [vmem:[%s1769_s1 + $0x58] sm:$0xff] }
   0x6   :  { %v53_v16 = vld [vmem:[%s1769_s1 + $0x140] sm:$0xff]  ;;  %v54_v18 = vld [vmem:[%s1769_s1 + $0x148] sm:$0xff]  ;;  %782 = vmatpush1.bf16.msra.mxu0 %v1205_v6  ;;  %823 = vmatpush1.bf16.msra.mxu1 %v1207_v10  ;;  %v1223_v20 = vcombine.low %v30_v12, %v38_v13  ;;  %v1210_v6 = vcombine.high %v15_v63, %v23_v0  ;;  %v1212_v7 = vcombine.high %v16_v1, %v24_v2  ;;  %v31_v8 = vld [vmem:[%s1769_s1 + $0x90] sm:$0xff] }
   0x7   :  { %783 = vmatprep.subr.bf16.mxu0 %v1222_v11  ;;  %v1238_v21 = vcombine.high %v45_v14, %v53_v16  ;;  %824 = vmatprep.subr.bf16.mxu1 %v1224_v15  ;;  %v1240_v22 = vcombine.high %v46_v17, %v54_v18  ;;  %v61_v23 = vld [vmem:[%s1769_s1 + $0x180] sm:$0xff]  ;;  %v62_v25 = vld [vmem:[%s1769_s1 + $0x188] sm:$0xff]  ;;  %v1237_v27 = vcombine.low %v45_v14, %v53_v16  ;;  %v39_v9 = vld [vmem:[%s1769_s1 + $0xd0] sm:$0xff] }
   0x8   :  { %v69_v24 = vld [vmem:[%s1769_s1 + $0x1c0] sm:$0xff]  ;;  %v70_v26 = vld [vmem:[%s1769_s1 + $0x1c8] sm:$0xff]  ;;  %v1239_v28 = vcombine.low %v46_v17, %v54_v18  ;;  %v32_v10 = vld [vmem:[%s1769_s1 + $0x98] sm:$0xff]  ;;  %v1209_v13 = vcombine.low %v15_v63, %v23_v0  ;;  %v1211_v14 = vcombine.low %v16_v1, %v24_v2  ;;  %v1226_v15 = vcombine.high %v31_v8, %v39_v9 }
   0x9   :  { %v1254_v29 = vcombine.high %v61_v23, %v69_v24  ;;  %v1256_v30 = vcombine.high %v62_v25, %v70_v26  ;;  %v77_v31 = vld [vmem:[%s1769_s1 + $0x200] sm:$0xff]  ;;  %v78_v33 = vld [vmem:[%s1769_s1 + $0x208] sm:$0xff]  ;;  %v1253_v35 = vcombine.low %v61_v23, %v69_v24  ;;  %v1255_v36 = vcombine.low %v62_v25, %v70_v26  ;;  %v40_v11 = vld [vmem:[%s1769_s1 + $0xd8] sm:$0xff] }
   0xa   :  { %784 = vmatpush1.bf16.msra.mxu0 %v1221_v19  ;;  %825 = vmatpush1.bf16.msra.mxu1 %v1223_v20  ;;  %v85_v32 = vld [vmem:[%s1769_s1 + $0x240] sm:$0xff]  ;;  %v86_v34 = vld [vmem:[%s1769_s1 + $0x248] sm:$0xff]  ;;  %v1228_v16 = vcombine.high %v32_v10, %v40_v11  ;;  %v47_v17 = vld [vmem:[%s1769_s1 + $0x110] sm:$0xff] }
   0xb   :  { %785 = vmatprep.subr.bf16.mxu0 %v1238_v21  ;;  %826 = vmatprep.subr.bf16.mxu1 %v1240_v22  ;;  %v1270_v37 = vcombine.high %v77_v31, %v85_v32  ;;  %v1272_v38 = vcombine.high %v78_v33, %v86_v34  ;;  %v93_v39 = vld [vmem:[%s1769_s1 + $0x280] sm:$0xff]  ;;  %v94_v41 = vld [vmem:[%s1769_s1 + $0x288] sm:$0xff]  ;;  %v1269_v43 = vcombine.low %v77_v31, %v85_v32  ;;  %v55_v18 = vld [vmem:[%s1769_s1 + $0x150] sm:$0xff] }
   0xc   :  { %v101_v40 = vld [vmem:[%s1769_s1 + $0x2c0] sm:$0xff]  ;;  %v102_v42 = vld [vmem:[%s1769_s1 + $0x2c8] sm:$0xff]  ;;  %v1271_v44 = vcombine.low %v78_v33, %v86_v34  ;;  %v48_v19 = vld [vmem:[%s1769_s1 + $0x118] sm:$0xff]  ;;  %v1225_v21 = vcombine.low %v31_v8, %v39_v9  ;;  %v1227_v22 = vcombine.low %v32_v10, %v40_v11  ;;  %v1242_v23 = vcombine.high %v47_v17, %v55_v18 }
   0xd   :  { %v1286_v45 = vcombine.high %v93_v39, %v101_v40  ;;  %v1288_v46 = vcombine.high %v94_v41, %v102_v42  ;;  %v109_v47 = vld [vmem:[%s1769_s1 + $0x300] sm:$0xff]  ;;  %v110_v49 = vld [vmem:[%s1769_s1 + $0x308] sm:$0xff]  ;;  %v1285_v51 = vcombine.low %v93_v39, %v101_v40  ;;  %v1287_v52 = vcombine.low %v94_v41, %v102_v42  ;;  %v56_v20 = vld [vmem:[%s1769_s1 + $0x158] sm:$0xff] }
   0xe   :  { %786 = vmatpush1.bf16.msra.mxu0 %v1237_v27  ;;  %827 = vmatpush1.bf16.msra.mxu1 %v1239_v28  ;;  %v117_v48 = vld [vmem:[%s1769_s1 + $0x340] sm:$0xff]  ;;  %v118_v50 = vld [vmem:[%s1769_s1 + $0x348] sm:$0xff]  ;;  %v1244_v24 = vcombine.high %v48_v19, %v56_v20  ;;  %v63_v25 = vld [vmem:[%s1769_s1 + $0x190] sm:$0xff] }
   0xf   :  { %787 = vmatprep.subr.bf16.mxu0 %v1254_v29  ;;  %828 = vmatprep.subr.bf16.mxu1 %v1256_v30  ;;  %v1302_v53 = vcombine.high %v109_v47, %v117_v48  ;;  %v1304_v54 = vcombine.high %v110_v49, %v118_v50  ;;  %v125_v55 = vld [vmem:[%s1769_s1 + $0x380] sm:$0xff]  ;;  %v126_v57 = vld [vmem:[%s1769_s1 + $0x388] sm:$0xff]  ;;  %v1301_v59 = vcombine.low %v109_v47, %v117_v48  ;;  %v71_v26 = vld [vmem:[%s1769_s1 + $0x1d0] sm:$0xff] }
  0x10   :  { %v133_v56 = vld [vmem:[%s1769_s1 + $0x3c0] sm:$0xff]  ;;  %v134_v58 = vld [vmem:[%s1769_s1 + $0x3c8] sm:$0xff]  ;;  %v1303_v60 = vcombine.low %v110_v49, %v118_v50  ;;  %v64_v27 = vld [vmem:[%s1769_s1 + $0x198] sm:$0xff]  ;;  %v1241_v29 = vcombine.low %v47_v17, %v55_v18  ;;  %v1243_v30 = vcombine.low %v48_v19, %v56_v20  ;;  %v1258_v31 = vcombine.high %v63_v25, %v71_v26 }
  0x11   :  { %v1318_v61 = vcombine.high %v125_v55, %v133_v56  ;;  %v1320_v62 = vcombine.high %v126_v57, %v134_v58  ;;  %v1317_v4 = vcombine.low %v125_v55, %v133_v56  ;;  %v1319_v5 = vcombine.low %v126_v57, %v134_v58  ;;  %v1477_v12 = vld [vmem:[%s1770_s0] sm:$0x1]  ;;  %v72_v28 = vld [vmem:[%s1769_s1 + $0x1d8] sm:$0xff]  ;;  %v79_v33 = vld [vmem:[%s1769_s1 + $0x210] sm:$0xff] }
  0x12   :  { %788 = vmatpush1.bf16.msra.mxu0 %v1253_v35  ;;  %829 = vmatpush1.bf16.msra.mxu1 %v1255_v36  ;;  %v1260_v32 = vcombine.high %v64_v27, %v72_v28  ;;  %v87_v34 = vld [vmem:[%s1769_s1 + $0x250] sm:$0xff]  ;;  %v80_v35 = vld [vmem:[%s1769_s1 + $0x218] sm:$0xff]  ;;  %v17_v1 = vld [vmem:[%s1769_s1 + $0x20] sm:$0xff] }
  0x13   :  { %789 = vmatprep.subr.bf16.mxu0 %v1270_v37  ;;  %830 = vmatprep.subr.bf16.mxu1 %v1272_v38  ;;  %v88_v36 = vld [vmem:[%s1769_s1 + $0x258] sm:$0xff]  ;;  %v1257_v37 = vcombine.low %v63_v25, %v71_v26  ;;  %v1259_v38 = vcombine.low %v64_v27, %v72_v28  ;;  %v1274_v39 = vcombine.high %v79_v33, %v87_v34  ;;  %v95_v41 = vld [vmem:[%s1769_s1 + $0x290] sm:$0xff]  ;;  %v25_v2 = vld [vmem:[%s1769_s1 + $0x60] sm:$0xff] }
  0x14   :  { %v1276_v40 = vcombine.high %v80_v35, %v88_v36  ;;  %v103_v42 = vld [vmem:[%s1769_s1 + $0x2d0] sm:$0xff]  ;;  %v1214_v8 = vcombine.high %v17_v1, %v25_v2  ;;  %v33_v10 = vld [vmem:[%s1769_s1 + $0xa0] sm:$0xff] }
  0x15   :  { %v1290_v47 = vcombine.high %v95_v41, %v103_v42  ;;  %v111_v49 = vld [vmem:[%s1769_s1 + $0x310] sm:$0xff]  ;;  %v41_v11 = vld [vmem:[%s1769_s1 + $0xe0] sm:$0xff] }
  0x16   :  { %790 = vmatpush1.bf16.msra.mxu0 %v1269_v43  ;;  %831 = vmatpush1.bf16.msra.mxu1 %v1271_v44  ;;  %v96_v43 = vld [vmem:[%s1769_s1 + $0x298] sm:$0xff]  ;;  %v119_v50 = vld [vmem:[%s1769_s1 + $0x350] sm:$0xff]  ;;  %v1230_v17 = vcombine.high %v33_v10, %v41_v11  ;;  %v49_v19 = vld [vmem:[%s1769_s1 + $0x120] sm:$0xff] }
  0x17   :  { %791 = vmatprep.subr.bf16.mxu0 %v1286_v45  ;;  %832 = vmatprep.subr.bf16.mxu1 %v1288_v46  ;;  %v104_v44 = vld [vmem:[%s1769_s1 + $0x2d8] sm:$0xff]  ;;  %v1273_v45 = vcombine.low %v79_v33, %v87_v34  ;;  %v1275_v46 = vcombine.low %v80_v35, %v88_v36  ;;  %v1306_v55 = vcombine.high %v111_v49, %v119_v50  ;;  %v127_v57 = vld [vmem:[%s1769_s1 + $0x390] sm:$0xff]  ;;  %v57_v20 = vld [vmem:[%s1769_s1 + $0x160] sm:$0xff] }
  0x18   :  { %v1292_v48 = vcombine.high %v96_v43, %v104_v44  ;;  %v135_v58 = vld [vmem:[%s1769_s1 + $0x3d0] sm:$0xff]  ;;  %v1246_v25 = vcombine.high %v49_v19, %v57_v20  ;;  %v65_v27 = vld [vmem:[%s1769_s1 + $0x1a0] sm:$0xff] }
  0x19   :  { %v1322_v63 = vcombine.high %v127_v57, %v135_v58  ;;  %v73_v28 = vld [vmem:[%s1769_s1 + $0x1e0] sm:$0xff] }
  0x1a   :  { %792 = vmatpush1.bf16.msra.mxu0 %v1285_v51  ;;  %833 = vmatpush1.bf16.msra.mxu1 %v1287_v52  ;;  %v112_v51 = vld [vmem:[%s1769_s1 + $0x318] sm:$0xff]  ;;  %v1262_v33 = vcombine.high %v65_v27, %v73_v28  ;;  %v81_v35 = vld [vmem:[%s1769_s1 + $0x220] sm:$0xff] }
  0x1b   :  { %793 = vmatprep.subr.bf16.mxu0 %v1302_v53  ;;  %834 = vmatprep.subr.bf16.mxu1 %v1304_v54  ;;  %v120_v52 = vld [vmem:[%s1769_s1 + $0x358] sm:$0xff]  ;;  %v1289_v53 = vcombine.low %v95_v41, %v103_v42  ;;  %v1291_v54 = vcombine.low %v96_v43, %v104_v44  ;;  %v89_v36 = vld [vmem:[%s1769_s1 + $0x260] sm:$0xff] }
  0x1c   :  { %v1308_v56 = vcombine.high %v112_v51, %v120_v52  ;;  %v1278_v41 = vcombine.high %v81_v35, %v89_v36  ;;  %v97_v43 = vld [vmem:[%s1769_s1 + $0x2a0] sm:$0xff] }
  0x1d   :  { %v105_v44 = vld [vmem:[%s1769_s1 + $0x2e0] sm:$0xff] }
  0x1e   :  { %794 = vmatpush1.bf16.msra.mxu0 %v1301_v59  ;;  %835 = vmatpush1.bf16.msra.mxu1 %v1303_v60  ;;  %v128_v59 = vld [vmem:[%s1769_s1 + $0x398] sm:$0xff] }
  0x1f   :  { %795 = vmatprep.subr.bf16.mxu0 %v1318_v61  ;;  %836 = vmatprep.subr.bf16.mxu1 %v1320_v62  ;;  %v136_v60 = vld [vmem:[%s1769_s1 + $0x3d8] sm:$0xff]  ;;  %v1305_v61 = vcombine.low %v111_v49, %v119_v50  ;;  %v1307_v62 = vcombine.low %v112_v51, %v120_v52  ;;  %v1294_v49 = vcombine.high %v97_v43, %v105_v44  ;;  %v113_v51 = vld [vmem:[%s1769_s1 + $0x320] sm:$0xff] }
  0x20   :  { %v1324_v0 = vcombine.high %v128_v59, %v136_v60  ;;  %v121_v52 = vld [vmem:[%s1769_s1 + $0x360] sm:$0xff] }
  0x22   :  { %796 = vmatpush1.bf16.msra.mxu0 %v1317_v4  ;;  %837 = vmatpush1.bf16.msra.mxu1 %v1319_v5  ;;  %v18_v4 = vld [vmem:[%s1769_s1 + $0x28] sm:$0xff] }
  0x23   :  { %863 = vmatprep.subr.bf16.mxu0 %v1210_v6  ;;  %904 = vmatprep.subr.bf16.mxu1 %v1212_v7  ;;  %v26_v5 = vld [vmem:[%s1769_s1 + $0x68] sm:$0xff]  ;;  %v1321_v6 = vcombine.low %v127_v57, %v135_v58  ;;  %v1323_v7 = vcombine.low %v128_v59, %v136_v60  ;;  %v1310_v57 = vcombine.high %v113_v51, %v121_v52  ;;  %v129_v59 = vld [vmem:[%s1769_s1 + $0x3a0] sm:$0xff] }
  0x24   :  { %v1216_v9 = vcombine.high %v18_v4, %v26_v5  ;;  %v137_v60 = vld [vmem:[%s1769_s1 + $0x3e0] sm:$0xff] }
  0x25   :  { %814 = vmatmul.mubr.bf16.vlgmr.msra.gmra.mrb[0].mxu0 %v1477_v12  ;;  %855 = vmatmul.mubr.bf16.vlgmr.msra.gmra.mrb[0].mxu1 %v1477_v12 }
  0x26   :  { %864 = vmatpush1.bf16.msra.mxu0 %v1209_v13  ;;  %905 = vmatpush1.bf16.msra.mxu1 %v1211_v14  ;;  %v34_v13 = vld [vmem:[%s1769_s1 + $0xa8] sm:$0xff] }
  0x27   :  { %865 = vmatprep.subr.bf16.mxu0 %v1226_v15  ;;  %906 = vmatprep.subr.bf16.mxu1 %v1228_v16  ;;  %v42_v14 = vld [vmem:[%s1769_s1 + $0xe8] sm:$0xff]  ;;  %v1213_v15 = vcombine.low %v17_v1, %v25_v2  ;;  %v1215_v16 = vcombine.low %v18_v4, %v26_v5  ;;  %v1326_v1 = vcombine.high %v129_v59, %v137_v60  ;;  %v19_v4 = vld [vmem:[%s1769_s1 + $0x30] sm:$0xff] }
  0x28   :  { %895 = vmatprep.mubr.bf16.mxu0 %v1335_v3  ;;  %936 = vmatprep.mubr.bf16.mxu1 %v1335_v3  ;;  %v1232_v18 = vcombine.high %v34_v13, %v42_v14  ;;  %v27_v5 = vld [vmem:[%s1769_s1 + $0x70] sm:$0xff] }
  0x2a   :  { %866 = vmatpush1.bf16.msra.mxu0 %v1225_v21  ;;  %907 = vmatpush1.bf16.msra.mxu1 %v1227_v22  ;;  %v50_v21 = vld [vmem:[%s1769_s1 + $0x128] sm:$0xff] }
  0x2b   :  { %867 = vmatprep.subr.bf16.mxu0 %v1242_v23  ;;  %908 = vmatprep.subr.bf16.mxu1 %v1244_v24  ;;  %v58_v22 = vld [vmem:[%s1769_s1 + $0x168] sm:$0xff]  ;;  %v1229_v23 = vcombine.low %v33_v10, %v41_v11  ;;  %v1231_v24 = vcombine.low %v34_v13, %v42_v14  ;;  %v1218_v10 = vcombine.high %v19_v4, %v27_v5  ;;  %v35_v13 = vld [vmem:[%s1769_s1 + $0xb0] sm:$0xff] }
  0x2c   :  { %v1248_v26 = vcombine.high %v50_v21, %v58_v22  ;;  %v43_v14 = vld [vmem:[%s1769_s1 + $0xf0] sm:$0xff] }
  0x2e   :  { %868 = vmatpush1.bf16.msra.mxu0 %v1241_v29  ;;  %909 = vmatpush1.bf16.msra.mxu1 %v1243_v30  ;;  %v66_v29 = vld [vmem:[%s1769_s1 + $0x1a8] sm:$0xff] }
  0x2f   :  { %869 = vmatprep.subr.bf16.mxu0 %v1258_v31  ;;  %910 = vmatprep.subr.bf16.mxu1 %v1260_v32  ;;  %v74_v30 = vld [vmem:[%s1769_s1 + $0x1e8] sm:$0xff]  ;;  %v1245_v31 = vcombine.low %v49_v19, %v57_v20  ;;  %v1247_v32 = vcombine.low %v50_v21, %v58_v22  ;;  %v1234_v19 = vcombine.high %v35_v13, %v43_v14  ;;  %v51_v21 = vld [vmem:[%s1769_s1 + $0x130] sm:$0xff] }
  0x30   :  { %v1264_v34 = vcombine.high %v66_v29, %v74_v30  ;;  %v59_v22 = vld [vmem:[%s1769_s1 + $0x170] sm:$0xff] }
  0x32   :  { %870 = vmatpush1.bf16.msra.mxu0 %v1257_v37  ;;  %911 = vmatpush1.bf16.msra.mxu1 %v1259_v38  ;;  %v82_v37 = vld [vmem:[%s1769_s1 + $0x228] sm:$0xff] }
  0x33   :  { %871 = vmatprep.subr.bf16.mxu0 %v1274_v39  ;;  %912 = vmatprep.subr.bf16.mxu1 %v1276_v40  ;;  %v90_v38 = vld [vmem:[%s1769_s1 + $0x268] sm:$0xff]  ;;  %v1261_v39 = vcombine.low %v65_v27, %v73_v28  ;;  %v1263_v40 = vcombine.low %v66_v29, %v74_v30  ;;  %v1250_v27 = vcombine.high %v51_v21, %v59_v22  ;;  %v67_v29 = vld [vmem:[%s1769_s1 + $0x1b0] sm:$0xff] }
  0x34   :  { %v1280_v42 = vcombine.high %v82_v37, %v90_v38  ;;  %v75_v30 = vld [vmem:[%s1769_s1 + $0x1f0] sm:$0xff] }
  0x36   :  { %872 = vmatpush1.bf16.msra.mxu0 %v1273_v45  ;;  %913 = vmatpush1.bf16.msra.mxu1 %v1275_v46  ;;  %v98_v45 = vld [vmem:[%s1769_s1 + $0x2a8] sm:$0xff] }
  0x37   :  { %873 = vmatprep.subr.bf16.mxu0 %v1290_v47  ;;  %914 = vmatprep.subr.bf16.mxu1 %v1292_v48  ;;  %v106_v46 = vld [vmem:[%s1769_s1 + $0x2e8] sm:$0xff]  ;;  %v1277_v47 = vcombine.low %v81_v35, %v89_v36  ;;  %v1279_v48 = vcombine.low %v82_v37, %v90_v38  ;;  %v1266_v35 = vcombine.high %v67_v29, %v75_v30  ;;  %v83_v37 = vld [vmem:[%s1769_s1 + $0x230] sm:$0xff] }
  0x38   :  { %v1296_v50 = vcombine.high %v98_v45, %v106_v46  ;;  %v91_v38 = vld [vmem:[%s1769_s1 + $0x270] sm:$0xff] }
  0x3a   :  { %874 = vmatpush1.bf16.msra.mxu0 %v1289_v53  ;;  %915 = vmatpush1.bf16.msra.mxu1 %v1291_v54  ;;  %v114_v53 = vld [vmem:[%s1769_s1 + $0x328] sm:$0xff] }
  0x3b   :  { %875 = vmatprep.subr.bf16.mxu0 %v1306_v55  ;;  %916 = vmatprep.subr.bf16.mxu1 %v1308_v56  ;;  %v122_v54 = vld [vmem:[%s1769_s1 + $0x368] sm:$0xff]  ;;  %v1293_v55 = vcombine.low %v97_v43, %v105_v44  ;;  %v1295_v56 = vcombine.low %v98_v45, %v106_v46  ;;  %v99_v44 = vld [vmem:[%s1769_s1 + $0x2b0] sm:$0xff]  ;;  %v100_v46 = vld [vmem:[%s1769_s1 + $0x2b8] sm:$0xff] }
  0x3c   :  { %v1312_v58 = vcombine.high %v114_v53, %v122_v54  ;;  %v107_v45 = vld [vmem:[%s1769_s1 + $0x2f0] sm:$0xff] }
  0x3e   :  { %876 = vmatpush1.bf16.msra.mxu0 %v1305_v61  ;;  %917 = vmatpush1.bf16.msra.mxu1 %v1307_v62  ;;  %v130_v61 = vld [vmem:[%s1769_s1 + $0x3a8] sm:$0xff] }
  0x3f   :  { %877 = vmatprep.subr.bf16.mxu0 %v1322_v63  ;;  %918 = vmatprep.subr.bf16.mxu1 %v1324_v0  ;;  %v138_v62 = vld [vmem:[%s1769_s1 + $0x3e8] sm:$0xff]  ;;  %v1309_v63 = vcombine.low %v113_v51, %v121_v52  ;;  %v1311_v0 = vcombine.low %v114_v53, %v122_v54  ;;  %v115_v52 = vld [vmem:[%s1769_s1 + $0x330] sm:$0xff]  ;;  %v116_v54 = vld [vmem:[%s1769_s1 + $0x338] sm:$0xff] }
  0x40   :  { %v1328_v2 = vcombine.high %v130_v61, %v138_v62  ;;  %v123_v53 = vld [vmem:[%s1769_s1 + $0x370] sm:$0xff] }
  0x42   :  { %878 = vmatpush1.bf16.msra.mxu0 %v1321_v6  ;;  %919 = vmatpush1.bf16.msra.mxu1 %v1323_v7  ;;  %v20_v6 = vld [vmem:[%s1769_s1 + $0x38] sm:$0xff] }
  0x43   :  { %945 = vmatprep.subr.bf16.mxu0 %v1214_v8  ;;  %986 = vmatprep.subr.bf16.mxu1 %v1216_v9  ;;  %v28_v7 = vld [vmem:[%s1769_s1 + $0x78] sm:$0xff]  ;;  %v1325_v8 = vcombine.low %v129_v59, %v137_v60  ;;  %v1327_v9 = vcombine.low %v130_v61, %v138_v62  ;;  %v131_v60 = vld [vmem:[%s1769_s1 + $0x3b0] sm:$0xff] }
  0x44   :  { %v1220_v11 = vcombine.high %v20_v6, %v28_v7  ;;  %v139_v61 = vld [vmem:[%s1769_s1 + $0x3f0] sm:$0xff]  ;;  %v132_v62 = vld [vmem:[%s1769_s1 + $0x3b8] sm:$0xff] }
  0x45   :  { %896 = vmatmul.mubr.bf16.vlgmr.msra.gmra.mrb[4].mxu0 %v1477_v12  ;;  %937 = vmatmul.mubr.bf16.vlgmr.msra.gmra.mrb[4].mxu1 %v1477_v12 }
  0x46   :  { %946 = vmatpush1.bf16.msra.mxu0 %v1213_v15  ;;  %987 = vmatpush1.bf16.msra.mxu1 %v1215_v16  ;;  %v36_v15 = vld [vmem:[%s1769_s1 + $0xb8] sm:$0xff] }
  0x47   :  { %947 = vmatprep.subr.bf16.mxu0 %v1230_v17  ;;  %988 = vmatprep.subr.bf16.mxu1 %v1232_v18  ;;  %v44_v16 = vld [vmem:[%s1769_s1 + $0xf8] sm:$0xff]  ;;  %v1217_v17 = vcombine.low %v19_v4, %v27_v5  ;;  %v1219_v18 = vcombine.low %v20_v6, %v28_v7  ;;  %v1329_v5 = vcombine.low %v131_v60, %v139_v61  ;;  %v1336_v7 = vmov 1983009808  }
  0x48   :  { %977 = vmatprep.mubr.bf16.mxu0 %v1335_v3  ;;  %1018 = vmatprep.mubr.bf16.mxu1 %v1335_v3  ;;  %v1236_v20 = vcombine.high %v36_v15, %v44_v16 }
  0x4a   :  { %948 = vmatpush1.bf16.msra.mxu0 %v1229_v23  ;;  %989 = vmatpush1.bf16.msra.mxu1 %v1231_v24  ;;  %v52_v23 = vld [vmem:[%s1769_s1 + $0x138] sm:$0xff] }
  0x4b   :  { %949 = vmatprep.subr.bf16.mxu0 %v1246_v25  ;;  %990 = vmatprep.subr.bf16.mxu1 %v1248_v26  ;;  %v60_v24 = vld [vmem:[%s1769_s1 + $0x178] sm:$0xff]  ;;  %v1233_v25 = vcombine.low %v35_v13, %v43_v14  ;;  %v1235_v26 = vcombine.low %v36_v15, %v44_v16 }
  0x4c   :  { %v1252_v28 = vcombine.high %v52_v23, %v60_v24 }
  0x4e   :  { %950 = vmatpush1.bf16.msra.mxu0 %v1245_v31  ;;  %991 = vmatpush1.bf16.msra.mxu1 %v1247_v32  ;;  %v68_v31 = vld [vmem:[%s1769_s1 + $0x1b8] sm:$0xff] }
  0x4f   :  { %951 = vmatprep.subr.bf16.mxu0 %v1262_v33  ;;  %992 = vmatprep.subr.bf16.mxu1 %v1264_v34  ;;  %v76_v32 = vld [vmem:[%s1769_s1 + $0x1f8] sm:$0xff]  ;;  %v1249_v33 = vcombine.low %v51_v21, %v59_v22  ;;  %v1251_v34 = vcombine.low %v52_v23, %v60_v24 }
  0x50   :  { %v1268_v36 = vcombine.high %v68_v31, %v76_v32 }
  0x52   :  { %952 = vmatpush1.bf16.msra.mxu0 %v1261_v39  ;;  %993 = vmatpush1.bf16.msra.mxu1 %v1263_v40  ;;  %v92_v39 = vld [vmem:[%s1769_s1 + $0x278] sm:$0xff]  ;;  %v1265_v40 = vcombine.low %v67_v29, %v75_v30 }
  0x53   :  { %953 = vmatprep.subr.bf16.mxu0 %v1278_v41  ;;  %994 = vmatprep.subr.bf16.mxu1 %v1280_v42  ;;  %v1267_v41 = vcombine.low %v68_v31, %v76_v32  ;;  %v1282_v42 = vcombine.high %v83_v37, %v91_v38 }
  0x56   :  { %954 = vmatpush1.bf16.msra.mxu0 %v1277_v47  ;;  %995 = vmatpush1.bf16.msra.mxu1 %v1279_v48  ;;  %v108_v47 = vld [vmem:[%s1769_s1 + $0x2f8] sm:$0xff]  ;;  %v1281_v48 = vcombine.low %v83_v37, %v91_v38 }
  0x57   :  { %955 = vmatprep.subr.bf16.mxu0 %v1294_v49  ;;  %996 = vmatprep.subr.bf16.mxu1 %v1296_v50  ;;  %v1298_v50 = vcombine.high %v99_v44, %v107_v45  ;;  %v1300_v51 = vcombine.high %v100_v46, %v108_v47 }
  0x5a   :  { %956 = vmatpush1.bf16.msra.mxu0 %v1293_v55  ;;  %997 = vmatpush1.bf16.msra.mxu1 %v1295_v56  ;;  %v124_v55 = vld [vmem:[%s1769_s1 + $0x378] sm:$0xff]  ;;  %v1297_v56 = vcombine.low %v99_v44, %v107_v45 }
  0x5b   :  { %957 = vmatprep.subr.bf16.mxu0 %v1310_v57  ;;  %998 = vmatprep.subr.bf16.mxu1 %v1312_v58  ;;  %v1299_v57 = vcombine.low %v100_v46, %v108_v47  ;;  %v1314_v58 = vcombine.high %v115_v52, %v123_v53  ;;  %v1316_v59 = vcombine.high %v116_v54, %v124_v55 }
  0x5e   :  { %958 = vmatpush1.bf16.msra.mxu0 %v1309_v63  ;;  %999 = vmatpush1.bf16.msra.mxu1 %v1311_v0  ;;  %v140_v63 = vld [vmem:[%s1769_s1 + $0x3f8] sm:$0xff]  ;;  %v1313_v0 = vcombine.low %v115_v52, %v123_v53 }
  0x5f   :  { %959 = vmatprep.subr.bf16.mxu0 %v1326_v1  ;;  %1000 = vmatprep.subr.bf16.mxu1 %v1328_v2  ;;  %v1315_v1 = vcombine.low %v116_v54, %v124_v55  ;;  %v1330_v2 = vcombine.high %v131_v60, %v139_v61  ;;  %v1332_v4 = vcombine.high %v132_v62, %v140_v63 }
  0x60   :  { %v1331_v6 = vcombine.low %v132_v62, %v140_v63 }
  0x62   :  { %960 = vmatpush1.bf16.msra.mxu0 %v1325_v8  ;;  %1001 = vmatpush1.bf16.msra.mxu1 %v1327_v9  ;;  %v1128_v8 = vunpack.c.l.s4 %v1336_v7  ;;  %v1130_v9 = vlaneseq }
  0x63   :  { %1027 = vmatprep.subr.bf16.mxu0 %v1218_v10  ;;  %1068 = vmatprep.subr.bf16.mxu1 %v1220_v11 }
  0x64   :  { %v1129_v10 = vunpack.c.0.s8 %v1128_v8  ;;  %v1131_v11 = vshrl.u32 %v1130_v9, 7 }
  0x65   :  { %978 = vmatmul.mubr.bf16.vlgmr.msra.gmra.mrb[8].mxu0 %v1477_v12  ;;  %1019 = vmatmul.mubr.bf16.vlgmr.msra.gmra.mrb[8].mxu1 %v1477_v12 }
  0x66   :  { %1028 = vmatpush1.bf16.msra.mxu0 %v1217_v17  ;;  %1069 = vmatpush1.bf16.msra.mxu1 %v1219_v18  ;;  %v1132_v14 = vsub.s32 %v1129_v10, %v1131_v11 }
  0x67   :  { %1029 = vmatprep.subr.bf16.mxu0 %v1234_v19  ;;  %1070 = vmatprep.subr.bf16.mxu1 %v1236_v20 }
  0x68   :  { %1059 = vmatprep.mubr.bf16.mxu0 %v1335_v3  ;;  %1100 = vmatprep.mubr.bf16.mxu1 %v1335_v3  ;;  %v84_v3 = vld [vmem:[%s1769_s1 + $0x238] sm:$0xff] }
  0x69   :  { %v1284_v43 = vcombine.high %v84_v3, %v92_v39  ;;  %v1283_v49 = vcombine.low %v84_v3, %v92_v39 }
  0x6a   :  { %1030 = vmatpush1.bf16.msra.mxu0 %v1233_v25  ;;  %1071 = vmatpush1.bf16.msra.mxu1 %v1235_v26 }
  0x6b   :  { %1031 = vmatprep.subr.bf16.mxu0 %v1250_v27  ;;  %1072 = vmatprep.subr.bf16.mxu1 %v1252_v28 }
  0x6e   :  { %1032 = vmatpush1.bf16.msra.mxu0 %v1249_v33  ;;  %1073 = vmatpush1.bf16.msra.mxu1 %v1251_v34 }
  0x6f   :  { %1033 = vmatprep.subr.bf16.mxu0 %v1266_v35  ;;  %1074 = vmatprep.subr.bf16.mxu1 %v1268_v36 }
  0x72   :  { %1034 = vmatpush1.bf16.msra.mxu0 %v1265_v40  ;;  %1075 = vmatpush1.bf16.msra.mxu1 %v1267_v41 }
  0x73   :  { %1035 = vmatprep.subr.bf16.mxu0 %v1282_v42  ;;  %1076 = vmatprep.subr.bf16.mxu1 %v1284_v43 }
  0x76   :  { %1036 = vmatpush1.bf16.msra.mxu0 %v1281_v48  ;;  %1077 = vmatpush1.bf16.msra.mxu1 %v1283_v49 }
  0x77   :  { %1037 = vmatprep.subr.bf16.mxu0 %v1298_v50  ;;  %1078 = vmatprep.subr.bf16.mxu1 %v1300_v51 }
  0x7a   :  { %1038 = vmatpush1.bf16.msra.mxu0 %v1297_v56  ;;  %1079 = vmatpush1.bf16.msra.mxu1 %v1299_v57 }
  0x7b   :  { %1039 = vmatprep.subr.bf16.mxu0 %v1314_v58  ;;  %1080 = vmatprep.subr.bf16.mxu1 %v1316_v59 }
  0x7e   :  { %1040 = vmatpush1.bf16.msra.mxu0 %v1313_v0  ;;  %1081 = vmatpush1.bf16.msra.mxu1 %v1315_v1 }
  0x7f   :  { %1041 = vmatprep.subr.bf16.mxu0 %v1330_v2  ;;  %1082 = vmatprep.subr.bf16.mxu1 %v1332_v4 }
  0x82   :  { %1042 = vmatpush1.bf16.msra.mxu0 %v1329_v5  ;;  %1083 = vmatpush1.bf16.msra.mxu1 %v1331_v6 }
  0x85   :  { %1060 = vmatmul.mubr.bf16.vlgmr.msra.gmra.mrb[12].mxu0 %v1477_v12  ;;  %1101 = vmatmul.mubr.bf16.vlgmr.msra.gmra.mrb[12].mxu1 %v1477_v12 }
  0xf8   :  { %v815_v13 = vpop.f32.mrb[0].mxu0  ;;  %v856_v15 = vpop.f32.mrb[0].mxu1 }
  0xf9   :  { %v817_v16 = vpop.f32.mrb[1].mxu0  ;;  %v858_v18 = vpop.f32.mrb[1].mxu1 }
  0xfa   :  { %v1125_v17 = vcombine.low %v815_v13, %v817_v16  ;;  %v819_v19 = vpop.f32.mrb[2].mxu0  ;;  %v1126_v20 = vcombine.low %v856_v15, %v858_v18  ;;  %v860_v21 = vpop.f32.mrb[2].mxu1 }
  0xfb   :  { %v820_v22 = vpop.f32.mrb[3].mxu0  ;;  %v861_v24 = vpop.f32.mrb[3].mxu1 }
  0xfc   :  { %v1133_v23 = vrot.slane %v1125_v17, %v1132_v14  ;;  %v1140_v25 = vrot.slane %v1126_v20, %v1132_v14 }
  0xfe   :  { %v1141_v26 = vcombine.low %v1133_v23, %v1140_v25 }
 0x100   :  { %1197 = vst [vmem:[%s1771_s2] sm:$0xff] %v1141_v26 }
 0x118   :  { %v897_v12 = vpop.f32.mrb[4].mxu0  ;;  %v938_v27 = vpop.f32.mrb[4].mxu1 }
 0x119   :  { %v899_v28 = vpop.f32.mrb[5].mxu0  ;;  %v940_v30 = vpop.f32.mrb[5].mxu1 }
 0x11a   :  { %v1142_v29 = vcombine.low %v897_v12, %v899_v28  ;;  %v901_v31 = vpop.f32.mrb[6].mxu0  ;;  %v1143_v32 = vcombine.low %v938_v27, %v940_v30  ;;  %v942_v33 = vpop.f32.mrb[6].mxu1 }
 0x11b   :  { %v902_v34 = vpop.f32.mrb[7].mxu0  ;;  %v943_v36 = vpop.f32.mrb[7].mxu1 }
 0x11c   :  { %v1150_v35 = vrot.slane %v1142_v29, %v1132_v14  ;;  %v1157_v37 = vrot.slane %v1143_v32, %v1132_v14 }
 0x11e   :  { %v1158_v38 = vcombine.low %v1150_v35, %v1157_v37 }
 0x120   :  { %1198 = vst [vmem:[%s1771_s2 + $0x8] sm:$0xff] %v1158_v38 }
 0x138   :  { %v979_v3 = vpop.f32.mrb[8].mxu0  ;;  %v1020_v39 = vpop.f32.mrb[8].mxu1 }
 0x139   :  { %v981_v40 = vpop.f32.mrb[9].mxu0  ;;  %v1022_v42 = vpop.f32.mrb[9].mxu1 }
 0x13a   :  { %v1159_v41 = vcombine.low %v979_v3, %v981_v40  ;;  %v983_v43 = vpop.f32.mrb[10].mxu0  ;;  %v1160_v44 = vcombine.low %v1020_v39, %v1022_v42  ;;  %v1024_v45 = vpop.f32.mrb[10].mxu1 }
 0x13b   :  { %v984_v46 = vpop.f32.mrb[11].mxu0  ;;  %v1025_v48 = vpop.f32.mrb[11].mxu1 }
 0x13c   :  { %v1167_v47 = vrot.slane %v1159_v41, %v1132_v14  ;;  %v1174_v49 = vrot.slane %v1160_v44, %v1132_v14 }
 0x13e   :  { %v1175_v50 = vcombine.low %v1167_v47, %v1174_v49 }
 0x140   :  { %1199 = vst [vmem:[%s1771_s2 + $0x10] sm:$0xff] %v1175_v50 }
 0x158   :  { %v1061_v51 = vpop.f32.mrb[12].mxu0  ;;  %v1102_v52 = vpop.f32.mrb[12].mxu1 }
 0x159   :  { %v1063_v53 = vpop.f32.mrb[13].mxu0  ;;  %v1104_v55 = vpop.f32.mrb[13].mxu1 }
 0x15a   :  { %v1176_v54 = vcombine.low %v1061_v51, %v1063_v53  ;;  %v1065_v56 = vpop.f32.mrb[14].mxu0  ;;  %v1177_v57 = vcombine.low %v1102_v52, %v1104_v55  ;;  %v1106_v58 = vpop.f32.mrb[14].mxu1 }
 0x15b   :  { %v1066_v59 = vpop.f32.mrb[15].mxu0  ;;  %v1107_v61 = vpop.f32.mrb[15].mxu1 }
 0x15c   :  { %v1184_v60 = vrot.slane %v1176_v54, %v1132_v14  ;;  %v1191_v62 = vrot.slane %v1177_v57, %v1132_v14 }
 0x15e   :  { %v1192_v63 = vcombine.low %v1184_v60, %v1191_v62 }
 0x160   :  { %1200 = vst [vmem:[%s1771_s2 + $0x18] sm:$0xff] %v1192_v63 }

// kernel: dcgan_generator.11
= control target key start
LH: loop header
LB: loop body
LE: loop exit
PB: predicated region body
PF: predicated region fallthrough
CT: control target
= control target key end

     0   :  { %s934_s9 = smov 0   ;;  %s936_s10 = smov 0   ;;  %s1009_s0 = inlined_call_operand.vmem [shape: bf16[4,32,512], index: 0, kind: input, shape index: {}]   ;;  %s1010_s1 = inlined_call_operand.vmem [shape: bf16[4,512,128], index: 1, kind: input, shape index: {}]   ;;  %s1011_s2 = inlined_call_operand.vmem [shape: f32[4,32,128], index: 2, kind: output, shape index: {}]  }
   0x1   :  { %s938_s11 = smov 0  }
   0x2 LB: > { %s24_s12 = sadd.s32 1, %s913_s10  ;;  %p719_p0 = scmp.ge.s32.totalorder %s917_s11, 1  ;;  %s917_s11 = sphi %s938_s11, %s12_s11   ;;  %s913_s10 = sphi %s936_s10, %s1013_s10   ;;  %s909_s9 = sphi %s934_s9, %s1012_s9  }
   0x3   : > { %p26_p1 = scmp.ge.s32.totalorder %s24_s12, 4  ;;  %p144_p2 = scmp.lt.s32.totalorder %s917_s11, 5 }
   0x5   : > { %s1015_s12 = smov (%p26_p1, %s24_s12), 0  ;;  %p145_p3 = pnand %p719_p0, %p144_p2 }
   0x6   : > { %p181_p4 = scmp.lt.s32.totalorder (!%p145_p3), %s909_s9, 3 }
   0x7   : > { %148 = sbr.rel (%p145_p3) target bundleno = 280 (0x118), region = 28 }
   0xe   : > { %s1017_s9 = smov (!%p181_p4, %s909_s9), 3 }
   0xf   : > { %s769_s13 = sshll.u32 %s1017_s9, 8  ;;  %s768_s17 = sshll.u32 %s1017_s9, 6 }
  0x10   : > { %s958_s16 = scalar_lea.vmem %s1010_s1, %s769_s13  ;;  %s189_s20 = scalar_lea.vmem %s1009_s0, %s768_s17 }
  0x11   : > { %v851_v0 = vld [vmem:[%s958_s16 + $0x40] sm:$0xff]   ;;  %v855_v4 = vld [vmem:[%s958_s16 + $0x48] sm:$0xff]   ;;  %v859_v8 = vld [vmem:[%s958_s16 + $0x50] sm:$0xff]   ;;  %s770_s21 = sshll.u32 %s1017_s9, 5 }
  0x12   : > { %v852_v1 = vld [vmem:[%s958_s16 + $0xc0] sm:$0xff]   ;;  %771 = vmatprep.subr.bf16.mxu0 %v851_v0  ;;  %v856_v5 = vld [vmem:[%s958_s16 + $0xc8] sm:$0xff]   ;;  %v860_v9 = vld [vmem:[%s958_s16 + $0xd0] sm:$0xff]   ;;  %s204_s24 = scalar_lea.vmem %s1011_s2, %s770_s21 }
  0x13   : > { %v853_v2 = vld [vmem:[%s958_s16] sm:$0xff]   ;;  %799 = vmatprep.subr.bf16.mxu1 %v852_v1  ;;  %v857_v6 = vld [vmem:[%s958_s16 + $0x8] sm:$0xff]   ;;  %v861_v10 = vld [vmem:[%s958_s16 + $0x10] sm:$0xff]  }
  0x14   : > { %v854_v3 = vld [vmem:[%s958_s16 + $0x80] sm:$0xff]   ;;  %772 = vmatpush3.bf16.msra.mxu0 %v853_v2  ;;  %v858_v7 = vld [vmem:[%s958_s16 + $0x88] sm:$0xff]   ;;  %v862_v11 = vld [vmem:[%s958_s16 + $0x90] sm:$0xff]  }
  0x15   : > { %800 = vmatpush3.bf16.msra.mxu1 %v854_v3  ;;  %773 = vmatprep.subr.bf16.mxu0 %v855_v4  ;;  %v863_v12 = vld [vmem:[%s958_s16 + $0x58] sm:$0xff]   ;;  %v867_v16 = vld [vmem:[%s958_s16 + $0x60] sm:$0xff]   ;;  %v871_v20 = vld [vmem:[%s958_s16 + $0x68] sm:$0xff]  }
  0x16   : > { %801 = vmatprep.subr.bf16.mxu1 %v856_v5  ;;  %v864_v13 = vld [vmem:[%s958_s16 + $0xd8] sm:$0xff]   ;;  %v868_v17 = vld [vmem:[%s958_s16 + $0xe0] sm:$0xff]   ;;  %v872_v21 = vld [vmem:[%s958_s16 + $0xe8] sm:$0xff]  }
  0x17   : > { %v865_v14 = vld [vmem:[%s958_s16 + $0x18] sm:$0xff]   ;;  %v869_v18 = vld [vmem:[%s958_s16 + $0x20] sm:$0xff]   ;;  %v873_v22 = vld [vmem:[%s958_s16 + $0x28] sm:$0xff]  }
  0x18   : > { %774 = vmatpush3.bf16.msra.mxu0 %v857_v6  ;;  %v866_v15 = vld [vmem:[%s958_s16 + $0x98] sm:$0xff]   ;;  %v870_v19 = vld [vmem:[%s958_s16 + $0xa0] sm:$0xff]   ;;  %v874_v23 = vld [vmem:[%s958_s16 + $0xa8] sm:$0xff]  }
  0x19   : > { %802 = vmatpush3.bf16.msra.mxu1 %v858_v7  ;;  %775 = vmatprep.subr.bf16.mxu0 %v859_v8  ;;  %v875_v24 = vld [vmem:[%s958_s16 + $0x70] sm:$0xff]   ;;  %v879_v28 = vld [vmem:[%s958_s16 + $0x78] sm:$0xff]  }
  0x1a   : > { %803 = vmatprep.subr.bf16.mxu1 %v860_v9  ;;  %v876_v25 = vld [vmem:[%s958_s16 + $0xf0] sm:$0xff]   ;;  %v880_v29 = vld [vmem:[%s958_s16 + $0xf8] sm:$0xff]  }
  0x1b   : > { %v877_v26 = vld [vmem:[%s958_s16 + $0x30] sm:$0xff]   ;;  %v881_v30 = vld [vmem:[%s958_s16 + $0x38] sm:$0xff]  }
  0x1c   : > { %776 = vmatpush3.bf16.msra.mxu0 %v861_v10  ;;  %v878_v27 = vld [vmem:[%s958_s16 + $0xb0] sm:$0xff]   ;;  %v882_v31 = vld [vmem:[%s958_s16 + $0xb8] sm:$0xff]  }
  0x1d   : > { %804 = vmatpush3.bf16.msra.mxu1 %v862_v11  ;;  %777 = vmatprep.subr.bf16.mxu0 %v863_v12  ;;  %v883_v32 = vld [vmem:[%s189_s20] ss:$16 sps:$4 sm:$0xff]   ;;  %v885_v33 = vld [vmem:[%s189_s20 + $0x4] ss:$16 sps:$4 sm:$0xff]   ;;  %v886_v34 = vld [vmem:[%s189_s20 + $0x8] ss:$16 sps:$4 sm:$0xff]  }
  0x1e   : > { %805 = vmatprep.subr.bf16.mxu1 %v864_v13  ;;  %v888_v35 = vld [vmem:[%s189_s20 + $0xc] ss:$16 sps:$4 sm:$0xff]   ;;  %543 = vmatprep.mubr.bf16.mxu0 %v885_v33  ;;  %v889_v36 = vld [vmem:[%s189_s20 + $0x24] ss:$16 sps:$4 sm:$0xff]   ;;  %v893_v38 = vld [vmem:[%s189_s20 + $0x20] ss:$16 sps:$4 sm:$0xff]  }
  0x1f   : > { %592 = vmatprep.mubr.bf16.mxu1 %v888_v35  ;;  %v891_v37 = vld [vmem:[%s189_s20 + $0x2c] ss:$16 sps:$4 sm:$0xff]   ;;  %v894_v39 = vld [vmem:[%s189_s20 + $0x28] ss:$16 sps:$4 sm:$0xff]  }
  0x20   : > { %778 = vmatpush3.bf16.msra.mxu0 %v865_v14 }
  0x21   : > { %806 = vmatpush3.bf16.msra.mxu1 %v866_v15  ;;  %779 = vmatprep.subr.bf16.mxu0 %v867_v16 }
  0x22   : > { %807 = vmatprep.subr.bf16.mxu1 %v868_v17 }
  0x24   : > { %780 = vmatpush3.bf16.msra.mxu0 %v869_v18 }
  0x25   : > { %808 = vmatpush3.bf16.msra.mxu1 %v870_v19  ;;  %781 = vmatprep.subr.bf16.mxu0 %v871_v20 }
  0x26   : > { %809 = vmatprep.subr.bf16.mxu1 %v872_v21 }
  0x28   : > { %782 = vmatpush3.bf16.msra.mxu0 %v873_v22 }
  0x29   : > { %810 = vmatpush3.bf16.msra.mxu1 %v874_v23  ;;  %783 = vmatprep.subr.bf16.mxu0 %v875_v24 }
  0x2a   : > { %811 = vmatprep.subr.bf16.mxu1 %v876_v25 }
  0x2c   : > { %784 = vmatpush3.bf16.msra.mxu0 %v877_v26 }
  0x2d   : > { %812 = vmatpush3.bf16.msra.mxu1 %v878_v27  ;;  %785 = vmatprep.subr.bf16.mxu0 %v879_v28 }
  0x2e   : > { %813 = vmatprep.subr.bf16.mxu1 %v880_v29 }
  0x30   : > { %786 = vmatpush3.bf16.msra.mxu0 %v881_v30 }
  0x31   : > { %814 = vmatpush3.bf16.msra.mxu1 %v882_v31 }
  0x33   : > { %544 = vmatmul.mubr.bf16.vlgmr.msra.gmra.mrb[0].mxu0 %v883_v32 }
  0x34   : > { %593 = vmatmul.mubr.bf16.vlgmr.msra.gmra.mrb[0].mxu1 %v886_v34  ;;  %551 = vmatprep.mubr.bf16.mxu0 %v889_v36 }
  0x35   : > { %600 = vmatprep.mubr.bf16.mxu1 %v891_v37 }
  0x3b   : > { %552 = vmatmul.mubr.bf16.gmra.mrb[4].mxu0 %v893_v38 }
  0x3c   : > { %601 = vmatmul.mubr.bf16.gmra.mrb[4].mxu1 %v894_v39 }
 0x106   : > { %v787_v40 = vpop.f32.mrb[0].mxu0 }
 0x107   : > { %v815_v41 = vpop.f32.mrb[0].mxu1  ;;  %v788_v42 = vpop.f32.mrb[1].mxu0 }
 0x108   : > { %v789_v43 = vadd.f32 %v788_v42, %v787_v40  ;;  %v816_v44 = vpop.f32.mrb[1].mxu1  ;;  %v790_v45 = vpop.f32.mrb[2].mxu0 }
 0x109   : > { %v817_v46 = vadd.f32 %v816_v44, %v815_v41  ;;  %v818_v47 = vpop.f32.mrb[2].mxu1  ;;  %v791_v48 = vpop.f32.mrb[3].mxu0 }
 0x10a   : > { %v792_v49 = vadd.f32 %v791_v48, %v790_v45  ;;  %v819_v50 = vpop.f32.mrb[3].mxu1 }
 0x10b   : > { %v595_v51 = vadd.f32 %v817_v46, %v789_v43  ;;  %v820_v52 = vadd.f32 %v819_v50, %v818_v47 }
 0x10d   : > { %609 = vst [vmem:[%s204_s24] sm:$0xff] %v595_v51  ;;  %v598_v53 = vadd.f32 %v820_v52, %v792_v49 }
 0x10e   : > { %v793_v54 = vpop.f32.mrb[4].mxu0 }
 0x10f   : > { %610 = vst [vmem:[%s204_s24 + $0x8] sm:$0xff] %v598_v53  ;;  %v821_v55 = vpop.f32.mrb[4].mxu1  ;;  %v794_v56 = vpop.f32.mrb[5].mxu0 }
 0x110   : > { %v795_v57 = vadd.f32 %v794_v56, %v793_v54  ;;  %v822_v58 = vpop.f32.mrb[5].mxu1  ;;  %v796_v59 = vpop.f32.mrb[6].mxu0 }
 0x111   : > { %v823_v60 = vadd.f32 %v822_v58, %v821_v55  ;;  %v824_v61 = vpop.f32.mrb[6].mxu1  ;;  %v797_v62 = vpop.f32.mrb[7].mxu0 }
 0x112   : > { %v798_v63 = vadd.f32 %v797_v62, %v796_v59  ;;  %v825_v0 = vpop.f32.mrb[7].mxu1 }
 0x113   : > { %v603_v1 = vadd.f32 %v823_v60, %v795_v57  ;;  %v826_v2 = vadd.f32 %v825_v0, %v824_v61 }
 0x115   : > { %611 = vst [vmem:[%s204_s24 + $0x10] sm:$0xff] %v603_v1  ;;  %v606_v3 = vadd.f32 %v826_v2, %v798_v63 }
 0x117   : > { %612 = vst [vmem:[%s204_s24 + $0x18] sm:$0xff] %v606_v3 }
 0x118 PF: > { %s12_s11 = sadd.s32 1, %s917_s11   ;;  %s1012_s9 = smov %s913_s10 }
 0x119   : > { %p9_p5 = scmp.ge.s32.totalorder %s12_s11, 6   ;;  %s1013_s10 = smov %s1015_s12 }
 0x11b   :  { %11 = sbr.rel (!%p9_p5) target bundleno = 2 (0x2), region = 61 }

// kernel: dcgan_generator.12
= control target key start
LH: loop header
LB: loop body
LE: loop exit
PB: predicated region body
PF: predicated region fallthrough
CT: control target
= control target key end

     0   :  { %s569_s12 = smov 0   ;;  %s571_s13 = smov 0   ;;  %s769_s0 = inlined_call_operand.vmem [shape: f32[128,128], index: 0, kind: input, shape index: {}]   ;;  %s770_s1 = inlined_call_operand.vmem [shape: f32[1,128], index: 1, kind: input, shape index: {}]   ;;  %s771_s2 = inlined_call_operand.vmem [shape: f32[1,128], index: 2, kind: input, shape index: {}]   ;;  %s772_s3 = inlined_call_operand.vmem [shape: f32[128,128], index: 3, kind: output, shape index: {}]  }
   0x1   :  { %s573_s14 = smov 0  }
   0x2 LB: > { %s25_s15 = sadd.s32 1, %s542_s13  ;;  %p487_p0 = scmp.ge.s32.totalorder %s546_s14, 1  ;;  %s546_s14 = sphi %s573_s14, %s13_s14   ;;  %s542_s13 = sphi %s571_s13, %s774_s13   ;;  %s538_s12 = sphi %s569_s12, %s773_s12  }
   0x3   : > { %p27_p1 = scmp.ge.s32.totalorder %s25_s15, 2  ;;  %p152_p2 = scmp.lt.s32.totalorder %s546_s14, 3 }
   0x5   : > { %s776_s15 = smov (%p27_p1, %s25_s15), 0  ;;  %p153_p3 = pnand %p487_p0, %p152_p2 }
   0x6   : > { %p191_p4 = scmp.eq.s32.totalorder (!%p153_p3), %s538_s12, 0 }
   0x7   : > { %156 = sbr.rel (%p153_p3) target bundleno = 117 (0x75), region = 32 }
   0xe   : > { %196 = sbr.rel (!%p191_p4) target bundleno = 21 (0x15), region = 36  ;;  %v548_v0 = vmov (%p191_p4), 0.0  }
   0xf   : > { %197 = vst [vmem:[#allocation2] sm:$0x1] (%p191_p4), %v548_v0  ;;  %198 = vst [vmem:[#allocation3] sm:$0x1] (%p191_p4), %v548_v0 }
  0x15 PF: > { %p489_p5 = scmp.ne.s32.totalorder %s538_s12, 0 }
  0x16   : > { %v202_v1 = vld [vmem:[%s769_s0] sm:$0xff] (!%p489_p5)  ;;  %v203_v2 = vld [vmem:[%s769_s0 + $0x8] sm:$0xff] (!%p489_p5)  ;;  %v204_v3 = vld [vmem:[%s769_s0 + $0x10] sm:$0xff] (!%p489_p5) }
  0x17   : > { %201 = sbr.rel (%p489_p5) target bundleno = 70 (0x46), region = 40  ;;  %v205_v4 = vld [vmem:[%s769_s0 + $0x18] sm:$0xff] (!%p489_p5)  ;;  %v219_v5 = vadd.f32 (!%p489_p5), %v203_v2, %v202_v1  ;;  %v243_v6 = vmul.f32 (!%p489_p5), %v202_v1, %v202_v1  ;;  %v244_v7 = vmul.f32 (!%p489_p5), %v203_v2, %v203_v2  ;;  %v245_v8 = vmul.f32 (!%p489_p5), %v204_v3, %v204_v3  ;;  %v206_v9 = vld [vmem:[%s769_s0 + $0x20] sm:$0xff] (!%p489_p5)  ;;  %v207_v13 = vld [vmem:[%s769_s0 + $0x28] sm:$0xff] (!%p489_p5) }
  0x18   : > { %v246_v11 = vmul.f32 (!%p489_p5), %v205_v4, %v205_v4  ;;  %v247_v15 = vmul.f32 (!%p489_p5), %v206_v9, %v206_v9  ;;  %v208_v17 = vld [vmem:[%s769_s0 + $0x30] sm:$0xff] (!%p489_p5)  ;;  %v248_v19 = vmul.f32 (!%p489_p5), %v207_v13, %v207_v13  ;;  %v209_v21 = vld [vmem:[%s769_s0 + $0x38] sm:$0xff] (!%p489_p5)  ;;  %v210_v25 = vld [vmem:[%s769_s0 + $0x40] sm:$0xff] (!%p489_p5) }
  0x19   : > { %v220_v10 = vadd.f32 (!%p489_p5), %v219_v5, %v204_v3  ;;  %v259_v12 = vadd.f32 (!%p489_p5), %v244_v7, %v243_v6  ;;  %v249_v23 = vmul.f32 (!%p489_p5), %v208_v17, %v208_v17  ;;  %v250_v27 = vmul.f32 (!%p489_p5), %v209_v21, %v209_v21  ;;  %v211_v29 = vld [vmem:[%s769_s0 + $0x48] sm:$0xff] (!%p489_p5)  ;;  %v212_v33 = vld [vmem:[%s769_s0 + $0x50] sm:$0xff] (!%p489_p5)  ;;  %v213_v37 = vld [vmem:[%s769_s0 + $0x58] sm:$0xff] (!%p489_p5) }
  0x1a   : > { %v251_v31 = vmul.f32 (!%p489_p5), %v210_v25, %v210_v25  ;;  %v252_v35 = vmul.f32 (!%p489_p5), %v211_v29, %v211_v29  ;;  %v253_v39 = vmul.f32 (!%p489_p5), %v212_v33, %v212_v33  ;;  %v214_v41 = vld [vmem:[%s769_s0 + $0x60] sm:$0xff] (!%p489_p5)  ;;  %v254_v43 = vmul.f32 (!%p489_p5), %v213_v37, %v213_v37  ;;  %v215_v45 = vld [vmem:[%s769_s0 + $0x68] sm:$0xff] (!%p489_p5)  ;;  %v216_v49 = vld [vmem:[%s769_s0 + $0x70] sm:$0xff] (!%p489_p5) }
  0x1b   : > { %v221_v14 = vadd.f32 (!%p489_p5), %v220_v10, %v205_v4  ;;  %v260_v16 = vadd.f32 (!%p489_p5), %v259_v12, %v245_v8  ;;  %v255_v47 = vmul.f32 (!%p489_p5), %v214_v41, %v214_v41  ;;  %v256_v51 = vmul.f32 (!%p489_p5), %v215_v45, %v215_v45  ;;  %v217_v53 = vld [vmem:[%s769_s0 + $0x78] sm:$0xff] (!%p489_p5)  ;;  %v218_v7 = vld [vmem:[#allocation2] sm:$0x1] (!%p489_p5)  ;;  %v242_v12 = vld [vmem:[#allocation3] sm:$0x1] (!%p489_p5) }
  0x1c   : > { %v257_v55 = vmul.f32 (!%p489_p5), %v216_v49, %v216_v49  ;;  %v258_v58 = vmul.f32 (!%p489_p5), %v217_v53, %v217_v53 }
  0x1d   : > { %v222_v18 = vadd.f32 (!%p489_p5), %v221_v14, %v206_v9  ;;  %v261_v20 = vadd.f32 (!%p489_p5), %v260_v16, %v246_v11 }
  0x1f   : > { %v223_v22 = vadd.f32 %v222_v18, %v207_v13  ;;  %v262_v24 = vadd.f32 %v261_v20, %v247_v15 }
  0x21   : > { %v224_v26 = vadd.f32 %v223_v22, %v208_v17  ;;  %v263_v28 = vadd.f32 %v262_v24, %v248_v19 }
  0x23   : > { %v225_v30 = vadd.f32 %v224_v26, %v209_v21  ;;  %v264_v32 = vadd.f32 %v263_v28, %v249_v23 }
  0x25   : > { %v226_v34 = vadd.f32 %v225_v30, %v210_v25  ;;  %v265_v36 = vadd.f32 %v264_v32, %v250_v27 }
  0x27   : > { %v227_v38 = vadd.f32 %v226_v34, %v211_v29  ;;  %v266_v40 = vadd.f32 %v265_v36, %v251_v31 }
  0x29   : > { %v228_v42 = vadd.f32 %v227_v38, %v212_v33  ;;  %v267_v44 = vadd.f32 %v266_v40, %v252_v35 }
  0x2b   : > { %v229_v46 = vadd.f32 %v228_v42, %v213_v37  ;;  %v268_v48 = vadd.f32 %v267_v44, %v253_v39 }
  0x2d   : > { %v230_v50 = vadd.f32 %v229_v46, %v214_v41  ;;  %v269_v52 = vadd.f32 %v268_v48, %v254_v43 }
  0x2f   : > { %v231_v54 = vadd.f32 %v230_v50, %v215_v45  ;;  %v270_v56 = vadd.f32 %v269_v52, %v255_v47 }
  0x31   : > { %v232_v57 = vadd.f32 %v231_v54, %v216_v49  ;;  %v271_v59 = vadd.f32 %v270_v56, %v256_v51 }
  0x33   : > { %v233_v60 = vadd.f32 %v232_v57, %v217_v53  ;;  %v272_v61 = vadd.f32 %v271_v59, %v257_v55 }
  0x35   : > { %v234_v62 = vrot.slane %v233_v60, 4  ;;  %v273_v63 = vadd.f32 %v272_v61, %v258_v58 }
  0x37   : > { %v235_v0 = vadd.f32 %v234_v62, %v233_v60  ;;  %v274_v1 = vrot.slane %v273_v63, 4 }
  0x39   : > { %v236_v2 = vrot.slane %v235_v0, 2  ;;  %v275_v3 = vadd.f32 %v274_v1, %v273_v63 }
  0x3b   : > { %v237_v4 = vadd.f32 %v236_v2, %v235_v0  ;;  %v276_v5 = vrot.slane %v275_v3, 2 }
  0x3d   : > { %v238_v6 = vrot.slane %v237_v4, 1  ;;  %v277_v8 = vadd.f32 %v276_v5, %v275_v3 }
  0x3f   : > { %v239_v9 = vadd.f32 %v238_v6, %v237_v4  ;;  %v278_v10 = vrot.slane %v277_v8, 1 }
  0x41   : > { %v240_v11 = vadd.f32 %v239_v9, %v218_v7  ;;  %v279_v13 = vadd.f32 %v278_v10, %v277_v8 }
  0x43   : > { %241 = vst [vmem:[#allocation2] sm:$0x1] %v240_v11  ;;  %v280_v14 = vadd.f32 %v279_v13, %v242_v12 }
  0x45   : > { %281 = vst [vmem:[#allocation3] sm:$0x1] %v280_v14 }
  0x46 PF: > { %p490_p6 = scmp.ne.s32.totalorder %s538_s12, 1 }
  0x47   : > { %v314_v21 = vlaneseq (!%p490_p6)  ;;  %v286_v26 = vld [vmem:[%s769_s0] sm:$0xff] (!%p490_p6)  ;;  %v287_v29 = vld [vmem:[%s769_s0 + $0x8] sm:$0xff] (!%p490_p6)  ;;  %v288_v30 = vld [vmem:[%s769_s0 + $0x10] sm:$0xff] (!%p490_p6) }
  0x48   : > { %285 = sbr.rel (%p490_p6) target bundleno = 117 (0x75), region = 44  ;;  %v311_v27 = vld [vmem:[%s770_s1] sm:$0x1] (!%p490_p6)  ;;  %v289_v31 = vld [vmem:[%s769_s0 + $0x18] sm:$0xff] (!%p490_p6)  ;;  %v291_v33 = vld [vmem:[%s769_s0 + $0x28] sm:$0xff] (!%p490_p6) }
  0x49   : > { %v315_v24 = vshrl.u32 (!%p490_p6), %v314_v21, 7  ;;  %v290_v32 = vld [vmem:[%s769_s0 + $0x20] sm:$0xff] (!%p490_p6)  ;;  %v292_v34 = vld [vmem:[%s769_s0 + $0x30] sm:$0xff] (!%p490_p6)  ;;  %v293_v35 = vld [vmem:[%s769_s0 + $0x38] sm:$0xff] (!%p490_p6) }
  0x4a   : > { %v302_v15 = vld [vmem:[#allocation2] sm:$0x1] (!%p490_p6)  ;;  %v295_v37 = vld [vmem:[%s769_s0 + $0x48] sm:$0xff] (!%p490_p6)  ;;  %v296_v41 = vld [vmem:[%s769_s0 + $0x50] sm:$0xff] (!%p490_p6) }
  0x4b   : > { %v303_v17 = vmul.f32 (!%p490_p6), 0.0078125, %v302_v15  ;;  %v316_v25 = vsub.s32 (!%p490_p6), 0, %v315_v24  ;;  %v294_v36 = vld [vmem:[%s769_s0 + $0x40] sm:$0xff] (!%p490_p6)  ;;  %v297_v42 = vld [vmem:[%s769_s0 + $0x58] sm:$0xff] (!%p490_p6)  ;;  %v299_v48 = vld [vmem:[%s769_s0 + $0x68] sm:$0xff] (!%p490_p6) }
  0x4c   : > { %v304_v16 = vld [vmem:[#allocation3] sm:$0x1] (!%p490_p6)  ;;  %v300_v49 = vld [vmem:[%s769_s0 + $0x70] sm:$0xff] (!%p490_p6)  ;;  %v301_v50 = vld [vmem:[%s769_s0 + $0x78] sm:$0xff] (!%p490_p6) }
  0x4d   : > { %v305_v18 = vmul.f32 (!%p490_p6), 0.0078125, %v304_v16  ;;  %v306_v19 = vmul.f32 (!%p490_p6), %v303_v17, %v303_v17  ;;  %v646_v28 = vrot.slane (!%p490_p6), %v303_v17, %v316_v25  ;;  %v298_v43 = vld [vmem:[%s769_s0 + $0x60] sm:$0xff] (!%p490_p6) }
  0x4e   : > { %v491_v59 = vld [vmem:[%s771_s2] ss:$0 sm:$0xff] (!%p490_p6) }
  0x4f   : > { %v307_v20 = vsub.f32 %v305_v18, %v306_v19  ;;  %v319_v39 = vsub.f32 %v286_v26, %v646_v28  ;;  %v320_v40 = vsub.f32 %v287_v29, %v646_v28  ;;  %v321_v45 = vsub.f32 %v288_v30, %v646_v28 }
  0x50   : > { %v322_v46 = vsub.f32 %v289_v31, %v646_v28  ;;  %v323_v47 = vsub.f32 %v290_v32, %v646_v28  ;;  %v324_v51 = vsub.f32 %v291_v33, %v646_v28  ;;  %v325_v52 = vsub.f32 %v292_v34, %v646_v28 }
  0x51   : > { %v308_v22 = vmax.f32 %v307_v20, 0.0  ;;  %v326_v53 = vsub.f32 %v293_v35, %v646_v28  ;;  %v327_v54 = vsub.f32 %v294_v36, %v646_v28  ;;  %v328_v56 = vsub.f32 %v295_v37, %v646_v28 }
  0x52   : > { %v329_v57 = vsub.f32 %v296_v41, %v646_v28  ;;  %v330_v58 = vsub.f32 %v297_v42, %v646_v28  ;;  %v331_v60 = vsub.f32 %v298_v43, %v646_v28  ;;  %v332_v61 = vsub.f32 %v299_v48, %v646_v28 }
  0x53   : > { %v309_v23 = vadd.f32 1e-05, %v308_v22  ;;  %v333_v62 = vsub.f32 %v300_v49, %v646_v28  ;;  %v334_v63 = vsub.f32 %v301_v50, %v646_v28 }
  0x55   : > { %522 = vrsqrt.f32 %v309_v23 }
  0x5f   : > { %v523_v38 = vpop.eup %522 }
  0x60   : > { %v312_v44 = vmul.f32 %v523_v38, %v311_v27 }
  0x62   : > { %v339_v55 = vrot.slane %v312_v44, %v316_v25 }
  0x64   : > { %v341_v0 = vmul.f32 %v339_v55, %v319_v39  ;;  %v342_v1 = vmul.f32 %v339_v55, %v320_v40  ;;  %v343_v2 = vmul.f32 %v339_v55, %v321_v45  ;;  %v344_v3 = vmul.f32 %v339_v55, %v322_v46 }
  0x65   : > { %v345_v4 = vmul.f32 %v339_v55, %v323_v47  ;;  %v346_v5 = vmul.f32 %v339_v55, %v324_v51  ;;  %v347_v6 = vmul.f32 %v339_v55, %v325_v52  ;;  %v348_v7 = vmul.f32 %v339_v55, %v326_v53 }
  0x66   : > { %v364_v8 = vadd.f32 %v491_v59, %v341_v0  ;;  %v365_v9 = vadd.f32 %v491_v59, %v342_v1  ;;  %v366_v10 = vadd.f32 %v491_v59, %v343_v2  ;;  %v367_v11 = vadd.f32 %v491_v59, %v344_v3 }
  0x67   : > { %v368_v12 = vadd.f32 %v491_v59, %v345_v4  ;;  %v369_v13 = vadd.f32 %v491_v59, %v346_v5  ;;  %v370_v14 = vadd.f32 %v491_v59, %v347_v6  ;;  %v371_v15 = vadd.f32 %v491_v59, %v348_v7 }
  0x68   : > { %v380_v16 = vmax.f32 %v364_v8, 0.0  ;;  %v381_v17 = vmax.f32 %v365_v9, 0.0  ;;  %v382_v18 = vmax.f32 %v366_v10, 0.0  ;;  %v383_v19 = vmax.f32 %v367_v11, 0.0 }
  0x69   : > { %v384_v20 = vmax.f32 %v368_v12, 0.0  ;;  %v385_v21 = vmax.f32 %v369_v13, 0.0  ;;  %v386_v22 = vmax.f32 %v370_v14, 0.0  ;;  %v387_v23 = vmax.f32 %v371_v15, 0.0 }
  0x6a   : > { %396 = vst [vmem:[%s772_s3] sm:$0xff] %v380_v16  ;;  %397 = vst [vmem:[%s772_s3 + $0x8] sm:$0xff] %v381_v17  ;;  %v349_v24 = vmul.f32 %v339_v55, %v327_v54  ;;  %v350_v25 = vmul.f32 %v339_v55, %v328_v56  ;;  %v351_v26 = vmul.f32 %v339_v55, %v329_v57 }
  0x6b   : > { %398 = vst [vmem:[%s772_s3 + $0x10] sm:$0xff] %v382_v18  ;;  %399 = vst [vmem:[%s772_s3 + $0x18] sm:$0xff] %v383_v19  ;;  %v352_v27 = vmul.f32 %v339_v55, %v330_v58  ;;  %v353_v28 = vmul.f32 %v339_v55, %v331_v60  ;;  %v354_v29 = vmul.f32 %v339_v55, %v332_v61 }
  0x6c   : > { %400 = vst [vmem:[%s772_s3 + $0x20] sm:$0xff] %v384_v20  ;;  %401 = vst [vmem:[%s772_s3 + $0x28] sm:$0xff] %v385_v21  ;;  %v355_v30 = vmul.f32 %v339_v55, %v333_v62  ;;  %v356_v31 = vmul.f32 %v339_v55, %v334_v63  ;;  %v372_v32 = vadd.f32 %v491_v59, %v349_v24 }
  0x6d   : > { %402 = vst [vmem:[%s772_s3 + $0x30] sm:$0xff] %v386_v22  ;;  %403 = vst [vmem:[%s772_s3 + $0x38] sm:$0xff] %v387_v23  ;;  %v373_v33 = vadd.f32 %v491_v59, %v350_v25  ;;  %v374_v34 = vadd.f32 %v491_v59, %v351_v26  ;;  %v375_v35 = vadd.f32 %v491_v59, %v352_v27 }
  0x6e   : > { %v376_v36 = vadd.f32 %v491_v59, %v353_v28  ;;  %v377_v37 = vadd.f32 %v491_v59, %v354_v29  ;;  %v378_v38 = vadd.f32 %v491_v59, %v355_v30  ;;  %v379_v39 = vadd.f32 %v491_v59, %v356_v31 }
  0x6f   : > { %v388_v40 = vmax.f32 %v372_v32, 0.0  ;;  %v389_v41 = vmax.f32 %v373_v33, 0.0  ;;  %v390_v42 = vmax.f32 %v374_v34, 0.0  ;;  %v391_v43 = vmax.f32 %v375_v35, 0.0 }
  0x70   : > { %v392_v44 = vmax.f32 %v376_v36, 0.0  ;;  %v393_v45 = vmax.f32 %v377_v37, 0.0  ;;  %v394_v46 = vmax.f32 %v378_v38, 0.0  ;;  %v395_v47 = vmax.f32 %v379_v39, 0.0 }
  0x71   : > { %404 = vst [vmem:[%s772_s3 + $0x40] sm:$0xff] %v388_v40  ;;  %405 = vst [vmem:[%s772_s3 + $0x48] sm:$0xff] %v389_v41 }
  0x72   : > { %406 = vst [vmem:[%s772_s3 + $0x50] sm:$0xff] %v390_v42  ;;  %407 = vst [vmem:[%s772_s3 + $0x58] sm:$0xff] %v391_v43 }
  0x73   : > { %408 = vst [vmem:[%s772_s3 + $0x60] sm:$0xff] %v392_v44  ;;  %409 = vst [vmem:[%s772_s3 + $0x68] sm:$0xff] %v393_v45 }
  0x74   : > { %410 = vst [vmem:[%s772_s3 + $0x70] sm:$0xff] %v394_v46  ;;  %411 = vst [vmem:[%s772_s3 + $0x78] sm:$0xff] %v395_v47 }
  0x75 PF: > { %s13_s14 = sadd.s32 1, %s546_s14   ;;  %s773_s12 = smov %s542_s13 }
  0x76   : > { %p10_p7 = scmp.ge.s32.totalorder %s13_s14, 4   ;;  %s774_s13 = smov %s776_s15 }
  0x78   :  { %12 = sbr.rel (!%p10_p7) target bundleno = 2 (0x2), region = 74 }

// kernel: dcgan_generator.13
= control target key start
LH: loop header
LB: loop body
LE: loop exit
PB: predicated region body
PF: predicated region fallthrough
CT: control target
= control target key end

     0   :  { %s1318_s9 = smov 0   ;;  %s1320_s10 = smov 0   ;;  %s1448_s0 = inlined_call_operand.vmem [shape: bf16[4,128,512], index: 0, kind: input, shape index: {}]   ;;  %s1449_s1 = inlined_call_operand.vmem [shape: bf16[4,512,128], index: 1, kind: input, shape index: {}]   ;;  %s1450_s2 = inlined_call_operand.vmem [shape: f32[4,128,128], index: 2, kind: output, shape index: {}]  }
   0x1   :  { %s1322_s11 = smov 0  }
   0x2 LB: > { %s24_s12 = sadd.s32 1, %s1297_s10  ;;  %p971_p0 = scmp.ge.s32.totalorder %s1301_s11, 1  ;;  %s1301_s11 = sphi %s1322_s11, %s12_s11   ;;  %s1297_s10 = sphi %s1320_s10, %s1452_s10   ;;  %s1293_s9 = sphi %s1318_s9, %s1451_s9  }
   0x3   : > { %p26_p1 = scmp.ge.s32.totalorder %s24_s12, 4  ;;  %p144_p2 = scmp.lt.s32.totalorder %s1301_s11, 5 }
   0x5   : > { %s1454_s12 = smov (%p26_p1, %s24_s12), 0  ;;  %p145_p3 = pnand %p971_p0, %p144_p2 }
   0x6   : > { %p181_p4 = scmp.lt.s32.totalorder (!%p145_p3), %s1293_s9, 3 }
   0x7   : > { %148 = sbr.rel (%p145_p3) target bundleno = 328 (0x148), region = 28 }
   0xe   : > { %s1456_s9 = smov (!%p181_p4, %s1293_s9), 3 }
   0xf   : > { %s1044_s13 = sshll.u32 %s1456_s9, 8  ;;  %s1046_s20 = sshll.u32 %s1456_s9, 7 }
  0x10   : > { %s1344_s16 = scalar_lea.vmem %s1449_s1, %s1044_s13  ;;  %s1381_s19 = scalar_lea.vmem %s1448_s0, %s1044_s13 }
  0x11   : > { %v1199_v0 = vld [vmem:[%s1344_s16 + $0x40] sm:$0xff]   ;;  %v1203_v4 = vld [vmem:[%s1344_s16 + $0x48] sm:$0xff]   ;;  %v1207_v8 = vld [vmem:[%s1344_s16 + $0x50] sm:$0xff]   ;;  %s1421_s23 = scalar_lea.vmem %s1450_s2, %s1046_s20 }
  0x12   : > { %v1200_v1 = vld [vmem:[%s1344_s16 + $0xc0] sm:$0xff]   ;;  %1047 = vmatprep.subr.bf16.mxu0 %v1199_v0  ;;  %v1204_v5 = vld [vmem:[%s1344_s16 + $0xc8] sm:$0xff]   ;;  %v1208_v9 = vld [vmem:[%s1344_s16 + $0xd0] sm:$0xff]  }
  0x13   : > { %v1201_v2 = vld [vmem:[%s1344_s16] sm:$0xff]   ;;  %1111 = vmatprep.subr.bf16.mxu1 %v1200_v1  ;;  %v1205_v6 = vld [vmem:[%s1344_s16 + $0x8] sm:$0xff]   ;;  %v1209_v10 = vld [vmem:[%s1344_s16 + $0x10] sm:$0xff]  }
  0x14   : > { %v1202_v3 = vld [vmem:[%s1344_s16 + $0x80] sm:$0xff]   ;;  %1048 = vmatpush3.bf16.msra.mxu0 %v1201_v2  ;;  %v1206_v7 = vld [vmem:[%s1344_s16 + $0x88] sm:$0xff]   ;;  %v1210_v11 = vld [vmem:[%s1344_s16 + $0x90] sm:$0xff]  }
  0x15   : > { %1112 = vmatpush3.bf16.msra.mxu1 %v1202_v3  ;;  %1049 = vmatprep.subr.bf16.mxu0 %v1203_v4  ;;  %v1211_v12 = vld [vmem:[%s1344_s16 + $0x58] sm:$0xff]   ;;  %v1215_v16 = vld [vmem:[%s1344_s16 + $0x60] sm:$0xff]   ;;  %v1219_v20 = vld [vmem:[%s1344_s16 + $0x68] sm:$0xff]  }
  0x16   : > { %1113 = vmatprep.subr.bf16.mxu1 %v1204_v5  ;;  %v1212_v13 = vld [vmem:[%s1344_s16 + $0xd8] sm:$0xff]   ;;  %v1216_v17 = vld [vmem:[%s1344_s16 + $0xe0] sm:$0xff]   ;;  %v1220_v21 = vld [vmem:[%s1344_s16 + $0xe8] sm:$0xff]  }
  0x17   : > { %v1213_v14 = vld [vmem:[%s1344_s16 + $0x18] sm:$0xff]   ;;  %v1217_v18 = vld [vmem:[%s1344_s16 + $0x20] sm:$0xff]   ;;  %v1221_v22 = vld [vmem:[%s1344_s16 + $0x28] sm:$0xff]  }
  0x18   : > { %1050 = vmatpush3.bf16.msra.mxu0 %v1205_v6  ;;  %v1214_v15 = vld [vmem:[%s1344_s16 + $0x98] sm:$0xff]   ;;  %v1218_v19 = vld [vmem:[%s1344_s16 + $0xa0] sm:$0xff]   ;;  %v1222_v23 = vld [vmem:[%s1344_s16 + $0xa8] sm:$0xff]  }
  0x19   : > { %1114 = vmatpush3.bf16.msra.mxu1 %v1206_v7  ;;  %1051 = vmatprep.subr.bf16.mxu0 %v1207_v8  ;;  %v1223_v24 = vld [vmem:[%s1344_s16 + $0x70] sm:$0xff]   ;;  %v1227_v28 = vld [vmem:[%s1344_s16 + $0x78] sm:$0xff]  }
  0x1a   : > { %1115 = vmatprep.subr.bf16.mxu1 %v1208_v9  ;;  %v1224_v25 = vld [vmem:[%s1344_s16 + $0xf0] sm:$0xff]   ;;  %v1228_v29 = vld [vmem:[%s1344_s16 + $0xf8] sm:$0xff]  }
  0x1b   : > { %v1225_v26 = vld [vmem:[%s1344_s16 + $0x30] sm:$0xff]   ;;  %v1229_v30 = vld [vmem:[%s1344_s16 + $0x38] sm:$0xff]  }
  0x1c   : > { %1052 = vmatpush3.bf16.msra.mxu0 %v1209_v10  ;;  %v1226_v27 = vld [vmem:[%s1344_s16 + $0xb0] sm:$0xff]   ;;  %v1230_v31 = vld [vmem:[%s1344_s16 + $0xb8] sm:$0xff]  }
  0x1d   : > { %1116 = vmatpush3.bf16.msra.mxu1 %v1210_v11  ;;  %1053 = vmatprep.subr.bf16.mxu0 %v1211_v12  ;;  %v1231_v32 = vld [vmem:[%s1381_s19] ss:$16 sps:$4 sm:$0xff]   ;;  %v1233_v33 = vld [vmem:[%s1381_s19 + $0x4] ss:$16 sps:$4 sm:$0xff]   ;;  %v1234_v34 = vld [vmem:[%s1381_s19 + $0x8] ss:$16 sps:$4 sm:$0xff]  }
  0x1e   : > { %1117 = vmatprep.subr.bf16.mxu1 %v1212_v13  ;;  %v1236_v35 = vld [vmem:[%s1381_s19 + $0xc] ss:$16 sps:$4 sm:$0xff]   ;;  %687 = vmatprep.mubr.bf16.mxu0 %v1233_v33  ;;  %v1237_v36 = vld [vmem:[%s1381_s19 + $0x24] ss:$16 sps:$4 sm:$0xff]   ;;  %v1241_v38 = vld [vmem:[%s1381_s19 + $0x20] ss:$16 sps:$4 sm:$0xff]  }
  0x1f   : > { %784 = vmatprep.mubr.bf16.mxu1 %v1236_v35  ;;  %v1239_v37 = vld [vmem:[%s1381_s19 + $0x2c] ss:$16 sps:$4 sm:$0xff]   ;;  %v1242_v39 = vld [vmem:[%s1381_s19 + $0x28] ss:$16 sps:$4 sm:$0xff]   ;;  %v1243_v40 = vld [vmem:[%s1381_s19 + $0x44] ss:$16 sps:$4 sm:$0xff]  }
  0x20   : > { %1054 = vmatpush3.bf16.msra.mxu0 %v1213_v14  ;;  %v1245_v41 = vld [vmem:[%s1381_s19 + $0x4c] ss:$16 sps:$4 sm:$0xff]   ;;  %v1247_v42 = vld [vmem:[%s1381_s19 + $0x40] ss:$16 sps:$4 sm:$0xff]   ;;  %v1248_v43 = vld [vmem:[%s1381_s19 + $0x48] ss:$16 sps:$4 sm:$0xff]  }
  0x21   : > { %1118 = vmatpush3.bf16.msra.mxu1 %v1214_v15  ;;  %1055 = vmatprep.subr.bf16.mxu0 %v1215_v16  ;;  %v1249_v44 = vld [vmem:[%s1381_s19 + $0x64] ss:$16 sps:$4 sm:$0xff]   ;;  %v1251_v45 = vld [vmem:[%s1381_s19 + $0x6c] ss:$16 sps:$4 sm:$0xff]   ;;  %v1253_v46 = vld [vmem:[%s1381_s19 + $0x60] ss:$16 sps:$4 sm:$0xff]  }
  0x22   : > { %1119 = vmatprep.subr.bf16.mxu1 %v1216_v17  ;;  %v1254_v47 = vld [vmem:[%s1381_s19 + $0x68] ss:$16 sps:$4 sm:$0xff]   ;;  %v1255_v48 = vld [vmem:[%s1381_s19 + $0x84] ss:$16 sps:$4 sm:$0xff]   ;;  %v1257_v49 = vld [vmem:[%s1381_s19 + $0x8c] ss:$16 sps:$4 sm:$0xff]  }
  0x23   : > { %v1259_v50 = vld [vmem:[%s1381_s19 + $0x80] ss:$16 sps:$4 sm:$0xff]   ;;  %v1260_v51 = vld [vmem:[%s1381_s19 + $0x88] ss:$16 sps:$4 sm:$0xff]   ;;  %v1261_v52 = vld [vmem:[%s1381_s19 + $0xa4] ss:$16 sps:$4 sm:$0xff]  }
  0x24   : > { %1056 = vmatpush3.bf16.msra.mxu0 %v1217_v18  ;;  %v1263_v53 = vld [vmem:[%s1381_s19 + $0xac] ss:$16 sps:$4 sm:$0xff]   ;;  %v1265_v54 = vld [vmem:[%s1381_s19 + $0xa0] ss:$16 sps:$4 sm:$0xff]   ;;  %v1266_v55 = vld [vmem:[%s1381_s19 + $0xa8] ss:$16 sps:$4 sm:$0xff]  }
  0x25   : > { %1120 = vmatpush3.bf16.msra.mxu1 %v1218_v19  ;;  %1057 = vmatprep.subr.bf16.mxu0 %v1219_v20  ;;  %v1267_v56 = vld [vmem:[%s1381_s19 + $0xc4] ss:$16 sps:$4 sm:$0xff]   ;;  %v1269_v57 = vld [vmem:[%s1381_s19 + $0xcc] ss:$16 sps:$4 sm:$0xff]   ;;  %v1271_v58 = vld [vmem:[%s1381_s19 + $0xc0] ss:$16 sps:$4 sm:$0xff]  }
  0x26   : > { %1121 = vmatprep.subr.bf16.mxu1 %v1220_v21  ;;  %v1272_v59 = vld [vmem:[%s1381_s19 + $0xc8] ss:$16 sps:$4 sm:$0xff]   ;;  %v1273_v60 = vld [vmem:[%s1381_s19 + $0xe4] ss:$16 sps:$4 sm:$0xff]   ;;  %v1275_v61 = vld [vmem:[%s1381_s19 + $0xec] ss:$16 sps:$4 sm:$0xff]  }
  0x27   : > { %v1277_v62 = vld [vmem:[%s1381_s19 + $0xe0] ss:$16 sps:$4 sm:$0xff]   ;;  %v1278_v63 = vld [vmem:[%s1381_s19 + $0xe8] ss:$16 sps:$4 sm:$0xff]  }
  0x28   : > { %1058 = vmatpush3.bf16.msra.mxu0 %v1221_v22 }
  0x29   : > { %1122 = vmatpush3.bf16.msra.mxu1 %v1222_v23  ;;  %1059 = vmatprep.subr.bf16.mxu0 %v1223_v24 }
  0x2a   : > { %1123 = vmatprep.subr.bf16.mxu1 %v1224_v25 }
  0x2c   : > { %1060 = vmatpush3.bf16.msra.mxu0 %v1225_v26 }
  0x2d   : > { %1124 = vmatpush3.bf16.msra.mxu1 %v1226_v27  ;;  %1061 = vmatprep.subr.bf16.mxu0 %v1227_v28 }
  0x2e   : > { %1125 = vmatprep.subr.bf16.mxu1 %v1228_v29 }
  0x30   : > { %1062 = vmatpush3.bf16.msra.mxu0 %v1229_v30 }
  0x31   : > { %1126 = vmatpush3.bf16.msra.mxu1 %v1230_v31 }
  0x33   : > { %688 = vmatmul.mubr.bf16.vlgmr.msra.gmra.mrb[0].mxu0 %v1231_v32 }
  0x34   : > { %785 = vmatmul.mubr.bf16.vlgmr.msra.gmra.mrb[0].mxu1 %v1234_v34  ;;  %695 = vmatprep.mubr.bf16.mxu0 %v1237_v36 }
  0x35   : > { %792 = vmatprep.mubr.bf16.mxu1 %v1239_v37 }
  0x3b   : > { %696 = vmatmul.mubr.bf16.gmra.mrb[4].mxu0 %v1241_v38 }
  0x3c   : > { %793 = vmatmul.mubr.bf16.gmra.mrb[4].mxu1 %v1242_v39  ;;  %703 = vmatprep.mubr.bf16.mxu0 %v1243_v40 }
  0x3d   : > { %800 = vmatprep.mubr.bf16.mxu1 %v1245_v41 }
  0x43   : > { %704 = vmatmul.mubr.bf16.gmra.mrb[8].mxu0 %v1247_v42 }
  0x44   : > { %801 = vmatmul.mubr.bf16.gmra.mrb[8].mxu1 %v1248_v43  ;;  %711 = vmatprep.mubr.bf16.mxu0 %v1249_v44 }
  0x45   : > { %808 = vmatprep.mubr.bf16.mxu1 %v1251_v45 }
  0x4b   : > { %712 = vmatmul.mubr.bf16.gmra.mrb[12].mxu0 %v1253_v46 }
  0x4c   : > { %809 = vmatmul.mubr.bf16.gmra.mrb[12].mxu1 %v1254_v47  ;;  %719 = vmatprep.mubr.bf16.mxu0 %v1255_v48 }
  0x4d   : > { %816 = vmatprep.mubr.bf16.mxu1 %v1257_v49 }
  0x53   : > { %720 = vmatmul.mubr.bf16.gmra.mrb[16].mxu0 %v1259_v50 }
  0x54   : > { %817 = vmatmul.mubr.bf16.gmra.mrb[16].mxu1 %v1260_v51  ;;  %727 = vmatprep.mubr.bf16.mxu0 %v1261_v52 }
  0x55   : > { %824 = vmatprep.mubr.bf16.mxu1 %v1263_v53 }
  0x5b   : > { %728 = vmatmul.mubr.bf16.gmra.mrb[20].mxu0 %v1265_v54 }
  0x5c   : > { %825 = vmatmul.mubr.bf16.gmra.mrb[20].mxu1 %v1266_v55  ;;  %735 = vmatprep.mubr.bf16.mxu0 %v1267_v56 }
  0x5d   : > { %832 = vmatprep.mubr.bf16.mxu1 %v1269_v57 }
  0x63   : > { %736 = vmatmul.mubr.bf16.gmra.mrb[24].mxu0 %v1271_v58 }
  0x64   : > { %833 = vmatmul.mubr.bf16.gmra.mrb[24].mxu1 %v1272_v59  ;;  %743 = vmatprep.mubr.bf16.mxu0 %v1273_v60 }
  0x65   : > { %840 = vmatprep.mubr.bf16.mxu1 %v1275_v61 }
  0x6b   : > { %744 = vmatmul.mubr.bf16.gmra.mrb[28].mxu0 %v1277_v62 }
  0x6c   : > { %841 = vmatmul.mubr.bf16.gmra.mrb[28].mxu1 %v1278_v63 }
 0x106   : > { %v1063_v0 = vpop.f32.mrb[0].mxu0 }
 0x107   : > { %v1127_v1 = vpop.f32.mrb[0].mxu1  ;;  %v1064_v2 = vpop.f32.mrb[1].mxu0 }
 0x108   : > { %v1065_v3 = vadd.f32 %v1064_v2, %v1063_v0  ;;  %v1128_v4 = vpop.f32.mrb[1].mxu1  ;;  %v1066_v5 = vpop.f32.mrb[2].mxu0 }
 0x109   : > { %v1129_v6 = vadd.f32 %v1128_v4, %v1127_v1  ;;  %v1130_v7 = vpop.f32.mrb[2].mxu1  ;;  %v1067_v8 = vpop.f32.mrb[3].mxu0 }
 0x10a   : > { %v1068_v9 = vadd.f32 %v1067_v8, %v1066_v5  ;;  %v1131_v10 = vpop.f32.mrb[3].mxu1 }
 0x10b   : > { %v787_v11 = vadd.f32 %v1129_v6, %v1065_v3  ;;  %v1132_v12 = vadd.f32 %v1131_v10, %v1130_v7 }
 0x10d   : > { %849 = vst [vmem:[%s1421_s23] sm:$0xff] %v787_v11  ;;  %v790_v13 = vadd.f32 %v1132_v12, %v1068_v9 }
 0x10e   : > { %v1069_v14 = vpop.f32.mrb[4].mxu0 }
 0x10f   : > { %850 = vst [vmem:[%s1421_s23 + $0x8] sm:$0xff] %v790_v13  ;;  %v1133_v15 = vpop.f32.mrb[4].mxu1  ;;  %v1070_v16 = vpop.f32.mrb[5].mxu0 }
 0x110   : > { %v1071_v17 = vadd.f32 %v1070_v16, %v1069_v14  ;;  %v1134_v18 = vpop.f32.mrb[5].mxu1  ;;  %v1072_v19 = vpop.f32.mrb[6].mxu0 }
 0x111   : > { %v1135_v20 = vadd.f32 %v1134_v18, %v1133_v15  ;;  %v1136_v21 = vpop.f32.mrb[6].mxu1  ;;  %v1073_v22 = vpop.f32.mrb[7].mxu0 }
 0x112   : > { %v1074_v23 = vadd.f32 %v1073_v22, %v1072_v19  ;;  %v1137_v24 = vpop.f32.mrb[7].mxu1 }
 0x113   : > { %v795_v25 = vadd.f32 %v1135_v20, %v1071_v17  ;;  %v1138_v26 = vadd.f32 %v1137_v24, %v1136_v21 }
 0x115   : > { %851 = vst [vmem:[%s1421_s23 + $0x10] sm:$0xff] %v795_v25  ;;  %v798_v27 = vadd.f32 %v1138_v26, %v1074_v23 }
 0x116   : > { %v1075_v28 = vpop.f32.mrb[8].mxu0 }
 0x117   : > { %852 = vst [vmem:[%s1421_s23 + $0x18] sm:$0xff] %v798_v27  ;;  %v1139_v29 = vpop.f32.mrb[8].mxu1  ;;  %v1076_v30 = vpop.f32.mrb[9].mxu0 }
 0x118   : > { %v1077_v31 = vadd.f32 %v1076_v30, %v1075_v28  ;;  %v1140_v32 = vpop.f32.mrb[9].mxu1  ;;  %v1078_v33 = vpop.f32.mrb[10].mxu0 }
 0x119   : > { %v1141_v34 = vadd.f32 %v1140_v32, %v1139_v29  ;;  %v1142_v35 = vpop.f32.mrb[10].mxu1  ;;  %v1079_v36 = vpop.f32.mrb[11].mxu0 }
 0x11a   : > { %v1080_v37 = vadd.f32 %v1079_v36, %v1078_v33  ;;  %v1143_v38 = vpop.f32.mrb[11].mxu1 }
 0x11b   : > { %v803_v39 = vadd.f32 %v1141_v34, %v1077_v31  ;;  %v1144_v40 = vadd.f32 %v1143_v38, %v1142_v35 }
 0x11d   : > { %853 = vst [vmem:[%s1421_s23 + $0x20] sm:$0xff] %v803_v39  ;;  %v806_v41 = vadd.f32 %v1144_v40, %v1080_v37 }
 0x11e   : > { %v1081_v42 = vpop.f32.mrb[12].mxu0 }
 0x11f   : > { %854 = vst [vmem:[%s1421_s23 + $0x28] sm:$0xff] %v806_v41  ;;  %v1145_v43 = vpop.f32.mrb[12].mxu1  ;;  %v1082_v44 = vpop.f32.mrb[13].mxu0 }
 0x120   : > { %v1083_v45 = vadd.f32 %v1082_v44, %v1081_v42  ;;  %v1146_v46 = vpop.f32.mrb[13].mxu1  ;;  %v1084_v47 = vpop.f32.mrb[14].mxu0 }
 0x121   : > { %v1147_v48 = vadd.f32 %v1146_v46, %v1145_v43  ;;  %v1148_v49 = vpop.f32.mrb[14].mxu1  ;;  %v1085_v50 = vpop.f32.mrb[15].mxu0 }
 0x122   : > { %v1086_v51 = vadd.f32 %v1085_v50, %v1084_v47  ;;  %v1149_v52 = vpop.f32.mrb[15].mxu1 }
 0x123   : > { %v811_v53 = vadd.f32 %v1147_v48, %v1083_v45  ;;  %v1150_v54 = vadd.f32 %v1149_v52, %v1148_v49 }
 0x125   : > { %855 = vst [vmem:[%s1421_s23 + $0x30] sm:$0xff] %v811_v53  ;;  %v814_v55 = vadd.f32 %v1150_v54, %v1086_v51 }
 0x126   : > { %v1087_v56 = vpop.f32.mrb[16].mxu0 }
 0x127   : > { %856 = vst [vmem:[%s1421_s23 + $0x38] sm:$0xff] %v814_v55  ;;  %v1151_v57 = vpop.f32.mrb[16].mxu1  ;;  %v1088_v58 = vpop.f32.mrb[17].mxu0 }
 0x128   : > { %v1089_v59 = vadd.f32 %v1088_v58, %v1087_v56  ;;  %v1152_v60 = vpop.f32.mrb[17].mxu1  ;;  %v1090_v61 = vpop.f32.mrb[18].mxu0 }
 0x129   : > { %v1153_v62 = vadd.f32 %v1152_v60, %v1151_v57  ;;  %v1154_v63 = vpop.f32.mrb[18].mxu1  ;;  %v1091_v0 = vpop.f32.mrb[19].mxu0 }
 0x12a   : > { %v1092_v1 = vadd.f32 %v1091_v0, %v1090_v61  ;;  %v1155_v2 = vpop.f32.mrb[19].mxu1 }
 0x12b   : > { %v819_v3 = vadd.f32 %v1153_v62, %v1089_v59  ;;  %v1156_v4 = vadd.f32 %v1155_v2, %v1154_v63 }
 0x12d   : > { %857 = vst [vmem:[%s1421_s23 + $0x40] sm:$0xff] %v819_v3  ;;  %v822_v5 = vadd.f32 %v1156_v4, %v1092_v1 }
 0x12e   : > { %v1093_v6 = vpop.f32.mrb[20].mxu0 }
 0x12f   : > { %858 = vst [vmem:[%s1421_s23 + $0x48] sm:$0xff] %v822_v5  ;;  %v1157_v7 = vpop.f32.mrb[20].mxu1  ;;  %v1094_v8 = vpop.f32.mrb[21].mxu0 }
 0x130   : > { %v1095_v9 = vadd.f32 %v1094_v8, %v1093_v6  ;;  %v1158_v10 = vpop.f32.mrb[21].mxu1  ;;  %v1096_v11 = vpop.f32.mrb[22].mxu0 }
 0x131   : > { %v1159_v12 = vadd.f32 %v1158_v10, %v1157_v7  ;;  %v1160_v13 = vpop.f32.mrb[22].mxu1  ;;  %v1097_v14 = vpop.f32.mrb[23].mxu0 }
 0x132   : > { %v1098_v15 = vadd.f32 %v1097_v14, %v1096_v11  ;;  %v1161_v16 = vpop.f32.mrb[23].mxu1 }
 0x133   : > { %v827_v17 = vadd.f32 %v1159_v12, %v1095_v9  ;;  %v1162_v18 = vadd.f32 %v1161_v16, %v1160_v13 }
 0x135   : > { %859 = vst [vmem:[%s1421_s23 + $0x50] sm:$0xff] %v827_v17  ;;  %v830_v19 = vadd.f32 %v1162_v18, %v1098_v15 }
 0x136   : > { %v1099_v20 = vpop.f32.mrb[24].mxu0 }
 0x137   : > { %860 = vst [vmem:[%s1421_s23 + $0x58] sm:$0xff] %v830_v19  ;;  %v1163_v21 = vpop.f32.mrb[24].mxu1  ;;  %v1100_v22 = vpop.f32.mrb[25].mxu0 }
 0x138   : > { %v1101_v23 = vadd.f32 %v1100_v22, %v1099_v20  ;;  %v1164_v24 = vpop.f32.mrb[25].mxu1  ;;  %v1102_v25 = vpop.f32.mrb[26].mxu0 }
 0x139   : > { %v1165_v26 = vadd.f32 %v1164_v24, %v1163_v21  ;;  %v1166_v27 = vpop.f32.mrb[26].mxu1  ;;  %v1103_v28 = vpop.f32.mrb[27].mxu0 }
 0x13a   : > { %v1104_v29 = vadd.f32 %v1103_v28, %v1102_v25  ;;  %v1167_v30 = vpop.f32.mrb[27].mxu1 }
 0x13b   : > { %v835_v31 = vadd.f32 %v1165_v26, %v1101_v23  ;;  %v1168_v32 = vadd.f32 %v1167_v30, %v1166_v27 }
 0x13d   : > { %861 = vst [vmem:[%s1421_s23 + $0x60] sm:$0xff] %v835_v31  ;;  %v838_v33 = vadd.f32 %v1168_v32, %v1104_v29 }
 0x13e   : > { %v1105_v34 = vpop.f32.mrb[28].mxu0 }
 0x13f   : > { %862 = vst [vmem:[%s1421_s23 + $0x68] sm:$0xff] %v838_v33  ;;  %v1169_v35 = vpop.f32.mrb[28].mxu1  ;;  %v1106_v36 = vpop.f32.mrb[29].mxu0 }
 0x140   : > { %v1107_v37 = vadd.f32 %v1106_v36, %v1105_v34  ;;  %v1170_v38 = vpop.f32.mrb[29].mxu1  ;;  %v1108_v39 = vpop.f32.mrb[30].mxu0 }
 0x141   : > { %v1171_v40 = vadd.f32 %v1170_v38, %v1169_v35  ;;  %v1172_v41 = vpop.f32.mrb[30].mxu1  ;;  %v1109_v42 = vpop.f32.mrb[31].mxu0 }
 0x142   : > { %v1110_v43 = vadd.f32 %v1109_v42, %v1108_v39  ;;  %v1173_v44 = vpop.f32.mrb[31].mxu1 }
 0x143   : > { %v843_v45 = vadd.f32 %v1171_v40, %v1107_v37  ;;  %v1174_v46 = vadd.f32 %v1173_v44, %v1172_v41 }
 0x145   : > { %863 = vst [vmem:[%s1421_s23 + $0x70] sm:$0xff] %v843_v45  ;;  %v846_v47 = vadd.f32 %v1174_v46, %v1110_v43 }
 0x147   : > { %864 = vst [vmem:[%s1421_s23 + $0x78] sm:$0xff] %v846_v47 }
 0x148 PF: > { %s12_s11 = sadd.s32 1, %s1301_s11   ;;  %s1451_s9 = smov %s1297_s10 }
 0x149   : > { %p9_p5 = scmp.ge.s32.totalorder %s12_s11, 6   ;;  %s1452_s10 = smov %s1454_s12 }
 0x14b   :  { %11 = sbr.rel (!%p9_p5) target bundleno = 2 (0x2), region = 61 }

// kernel: dcgan_generator.14
= control target key start
LH: loop header
LB: loop body
LE: loop exit
PB: predicated region body
PF: predicated region fallthrough
CT: control target
= control target key end

     0   :  { %s1049_s12 = smov 0   ;;  %s1051_s13 = smov 0   ;;  %s2252_s0 = inlined_call_operand.vmem [shape: f32[512,128], index: 0, kind: input, shape index: {}]   ;;  %s2253_s1 = inlined_call_operand.vmem [shape: f32[1,128], index: 1, kind: input, shape index: {}]   ;;  %s2254_s2 = inlined_call_operand.vmem [shape: f32[1,128], index: 2, kind: input, shape index: {}]   ;;  %s2255_s3 = inlined_call_operand.vmem [shape: f32[512,128], index: 3, kind: output, shape index: {}]  }
   0x1   :  { %s1053_s14 = smov 0  }
   0x2 LB: > { %s25_s15 = sadd.s32 1, %s1022_s13  ;;  %p967_p0 = scmp.ge.s32.totalorder %s1026_s14, 1  ;;  %s1026_s14 = sphi %s1053_s14, %s13_s14   ;;  %s1022_s13 = sphi %s1051_s13, %s2374_s13   ;;  %s1018_s12 = sphi %s1049_s12, %s2373_s12  }
   0x3   : > { %p27_p1 = scmp.ge.s32.totalorder %s25_s15, 2  ;;  %p152_p2 = scmp.lt.s32.totalorder %s1026_s14, 3 }
   0x5   : > { %s2376_s15 = smov (%p27_p1, %s25_s15), 0  ;;  %p153_p3 = pnand %p967_p0, %p152_p2 }
   0x6   : > { %p191_p4 = scmp.eq.s32.totalorder (!%p153_p3), %s1018_s12, 0 }
   0x7   : > { %156 = sbr.rel (%p153_p3) target bundleno = 271 (0x10f), region = 32 }
   0xe   : > { %196 = sbr.rel (!%p191_p4) target bundleno = 21 (0x15), region = 36  ;;  %v1028_v0 = vmov (%p191_p4), 0.0  }
   0xf   : > { %197 = vst [vmem:[#allocation2] sm:$0x1] (%p191_p4), %v1028_v0  ;;  %198 = vst [vmem:[#allocation3] sm:$0x1] (%p191_p4), %v1028_v0 }
  0x15 PF: > { %p969_p5 = scmp.ne.s32.totalorder %s1018_s12, 0 }
  0x16   : > { %v202_v1 = vld [vmem:[%s2252_s0] sm:$0xff] (!%p969_p5)  ;;  %v203_v2 = vld [vmem:[%s2252_s0 + $0x8] sm:$0xff] (!%p969_p5)  ;;  %v204_v3 = vld [vmem:[%s2252_s0 + $0x10] sm:$0xff] (!%p969_p5) }
  0x17   : > { %201 = sbr.rel (%p969_p5) target bundleno = 166 (0xa6), region = 40  ;;  %v205_v4 = vld [vmem:[%s2252_s0 + $0x18] sm:$0xff] (!%p969_p5)  ;;  %v267_v5 = vadd.f32 (!%p969_p5), %v203_v2, %v202_v1  ;;  %v339_v6 = vmul.f32 (!%p969_p5), %v202_v1, %v202_v1  ;;  %v340_v7 = vmul.f32 (!%p969_p5), %v203_v2, %v203_v2  ;;  %v341_v8 = vmul.f32 (!%p969_p5), %v204_v3, %v204_v3  ;;  %v206_v9 = vld [vmem:[%s2252_s0 + $0x20] sm:$0xff] (!%p969_p5)  ;;  %v207_v13 = vld [vmem:[%s2252_s0 + $0x28] sm:$0xff] (!%p969_p5) }
  0x18   : > { %v342_v11 = vmul.f32 (!%p969_p5), %v205_v4, %v205_v4  ;;  %v343_v15 = vmul.f32 (!%p969_p5), %v206_v9, %v206_v9  ;;  %v208_v17 = vld [vmem:[%s2252_s0 + $0x30] sm:$0xff] (!%p969_p5)  ;;  %v344_v19 = vmul.f32 (!%p969_p5), %v207_v13, %v207_v13  ;;  %v209_v21 = vld [vmem:[%s2252_s0 + $0x38] sm:$0xff] (!%p969_p5)  ;;  %v210_v25 = vld [vmem:[%s2252_s0 + $0x40] sm:$0xff] (!%p969_p5) }
  0x19   : > { %v268_v10 = vadd.f32 (!%p969_p5), %v267_v5, %v204_v3  ;;  %v403_v12 = vadd.f32 (!%p969_p5), %v340_v7, %v339_v6  ;;  %v345_v23 = vmul.f32 (!%p969_p5), %v208_v17, %v208_v17  ;;  %v346_v27 = vmul.f32 (!%p969_p5), %v209_v21, %v209_v21  ;;  %v211_v29 = vld [vmem:[%s2252_s0 + $0x48] sm:$0xff] (!%p969_p5)  ;;  %v212_v33 = vld [vmem:[%s2252_s0 + $0x50] sm:$0xff] (!%p969_p5)  ;;  %v213_v37 = vld [vmem:[%s2252_s0 + $0x58] sm:$0xff] (!%p969_p5) }
  0x1a   : > { %v347_v31 = vmul.f32 (!%p969_p5), %v210_v25, %v210_v25  ;;  %v348_v35 = vmul.f32 (!%p969_p5), %v211_v29, %v211_v29  ;;  %v349_v39 = vmul.f32 (!%p969_p5), %v212_v33, %v212_v33  ;;  %v214_v41 = vld [vmem:[%s2252_s0 + $0x60] sm:$0xff] (!%p969_p5)  ;;  %v350_v43 = vmul.f32 (!%p969_p5), %v213_v37, %v213_v37  ;;  %v215_v45 = vld [vmem:[%s2252_s0 + $0x68] sm:$0xff] (!%p969_p5)  ;;  %v216_v49 = vld [vmem:[%s2252_s0 + $0x70] sm:$0xff] (!%p969_p5) }
  0x1b   : > { %v269_v14 = vadd.f32 (!%p969_p5), %v268_v10, %v205_v4  ;;  %v404_v16 = vadd.f32 (!%p969_p5), %v403_v12, %v341_v8  ;;  %v351_v47 = vmul.f32 (!%p969_p5), %v214_v41, %v214_v41  ;;  %v352_v51 = vmul.f32 (!%p969_p5), %v215_v45, %v215_v45  ;;  %v217_v53 = vld [vmem:[%s2252_s0 + $0x78] sm:$0xff] (!%p969_p5)  ;;  %v218_v57 = vld [vmem:[%s2252_s0 + $0x80] sm:$0xff] (!%p969_p5)  ;;  %v219_v61 = vld [vmem:[%s2252_s0 + $0x88] sm:$0xff] (!%p969_p5) }
  0x1c   : > { %v353_v55 = vmul.f32 (!%p969_p5), %v216_v49, %v216_v49  ;;  %v354_v59 = vmul.f32 (!%p969_p5), %v217_v53, %v217_v53  ;;  %v355_v63 = vmul.f32 (!%p969_p5), %v218_v57, %v218_v57  ;;  %v220_v1 = vld [vmem:[%s2252_s0 + $0x90] sm:$0xff] (!%p969_p5)  ;;  %v356_v3 = vmul.f32 (!%p969_p5), %v219_v61, %v219_v61  ;;  %v221_v5 = vld [vmem:[%s2252_s0 + $0x98] sm:$0xff] (!%p969_p5) }
  0x1d   : > { %v270_v18 = vadd.f32 (!%p969_p5), %v269_v14, %v206_v9  ;;  %v405_v20 = vadd.f32 (!%p969_p5), %v404_v16, %v342_v11  ;;  %v357_v7 = vmul.f32 (!%p969_p5), %v220_v1, %v220_v1  ;;  %v222_v9 = vld [vmem:[%s2252_s0 + $0xa0] sm:$0xff] (!%p969_p5)  ;;  %v358_v11 = vmul.f32 (!%p969_p5), %v221_v5, %v221_v5 }
  0x1f   : > { %v271_v22 = vadd.f32 %v270_v18, %v207_v13  ;;  %v406_v24 = vadd.f32 %v405_v20, %v343_v15  ;;  %v223_v13 = vld [vmem:[%s2252_s0 + $0xa8] sm:$0xff]  ;;  %v359_v15 = vmul.f32 %v222_v9, %v222_v9 }
  0x21   : > { %v272_v26 = vadd.f32 %v271_v22, %v208_v17  ;;  %v407_v28 = vadd.f32 %v406_v24, %v344_v19  ;;  %v224_v17 = vld [vmem:[%s2252_s0 + $0xb0] sm:$0xff]  ;;  %v360_v19 = vmul.f32 %v223_v13, %v223_v13 }
  0x23   : > { %v273_v30 = vadd.f32 %v272_v26, %v209_v21  ;;  %v408_v32 = vadd.f32 %v407_v28, %v345_v23  ;;  %v225_v21 = vld [vmem:[%s2252_s0 + $0xb8] sm:$0xff]  ;;  %v361_v23 = vmul.f32 %v224_v17, %v224_v17 }
  0x25   : > { %v274_v34 = vadd.f32 %v273_v30, %v210_v25  ;;  %v409_v36 = vadd.f32 %v408_v32, %v346_v27  ;;  %v226_v25 = vld [vmem:[%s2252_s0 + $0xc0] sm:$0xff]  ;;  %v362_v27 = vmul.f32 %v225_v21, %v225_v21 }
  0x27   : > { %v275_v38 = vadd.f32 %v274_v34, %v211_v29  ;;  %v410_v40 = vadd.f32 %v409_v36, %v347_v31  ;;  %v227_v29 = vld [vmem:[%s2252_s0 + $0xc8] sm:$0xff]  ;;  %v363_v31 = vmul.f32 %v226_v25, %v226_v25 }
  0x29   : > { %v276_v42 = vadd.f32 %v275_v38, %v212_v33  ;;  %v411_v44 = vadd.f32 %v410_v40, %v348_v35  ;;  %v228_v33 = vld [vmem:[%s2252_s0 + $0xd0] sm:$0xff]  ;;  %v364_v35 = vmul.f32 %v227_v29, %v227_v29 }
  0x2b   : > { %v277_v46 = vadd.f32 %v276_v42, %v213_v37  ;;  %v412_v48 = vadd.f32 %v411_v44, %v349_v39  ;;  %v229_v37 = vld [vmem:[%s2252_s0 + $0xd8] sm:$0xff]  ;;  %v365_v39 = vmul.f32 %v228_v33, %v228_v33 }
  0x2d   : > { %v278_v50 = vadd.f32 %v277_v46, %v214_v41  ;;  %v413_v52 = vadd.f32 %v412_v48, %v350_v43  ;;  %v230_v41 = vld [vmem:[%s2252_s0 + $0xe0] sm:$0xff]  ;;  %v366_v43 = vmul.f32 %v229_v37, %v229_v37 }
  0x2f   : > { %v279_v54 = vadd.f32 %v278_v50, %v215_v45  ;;  %v414_v56 = vadd.f32 %v413_v52, %v351_v47  ;;  %v231_v45 = vld [vmem:[%s2252_s0 + $0xe8] sm:$0xff]  ;;  %v367_v47 = vmul.f32 %v230_v41, %v230_v41 }
  0x31   : > { %v280_v58 = vadd.f32 %v279_v54, %v216_v49  ;;  %v415_v60 = vadd.f32 %v414_v56, %v352_v51  ;;  %v232_v49 = vld [vmem:[%s2252_s0 + $0xf0] sm:$0xff]  ;;  %v368_v51 = vmul.f32 %v231_v45, %v231_v45 }
  0x33   : > { %v281_v62 = vadd.f32 %v280_v58, %v217_v53  ;;  %v416_v0 = vadd.f32 %v415_v60, %v353_v55  ;;  %v233_v53 = vld [vmem:[%s2252_s0 + $0xf8] sm:$0xff]  ;;  %v369_v55 = vmul.f32 %v232_v49, %v232_v49 }
  0x35   : > { %v282_v2 = vadd.f32 %v281_v62, %v218_v57  ;;  %v417_v4 = vadd.f32 %v416_v0, %v354_v59  ;;  %v234_v57 = vld [vmem:[%s2252_s0 + $0x100] sm:$0xff]  ;;  %v370_v59 = vmul.f32 %v233_v53, %v233_v53 }
  0x37   : > { %v283_v6 = vadd.f32 %v282_v2, %v219_v61  ;;  %v418_v8 = vadd.f32 %v417_v4, %v355_v63  ;;  %v235_v61 = vld [vmem:[%s2252_s0 + $0x108] sm:$0xff]  ;;  %v371_v63 = vmul.f32 %v234_v57, %v234_v57 }
  0x39   : > { %v284_v10 = vadd.f32 %v283_v6, %v220_v1  ;;  %v419_v12 = vadd.f32 %v418_v8, %v356_v3  ;;  %v236_v1 = vld [vmem:[%s2252_s0 + $0x110] sm:$0xff]  ;;  %v372_v3 = vmul.f32 %v235_v61, %v235_v61 }
  0x3b   : > { %v285_v14 = vadd.f32 %v284_v10, %v221_v5  ;;  %v420_v16 = vadd.f32 %v419_v12, %v357_v7  ;;  %v237_v5 = vld [vmem:[%s2252_s0 + $0x118] sm:$0xff]  ;;  %v373_v7 = vmul.f32 %v236_v1, %v236_v1 }
  0x3d   : > { %v286_v18 = vadd.f32 %v285_v14, %v222_v9  ;;  %v421_v20 = vadd.f32 %v420_v16, %v358_v11  ;;  %v238_v9 = vld [vmem:[%s2252_s0 + $0x120] sm:$0xff]  ;;  %v374_v11 = vmul.f32 %v237_v5, %v237_v5 }
  0x3f   : > { %v287_v22 = vadd.f32 %v286_v18, %v223_v13  ;;  %v422_v24 = vadd.f32 %v421_v20, %v359_v15  ;;  %v239_v13 = vld [vmem:[%s2252_s0 + $0x128] sm:$0xff]  ;;  %v375_v15 = vmul.f32 %v238_v9, %v238_v9 }
  0x41   : > { %v288_v26 = vadd.f32 %v287_v22, %v224_v17  ;;  %v423_v28 = vadd.f32 %v422_v24, %v360_v19  ;;  %v240_v17 = vld [vmem:[%s2252_s0 + $0x130] sm:$0xff]  ;;  %v376_v19 = vmul.f32 %v239_v13, %v239_v13 }
  0x43   : > { %v289_v30 = vadd.f32 %v288_v26, %v225_v21  ;;  %v424_v32 = vadd.f32 %v423_v28, %v361_v23  ;;  %v241_v21 = vld [vmem:[%s2252_s0 + $0x138] sm:$0xff]  ;;  %v377_v23 = vmul.f32 %v240_v17, %v240_v17 }
  0x45   : > { %v290_v34 = vadd.f32 %v289_v30, %v226_v25  ;;  %v425_v36 = vadd.f32 %v424_v32, %v362_v27  ;;  %v242_v25 = vld [vmem:[%s2252_s0 + $0x140] sm:$0xff]  ;;  %v378_v27 = vmul.f32 %v241_v21, %v241_v21 }
  0x47   : > { %v291_v38 = vadd.f32 %v290_v34, %v227_v29  ;;  %v426_v40 = vadd.f32 %v425_v36, %v363_v31  ;;  %v243_v29 = vld [vmem:[%s2252_s0 + $0x148] sm:$0xff]  ;;  %v379_v31 = vmul.f32 %v242_v25, %v242_v25 }
  0x49   : > { %v292_v42 = vadd.f32 %v291_v38, %v228_v33  ;;  %v427_v44 = vadd.f32 %v426_v40, %v364_v35  ;;  %v244_v33 = vld [vmem:[%s2252_s0 + $0x150] sm:$0xff]  ;;  %v380_v35 = vmul.f32 %v243_v29, %v243_v29 }
  0x4b   : > { %v293_v46 = vadd.f32 %v292_v42, %v229_v37  ;;  %v428_v48 = vadd.f32 %v427_v44, %v365_v39  ;;  %v245_v37 = vld [vmem:[%s2252_s0 + $0x158] sm:$0xff]  ;;  %v381_v39 = vmul.f32 %v244_v33, %v244_v33 }
  0x4d   : > { %v294_v50 = vadd.f32 %v293_v46, %v230_v41  ;;  %v429_v52 = vadd.f32 %v428_v48, %v366_v43  ;;  %v246_v41 = vld [vmem:[%s2252_s0 + $0x160] sm:$0xff]  ;;  %v382_v43 = vmul.f32 %v245_v37, %v245_v37 }
  0x4f   : > { %v295_v54 = vadd.f32 %v294_v50, %v231_v45  ;;  %v430_v56 = vadd.f32 %v429_v52, %v367_v47  ;;  %v247_v45 = vld [vmem:[%s2252_s0 + $0x168] sm:$0xff]  ;;  %v383_v47 = vmul.f32 %v246_v41, %v246_v41 }
  0x51   : > { %v296_v58 = vadd.f32 %v295_v54, %v232_v49  ;;  %v431_v60 = vadd.f32 %v430_v56, %v368_v51  ;;  %v248_v49 = vld [vmem:[%s2252_s0 + $0x170] sm:$0xff]  ;;  %v384_v51 = vmul.f32 %v247_v45, %v247_v45 }
  0x53   : > { %v297_v62 = vadd.f32 %v296_v58, %v233_v53  ;;  %v432_v0 = vadd.f32 %v431_v60, %v369_v55  ;;  %v249_v53 = vld [vmem:[%s2252_s0 + $0x178] sm:$0xff]  ;;  %v385_v55 = vmul.f32 %v248_v49, %v248_v49 }
  0x55   : > { %v298_v2 = vadd.f32 %v297_v62, %v234_v57  ;;  %v433_v4 = vadd.f32 %v432_v0, %v370_v59  ;;  %v250_v57 = vld [vmem:[%s2252_s0 + $0x180] sm:$0xff]  ;;  %v386_v59 = vmul.f32 %v249_v53, %v249_v53 }
  0x57   : > { %v299_v6 = vadd.f32 %v298_v2, %v235_v61  ;;  %v434_v8 = vadd.f32 %v433_v4, %v371_v63  ;;  %v251_v61 = vld [vmem:[%s2252_s0 + $0x188] sm:$0xff]  ;;  %v387_v63 = vmul.f32 %v250_v57, %v250_v57 }
  0x59   : > { %v300_v10 = vadd.f32 %v299_v6, %v236_v1  ;;  %v435_v12 = vadd.f32 %v434_v8, %v372_v3  ;;  %v252_v1 = vld [vmem:[%s2252_s0 + $0x190] sm:$0xff]  ;;  %v388_v3 = vmul.f32 %v251_v61, %v251_v61 }
  0x5b   : > { %v301_v14 = vadd.f32 %v300_v10, %v237_v5  ;;  %v436_v16 = vadd.f32 %v435_v12, %v373_v7  ;;  %v253_v5 = vld [vmem:[%s2252_s0 + $0x198] sm:$0xff]  ;;  %v389_v7 = vmul.f32 %v252_v1, %v252_v1 }
  0x5d   : > { %v302_v18 = vadd.f32 %v301_v14, %v238_v9  ;;  %v437_v20 = vadd.f32 %v436_v16, %v374_v11  ;;  %v254_v9 = vld [vmem:[%s2252_s0 + $0x1a0] sm:$0xff]  ;;  %v390_v11 = vmul.f32 %v253_v5, %v253_v5 }
  0x5f   : > { %v303_v22 = vadd.f32 %v302_v18, %v239_v13  ;;  %v438_v24 = vadd.f32 %v437_v20, %v375_v15  ;;  %v255_v13 = vld [vmem:[%s2252_s0 + $0x1a8] sm:$0xff]  ;;  %v391_v15 = vmul.f32 %v254_v9, %v254_v9 }
  0x61   : > { %v304_v26 = vadd.f32 %v303_v22, %v240_v17  ;;  %v439_v28 = vadd.f32 %v438_v24, %v376_v19  ;;  %v256_v17 = vld [vmem:[%s2252_s0 + $0x1b0] sm:$0xff]  ;;  %v392_v19 = vmul.f32 %v255_v13, %v255_v13 }
  0x63   : > { %v305_v30 = vadd.f32 %v304_v26, %v241_v21  ;;  %v440_v32 = vadd.f32 %v439_v28, %v377_v23  ;;  %v257_v21 = vld [vmem:[%s2252_s0 + $0x1b8] sm:$0xff]  ;;  %v393_v23 = vmul.f32 %v256_v17, %v256_v17 }
  0x65   : > { %v306_v34 = vadd.f32 %v305_v30, %v242_v25  ;;  %v441_v36 = vadd.f32 %v440_v32, %v378_v27  ;;  %v258_v25 = vld [vmem:[%s2252_s0 + $0x1c0] sm:$0xff]  ;;  %v394_v27 = vmul.f32 %v257_v21, %v257_v21 }
  0x67   : > { %v307_v38 = vadd.f32 %v306_v34, %v243_v29  ;;  %v442_v40 = vadd.f32 %v441_v36, %v379_v31  ;;  %v259_v29 = vld [vmem:[%s2252_s0 + $0x1c8] sm:$0xff]  ;;  %v395_v31 = vmul.f32 %v258_v25, %v258_v25 }
  0x69   : > { %v308_v42 = vadd.f32 %v307_v38, %v244_v33  ;;  %v443_v44 = vadd.f32 %v442_v40, %v380_v35  ;;  %v260_v33 = vld [vmem:[%s2252_s0 + $0x1d0] sm:$0xff]  ;;  %v396_v35 = vmul.f32 %v259_v29, %v259_v29 }
  0x6b   : > { %v309_v46 = vadd.f32 %v308_v42, %v245_v37  ;;  %v444_v48 = vadd.f32 %v443_v44, %v381_v39  ;;  %v261_v37 = vld [vmem:[%s2252_s0 + $0x1d8] sm:$0xff]  ;;  %v397_v39 = vmul.f32 %v260_v33, %v260_v33 }
  0x6d   : > { %v310_v50 = vadd.f32 %v309_v46, %v246_v41  ;;  %v445_v52 = vadd.f32 %v444_v48, %v382_v43  ;;  %v262_v41 = vld [vmem:[%s2252_s0 + $0x1e0] sm:$0xff]  ;;  %v398_v43 = vmul.f32 %v261_v37, %v261_v37 }
  0x6f   : > { %v311_v54 = vadd.f32 %v310_v50, %v247_v45  ;;  %v446_v56 = vadd.f32 %v445_v52, %v383_v47  ;;  %v263_v45 = vld [vmem:[%s2252_s0 + $0x1e8] sm:$0xff]  ;;  %v399_v47 = vmul.f32 %v262_v41, %v262_v41 }
  0x71   : > { %v312_v58 = vadd.f32 %v311_v54, %v248_v49  ;;  %v447_v60 = vadd.f32 %v446_v56, %v384_v51  ;;  %v264_v49 = vld [vmem:[%s2252_s0 + $0x1f0] sm:$0xff]  ;;  %v400_v51 = vmul.f32 %v263_v45, %v263_v45 }
  0x73   : > { %v313_v62 = vadd.f32 %v312_v58, %v249_v53  ;;  %v448_v0 = vadd.f32 %v447_v60, %v385_v55  ;;  %v265_v53 = vld [vmem:[%s2252_s0 + $0x1f8] sm:$0xff]  ;;  %v401_v55 = vmul.f32 %v264_v49, %v264_v49 }
  0x74   : > { %v402_v58 = vmul.f32 %v265_v53, %v265_v53 }
  0x75   : > { %v314_v2 = vadd.f32 %v313_v62, %v250_v57  ;;  %v449_v4 = vadd.f32 %v448_v0, %v386_v59 }
  0x77   : > { %v315_v6 = vadd.f32 %v314_v2, %v251_v61  ;;  %v450_v8 = vadd.f32 %v449_v4, %v387_v63 }
  0x79   : > { %v316_v10 = vadd.f32 %v315_v6, %v252_v1  ;;  %v451_v12 = vadd.f32 %v450_v8, %v388_v3 }
  0x7b   : > { %v317_v14 = vadd.f32 %v316_v10, %v253_v5  ;;  %v452_v16 = vadd.f32 %v451_v12, %v389_v7  ;;  %v266_v7 = vld [vmem:[#allocation2] sm:$0x1]  ;;  %v338_v12 = vld [vmem:[#allocation3] sm:$0x1] }
  0x7d   : > { %v318_v18 = vadd.f32 %v317_v14, %v254_v9  ;;  %v453_v20 = vadd.f32 %v452_v16, %v390_v11 }
  0x7f   : > { %v319_v22 = vadd.f32 %v318_v18, %v255_v13  ;;  %v454_v24 = vadd.f32 %v453_v20, %v391_v15 }
  0x81   : > { %v320_v26 = vadd.f32 %v319_v22, %v256_v17  ;;  %v455_v28 = vadd.f32 %v454_v24, %v392_v19 }
  0x83   : > { %v321_v30 = vadd.f32 %v320_v26, %v257_v21  ;;  %v456_v32 = vadd.f32 %v455_v28, %v393_v23 }
  0x85   : > { %v322_v34 = vadd.f32 %v321_v30, %v258_v25  ;;  %v457_v36 = vadd.f32 %v456_v32, %v394_v27 }
  0x87   : > { %v323_v38 = vadd.f32 %v322_v34, %v259_v29  ;;  %v458_v40 = vadd.f32 %v457_v36, %v395_v31 }
  0x89   : > { %v324_v42 = vadd.f32 %v323_v38, %v260_v33  ;;  %v459_v44 = vadd.f32 %v458_v40, %v396_v35 }
  0x8b   : > { %v325_v46 = vadd.f32 %v324_v42, %v261_v37  ;;  %v460_v48 = vadd.f32 %v459_v44, %v397_v39 }
  0x8d   : > { %v326_v50 = vadd.f32 %v325_v46, %v262_v41  ;;  %v461_v52 = vadd.f32 %v460_v48, %v398_v43 }
  0x8f   : > { %v327_v54 = vadd.f32 %v326_v50, %v263_v45  ;;  %v462_v56 = vadd.f32 %v461_v52, %v399_v47 }
  0x91   : > { %v328_v57 = vadd.f32 %v327_v54, %v264_v49  ;;  %v463_v59 = vadd.f32 %v462_v56, %v400_v51 }
  0x93   : > { %v329_v60 = vadd.f32 %v328_v57, %v265_v53  ;;  %v464_v61 = vadd.f32 %v463_v59, %v401_v55 }
  0x95   : > { %v330_v62 = vrot.slane %v329_v60, 4  ;;  %v465_v63 = vadd.f32 %v464_v61, %v402_v58 }
  0x97   : > { %v331_v0 = vadd.f32 %v330_v62, %v329_v60  ;;  %v466_v1 = vrot.slane %v465_v63, 4 }
  0x99   : > { %v332_v2 = vrot.slane %v331_v0, 2  ;;  %v467_v3 = vadd.f32 %v466_v1, %v465_v63 }
  0x9b   : > { %v333_v4 = vadd.f32 %v332_v2, %v331_v0  ;;  %v468_v5 = vrot.slane %v467_v3, 2 }
  0x9d   : > { %v334_v6 = vrot.slane %v333_v4, 1  ;;  %v469_v8 = vadd.f32 %v468_v5, %v467_v3 }
  0x9f   : > { %v335_v9 = vadd.f32 %v334_v6, %v333_v4  ;;  %v470_v10 = vrot.slane %v469_v8, 1 }
  0xa1   : > { %v336_v11 = vadd.f32 %v335_v9, %v266_v7  ;;  %v471_v13 = vadd.f32 %v470_v10, %v469_v8 }
  0xa3   : > { %337 = vst [vmem:[#allocation2] sm:$0x1] %v336_v11  ;;  %v472_v14 = vadd.f32 %v471_v13, %v338_v12 }
  0xa5   : > { %473 = vst [vmem:[#allocation3] sm:$0x1] %v472_v14 }
  0xa6 PF: > { %p970_p6 = scmp.ne.s32.totalorder %s1018_s12, 1 }
  0xa8   : > { %477 = sbr.rel (%p970_p6) target bundleno = 271 (0x10f), region = 44 }
  0xaf   : > { %v542_v15 = vld [vmem:[#allocation2] sm:$0x1]  ;;  %v544_v16 = vld [vmem:[#allocation3] sm:$0x1]  ;;  %v554_v17 = vlaneseq  ;;  %v1275_v24 = vld [vmem:[%s2252_s0 + $0x8] sm:$0xff] }
  0xb0   : > { %v543_v18 = vmul.f32 0.001953125, %v542_v15  ;;  %v545_v19 = vmul.f32 0.001953125, %v544_v16  ;;  %v1269_v22 = vld [vmem:[%s2252_s0] sm:$0xff]  ;;  %v1280_v25 = vld [vmem:[%s2252_s0 + $0x10] sm:$0xff]  ;;  %v1285_v27 = vld [vmem:[%s2252_s0 + $0x18] sm:$0xff] }
  0xb1   : > { %v1264_v20 = vshrl.u32 %v554_v17, 7  ;;  %v1290_v28 = vld [vmem:[%s2252_s0 + $0x20] sm:$0xff]  ;;  %v1295_v29 = vld [vmem:[%s2252_s0 + $0x28] sm:$0xff]  ;;  %v1300_v30 = vld [vmem:[%s2252_s0 + $0x30] sm:$0xff] }
  0xb2   : > { %v546_v21 = vmul.f32 %v543_v18, %v543_v18  ;;  %v1309_v32 = vld [vmem:[%s2252_s0 + $0x38] sm:$0xff]  ;;  %v1314_v33 = vld [vmem:[%s2252_s0 + $0x40] sm:$0xff]  ;;  %v1319_v34 = vld [vmem:[%s2252_s0 + $0x48] sm:$0xff] }
  0xb3   : > { %v2256_v23 = vsub.s32 0, %v1264_v20  ;;  %v1324_v36 = vld [vmem:[%s2252_s0 + $0x50] sm:$0xff]  ;;  %v1329_v37 = vld [vmem:[%s2252_s0 + $0x58] sm:$0xff]  ;;  %v1334_v38 = vld [vmem:[%s2252_s0 + $0x60] sm:$0xff] }
  0xb4   : > { %v547_v26 = vsub.f32 %v545_v19, %v546_v21  ;;  %v1339_v39 = vld [vmem:[%s2252_s0 + $0x68] sm:$0xff]  ;;  %v1344_v40 = vld [vmem:[%s2252_s0 + $0x70] sm:$0xff]  ;;  %v1349_v41 = vld [vmem:[%s2252_s0 + $0x78] sm:$0xff] }
  0xb5   : > { %v1304_v31 = vrot.slane %v543_v18, %v2256_v23  ;;  %v1354_v42 = vld [vmem:[%s2252_s0 + $0x80] sm:$0xff]  ;;  %v1359_v43 = vld [vmem:[%s2252_s0 + $0x88] sm:$0xff]  ;;  %v1370_v48 = vld [vmem:[%s2252_s0 + $0x90] sm:$0xff] }
  0xb6   : > { %v548_v35 = vmax.f32 %v547_v26, 0.0  ;;  %v1375_v49 = vld [vmem:[%s2252_s0 + $0x98] sm:$0xff]  ;;  %v1380_v50 = vld [vmem:[%s2252_s0 + $0xa0] sm:$0xff]  ;;  %v1385_v51 = vld [vmem:[%s2252_s0 + $0xa8] sm:$0xff] }
  0xb7   : > { %v1398_v56 = vld [vmem:[%s2252_s0 + $0xb0] sm:$0xff]  ;;  %v1403_v57 = vld [vmem:[%s2252_s0 + $0xb8] sm:$0xff]  ;;  %v1408_v58 = vld [vmem:[%s2252_s0 + $0xc0] sm:$0xff] }
  0xb8   : > { %v549_v44 = vadd.f32 1e-05, %v548_v35  ;;  %v1413_v59 = vld [vmem:[%s2252_s0 + $0xc8] sm:$0xff]  ;;  %v1424_v63 = vld [vmem:[%s2252_s0 + $0xd0] sm:$0xff]  ;;  %v1429_v0 = vld [vmem:[%s2252_s0 + $0xd8] sm:$0xff] }
  0xb9   : > { %v1434_v1 = vld [vmem:[%s2252_s0 + $0xe0] sm:$0xff]  ;;  %v1439_v2 = vld [vmem:[%s2252_s0 + $0xe8] sm:$0xff]  ;;  %v1452_v7 = vld [vmem:[%s2252_s0 + $0xf0] sm:$0xff] }
  0xba   : > { %1002 = vrsqrt.f32 %v549_v44  ;;  %v1457_v8 = vld [vmem:[%s2252_s0 + $0xf8] sm:$0xff]  ;;  %v1462_v9 = vld [vmem:[%s2252_s0 + $0x100] sm:$0xff]  ;;  %v1467_v10 = vld [vmem:[%s2252_s0 + $0x108] sm:$0xff] }
  0xbb   : > { %v1480_v15 = vld [vmem:[%s2252_s0 + $0x110] sm:$0xff]  ;;  %v1485_v16 = vld [vmem:[%s2252_s0 + $0x118] sm:$0xff]  ;;  %v1490_v17 = vld [vmem:[%s2252_s0 + $0x120] sm:$0xff] }
  0xbc   : > { %v1503_v35 = vld [vmem:[%s2252_s0 + $0x128] sm:$0xff]  ;;  %v1508_v44 = vld [vmem:[%s2252_s0 + $0x130] sm:$0xff]  ;;  %v1513_v19 = vld [vmem:[%s2252_s0 + $0x138] sm:$0xff] }
  0xbd   : > { %v1526_v13 = vld [vmem:[%s2252_s0 + $0x140] sm:$0xff]  ;;  %v1531_v12 = vld [vmem:[%s2252_s0 + $0x148] sm:$0xff]  ;;  %v1536_v26 = vld [vmem:[%s2252_s0 + $0x150] sm:$0xff] }
  0xbe   : > { %2274 = vst [vmem:[#allocation4_spill] sm:$0xff] %v1536_v26  ;;  %v1549_v6 = vld [vmem:[%s2252_s0 + $0x158] sm:$0xff]  ;;  %v1554_v5 = vld [vmem:[%s2252_s0 + $0x160] sm:$0xff]  ;;  %v1559_v14 = vld [vmem:[%s2252_s0 + $0x168] sm:$0xff] }
  0xbf   : > { %2275 = vst [vmem:[#allocation5_spill] sm:$0xff] %v1549_v6  ;;  %2276 = vst [vmem:[#allocation6_spill] sm:$0xff] %v1554_v5  ;;  %v551_v21 = vld [vmem:[%s2253_s1] sm:$0x1]  ;;  %v1575_v62 = vld [vmem:[%s2252_s0 + $0x170] sm:$0xff] }
  0xc0   : > { %2277 = vst [vmem:[#allocation7_spill] sm:$0xff] %v1559_v14  ;;  %2278 = vst [vmem:[#allocation8_spill] sm:$0xff] %v1575_v62  ;;  %v1580_v61 = vld [vmem:[%s2252_s0 + $0x178] sm:$0xff]  ;;  %v1585_v18 = vld [vmem:[%s2252_s0 + $0x180] sm:$0xff]  ;;  %v2294_v14 = vsub.f32 %v1280_v25, %v1304_v31  ;;  %v2298_v25 = vsub.f32 %v1300_v30, %v1304_v31 }
  0xc1   : > { %2279 = vst [vmem:[#allocation9_spill] sm:$0xff] %v1580_v61  ;;  %2280 = vst [vmem:[#allocation10_spill] sm:$0xff] %v1585_v18  ;;  %v1598_v55 = vld [vmem:[%s2252_s0 + $0x188] sm:$0xff]  ;;  %v1603_v54 = vld [vmem:[%s2252_s0 + $0x190] sm:$0xff] }
  0xc2   : > { %2281 = vst [vmem:[#allocation11_spill] sm:$0xff] %v1598_v55  ;;  %2282 = vst [vmem:[#allocation12_spill] sm:$0xff] %v1603_v54  ;;  %v1608_v3 = vld [vmem:[%s2252_s0 + $0x198] sm:$0xff]  ;;  %v1621_v52 = vld [vmem:[%s2252_s0 + $0x1a0] sm:$0xff]  ;;  %v2293_v54 = vsub.f32 %v1275_v24, %v1304_v31  ;;  %v2297_v24 = vsub.f32 %v1295_v29, %v1304_v31 }
  0xc3   : > { %2283 = vst [vmem:[#allocation13_spill] sm:$0xff] %v1608_v3  ;;  %2284 = vst [vmem:[#allocation14_spill] sm:$0xff] %v1621_v52  ;;  %v1626_v47 = vld [vmem:[%s2252_s0 + $0x1a8] sm:$0xff]  ;;  %v1631_v60 = vld [vmem:[%s2252_s0 + $0x1b0] sm:$0xff]  ;;  %v2291_v52 = vsub.s32 0, %v1264_v20 }
  0xc4   : > { %v1644_v45 = vld [vmem:[%s2252_s0 + $0x1b8] sm:$0xff]  ;;  %v1649_v23 = vld [vmem:[%s2252_s0 + $0x1c0] sm:$0xff]  ;;  %v1654_v53 = vld [vmem:[%s2252_s0 + $0x1c8] sm:$0xff]  ;;  %v1003_v4 = vpop.eup %1002 }
  0xc5   : > { %v1667_v6 = vld [vmem:[%s2252_s0 + $0x1d0] sm:$0xff]  ;;  %v1672_v26 = vld [vmem:[%s2252_s0 + $0x1d8] sm:$0xff]  ;;  %v1677_v46 = vld [vmem:[%s2252_s0 + $0x1e0] sm:$0xff]  ;;  %v552_v11 = vmul.f32 %v1003_v4, %v551_v21  ;;  %v2292_v21 = vsub.f32 %v1269_v22, %v1304_v31  ;;  %v2296_v22 = vsub.f32 %v1290_v28, %v1304_v31 }
  0xc6   : > { %2285 = vst [vmem:[#allocation15_spill] sm:$0xff] %v1667_v6  ;;  %2286 = vst [vmem:[#allocation16_spill] sm:$0xff] %v1672_v26  ;;  %v1688_v18 = vld [vmem:[%s2252_s0 + $0x1e8] sm:$0xff]  ;;  %v1693_v61 = vld [vmem:[%s2252_s0 + $0x1f0] sm:$0xff] }
  0xc7   : > { %2287 = vst [vmem:[#allocation17_spill] sm:$0xff] %v1677_v46  ;;  %2288 = vst [vmem:[#allocation18_spill] sm:$0xff] %v1688_v18  ;;  %v1698_v4 = vld [vmem:[%s2252_s0 + $0x1f8] sm:$0xff]  ;;  %v1710_v3 = vrot.slane %v552_v11, %v2291_v52  ;;  %v1721_v5 = vld [vmem:[%s2254_s2] ss:$0 sm:$0xff]  ;;  %v2295_v52 = vsub.f32 %v1285_v27, %v1304_v31  ;;  %v2299_v27 = vsub.f32 %v1309_v32, %v1304_v31 }
  0xc8   : > { %2289 = vst [vmem:[#allocation19_spill] sm:$0xff] %v1693_v61  ;;  %2290 = vst [vmem:[#allocation20_spill] sm:$0xff] %v1698_v4 }
  0xc9   : > { %v629_v62 = vmul.f32 %v1710_v3, %v2292_v21  ;;  %v630_v55 = vmul.f32 %v1710_v3, %v2293_v54  ;;  %v631_v20 = vmul.f32 %v1710_v3, %v2294_v14  ;;  %v632_v11 = vmul.f32 %v1710_v3, %v2295_v52 }
  0xca   : > { %v633_v21 = vmul.f32 %v1710_v3, %v2296_v22  ;;  %v634_v54 = vmul.f32 %v1710_v3, %v2297_v24  ;;  %v635_v14 = vmul.f32 %v1710_v3, %v2298_v25  ;;  %v636_v52 = vmul.f32 %v1710_v3, %v2299_v27 }
  0xcb   : > { %v700_v4 = vadd.f32 %v1721_v5, %v629_v62  ;;  %v701_v28 = vadd.f32 %v1721_v5, %v630_v55  ;;  %v702_v22 = vadd.f32 %v1721_v5, %v631_v20  ;;  %v703_v29 = vadd.f32 %v1721_v5, %v632_v11 }
  0xcc   : > { %v704_v24 = vadd.f32 %v1721_v5, %v633_v21  ;;  %v705_v61 = vadd.f32 %v1721_v5, %v634_v54  ;;  %v706_v30 = vadd.f32 %v1721_v5, %v635_v14  ;;  %v707_v25 = vadd.f32 %v1721_v5, %v636_v52 }
  0xcd   : > { %v764_v18 = vmax.f32 %v700_v4, 0.0  ;;  %v765_v32 = vmax.f32 %v701_v28, 0.0  ;;  %v766_v46 = vmax.f32 %v702_v22, 0.0  ;;  %v767_v27 = vmax.f32 %v703_v29, 0.0 }
  0xce   : > { %v768_v26 = vmax.f32 %v704_v24, 0.0  ;;  %v769_v62 = vmax.f32 %v705_v61, 0.0  ;;  %v770_v6 = vmax.f32 %v706_v30, 0.0  ;;  %v771_v55 = vmax.f32 %v707_v25, 0.0 }
  0xcf   : > { %828 = vst [vmem:[%s2255_s3] sm:$0xff] %v764_v18  ;;  %829 = vst [vmem:[%s2255_s3 + $0x8] sm:$0xff] %v765_v32  ;;  %v2300_v61 = vsub.f32 %v1314_v33, %v1304_v31  ;;  %v2301_v18 = vsub.f32 %v1319_v34, %v1304_v31  ;;  %v2302_v11 = vsub.f32 %v1324_v36, %v1304_v31 }
  0xd0   : > { %830 = vst [vmem:[%s2255_s3 + $0x10] sm:$0xff] %v766_v46  ;;  %831 = vst [vmem:[%s2255_s3 + $0x18] sm:$0xff] %v767_v27  ;;  %v2303_v46 = vsub.f32 %v1329_v37, %v1304_v31  ;;  %v2304_v33 = vsub.f32 %v1334_v38, %v1304_v31  ;;  %v2305_v36 = vsub.f32 %v1339_v39, %v1304_v31 }
  0xd1   : > { %v637_v4 = vmul.f32 %v1710_v3, %v2300_v61  ;;  %v638_v20 = vmul.f32 %v1710_v3, %v2301_v18  ;;  %v639_v21 = vmul.f32 %v1710_v3, %v2302_v11  ;;  %832 = vst [vmem:[%s2255_s3 + $0x20] sm:$0xff] %v768_v26  ;;  %833 = vst [vmem:[%s2255_s3 + $0x28] sm:$0xff] %v769_v62 }
  0xd2   : > { %v640_v54 = vmul.f32 %v1710_v3, %v2303_v46  ;;  %834 = vst [vmem:[%s2255_s3 + $0x30] sm:$0xff] %v770_v6  ;;  %835 = vst [vmem:[%s2255_s3 + $0x38] sm:$0xff] %v771_v55  ;;  %v641_v34 = vmul.f32 %v1710_v3, %v2304_v33  ;;  %v642_v37 = vmul.f32 %v1710_v3, %v2305_v36 }
  0xd3   : > { %v2306_v26 = vsub.f32 %v1344_v40, %v1304_v31  ;;  %v2307_v6 = vsub.f32 %v1349_v41, %v1304_v31  ;;  %v708_v28 = vadd.f32 %v1721_v5, %v637_v4  ;;  %v709_v38 = vadd.f32 %v1721_v5, %v638_v20 }
  0xd4   : > { %v710_v22 = vadd.f32 %v1721_v5, %v639_v21  ;;  %v711_v39 = vadd.f32 %v1721_v5, %v640_v54  ;;  %v712_v29 = vadd.f32 %v1721_v5, %v641_v34  ;;  %v713_v24 = vadd.f32 %v1721_v5, %v642_v37 }
  0xd5   : > { %v643_v14 = vmul.f32 %v1710_v3, %v2306_v26  ;;  %v644_v52 = vmul.f32 %v1710_v3, %v2307_v6  ;;  %v772_v25 = vmax.f32 %v708_v28, 0.0  ;;  %v773_v41 = vmax.f32 %v709_v38, 0.0 }
  0xd6   : > { %v774_v32 = vmax.f32 %v710_v22, 0.0  ;;  %v775_v27 = vmax.f32 %v711_v39, 0.0  ;;  %v776_v62 = vmax.f32 %v712_v29, 0.0  ;;  %v777_v55 = vmax.f32 %v713_v24, 0.0 }
  0xd7   : > { %v714_v40 = vadd.f32 %v1721_v5, %v643_v14  ;;  %v715_v30 = vadd.f32 %v1721_v5, %v644_v52  ;;  %836 = vst [vmem:[%s2255_s3 + $0x40] sm:$0xff] %v772_v25  ;;  %837 = vst [vmem:[%s2255_s3 + $0x48] sm:$0xff] %v773_v41  ;;  %v2308_v18 = vsub.f32 %v1354_v42, %v1304_v31 }
  0xd8   : > { %838 = vst [vmem:[%s2255_s3 + $0x50] sm:$0xff] %v774_v32  ;;  %839 = vst [vmem:[%s2255_s3 + $0x58] sm:$0xff] %v775_v27  ;;  %v2309_v11 = vsub.f32 %v1359_v43, %v1304_v31  ;;  %v2310_v46 = vsub.f32 %v1370_v48, %v1304_v31  ;;  %v2311_v33 = vsub.f32 %v1375_v49, %v1304_v31 }
  0xd9   : > { %v778_v61 = vmax.f32 %v714_v40, 0.0  ;;  %v779_v4 = vmax.f32 %v715_v30, 0.0  ;;  %v645_v20 = vmul.f32 %v1710_v3, %v2308_v18  ;;  %840 = vst [vmem:[%s2255_s3 + $0x60] sm:$0xff] %v776_v62  ;;  %841 = vst [vmem:[%s2255_s3 + $0x68] sm:$0xff] %v777_v55  ;;  %v2312_v42 = vsub.f32 %v1380_v50, %v1304_v31 }
  0xda   : > { %v646_v21 = vmul.f32 %v1710_v3, %v2309_v11  ;;  %v647_v54 = vmul.f32 %v1710_v3, %v2310_v46  ;;  %v648_v34 = vmul.f32 %v1710_v3, %v2311_v33  ;;  %v2313_v48 = vsub.f32 %v1385_v51, %v1304_v31 }
  0xdb   : > { %842 = vst [vmem:[%s2255_s3 + $0x70] sm:$0xff] %v778_v61  ;;  %843 = vst [vmem:[%s2255_s3 + $0x78] sm:$0xff] %v779_v4  ;;  %v649_v43 = vmul.f32 %v1710_v3, %v2312_v42  ;;  %v2314_v36 = vsub.f32 %v1398_v56, %v1304_v31  ;;  %v2315_v26 = vsub.f32 %v1403_v57, %v1304_v31 }
  0xdc   : > { %v650_v49 = vmul.f32 %v1710_v3, %v2313_v48  ;;  %v716_v6 = vadd.f32 %v1721_v5, %v645_v20  ;;  %v717_v50 = vadd.f32 %v1721_v5, %v646_v21  ;;  %v718_v52 = vadd.f32 %v1721_v5, %v647_v54 }
  0xdd   : > { %v651_v37 = vmul.f32 %v1710_v3, %v2314_v36  ;;  %v652_v14 = vmul.f32 %v1710_v3, %v2315_v26  ;;  %v719_v51 = vadd.f32 %v1721_v5, %v648_v34  ;;  %v720_v28 = vadd.f32 %v1721_v5, %v649_v43 }
  0xde   : > { %v721_v38 = vadd.f32 %v1721_v5, %v650_v49  ;;  %v780_v39 = vmax.f32 %v716_v6, 0.0  ;;  %v781_v57 = vmax.f32 %v717_v50, 0.0  ;;  %v782_v29 = vmax.f32 %v718_v52, 0.0 }
  0xdf   : > { %v722_v56 = vadd.f32 %v1721_v5, %v651_v37  ;;  %v723_v22 = vadd.f32 %v1721_v5, %v652_v14  ;;  %v783_v24 = vmax.f32 %v719_v51, 0.0  ;;  %v784_v40 = vmax.f32 %v720_v28, 0.0 }
  0xe0   : > { %v785_v30 = vmax.f32 %v721_v38, 0.0  ;;  %844 = vst [vmem:[%s2255_s3 + $0x80] sm:$0xff] %v780_v39  ;;  %845 = vst [vmem:[%s2255_s3 + $0x88] sm:$0xff] %v781_v57  ;;  %v2316_v32 = vsub.f32 %v1408_v58, %v1304_v31  ;;  %v2317_v62 = vsub.f32 %v1413_v59, %v1304_v31  ;;  %v2318_v61 = vsub.f32 %v1424_v63, %v1304_v31 }
  0xe1   : > { %v786_v25 = vmax.f32 %v722_v56, 0.0  ;;  %v787_v41 = vmax.f32 %v723_v22, 0.0  ;;  %846 = vst [vmem:[%s2255_s3 + $0x90] sm:$0xff] %v782_v29  ;;  %847 = vst [vmem:[%s2255_s3 + $0x98] sm:$0xff] %v783_v24  ;;  %v2319_v18 = vsub.f32 %v1429_v0, %v1304_v31  ;;  %v2320_v58 = vsub.f32 %v1434_v1, %v1304_v31 }
  0xe2   : > { %v653_v27 = vmul.f32 %v1710_v3, %v2316_v32  ;;  %v654_v55 = vmul.f32 %v1710_v3, %v2317_v62  ;;  %v655_v4 = vmul.f32 %v1710_v3, %v2318_v61  ;;  %848 = vst [vmem:[%s2255_s3 + $0xa0] sm:$0xff] %v784_v40  ;;  %849 = vst [vmem:[%s2255_s3 + $0xa8] sm:$0xff] %v785_v30 }
  0xe3   : > { %v656_v20 = vmul.f32 %v1710_v3, %v2319_v18  ;;  %850 = vst [vmem:[%s2255_s3 + $0xb0] sm:$0xff] %v786_v25  ;;  %851 = vst [vmem:[%s2255_s3 + $0xb8] sm:$0xff] %v787_v41  ;;  %v657_v59 = vmul.f32 %v1710_v3, %v2320_v58  ;;  %v2321_v63 = vsub.f32 %v1439_v2, %v1304_v31 }
  0xe4   : > { %v2322_v11 = vsub.f32 %v1452_v7, %v1304_v31  ;;  %v2323_v46 = vsub.f32 %v1457_v8, %v1304_v31  ;;  %v724_v33 = vadd.f32 %v1721_v5, %v653_v27  ;;  %v725_v1 = vadd.f32 %v1721_v5, %v654_v55 }
  0xe5   : > { %v658_v0 = vmul.f32 %v1710_v3, %v2321_v63  ;;  %v726_v34 = vadd.f32 %v1721_v5, %v655_v4  ;;  %v727_v2 = vadd.f32 %v1721_v5, %v656_v20  ;;  %v728_v42 = vadd.f32 %v1721_v5, %v657_v59 }
  0xe6   : > { %v659_v21 = vmul.f32 %v1710_v3, %v2322_v11  ;;  %v660_v54 = vmul.f32 %v1710_v3, %v2323_v46  ;;  %v788_v49 = vmax.f32 %v724_v33, 0.0  ;;  %v789_v8 = vmax.f32 %v725_v1, 0.0  ;;  %v2334_v46 = vld [vmem:[#allocation4_spill] sm:$0xff]  ;;  %v2336_v1 = vld [vmem:[#allocation5_spill] sm:$0xff] }
  0xe7   : > { %v729_v43 = vadd.f32 %v1721_v5, %v658_v0  ;;  %v790_v36 = vmax.f32 %v726_v34, 0.0  ;;  %v791_v37 = vmax.f32 %v727_v2, 0.0  ;;  %v792_v26 = vmax.f32 %v728_v42, 0.0 }
  0xe8   : > { %v730_v7 = vadd.f32 %v1721_v5, %v659_v21  ;;  %v731_v48 = vadd.f32 %v1721_v5, %v660_v54  ;;  %852 = vst [vmem:[%s2255_s3 + $0xc0] sm:$0xff] %v788_v49  ;;  %853 = vst [vmem:[%s2255_s3 + $0xc8] sm:$0xff] %v789_v8  ;;  %v2324_v52 = vsub.f32 %v1462_v9, %v1304_v31  ;;  %v2342_v49 = vld [vmem:[#allocation8_spill] sm:$0xff] }
  0xe9   : > { %v793_v14 = vmax.f32 %v729_v43, 0.0  ;;  %854 = vst [vmem:[%s2255_s3 + $0xd0] sm:$0xff] %v790_v36  ;;  %855 = vst [vmem:[%s2255_s3 + $0xd8] sm:$0xff] %v791_v37  ;;  %v2325_v28 = vsub.f32 %v1467_v10, %v1304_v31  ;;  %v2326_v56 = vsub.f32 %v1480_v15, %v1304_v31  ;;  %v2327_v39 = vsub.f32 %v1485_v16, %v1304_v31  ;;  %v2340_v43 = vld [vmem:[#allocation7_spill] sm:$0xff]  ;;  %v2344_v37 = vld [vmem:[#allocation9_spill] sm:$0xff] }
  0xea   : > { %v794_v6 = vmax.f32 %v730_v7, 0.0  ;;  %v795_v50 = vmax.f32 %v731_v48, 0.0  ;;  %v661_v51 = vmul.f32 %v1710_v3, %v2324_v52  ;;  %856 = vst [vmem:[%s2255_s3 + $0xe0] sm:$0xff] %v792_v26  ;;  %v2328_v9 = vsub.f32 %v1490_v17, %v1304_v31 }
  0xeb   : > { %v662_v38 = vmul.f32 %v1710_v3, %v2325_v28  ;;  %v663_v22 = vmul.f32 %v1710_v3, %v2326_v56  ;;  %v664_v57 = vmul.f32 %v1710_v3, %v2327_v39  ;;  %857 = vst [vmem:[%s2255_s3 + $0xe8] sm:$0xff] %v793_v14  ;;  %v2329_v15 = vsub.f32 %v1503_v35, %v1304_v31 }
  0xec   : > { %858 = vst [vmem:[%s2255_s3 + $0xf0] sm:$0xff] %v794_v6  ;;  %859 = vst [vmem:[%s2255_s3 + $0xf8] sm:$0xff] %v795_v50  ;;  %v665_v10 = vmul.f32 %v1710_v3, %v2328_v9  ;;  %v2330_v29 = vsub.f32 %v1508_v44, %v1304_v31  ;;  %v2331_v40 = vsub.f32 %v1513_v19, %v1304_v31 }
  0xed   : > { %v666_v16 = vmul.f32 %v1710_v3, %v2329_v15  ;;  %v732_v25 = vadd.f32 %v1721_v5, %v661_v51  ;;  %v733_v17 = vadd.f32 %v1721_v5, %v662_v38  ;;  %v734_v41 = vadd.f32 %v1721_v5, %v663_v22 }
  0xee   : > { %v667_v24 = vmul.f32 %v1710_v3, %v2330_v29  ;;  %v668_v30 = vmul.f32 %v1710_v3, %v2331_v40  ;;  %v735_v35 = vadd.f32 %v1721_v5, %v664_v57  ;;  %v736_v32 = vadd.f32 %v1721_v5, %v665_v10  ;;  %v2346_v40 = vld [vmem:[#allocation10_spill] sm:$0xff] }
  0xef   : > { %v737_v27 = vadd.f32 %v1721_v5, %v666_v16  ;;  %v796_v55 = vmax.f32 %v732_v25, 0.0  ;;  %v797_v19 = vmax.f32 %v733_v17, 0.0  ;;  %v798_v61 = vmax.f32 %v734_v41, 0.0  ;;  %v2348_v17 = vld [vmem:[#allocation11_spill] sm:$0xff] }
  0xf0   : > { %v738_v44 = vadd.f32 %v1721_v5, %v667_v24  ;;  %v739_v62 = vadd.f32 %v1721_v5, %v668_v30  ;;  %v799_v4 = vmax.f32 %v735_v35, 0.0  ;;  %v800_v18 = vmax.f32 %v736_v32, 0.0  ;;  %v2350_v32 = vld [vmem:[#allocation12_spill] sm:$0xff] }
  0xf1   : > { %v801_v20 = vmax.f32 %v737_v27, 0.0  ;;  %860 = vst [vmem:[%s2255_s3 + $0x100] sm:$0xff] %v796_v55  ;;  %861 = vst [vmem:[%s2255_s3 + $0x108] sm:$0xff] %v797_v19  ;;  %v2332_v63 = vsub.f32 %v1526_v13, %v1304_v31  ;;  %v2333_v11 = vsub.f32 %v1531_v12, %v1304_v31  ;;  %v2335_v54 = vsub.f32 %v2334_v46, %v1304_v31  ;;  %v2338_v12 = vld [vmem:[#allocation6_spill] sm:$0xff] }
  0xf2   : > { %v802_v58 = vmax.f32 %v738_v44, 0.0  ;;  %v803_v59 = vmax.f32 %v739_v62, 0.0  ;;  %862 = vst [vmem:[%s2255_s3 + $0x110] sm:$0xff] %v798_v61  ;;  %863 = vst [vmem:[%s2255_s3 + $0x118] sm:$0xff] %v799_v4  ;;  %v2337_v34 = vsub.f32 %v2336_v1, %v1304_v31  ;;  %v2339_v13 = vsub.f32 %v2338_v12, %v1304_v31  ;;  %v2352_v62 = vld [vmem:[#allocation13_spill] sm:$0xff]  ;;  %v2354_v61 = vld [vmem:[#allocation14_spill] sm:$0xff] }
  0xf3   : > { %v669_v0 = vmul.f32 %v1710_v3, %v2332_v63  ;;  %v670_v21 = vmul.f32 %v1710_v3, %v2333_v11  ;;  %v671_v33 = vmul.f32 %v1710_v3, %v2335_v54  ;;  %864 = vst [vmem:[%s2255_s3 + $0x120] sm:$0xff] %v800_v18  ;;  %865 = vst [vmem:[%s2255_s3 + $0x128] sm:$0xff] %v801_v20 }
  0xf4   : > { %v672_v2 = vmul.f32 %v1710_v3, %v2337_v34  ;;  %866 = vst [vmem:[%s2255_s3 + $0x130] sm:$0xff] %v802_v58  ;;  %867 = vst [vmem:[%s2255_s3 + $0x138] sm:$0xff] %v803_v59  ;;  %v673_v42 = vmul.f32 %v1710_v3, %v2339_v13  ;;  %v2341_v7 = vsub.f32 %v2340_v43, %v1304_v31 }
  0xf5   : > { %v2343_v8 = vsub.f32 %v2342_v49, %v1304_v31  ;;  %v2345_v26 = vsub.f32 %v2344_v37, %v1304_v31  ;;  %v740_v6 = vadd.f32 %v1721_v5, %v669_v0  ;;  %v741_v50 = vadd.f32 %v1721_v5, %v670_v21 }
  0xf6   : > { %v674_v48 = vmul.f32 %v1710_v3, %v2341_v7  ;;  %v742_v52 = vadd.f32 %v1721_v5, %v671_v33  ;;  %v743_v51 = vadd.f32 %v1721_v5, %v672_v2  ;;  %v744_v28 = vadd.f32 %v1721_v5, %v673_v42 }
  0xf7   : > { %v675_v36 = vmul.f32 %v1710_v3, %v2343_v8  ;;  %v676_v14 = vmul.f32 %v1710_v3, %v2345_v26  ;;  %v804_v39 = vmax.f32 %v740_v6, 0.0  ;;  %v805_v57 = vmax.f32 %v741_v50, 0.0  ;;  %v2361_v26 = vld [vmem:[#allocation15_spill] sm:$0xff]  ;;  %v2363_v50 = vld [vmem:[#allocation16_spill] sm:$0xff] }
  0xf8   : > { %v745_v38 = vadd.f32 %v1721_v5, %v674_v48  ;;  %v806_v9 = vmax.f32 %v742_v52, 0.0  ;;  %v807_v10 = vmax.f32 %v743_v51, 0.0  ;;  %v808_v15 = vmax.f32 %v744_v28, 0.0 }
  0xf9   : > { %v746_v56 = vadd.f32 %v1721_v5, %v675_v36  ;;  %v747_v22 = vadd.f32 %v1721_v5, %v676_v14  ;;  %868 = vst [vmem:[%s2255_s3 + $0x140] sm:$0xff] %v804_v39  ;;  %869 = vst [vmem:[%s2255_s3 + $0x148] sm:$0xff] %v805_v57  ;;  %v2347_v30 = vsub.f32 %v2346_v40, %v1304_v31  ;;  %v2369_v39 = vld [vmem:[#allocation19_spill] sm:$0xff] }
  0xfa   : > { %v809_v16 = vmax.f32 %v745_v38, 0.0  ;;  %870 = vst [vmem:[%s2255_s3 + $0x150] sm:$0xff] %v806_v9  ;;  %871 = vst [vmem:[%s2255_s3 + $0x158] sm:$0xff] %v807_v10  ;;  %v2349_v41 = vsub.f32 %v2348_v17, %v1304_v31  ;;  %v2351_v27 = vsub.f32 %v2350_v32, %v1304_v31  ;;  %v2353_v55 = vsub.f32 %v2352_v62, %v1304_v31  ;;  %v2367_v38 = vld [vmem:[#allocation18_spill] sm:$0xff]  ;;  %v2371_v10 = vld [vmem:[#allocation20_spill] sm:$0xff] }
  0xfb   : > { %v810_v29 = vmax.f32 %v746_v56, 0.0  ;;  %v811_v24 = vmax.f32 %v747_v22, 0.0  ;;  %v677_v25 = vmul.f32 %v1710_v3, %v2347_v30  ;;  %872 = vst [vmem:[%s2255_s3 + $0x160] sm:$0xff] %v808_v15  ;;  %v2355_v4 = vsub.f32 %v2354_v61, %v1304_v31 }
  0xfc   : > { %v678_v35 = vmul.f32 %v1710_v3, %v2349_v41  ;;  %v679_v44 = vmul.f32 %v1710_v3, %v2351_v27  ;;  %v680_v19 = vmul.f32 %v1710_v3, %v2353_v55  ;;  %873 = vst [vmem:[%s2255_s3 + $0x168] sm:$0xff] %v809_v16  ;;  %v2356_v20 = vsub.f32 %v1626_v47, %v1304_v31 }
  0xfd   : > { %874 = vst [vmem:[%s2255_s3 + $0x170] sm:$0xff] %v810_v29  ;;  %875 = vst [vmem:[%s2255_s3 + $0x178] sm:$0xff] %v811_v24  ;;  %v681_v18 = vmul.f32 %v1710_v3, %v2355_v4  ;;  %v2357_v59 = vsub.f32 %v1631_v60, %v1304_v31  ;;  %v2358_v0 = vsub.f32 %v1644_v45, %v1304_v31 }
  0xfe   : > { %v682_v58 = vmul.f32 %v1710_v3, %v2356_v20  ;;  %v748_v21 = vadd.f32 %v1721_v5, %v677_v25  ;;  %v749_v46 = vadd.f32 %v1721_v5, %v678_v35  ;;  %v750_v54 = vadd.f32 %v1721_v5, %v679_v44 }
  0xff   : > { %v683_v63 = vmul.f32 %v1710_v3, %v2357_v59  ;;  %v684_v11 = vmul.f32 %v1710_v3, %v2358_v0  ;;  %v751_v47 = vadd.f32 %v1721_v5, %v680_v19  ;;  %v752_v33 = vadd.f32 %v1721_v5, %v681_v18 }
 0x100   : > { %v753_v1 = vadd.f32 %v1721_v5, %v682_v58  ;;  %v812_v2 = vmax.f32 %v748_v21, 0.0  ;;  %v813_v45 = vmax.f32 %v749_v46, 0.0  ;;  %v814_v12 = vmax.f32 %v750_v54, 0.0 }
 0x101   : > { %v754_v60 = vadd.f32 %v1721_v5, %v683_v63  ;;  %v755_v34 = vadd.f32 %v1721_v5, %v684_v11  ;;  %v815_v13 = vmax.f32 %v751_v47, 0.0  ;;  %v816_v42 = vmax.f32 %v752_v33, 0.0 }
 0x102   : > { %v817_v43 = vmax.f32 %v753_v1, 0.0  ;;  %876 = vst [vmem:[%s2255_s3 + $0x180] sm:$0xff] %v812_v2  ;;  %877 = vst [vmem:[%s2255_s3 + $0x188] sm:$0xff] %v813_v45  ;;  %v2359_v49 = vsub.f32 %v1649_v23, %v1304_v31  ;;  %v2360_v36 = vsub.f32 %v1654_v53, %v1304_v31  ;;  %v2362_v14 = vsub.f32 %v2361_v26, %v1304_v31  ;;  %v2365_v23 = vld [vmem:[#allocation17_spill] sm:$0xff] }
 0x103   : > { %v818_v7 = vmax.f32 %v754_v60, 0.0  ;;  %v819_v48 = vmax.f32 %v755_v34, 0.0  ;;  %878 = vst [vmem:[%s2255_s3 + $0x190] sm:$0xff] %v814_v12  ;;  %879 = vst [vmem:[%s2255_s3 + $0x198] sm:$0xff] %v815_v13  ;;  %v2364_v52 = vsub.f32 %v2363_v50, %v1304_v31  ;;  %v2366_v53 = vsub.f32 %v2365_v23, %v1304_v31 }
 0x104   : > { %v685_v8 = vmul.f32 %v1710_v3, %v2359_v49  ;;  %v686_v37 = vmul.f32 %v1710_v3, %v2360_v36  ;;  %v687_v6 = vmul.f32 %v1710_v3, %v2362_v14  ;;  %880 = vst [vmem:[%s2255_s3 + $0x1a0] sm:$0xff] %v816_v42  ;;  %881 = vst [vmem:[%s2255_s3 + $0x1a8] sm:$0xff] %v817_v43 }
 0x105   : > { %v688_v51 = vmul.f32 %v1710_v3, %v2364_v52  ;;  %882 = vst [vmem:[%s2255_s3 + $0x1b0] sm:$0xff] %v818_v7  ;;  %883 = vst [vmem:[%s2255_s3 + $0x1b8] sm:$0xff] %v819_v48  ;;  %v689_v28 = vmul.f32 %v1710_v3, %v2366_v53  ;;  %v2368_v56 = vsub.f32 %v2367_v38, %v1304_v31 }
 0x106   : > { %v2370_v57 = vsub.f32 %v2369_v39, %v1304_v31  ;;  %v2372_v15 = vsub.f32 %v2371_v10, %v1304_v31  ;;  %v756_v29 = vadd.f32 %v1721_v5, %v685_v8  ;;  %v757_v24 = vadd.f32 %v1721_v5, %v686_v37 }
 0x107   : > { %v690_v22 = vmul.f32 %v1710_v3, %v2368_v56  ;;  %v758_v40 = vadd.f32 %v1721_v5, %v687_v6  ;;  %v759_v30 = vadd.f32 %v1721_v5, %v688_v51  ;;  %v760_v25 = vadd.f32 %v1721_v5, %v689_v28 }
 0x108   : > { %v691_v9 = vmul.f32 %v1710_v3, %v2370_v57  ;;  %v692_v16 = vmul.f32 %v1710_v3, %v2372_v15  ;;  %v820_v32 = vmax.f32 %v756_v29, 0.0  ;;  %v821_v31 = vmax.f32 %v757_v24, 0.0 }
 0x109   : > { %v761_v17 = vadd.f32 %v1721_v5, %v690_v22  ;;  %v822_v27 = vmax.f32 %v758_v40, 0.0  ;;  %v823_v3 = vmax.f32 %v759_v30, 0.0  ;;  %v824_v44 = vmax.f32 %v760_v25, 0.0 }
 0x10a   : > { %v762_v41 = vadd.f32 %v1721_v5, %v691_v9  ;;  %v763_v35 = vadd.f32 %v1721_v5, %v692_v16  ;;  %884 = vst [vmem:[%s2255_s3 + $0x1c0] sm:$0xff] %v820_v32  ;;  %885 = vst [vmem:[%s2255_s3 + $0x1c8] sm:$0xff] %v821_v31 }
 0x10b   : > { %v825_v62 = vmax.f32 %v761_v17, 0.0  ;;  %886 = vst [vmem:[%s2255_s3 + $0x1d0] sm:$0xff] %v822_v27  ;;  %887 = vst [vmem:[%s2255_s3 + $0x1d8] sm:$0xff] %v823_v3 }
 0x10c   : > { %v826_v55 = vmax.f32 %v762_v41, 0.0  ;;  %v827_v19 = vmax.f32 %v763_v35, 0.0  ;;  %888 = vst [vmem:[%s2255_s3 + $0x1e0] sm:$0xff] %v824_v44 }
 0x10d   : > { %889 = vst [vmem:[%s2255_s3 + $0x1e8] sm:$0xff] %v825_v62 }
 0x10e   : > { %890 = vst [vmem:[%s2255_s3 + $0x1f0] sm:$0xff] %v826_v55  ;;  %891 = vst [vmem:[%s2255_s3 + $0x1f8] sm:$0xff] %v827_v19 }
 0x10f PF: > { %s13_s14 = sadd.s32 1, %s1026_s14   ;;  %s2373_s12 = smov %s1022_s13 }
 0x110   : > { %p10_p7 = scmp.ge.s32.totalorder %s13_s14, 4   ;;  %s2374_s13 = smov %s2376_s15 }
 0x112   :  { %12 = sbr.rel (!%p10_p7) target bundleno = 2 (0x2), region = 74 }

// kernel: dcgan_generator.15
= control target key start
LH: loop header
LB: loop body
LE: loop exit
PB: predicated region body
PF: predicated region fallthrough
CT: control target
= control target key end

     0   :  { %s2504_s9 = smov 0   ;;  %s2506_s10 = smov 0   ;;  %s2807_s0 = inlined_call_operand.vmem [shape: bf16[4,512,512], index: 0, kind: input, shape index: {}]   ;;  %s2808_s1 = inlined_call_operand.vmem [shape: bf16[4,512,128], index: 1, kind: input, shape index: {}]   ;;  %s2809_s2 = inlined_call_operand.vmem [shape: f32[4,512,128], index: 2, kind: output, shape index: {}]  }
   0x1   :  { %s2508_s11 = smov 0  }
   0x2 LB: > { %s24_s12 = sadd.s32 1, %s2482_s10  ;;  %p1979_p0 = scmp.ge.s32.totalorder %s2486_s11, 1  ;;  %s2486_s11 = sphi %s2508_s11, %s12_s11   ;;  %s2482_s10 = sphi %s2506_s10, %s2811_s10   ;;  %s2478_s9 = sphi %s2504_s9, %s2810_s9  }
   0x3   : > { %p26_p1 = scmp.ge.s32.totalorder %s24_s12, 4  ;;  %p144_p2 = scmp.lt.s32.totalorder %s2486_s11, 5 }
   0x5   : > { %s2813_s12 = smov (%p26_p1, %s24_s12), 0  ;;  %p145_p3 = pnand %p1979_p0, %p144_p2 }
   0x6   : > { %p181_p4 = scmp.lt.s32.totalorder (!%p145_p3), %s2478_s9, 3  ;;  %v2488_v0 = vmov (!%p145_p3), 0  }
   0x7   : > { %148 = sbr.rel (%p145_p3) target bundleno = 547 (0x223), region = 28  ;;  %1231 = vmatprep.subr.bf16.mxu1 (!%p145_p3), %v2488_v0  ;;  %1520 = vmatprep.subr.bf16.mxu0 (!%p145_p3), %v2488_v0 }
   0xe   : > { %s2815_s9 = smov (!%p181_p4, %s2478_s9), 3 }
   0xf   : > { %s2149_s13 = sshll.u32 %s2815_s9, 8  ;;  %s2148_s17 = sshll.u32 %s2815_s9, 10 }
  0x10   : > { %s2530_s16 = scalar_lea.vmem %s2808_s1, %s2149_s13  ;;  %s2567_s20 = scalar_lea.vmem %s2807_s0, %s2148_s17 }
  0x11   : > { %v2240_v1 = vld [vmem:[%s2530_s16] sm:$0xff]   ;;  %v2242_v3 = vld [vmem:[%s2530_s16 + $0x8] sm:$0xff]   ;;  %v2244_v5 = vld [vmem:[%s2530_s16 + $0x10] sm:$0xff]   ;;  %s2150_s21 = sshll.u32 %s2815_s9, 9 }
  0x12   : > { %v2241_v2 = vld [vmem:[%s2530_s16 + $0x80] sm:$0xff]   ;;  %1232 = vmatpush1.bf16.msra.mxu1 %v2240_v1  ;;  %v2243_v4 = vld [vmem:[%s2530_s16 + $0x88] sm:$0xff]   ;;  %v2245_v6 = vld [vmem:[%s2530_s16 + $0x90] sm:$0xff]   ;;  %s2714_s24 = scalar_lea.vmem %s2809_s2, %s2150_s21 }
  0x13   : > { %1521 = vmatpush1.bf16.msra.mxu0 %v2241_v2  ;;  %1233 = vmatprep.subr.bf16.mxu1 %v2488_v0  ;;  %v2246_v7 = vld [vmem:[%s2530_s16 + $0x18] sm:$0xff]   ;;  %v2248_v9 = vld [vmem:[%s2530_s16 + $0x20] sm:$0xff]   ;;  %v2250_v11 = vld [vmem:[%s2530_s16 + $0x28] sm:$0xff]  }
  0x14   : > { %1522 = vmatprep.subr.bf16.mxu0 %v2488_v0  ;;  %v2247_v8 = vld [vmem:[%s2530_s16 + $0x98] sm:$0xff]   ;;  %v2249_v10 = vld [vmem:[%s2530_s16 + $0xa0] sm:$0xff]   ;;  %v2251_v12 = vld [vmem:[%s2530_s16 + $0xa8] sm:$0xff]  }
  0x15   : > { %v2252_v13 = vld [vmem:[%s2530_s16 + $0x30] sm:$0xff]   ;;  %v2254_v15 = vld [vmem:[%s2530_s16 + $0x38] sm:$0xff]   ;;  %v2256_v17 = vld [vmem:[%s2530_s16 + $0x40] sm:$0xff]  }
  0x16   : > { %1234 = vmatpush1.bf16.msra.mxu1 %v2242_v3  ;;  %v2253_v14 = vld [vmem:[%s2530_s16 + $0xb0] sm:$0xff]   ;;  %v2255_v16 = vld [vmem:[%s2530_s16 + $0xb8] sm:$0xff]   ;;  %v2257_v18 = vld [vmem:[%s2530_s16 + $0xc0] sm:$0xff]  }
  0x17   : > { %1523 = vmatpush1.bf16.msra.mxu0 %v2243_v4  ;;  %1235 = vmatprep.subr.bf16.mxu1 %v2488_v0  ;;  %v2274_v19 = vld [vmem:[%s2567_s20 + $0x4] ss:$16 sps:$4 sm:$0xff]   ;;  %v2258_v20 = vld [vmem:[%s2530_s16 + $0x48] sm:$0xff]   ;;  %v2262_v25 = vld [vmem:[%s2530_s16 + $0x58] sm:$0xff]  }
  0x18   : > { %1524 = vmatprep.subr.bf16.mxu0 %v2488_v0  ;;  %v2277_v21 = vld [vmem:[%s2567_s20 + $0xc] ss:$16 sps:$4 sm:$0xff]   ;;  %1263 = vmatprep.mubr.bf16.mxu1 %v2274_v19  ;;  %v2260_v23 = vld [vmem:[%s2530_s16 + $0x50] sm:$0xff]   ;;  %v2264_v27 = vld [vmem:[%s2530_s16 + $0x60] sm:$0xff]  }
  0x19   : > { %v2259_v22 = vld [vmem:[%s2530_s16 + $0xc8] sm:$0xff]   ;;  %1552 = vmatprep.mubr.bf16.mxu0 %v2277_v21  ;;  %v2261_v24 = vld [vmem:[%s2530_s16 + $0xd0] sm:$0xff]   ;;  %v2263_v26 = vld [vmem:[%s2530_s16 + $0xd8] sm:$0xff]  }
  0x1a   : > { %1236 = vmatpush1.bf16.msra.mxu1 %v2244_v5  ;;  %v2265_v28 = vld [vmem:[%s2530_s16 + $0xe0] sm:$0xff]   ;;  %v2266_v29 = vld [vmem:[%s2530_s16 + $0x68] sm:$0xff]   ;;  %v2268_v31 = vld [vmem:[%s2530_s16 + $0x70] sm:$0xff]  }
  0x1b   : > { %1525 = vmatpush1.bf16.msra.mxu0 %v2245_v6  ;;  %1237 = vmatprep.subr.bf16.mxu1 %v2488_v0  ;;  %v2267_v30 = vld [vmem:[%s2530_s16 + $0xe8] sm:$0xff]   ;;  %v2269_v32 = vld [vmem:[%s2530_s16 + $0xf0] sm:$0xff]   ;;  %v2270_v33 = vld [vmem:[%s2530_s16 + $0x78] sm:$0xff]  }
  0x1c   : > { %1526 = vmatprep.subr.bf16.mxu0 %v2488_v0  ;;  %v2271_v34 = vld [vmem:[%s2530_s16 + $0xf8] sm:$0xff]   ;;  %v2272_v35 = vld [vmem:[%s2567_s20] ss:$16 sps:$4 sm:$0xff]   ;;  %v2278_v37 = vld [vmem:[%s2567_s20 + $0x24] ss:$16 sps:$4 sm:$0xff]  }
  0x1d   : > { %v2275_v36 = vld [vmem:[%s2567_s20 + $0x8] ss:$16 sps:$4 sm:$0xff]   ;;  %v2280_v38 = vld [vmem:[%s2567_s20 + $0x2c] ss:$16 sps:$4 sm:$0xff]   ;;  %v2282_v39 = vld [vmem:[%s2567_s20 + $0x20] ss:$16 sps:$4 sm:$0xff]  }
  0x1e   : > { %1238 = vmatpush1.bf16.msra.mxu1 %v2246_v7  ;;  %v2283_v40 = vld [vmem:[%s2567_s20 + $0x28] ss:$16 sps:$4 sm:$0xff]   ;;  %v2284_v41 = vld [vmem:[%s2567_s20 + $0x44] ss:$16 sps:$4 sm:$0xff]   ;;  %v2286_v42 = vld [vmem:[%s2567_s20 + $0x4c] ss:$16 sps:$4 sm:$0xff]  }
  0x1f   : > { %1527 = vmatpush1.bf16.msra.mxu0 %v2247_v8  ;;  %1239 = vmatprep.subr.bf16.mxu1 %v2488_v0  ;;  %v2288_v43 = vld [vmem:[%s2567_s20 + $0x40] ss:$16 sps:$4 sm:$0xff]   ;;  %v2289_v44 = vld [vmem:[%s2567_s20 + $0x48] ss:$16 sps:$4 sm:$0xff]   ;;  %v2290_v45 = vld [vmem:[%s2567_s20 + $0x64] ss:$16 sps:$4 sm:$0xff]  }
  0x20   : > { %1528 = vmatprep.subr.bf16.mxu0 %v2488_v0  ;;  %v2292_v46 = vld [vmem:[%s2567_s20 + $0x6c] ss:$16 sps:$4 sm:$0xff]   ;;  %v2294_v47 = vld [vmem:[%s2567_s20 + $0x60] ss:$16 sps:$4 sm:$0xff]   ;;  %v2295_v48 = vld [vmem:[%s2567_s20 + $0x68] ss:$16 sps:$4 sm:$0xff]  }
  0x21   : > { %v2296_v49 = vld [vmem:[%s2567_s20 + $0x84] ss:$16 sps:$4 sm:$0xff]   ;;  %v2298_v50 = vld [vmem:[%s2567_s20 + $0x8c] ss:$16 sps:$4 sm:$0xff]   ;;  %v2300_v51 = vld [vmem:[%s2567_s20 + $0x80] ss:$16 sps:$4 sm:$0xff]  }
  0x22   : > { %1240 = vmatpush1.bf16.msra.mxu1 %v2248_v9  ;;  %v2301_v52 = vld [vmem:[%s2567_s20 + $0x88] ss:$16 sps:$4 sm:$0xff]   ;;  %v2302_v53 = vld [vmem:[%s2567_s20 + $0xa4] ss:$16 sps:$4 sm:$0xff]   ;;  %v2304_v54 = vld [vmem:[%s2567_s20 + $0xac] ss:$16 sps:$4 sm:$0xff]  }
  0x23   : > { %1529 = vmatpush1.bf16.msra.mxu0 %v2249_v10  ;;  %1241 = vmatprep.subr.bf16.mxu1 %v2488_v0  ;;  %v2306_v55 = vld [vmem:[%s2567_s20 + $0xa0] ss:$16 sps:$4 sm:$0xff]   ;;  %v2307_v56 = vld [vmem:[%s2567_s20 + $0xa8] ss:$16 sps:$4 sm:$0xff]   ;;  %v2308_v57 = vld [vmem:[%s2567_s20 + $0xc4] ss:$16 sps:$4 sm:$0xff]  }
  0x24   : > { %1530 = vmatprep.subr.bf16.mxu0 %v2488_v0  ;;  %v2310_v58 = vld [vmem:[%s2567_s20 + $0xcc] ss:$16 sps:$4 sm:$0xff]   ;;  %v2312_v59 = vld [vmem:[%s2567_s20 + $0xc0] ss:$16 sps:$4 sm:$0xff]   ;;  %v2313_v60 = vld [vmem:[%s2567_s20 + $0xc8] ss:$16 sps:$4 sm:$0xff]  }
  0x25   : > { %v2314_v61 = vld [vmem:[%s2567_s20 + $0xe4] ss:$16 sps:$4 sm:$0xff]   ;;  %v2316_v62 = vld [vmem:[%s2567_s20 + $0xec] ss:$16 sps:$4 sm:$0xff]   ;;  %v2318_v63 = vld [vmem:[%s2567_s20 + $0xe0] ss:$16 sps:$4 sm:$0xff]  }
  0x26   : > { %1242 = vmatpush1.bf16.msra.mxu1 %v2250_v11  ;;  %v2320_v1 = vld [vmem:[%s2567_s20 + $0x104] ss:$16 sps:$4 sm:$0xff]   ;;  %v2322_v2 = vld [vmem:[%s2567_s20 + $0x10c] ss:$16 sps:$4 sm:$0xff]   ;;  %v2324_v3 = vld [vmem:[%s2567_s20 + $0x100] ss:$16 sps:$4 sm:$0xff]  }
  0x27   : > { %1531 = vmatpush1.bf16.msra.mxu0 %v2251_v12  ;;  %1243 = vmatprep.subr.bf16.mxu1 %v2488_v0  ;;  %v2325_v4 = vld [vmem:[%s2567_s20 + $0x108] ss:$16 sps:$4 sm:$0xff]   ;;  %v2326_v5 = vld [vmem:[%s2567_s20 + $0x124] ss:$16 sps:$4 sm:$0xff]   ;;  %v2328_v6 = vld [vmem:[%s2567_s20 + $0x12c] ss:$16 sps:$4 sm:$0xff]  }
  0x28   : > { %1532 = vmatprep.subr.bf16.mxu0 %v2488_v0  ;;  %v2330_v7 = vld [vmem:[%s2567_s20 + $0x120] ss:$16 sps:$4 sm:$0xff]   ;;  %v2331_v8 = vld [vmem:[%s2567_s20 + $0x128] ss:$16 sps:$4 sm:$0xff]   ;;  %v2332_v9 = vld [vmem:[%s2567_s20 + $0x144] ss:$16 sps:$4 sm:$0xff]  }
  0x29   : > { %v2334_v10 = vld [vmem:[%s2567_s20 + $0x14c] ss:$16 sps:$4 sm:$0xff]   ;;  %v2336_v11 = vld [vmem:[%s2567_s20 + $0x140] ss:$16 sps:$4 sm:$0xff]   ;;  %v2337_v12 = vld [vmem:[%s2567_s20 + $0x148] ss:$16 sps:$4 sm:$0xff]  }
  0x2a   : > { %1244 = vmatpush1.bf16.msra.mxu1 %v2252_v13  ;;  %v2338_v13 = vld [vmem:[%s2567_s20 + $0x164] ss:$16 sps:$4 sm:$0xff]   ;;  %v2348_v19 = vld [vmem:[%s2567_s20 + $0x180] ss:$16 sps:$4 sm:$0xff]  }
  0x2b   : > { %1533 = vmatpush1.bf16.msra.mxu0 %v2253_v14  ;;  %1245 = vmatprep.subr.bf16.mxu1 %v2488_v0  ;;  %v2340_v14 = vld [vmem:[%s2567_s20 + $0x16c] ss:$16 sps:$4 sm:$0xff]   ;;  %v2350_v21 = vld [vmem:[%s2567_s20 + $0x1a4] ss:$16 sps:$4 sm:$0xff]  }
  0x2c   : > { %1534 = vmatprep.subr.bf16.mxu0 %v2488_v0 }
  0x2e   : > { %1246 = vmatpush1.bf16.msra.mxu1 %v2254_v15  ;;  %v2342_v15 = vld [vmem:[%s2567_s20 + $0x160] ss:$16 sps:$4 sm:$0xff]  }
  0x2f   : > { %1535 = vmatpush1.bf16.msra.mxu0 %v2255_v16  ;;  %1247 = vmatprep.subr.bf16.mxu1 %v2488_v0  ;;  %v2343_v16 = vld [vmem:[%s2567_s20 + $0x168] ss:$16 sps:$4 sm:$0xff]  }
  0x30   : > { %1536 = vmatprep.subr.bf16.mxu0 %v2488_v0 }
  0x32   : > { %1248 = vmatpush1.bf16.msra.mxu1 %v2256_v17  ;;  %v2344_v17 = vld [vmem:[%s2567_s20 + $0x184] ss:$16 sps:$4 sm:$0xff]  }
  0x33   : > { %1537 = vmatpush1.bf16.msra.mxu0 %v2257_v18  ;;  %1249 = vmatprep.subr.bf16.mxu1 %v2488_v0  ;;  %v2346_v18 = vld [vmem:[%s2567_s20 + $0x18c] ss:$16 sps:$4 sm:$0xff]  }
  0x34   : > { %1538 = vmatprep.subr.bf16.mxu0 %v2488_v0 }
  0x36   : > { %1250 = vmatpush1.bf16.msra.mxu1 %v2258_v20  ;;  %v2349_v20 = vld [vmem:[%s2567_s20 + $0x188] ss:$16 sps:$4 sm:$0xff]  }
  0x37   : > { %1539 = vmatpush1.bf16.msra.mxu0 %v2259_v22  ;;  %1251 = vmatprep.subr.bf16.mxu1 %v2488_v0  ;;  %v2352_v22 = vld [vmem:[%s2567_s20 + $0x1ac] ss:$16 sps:$4 sm:$0xff]  }
  0x38   : > { %1540 = vmatprep.subr.bf16.mxu0 %v2488_v0 }
  0x3a   : > { %1252 = vmatpush1.bf16.msra.mxu1 %v2260_v23  ;;  %v2354_v23 = vld [vmem:[%s2567_s20 + $0x1a0] ss:$16 sps:$4 sm:$0xff]  }
  0x3b   : > { %1541 = vmatpush1.bf16.msra.mxu0 %v2261_v24  ;;  %1253 = vmatprep.subr.bf16.mxu1 %v2488_v0  ;;  %v2355_v24 = vld [vmem:[%s2567_s20 + $0x1a8] ss:$16 sps:$4 sm:$0xff]  }
  0x3c   : > { %1542 = vmatprep.subr.bf16.mxu0 %v2488_v0 }
  0x3e   : > { %1254 = vmatpush1.bf16.msra.mxu1 %v2262_v25  ;;  %v2356_v25 = vld [vmem:[%s2567_s20 + $0x1c4] ss:$16 sps:$4 sm:$0xff]  }
  0x3f   : > { %1543 = vmatpush1.bf16.msra.mxu0 %v2263_v26  ;;  %1255 = vmatprep.subr.bf16.mxu1 %v2488_v0  ;;  %v2358_v26 = vld [vmem:[%s2567_s20 + $0x1cc] ss:$16 sps:$4 sm:$0xff]  }
  0x40   : > { %1544 = vmatprep.subr.bf16.mxu0 %v2488_v0 }
  0x42   : > { %1256 = vmatpush1.bf16.msra.mxu1 %v2264_v27  ;;  %v2360_v27 = vld [vmem:[%s2567_s20 + $0x1c0] ss:$16 sps:$4 sm:$0xff]  }
  0x43   : > { %1545 = vmatpush1.bf16.msra.mxu0 %v2265_v28  ;;  %1257 = vmatprep.subr.bf16.mxu1 %v2488_v0  ;;  %v2361_v28 = vld [vmem:[%s2567_s20 + $0x1c8] ss:$16 sps:$4 sm:$0xff]  }
  0x44   : > { %1546 = vmatprep.subr.bf16.mxu0 %v2488_v0 }
  0x46   : > { %1258 = vmatpush1.bf16.msra.mxu1 %v2266_v29  ;;  %v2362_v29 = vld [vmem:[%s2567_s20 + $0x1e4] ss:$16 sps:$4 sm:$0xff]  }
  0x47   : > { %1547 = vmatpush1.bf16.msra.mxu0 %v2267_v30  ;;  %1259 = vmatprep.subr.bf16.mxu1 %v2488_v0  ;;  %v2364_v30 = vld [vmem:[%s2567_s20 + $0x1ec] ss:$16 sps:$4 sm:$0xff]  }
  0x48   : > { %1548 = vmatprep.subr.bf16.mxu0 %v2488_v0 }
  0x4a   : > { %1260 = vmatpush1.bf16.msra.mxu1 %v2268_v31  ;;  %v2366_v31 = vld [vmem:[%s2567_s20 + $0x1e0] ss:$16 sps:$4 sm:$0xff]  }
  0x4b   : > { %1549 = vmatpush1.bf16.msra.mxu0 %v2269_v32  ;;  %1261 = vmatprep.subr.bf16.mxu1 %v2488_v0  ;;  %v2367_v32 = vld [vmem:[%s2567_s20 + $0x1e8] ss:$16 sps:$4 sm:$0xff]  }
  0x4c   : > { %1550 = vmatprep.subr.bf16.mxu0 %v2488_v0  ;;  %v2319_v0 = vld [vmem:[%s2567_s20 + $0xe8] ss:$16 sps:$4 sm:$0xff]  }
  0x4e   : > { %1262 = vmatpush1.bf16.msra.mxu1 %v2270_v33  ;;  %v2368_v33 = vld [vmem:[%s2567_s20 + $0x204] ss:$16 sps:$4 sm:$0xff]  }
  0x4f   : > { %1551 = vmatpush1.bf16.msra.mxu0 %v2271_v34  ;;  %v2370_v34 = vld [vmem:[%s2567_s20 + $0x20c] ss:$16 sps:$4 sm:$0xff]  }
  0x51   : > { %1264 = vmatmul.mubr.bf16.vlgmr.msra.gmra.mrb[0].mxu1 %v2272_v35  ;;  %v2372_v35 = vld [vmem:[%s2567_s20 + $0x200] ss:$16 sps:$4 sm:$0xff]  }
  0x52   : > { %1553 = vmatmul.mubr.bf16.vlgmr.msra.gmra.mrb[0].mxu0 %v2275_v36  ;;  %1271 = vmatprep.mubr.bf16.mxu1 %v2278_v37  ;;  %v2373_v36 = vld [vmem:[%s2567_s20 + $0x208] ss:$16 sps:$4 sm:$0xff]   ;;  %v2374_v37 = vld [vmem:[%s2567_s20 + $0x224] ss:$16 sps:$4 sm:$0xff]  }
  0x53   : > { %1560 = vmatprep.mubr.bf16.mxu0 %v2280_v38  ;;  %v2376_v38 = vld [vmem:[%s2567_s20 + $0x22c] ss:$16 sps:$4 sm:$0xff]  }
  0x59   : > { %1272 = vmatmul.mubr.bf16.gmra.mrb[4].mxu1 %v2282_v39  ;;  %v2378_v39 = vld [vmem:[%s2567_s20 + $0x220] ss:$16 sps:$4 sm:$0xff]  }
  0x5a   : > { %1561 = vmatmul.mubr.bf16.gmra.mrb[4].mxu0 %v2283_v40  ;;  %1279 = vmatprep.mubr.bf16.mxu1 %v2284_v41  ;;  %v2379_v40 = vld [vmem:[%s2567_s20 + $0x228] ss:$16 sps:$4 sm:$0xff]   ;;  %v2380_v41 = vld [vmem:[%s2567_s20 + $0x244] ss:$16 sps:$4 sm:$0xff]  }
  0x5b   : > { %1568 = vmatprep.mubr.bf16.mxu0 %v2286_v42  ;;  %v2382_v42 = vld [vmem:[%s2567_s20 + $0x24c] ss:$16 sps:$4 sm:$0xff]  }
  0x61   : > { %1280 = vmatmul.mubr.bf16.gmra.mrb[8].mxu1 %v2288_v43  ;;  %v2384_v43 = vld [vmem:[%s2567_s20 + $0x240] ss:$16 sps:$4 sm:$0xff]  }
  0x62   : > { %1569 = vmatmul.mubr.bf16.gmra.mrb[8].mxu0 %v2289_v44  ;;  %1287 = vmatprep.mubr.bf16.mxu1 %v2290_v45  ;;  %v2385_v44 = vld [vmem:[%s2567_s20 + $0x248] ss:$16 sps:$4 sm:$0xff]   ;;  %v2386_v45 = vld [vmem:[%s2567_s20 + $0x264] ss:$16 sps:$4 sm:$0xff]  }
  0x63   : > { %1576 = vmatprep.mubr.bf16.mxu0 %v2292_v46  ;;  %v2388_v46 = vld [vmem:[%s2567_s20 + $0x26c] ss:$16 sps:$4 sm:$0xff]  }
  0x69   : > { %1288 = vmatmul.mubr.bf16.gmra.mrb[12].mxu1 %v2294_v47  ;;  %v2390_v47 = vld [vmem:[%s2567_s20 + $0x260] ss:$16 sps:$4 sm:$0xff]  }
  0x6a   : > { %1577 = vmatmul.mubr.bf16.gmra.mrb[12].mxu0 %v2295_v48  ;;  %1295 = vmatprep.mubr.bf16.mxu1 %v2296_v49  ;;  %v2391_v48 = vld [vmem:[%s2567_s20 + $0x268] ss:$16 sps:$4 sm:$0xff]   ;;  %v2392_v49 = vld [vmem:[%s2567_s20 + $0x284] ss:$16 sps:$4 sm:$0xff]  }
  0x6b   : > { %1584 = vmatprep.mubr.bf16.mxu0 %v2298_v50  ;;  %v2394_v50 = vld [vmem:[%s2567_s20 + $0x28c] ss:$16 sps:$4 sm:$0xff]  }
  0x71   : > { %1296 = vmatmul.mubr.bf16.gmra.mrb[16].mxu1 %v2300_v51  ;;  %v2396_v51 = vld [vmem:[%s2567_s20 + $0x280] ss:$16 sps:$4 sm:$0xff]  }
  0x72   : > { %1585 = vmatmul.mubr.bf16.gmra.mrb[16].mxu0 %v2301_v52  ;;  %1303 = vmatprep.mubr.bf16.mxu1 %v2302_v53  ;;  %v2397_v52 = vld [vmem:[%s2567_s20 + $0x288] ss:$16 sps:$4 sm:$0xff]   ;;  %v2398_v53 = vld [vmem:[%s2567_s20 + $0x2a4] ss:$16 sps:$4 sm:$0xff]  }
  0x73   : > { %1592 = vmatprep.mubr.bf16.mxu0 %v2304_v54  ;;  %v2400_v54 = vld [vmem:[%s2567_s20 + $0x2ac] ss:$16 sps:$4 sm:$0xff]  }
  0x79   : > { %1304 = vmatmul.mubr.bf16.gmra.mrb[20].mxu1 %v2306_v55  ;;  %v2402_v55 = vld [vmem:[%s2567_s20 + $0x2a0] ss:$16 sps:$4 sm:$0xff]  }
  0x7a   : > { %1593 = vmatmul.mubr.bf16.gmra.mrb[20].mxu0 %v2307_v56  ;;  %1311 = vmatprep.mubr.bf16.mxu1 %v2308_v57  ;;  %v2403_v56 = vld [vmem:[%s2567_s20 + $0x2a8] ss:$16 sps:$4 sm:$0xff]   ;;  %v2404_v57 = vld [vmem:[%s2567_s20 + $0x2c4] ss:$16 sps:$4 sm:$0xff]  }
  0x7b   : > { %1600 = vmatprep.mubr.bf16.mxu0 %v2310_v58  ;;  %v2406_v58 = vld [vmem:[%s2567_s20 + $0x2cc] ss:$16 sps:$4 sm:$0xff]  }
  0x81   : > { %1312 = vmatmul.mubr.bf16.gmra.mrb[24].mxu1 %v2312_v59  ;;  %v2408_v59 = vld [vmem:[%s2567_s20 + $0x2c0] ss:$16 sps:$4 sm:$0xff]  }
  0x82   : > { %1601 = vmatmul.mubr.bf16.gmra.mrb[24].mxu0 %v2313_v60  ;;  %1319 = vmatprep.mubr.bf16.mxu1 %v2314_v61  ;;  %v2409_v60 = vld [vmem:[%s2567_s20 + $0x2c8] ss:$16 sps:$4 sm:$0xff]   ;;  %v2410_v61 = vld [vmem:[%s2567_s20 + $0x2e4] ss:$16 sps:$4 sm:$0xff]  }
  0x83   : > { %1608 = vmatprep.mubr.bf16.mxu0 %v2316_v62  ;;  %v2412_v62 = vld [vmem:[%s2567_s20 + $0x2ec] ss:$16 sps:$4 sm:$0xff]  }
  0x89   : > { %1320 = vmatmul.mubr.bf16.gmra.mrb[28].mxu1 %v2318_v63  ;;  %v2414_v63 = vld [vmem:[%s2567_s20 + $0x2e0] ss:$16 sps:$4 sm:$0xff]  }
  0x8a   : > { %1609 = vmatmul.mubr.bf16.gmra.mrb[28].mxu0 %v2319_v0  ;;  %1327 = vmatprep.mubr.bf16.mxu1 %v2320_v1  ;;  %v2415_v0 = vld [vmem:[%s2567_s20 + $0x2e8] ss:$16 sps:$4 sm:$0xff]   ;;  %v2416_v1 = vld [vmem:[%s2567_s20 + $0x304] ss:$16 sps:$4 sm:$0xff]  }
  0x8b   : > { %1616 = vmatprep.mubr.bf16.mxu0 %v2322_v2  ;;  %v2418_v2 = vld [vmem:[%s2567_s20 + $0x30c] ss:$16 sps:$4 sm:$0xff]  }
  0x91   : > { %1328 = vmatmul.mubr.bf16.gmra.mrb[32].mxu1 %v2324_v3  ;;  %v2420_v3 = vld [vmem:[%s2567_s20 + $0x300] ss:$16 sps:$4 sm:$0xff]  }
  0x92   : > { %1617 = vmatmul.mubr.bf16.gmra.mrb[32].mxu0 %v2325_v4  ;;  %1335 = vmatprep.mubr.bf16.mxu1 %v2326_v5  ;;  %v2421_v4 = vld [vmem:[%s2567_s20 + $0x308] ss:$16 sps:$4 sm:$0xff]   ;;  %v2422_v5 = vld [vmem:[%s2567_s20 + $0x324] ss:$16 sps:$4 sm:$0xff]  }
  0x93   : > { %1624 = vmatprep.mubr.bf16.mxu0 %v2328_v6  ;;  %v2424_v6 = vld [vmem:[%s2567_s20 + $0x32c] ss:$16 sps:$4 sm:$0xff]  }
  0x99   : > { %1336 = vmatmul.mubr.bf16.gmra.mrb[36].mxu1 %v2330_v7  ;;  %v2426_v7 = vld [vmem:[%s2567_s20 + $0x320] ss:$16 sps:$4 sm:$0xff]  }
  0x9a   : > { %1625 = vmatmul.mubr.bf16.gmra.mrb[36].mxu0 %v2331_v8  ;;  %1343 = vmatprep.mubr.bf16.mxu1 %v2332_v9  ;;  %v2427_v8 = vld [vmem:[%s2567_s20 + $0x328] ss:$16 sps:$4 sm:$0xff]   ;;  %v2428_v9 = vld [vmem:[%s2567_s20 + $0x344] ss:$16 sps:$4 sm:$0xff]  }
  0x9b   : > { %1632 = vmatprep.mubr.bf16.mxu0 %v2334_v10  ;;  %v2430_v10 = vld [vmem:[%s2567_s20 + $0x34c] ss:$16 sps:$4 sm:$0xff]  }
  0xa1   : > { %1344 = vmatmul.mubr.bf16.gmra.mrb[40].mxu1 %v2336_v11  ;;  %v2432_v11 = vld [vmem:[%s2567_s20 + $0x340] ss:$16 sps:$4 sm:$0xff]  }
  0xa2   : > { %1633 = vmatmul.mubr.bf16.gmra.mrb[40].mxu0 %v2337_v12  ;;  %1351 = vmatprep.mubr.bf16.mxu1 %v2338_v13  ;;  %v2433_v12 = vld [vmem:[%s2567_s20 + $0x348] ss:$16 sps:$4 sm:$0xff]   ;;  %v2434_v13 = vld [vmem:[%s2567_s20 + $0x364] ss:$16 sps:$4 sm:$0xff]  }
  0xa3   : > { %1640 = vmatprep.mubr.bf16.mxu0 %v2340_v14  ;;  %v2436_v14 = vld [vmem:[%s2567_s20 + $0x36c] ss:$16 sps:$4 sm:$0xff]  }
  0xa9   : > { %1352 = vmatmul.mubr.bf16.gmra.mrb[44].mxu1 %v2342_v15 }
  0xaa   : > { %1641 = vmatmul.mubr.bf16.gmra.mrb[44].mxu0 %v2343_v16  ;;  %1359 = vmatprep.mubr.bf16.mxu1 %v2344_v17 }
  0xab   : > { %1648 = vmatprep.mubr.bf16.mxu0 %v2346_v18  ;;  %v2438_v18 = vld [vmem:[%s2567_s20 + $0x360] ss:$16 sps:$4 sm:$0xff]  }
  0xb1   : > { %1360 = vmatmul.mubr.bf16.gmra.mrb[48].mxu1 %v2348_v19 }
  0xb2   : > { %1649 = vmatmul.mubr.bf16.gmra.mrb[48].mxu0 %v2349_v20  ;;  %1367 = vmatprep.mubr.bf16.mxu1 %v2350_v21 }
  0xb3   : > { %1656 = vmatprep.mubr.bf16.mxu0 %v2352_v22  ;;  %v2439_v22 = vld [vmem:[%s2567_s20 + $0x368] ss:$16 sps:$4 sm:$0xff]  }
  0xb9   : > { %1368 = vmatmul.mubr.bf16.gmra.mrb[52].mxu1 %v2354_v23  ;;  %v2440_v23 = vld [vmem:[%s2567_s20 + $0x384] ss:$16 sps:$4 sm:$0xff]  }
  0xba   : > { %1657 = vmatmul.mubr.bf16.gmra.mrb[52].mxu0 %v2355_v24  ;;  %1375 = vmatprep.mubr.bf16.mxu1 %v2356_v25 }
  0xbb   : > { %1664 = vmatprep.mubr.bf16.mxu0 %v2358_v26  ;;  %v2442_v26 = vld [vmem:[%s2567_s20 + $0x38c] ss:$16 sps:$4 sm:$0xff]  }
  0xc1   : > { %1376 = vmatmul.mubr.bf16.gmra.mrb[56].mxu1 %v2360_v27 }
  0xc2   : > { %1665 = vmatmul.mubr.bf16.gmra.mrb[56].mxu0 %v2361_v28  ;;  %1383 = vmatprep.mubr.bf16.mxu1 %v2362_v29 }
  0xc3   : > { %1672 = vmatprep.mubr.bf16.mxu0 %v2364_v30 }
  0xc9   : > { %1384 = vmatmul.mubr.bf16.gmra.mrb[60].mxu1 %v2366_v31 }
  0xca   : > { %1673 = vmatmul.mubr.bf16.gmra.mrb[60].mxu0 %v2367_v32  ;;  %1391 = vmatprep.mubr.bf16.mxu1 %v2368_v33  ;;  %v2444_v32 = vld [vmem:[%s2567_s20 + $0x380] ss:$16 sps:$4 sm:$0xff]  }
  0xcb   : > { %1680 = vmatprep.mubr.bf16.mxu0 %v2370_v34 }
  0xd1   : > { %1392 = vmatmul.mubr.bf16.gmra.mrb[64].mxu1 %v2372_v35 }
  0xd2   : > { %1681 = vmatmul.mubr.bf16.gmra.mrb[64].mxu0 %v2373_v36  ;;  %1399 = vmatprep.mubr.bf16.mxu1 %v2374_v37  ;;  %v2445_v36 = vld [vmem:[%s2567_s20 + $0x388] ss:$16 sps:$4 sm:$0xff]   ;;  %v2446_v37 = vld [vmem:[%s2567_s20 + $0x3a4] ss:$16 sps:$4 sm:$0xff]  }
  0xd3   : > { %1688 = vmatprep.mubr.bf16.mxu0 %v2376_v38 }
  0xd9   : > { %1400 = vmatmul.mubr.bf16.gmra.mrb[68].mxu1 %v2378_v39 }
  0xda   : > { %1689 = vmatmul.mubr.bf16.gmra.mrb[68].mxu0 %v2379_v40  ;;  %1407 = vmatprep.mubr.bf16.mxu1 %v2380_v41  ;;  %v2448_v40 = vld [vmem:[%s2567_s20 + $0x3ac] ss:$16 sps:$4 sm:$0xff]  }
  0xdb   : > { %1696 = vmatprep.mubr.bf16.mxu0 %v2382_v42 }
  0xe1   : > { %1408 = vmatmul.mubr.bf16.gmra.mrb[72].mxu1 %v2384_v43 }
  0xe2   : > { %1697 = vmatmul.mubr.bf16.gmra.mrb[72].mxu0 %v2385_v44  ;;  %1415 = vmatprep.mubr.bf16.mxu1 %v2386_v45 }
  0xe3   : > { %1704 = vmatprep.mubr.bf16.mxu0 %v2388_v46  ;;  %v2450_v46 = vld [vmem:[%s2567_s20 + $0x3a0] ss:$16 sps:$4 sm:$0xff]  }
  0xe9   : > { %1416 = vmatmul.mubr.bf16.gmra.mrb[76].mxu1 %v2390_v47 }
  0xea   : > { %1705 = vmatmul.mubr.bf16.gmra.mrb[76].mxu0 %v2391_v48  ;;  %1423 = vmatprep.mubr.bf16.mxu1 %v2392_v49 }
  0xeb   : > { %1712 = vmatprep.mubr.bf16.mxu0 %v2394_v50  ;;  %v2451_v50 = vld [vmem:[%s2567_s20 + $0x3a8] ss:$16 sps:$4 sm:$0xff]  }
  0xf1   : > { %1424 = vmatmul.mubr.bf16.gmra.mrb[80].mxu1 %v2396_v51  ;;  %v2452_v51 = vld [vmem:[%s2567_s20 + $0x3c4] ss:$16 sps:$4 sm:$0xff]  }
  0xf2   : > { %1713 = vmatmul.mubr.bf16.gmra.mrb[80].mxu0 %v2397_v52  ;;  %1431 = vmatprep.mubr.bf16.mxu1 %v2398_v53 }
  0xf3   : > { %1720 = vmatprep.mubr.bf16.mxu0 %v2400_v54  ;;  %v2454_v54 = vld [vmem:[%s2567_s20 + $0x3cc] ss:$16 sps:$4 sm:$0xff]  }
  0xf9   : > { %1432 = vmatmul.mubr.bf16.gmra.mrb[84].mxu1 %v2402_v55 }
  0xfa   : > { %1721 = vmatmul.mubr.bf16.gmra.mrb[84].mxu0 %v2403_v56  ;;  %1439 = vmatprep.mubr.bf16.mxu1 %v2404_v57 }
  0xfb   : > { %1728 = vmatprep.mubr.bf16.mxu0 %v2406_v58 }
 0x101   : > { %1440 = vmatmul.mubr.bf16.gmra.mrb[88].mxu1 %v2408_v59 }
 0x102   : > { %1729 = vmatmul.mubr.bf16.gmra.mrb[88].mxu0 %v2409_v60  ;;  %1447 = vmatprep.mubr.bf16.mxu1 %v2410_v61  ;;  %v2456_v60 = vld [vmem:[%s2567_s20 + $0x3c0] ss:$16 sps:$4 sm:$0xff]  }
 0x103   : > { %1736 = vmatprep.mubr.bf16.mxu0 %v2412_v62 }
 0x109   : > { %1448 = vmatmul.mubr.bf16.gmra.mrb[92].mxu1 %v2414_v63 }
 0x10a   : > { %1737 = vmatmul.mubr.bf16.gmra.mrb[92].mxu0 %v2415_v0  ;;  %1455 = vmatprep.mubr.bf16.mxu1 %v2416_v1  ;;  %v2457_v0 = vld [vmem:[%s2567_s20 + $0x3c8] ss:$16 sps:$4 sm:$0xff]   ;;  %v2458_v1 = vld [vmem:[%s2567_s20 + $0x3e4] ss:$16 sps:$4 sm:$0xff]  }
 0x10b   : > { %1744 = vmatprep.mubr.bf16.mxu0 %v2418_v2 }
 0x111   : > { %1456 = vmatmul.mubr.bf16.gmra.mrb[96].mxu1 %v2420_v3 }
 0x112   : > { %1745 = vmatmul.mubr.bf16.gmra.mrb[96].mxu0 %v2421_v4  ;;  %1463 = vmatprep.mubr.bf16.mxu1 %v2422_v5  ;;  %v2460_v4 = vld [vmem:[%s2567_s20 + $0x3ec] ss:$16 sps:$4 sm:$0xff]  }
 0x113   : > { %1752 = vmatprep.mubr.bf16.mxu0 %v2424_v6 }
 0x119   : > { %1464 = vmatmul.mubr.bf16.gmra.mrb[100].mxu1 %v2426_v7 }
 0x11a   : > { %1753 = vmatmul.mubr.bf16.gmra.mrb[100].mxu0 %v2427_v8  ;;  %1471 = vmatprep.mubr.bf16.mxu1 %v2428_v9 }
 0x11b   : > { %1760 = vmatprep.mubr.bf16.mxu0 %v2430_v10  ;;  %v2462_v10 = vld [vmem:[%s2567_s20 + $0x3e0] ss:$16 sps:$4 sm:$0xff]  }
 0x121   : > { %1472 = vmatmul.mubr.bf16.gmra.mrb[104].mxu1 %v2432_v11 }
 0x122   : > { %1761 = vmatmul.mubr.bf16.gmra.mrb[104].mxu0 %v2433_v12  ;;  %1479 = vmatprep.mubr.bf16.mxu1 %v2434_v13 }
 0x123   : > { %1768 = vmatprep.mubr.bf16.mxu0 %v2436_v14  ;;  %v2463_v14 = vld [vmem:[%s2567_s20 + $0x3e8] ss:$16 sps:$4 sm:$0xff]  }
 0x124   : > { %v1265_v15 = vpop.f32.mrb[0].mxu1 }
 0x125   : > { %v1554_v16 = vpop.f32.mrb[0].mxu0  ;;  %v1267_v17 = vpop.f32.mrb[1].mxu1 }
 0x126   : > { %v1555_v19 = vadd.f32 %v1554_v16, %v1265_v15  ;;  %v1556_v20 = vpop.f32.mrb[1].mxu0  ;;  %v1268_v21 = vpop.f32.mrb[2].mxu1 }
 0x127   : > { %v1557_v24 = vpop.f32.mrb[2].mxu0  ;;  %v1270_v25 = vpop.f32.mrb[3].mxu1 }
 0x128   : > { %1809 = vst [vmem:[%s2714_s24] sm:$0xff] %v1555_v19  ;;  %v1558_v27 = vadd.f32 %v1557_v24, %v1268_v21  ;;  %v1559_v28 = vpop.f32.mrb[3].mxu0 }
 0x129   : > { %1480 = vmatmul.mubr.bf16.gmra.mrb[108].mxu1 %v2438_v18 }
 0x12a   : > { %1810 = vst [vmem:[%s2714_s24 + $0x8] sm:$0xff] %v1558_v27  ;;  %1769 = vmatmul.mubr.bf16.gmra.mrb[108].mxu0 %v2439_v22  ;;  %1487 = vmatprep.mubr.bf16.mxu1 %v2440_v23 }
 0x12b   : > { %1776 = vmatprep.mubr.bf16.mxu0 %v2442_v26 }
 0x12c   : > { %v1273_v29 = vpop.f32.mrb[4].mxu1 }
 0x12d   : > { %v1562_v30 = vpop.f32.mrb[4].mxu0  ;;  %v1275_v31 = vpop.f32.mrb[5].mxu1 }
 0x12e   : > { %v1563_v33 = vadd.f32 %v1562_v30, %v1273_v29  ;;  %v1564_v34 = vpop.f32.mrb[5].mxu0  ;;  %v1276_v35 = vpop.f32.mrb[6].mxu1 }
 0x12f   : > { %v1565_v38 = vpop.f32.mrb[6].mxu0  ;;  %v1278_v39 = vpop.f32.mrb[7].mxu1 }
 0x130   : > { %1811 = vst [vmem:[%s2714_s24 + $0x10] sm:$0xff] %v1563_v33  ;;  %v1566_v41 = vadd.f32 %v1565_v38, %v1276_v35  ;;  %v1567_v42 = vpop.f32.mrb[7].mxu0 }
 0x131   : > { %1488 = vmatmul.mubr.bf16.gmra.mrb[112].mxu1 %v2444_v32 }
 0x132   : > { %1812 = vst [vmem:[%s2714_s24 + $0x18] sm:$0xff] %v1566_v41  ;;  %1777 = vmatmul.mubr.bf16.gmra.mrb[112].mxu0 %v2445_v36  ;;  %1495 = vmatprep.mubr.bf16.mxu1 %v2446_v37 }
 0x133   : > { %1784 = vmatprep.mubr.bf16.mxu0 %v2448_v40 }
 0x134   : > { %v1281_v43 = vpop.f32.mrb[8].mxu1 }
 0x135   : > { %v1570_v44 = vpop.f32.mrb[8].mxu0  ;;  %v1283_v45 = vpop.f32.mrb[9].mxu1 }
 0x136   : > { %v1571_v47 = vadd.f32 %v1570_v44, %v1281_v43  ;;  %v1572_v48 = vpop.f32.mrb[9].mxu0  ;;  %v1284_v49 = vpop.f32.mrb[10].mxu1 }
 0x137   : > { %v1573_v52 = vpop.f32.mrb[10].mxu0  ;;  %v1286_v53 = vpop.f32.mrb[11].mxu1 }
 0x138   : > { %1813 = vst [vmem:[%s2714_s24 + $0x20] sm:$0xff] %v1571_v47  ;;  %v1574_v55 = vadd.f32 %v1573_v52, %v1284_v49  ;;  %v1575_v56 = vpop.f32.mrb[11].mxu0 }
 0x139   : > { %1496 = vmatmul.mubr.bf16.gmra.mrb[116].mxu1 %v2450_v46 }
 0x13a   : > { %1814 = vst [vmem:[%s2714_s24 + $0x28] sm:$0xff] %v1574_v55  ;;  %1785 = vmatmul.mubr.bf16.gmra.mrb[116].mxu0 %v2451_v50  ;;  %1503 = vmatprep.mubr.bf16.mxu1 %v2452_v51 }
 0x13b   : > { %1792 = vmatprep.mubr.bf16.mxu0 %v2454_v54 }
 0x13c   : > { %v1289_v57 = vpop.f32.mrb[12].mxu1 }
 0x13d   : > { %v1578_v58 = vpop.f32.mrb[12].mxu0  ;;  %v1291_v59 = vpop.f32.mrb[13].mxu1 }
 0x13e   : > { %v1579_v61 = vadd.f32 %v1578_v58, %v1289_v57  ;;  %v1580_v62 = vpop.f32.mrb[13].mxu0  ;;  %v1292_v63 = vpop.f32.mrb[14].mxu1 }
 0x13f   : > { %v1581_v2 = vpop.f32.mrb[14].mxu0  ;;  %v1294_v3 = vpop.f32.mrb[15].mxu1 }
 0x140   : > { %1815 = vst [vmem:[%s2714_s24 + $0x30] sm:$0xff] %v1579_v61  ;;  %v1582_v5 = vadd.f32 %v1581_v2, %v1292_v63  ;;  %v1583_v6 = vpop.f32.mrb[15].mxu0 }
 0x141   : > { %1504 = vmatmul.mubr.bf16.gmra.mrb[120].mxu1 %v2456_v60 }
 0x142   : > { %1816 = vst [vmem:[%s2714_s24 + $0x38] sm:$0xff] %v1582_v5  ;;  %1793 = vmatmul.mubr.bf16.gmra.mrb[120].mxu0 %v2457_v0  ;;  %1511 = vmatprep.mubr.bf16.mxu1 %v2458_v1 }
 0x143   : > { %1800 = vmatprep.mubr.bf16.mxu0 %v2460_v4 }
 0x144   : > { %v1297_v7 = vpop.f32.mrb[16].mxu1 }
 0x145   : > { %v1586_v8 = vpop.f32.mrb[16].mxu0  ;;  %v1299_v9 = vpop.f32.mrb[17].mxu1 }
 0x146   : > { %v1587_v11 = vadd.f32 %v1586_v8, %v1297_v7  ;;  %v1588_v12 = vpop.f32.mrb[17].mxu0  ;;  %v1300_v13 = vpop.f32.mrb[18].mxu1 }
 0x147   : > { %v1589_v15 = vpop.f32.mrb[18].mxu0  ;;  %v1302_v16 = vpop.f32.mrb[19].mxu1 }
 0x148   : > { %1817 = vst [vmem:[%s2714_s24 + $0x40] sm:$0xff] %v1587_v11  ;;  %v1590_v17 = vadd.f32 %v1589_v15, %v1300_v13  ;;  %v1591_v18 = vpop.f32.mrb[19].mxu0 }
 0x149   : > { %1512 = vmatmul.mubr.bf16.gmra.mrb[124].mxu1 %v2462_v10 }
 0x14a   : > { %1818 = vst [vmem:[%s2714_s24 + $0x48] sm:$0xff] %v1590_v17  ;;  %1801 = vmatmul.mubr.bf16.gmra.mrb[124].mxu0 %v2463_v14 }
 0x14c   : > { %v1305_v19 = vpop.f32.mrb[20].mxu1 }
 0x14d   : > { %v1594_v20 = vpop.f32.mrb[20].mxu0  ;;  %v1307_v21 = vpop.f32.mrb[21].mxu1 }
 0x14e   : > { %v1595_v22 = vadd.f32 %v1594_v20, %v1305_v19  ;;  %v1596_v23 = vpop.f32.mrb[21].mxu0  ;;  %v1308_v24 = vpop.f32.mrb[22].mxu1 }
 0x14f   : > { %v1597_v25 = vpop.f32.mrb[22].mxu0  ;;  %v1310_v26 = vpop.f32.mrb[23].mxu1 }
 0x150   : > { %1819 = vst [vmem:[%s2714_s24 + $0x50] sm:$0xff] %v1595_v22  ;;  %v1598_v27 = vadd.f32 %v1597_v25, %v1308_v24  ;;  %v1599_v28 = vpop.f32.mrb[23].mxu0 }
 0x152   : > { %1820 = vst [vmem:[%s2714_s24 + $0x58] sm:$0xff] %v1598_v27 }
 0x154   : > { %v1313_v29 = vpop.f32.mrb[24].mxu1 }
 0x155   : > { %v1602_v30 = vpop.f32.mrb[24].mxu0  ;;  %v1315_v31 = vpop.f32.mrb[25].mxu1 }
 0x156   : > { %v1603_v32 = vadd.f32 %v1602_v30, %v1313_v29  ;;  %v1604_v33 = vpop.f32.mrb[25].mxu0  ;;  %v1316_v34 = vpop.f32.mrb[26].mxu1 }
 0x157   : > { %v1605_v35 = vpop.f32.mrb[26].mxu0  ;;  %v1318_v36 = vpop.f32.mrb[27].mxu1 }
 0x158   : > { %1821 = vst [vmem:[%s2714_s24 + $0x60] sm:$0xff] %v1603_v32  ;;  %v1606_v37 = vadd.f32 %v1605_v35, %v1316_v34  ;;  %v1607_v38 = vpop.f32.mrb[27].mxu0 }
 0x15a   : > { %1822 = vst [vmem:[%s2714_s24 + $0x68] sm:$0xff] %v1606_v37 }
 0x15c   : > { %v1321_v39 = vpop.f32.mrb[28].mxu1 }
 0x15d   : > { %v1610_v40 = vpop.f32.mrb[28].mxu0  ;;  %v1323_v41 = vpop.f32.mrb[29].mxu1 }
 0x15e   : > { %v1611_v42 = vadd.f32 %v1610_v40, %v1321_v39  ;;  %v1612_v43 = vpop.f32.mrb[29].mxu0  ;;  %v1324_v44 = vpop.f32.mrb[30].mxu1 }
 0x15f   : > { %v1613_v45 = vpop.f32.mrb[30].mxu0  ;;  %v1326_v46 = vpop.f32.mrb[31].mxu1 }
 0x160   : > { %1823 = vst [vmem:[%s2714_s24 + $0x70] sm:$0xff] %v1611_v42  ;;  %v1614_v47 = vadd.f32 %v1613_v45, %v1324_v44  ;;  %v1615_v48 = vpop.f32.mrb[31].mxu0 }
 0x162   : > { %1824 = vst [vmem:[%s2714_s24 + $0x78] sm:$0xff] %v1614_v47 }
 0x164   : > { %v1329_v49 = vpop.f32.mrb[32].mxu1 }
 0x165   : > { %v1618_v50 = vpop.f32.mrb[32].mxu0  ;;  %v1331_v51 = vpop.f32.mrb[33].mxu1 }
 0x166   : > { %v1619_v52 = vadd.f32 %v1618_v50, %v1329_v49  ;;  %v1620_v53 = vpop.f32.mrb[33].mxu0  ;;  %v1332_v54 = vpop.f32.mrb[34].mxu1 }
 0x167   : > { %v1621_v55 = vpop.f32.mrb[34].mxu0  ;;  %v1334_v56 = vpop.f32.mrb[35].mxu1 }
 0x168   : > { %1825 = vst [vmem:[%s2714_s24 + $0x80] sm:$0xff] %v1619_v52  ;;  %v1622_v57 = vadd.f32 %v1621_v55, %v1332_v54  ;;  %v1623_v58 = vpop.f32.mrb[35].mxu0 }
 0x16a   : > { %1826 = vst [vmem:[%s2714_s24 + $0x88] sm:$0xff] %v1622_v57 }
 0x16c   : > { %v1337_v59 = vpop.f32.mrb[36].mxu1 }
 0x16d   : > { %v1626_v60 = vpop.f32.mrb[36].mxu0  ;;  %v1339_v61 = vpop.f32.mrb[37].mxu1 }
 0x16e   : > { %v1627_v62 = vadd.f32 %v1626_v60, %v1337_v59  ;;  %v1628_v63 = vpop.f32.mrb[37].mxu0  ;;  %v1340_v0 = vpop.f32.mrb[38].mxu1 }
 0x16f   : > { %v1629_v1 = vpop.f32.mrb[38].mxu0  ;;  %v1342_v2 = vpop.f32.mrb[39].mxu1 }
 0x170   : > { %1827 = vst [vmem:[%s2714_s24 + $0x90] sm:$0xff] %v1627_v62  ;;  %v1630_v3 = vadd.f32 %v1629_v1, %v1340_v0  ;;  %v1631_v4 = vpop.f32.mrb[39].mxu0 }
 0x172   : > { %1828 = vst [vmem:[%s2714_s24 + $0x98] sm:$0xff] %v1630_v3 }
 0x174   : > { %v1345_v5 = vpop.f32.mrb[40].mxu1 }
 0x175   : > { %v1634_v6 = vpop.f32.mrb[40].mxu0  ;;  %v1347_v7 = vpop.f32.mrb[41].mxu1 }
 0x176   : > { %v1635_v8 = vadd.f32 %v1634_v6, %v1345_v5  ;;  %v1636_v9 = vpop.f32.mrb[41].mxu0  ;;  %v1348_v10 = vpop.f32.mrb[42].mxu1 }
 0x177   : > { %v1637_v11 = vpop.f32.mrb[42].mxu0  ;;  %v1350_v12 = vpop.f32.mrb[43].mxu1 }
 0x178   : > { %1829 = vst [vmem:[%s2714_s24 + $0xa0] sm:$0xff] %v1635_v8  ;;  %v1638_v13 = vadd.f32 %v1637_v11, %v1348_v10  ;;  %v1639_v14 = vpop.f32.mrb[43].mxu0 }
 0x17a   : > { %1830 = vst [vmem:[%s2714_s24 + $0xa8] sm:$0xff] %v1638_v13 }
 0x17c   : > { %v1353_v15 = vpop.f32.mrb[44].mxu1 }
 0x17d   : > { %v1642_v16 = vpop.f32.mrb[44].mxu0  ;;  %v1355_v17 = vpop.f32.mrb[45].mxu1 }
 0x17e   : > { %v1643_v18 = vadd.f32 %v1642_v16, %v1353_v15  ;;  %v1644_v19 = vpop.f32.mrb[45].mxu0  ;;  %v1356_v20 = vpop.f32.mrb[46].mxu1 }
 0x17f   : > { %v1645_v21 = vpop.f32.mrb[46].mxu0  ;;  %v1358_v22 = vpop.f32.mrb[47].mxu1 }
 0x180   : > { %1831 = vst [vmem:[%s2714_s24 + $0xb0] sm:$0xff] %v1643_v18  ;;  %v1646_v23 = vadd.f32 %v1645_v21, %v1356_v20  ;;  %v1647_v24 = vpop.f32.mrb[47].mxu0 }
 0x182   : > { %1832 = vst [vmem:[%s2714_s24 + $0xb8] sm:$0xff] %v1646_v23 }
 0x184   : > { %v1361_v25 = vpop.f32.mrb[48].mxu1 }
 0x185   : > { %v1650_v26 = vpop.f32.mrb[48].mxu0  ;;  %v1363_v27 = vpop.f32.mrb[49].mxu1 }
 0x186   : > { %v1651_v28 = vadd.f32 %v1650_v26, %v1361_v25  ;;  %v1652_v29 = vpop.f32.mrb[49].mxu0  ;;  %v1364_v30 = vpop.f32.mrb[50].mxu1 }
 0x187   : > { %v1653_v31 = vpop.f32.mrb[50].mxu0  ;;  %v1366_v32 = vpop.f32.mrb[51].mxu1 }
 0x188   : > { %1833 = vst [vmem:[%s2714_s24 + $0xc0] sm:$0xff] %v1651_v28  ;;  %v1654_v33 = vadd.f32 %v1653_v31, %v1364_v30  ;;  %v1655_v34 = vpop.f32.mrb[51].mxu0 }
 0x18a   : > { %1834 = vst [vmem:[%s2714_s24 + $0xc8] sm:$0xff] %v1654_v33 }
 0x18c   : > { %v1369_v35 = vpop.f32.mrb[52].mxu1 }
 0x18d   : > { %v1658_v36 = vpop.f32.mrb[52].mxu0  ;;  %v1371_v37 = vpop.f32.mrb[53].mxu1 }
 0x18e   : > { %v1659_v38 = vadd.f32 %v1658_v36, %v1369_v35  ;;  %v1660_v39 = vpop.f32.mrb[53].mxu0  ;;  %v1372_v40 = vpop.f32.mrb[54].mxu1 }
 0x18f   : > { %v1661_v41 = vpop.f32.mrb[54].mxu0  ;;  %v1374_v42 = vpop.f32.mrb[55].mxu1 }
 0x190   : > { %1835 = vst [vmem:[%s2714_s24 + $0xd0] sm:$0xff] %v1659_v38  ;;  %v1662_v43 = vadd.f32 %v1661_v41, %v1372_v40  ;;  %v1663_v44 = vpop.f32.mrb[55].mxu0 }
 0x192   : > { %1836 = vst [vmem:[%s2714_s24 + $0xd8] sm:$0xff] %v1662_v43 }
 0x194   : > { %v1377_v45 = vpop.f32.mrb[56].mxu1 }
 0x195   : > { %v1666_v46 = vpop.f32.mrb[56].mxu0  ;;  %v1379_v47 = vpop.f32.mrb[57].mxu1 }
 0x196   : > { %v1667_v48 = vadd.f32 %v1666_v46, %v1377_v45  ;;  %v1668_v49 = vpop.f32.mrb[57].mxu0  ;;  %v1380_v50 = vpop.f32.mrb[58].mxu1 }
 0x197   : > { %v1669_v51 = vpop.f32.mrb[58].mxu0  ;;  %v1382_v52 = vpop.f32.mrb[59].mxu1 }
 0x198   : > { %1837 = vst [vmem:[%s2714_s24 + $0xe0] sm:$0xff] %v1667_v48  ;;  %v1670_v53 = vadd.f32 %v1669_v51, %v1380_v50  ;;  %v1671_v54 = vpop.f32.mrb[59].mxu0 }
 0x19a   : > { %1838 = vst [vmem:[%s2714_s24 + $0xe8] sm:$0xff] %v1670_v53 }
 0x19c   : > { %v1385_v55 = vpop.f32.mrb[60].mxu1 }
 0x19d   : > { %v1674_v56 = vpop.f32.mrb[60].mxu0  ;;  %v1387_v57 = vpop.f32.mrb[61].mxu1 }
 0x19e   : > { %v1675_v58 = vadd.f32 %v1674_v56, %v1385_v55  ;;  %v1676_v59 = vpop.f32.mrb[61].mxu0  ;;  %v1388_v60 = vpop.f32.mrb[62].mxu1 }
 0x19f   : > { %v1677_v61 = vpop.f32.mrb[62].mxu0  ;;  %v1390_v62 = vpop.f32.mrb[63].mxu1 }
 0x1a0   : > { %1839 = vst [vmem:[%s2714_s24 + $0xf0] sm:$0xff] %v1675_v58  ;;  %v1678_v63 = vadd.f32 %v1677_v61, %v1388_v60  ;;  %v1679_v0 = vpop.f32.mrb[63].mxu0 }
 0x1a2   : > { %1840 = vst [vmem:[%s2714_s24 + $0xf8] sm:$0xff] %v1678_v63 }
 0x1a4   : > { %v1393_v1 = vpop.f32.mrb[64].mxu1 }
 0x1a5   : > { %v1682_v2 = vpop.f32.mrb[64].mxu0  ;;  %v1395_v3 = vpop.f32.mrb[65].mxu1 }
 0x1a6   : > { %v1683_v4 = vadd.f32 %v1682_v2, %v1393_v1  ;;  %v1684_v5 = vpop.f32.mrb[65].mxu0  ;;  %v1396_v6 = vpop.f32.mrb[66].mxu1 }
 0x1a7   : > { %v1685_v7 = vpop.f32.mrb[66].mxu0  ;;  %v1398_v8 = vpop.f32.mrb[67].mxu1 }
 0x1a8   : > { %1841 = vst [vmem:[%s2714_s24 + $0x100] sm:$0xff] %v1683_v4  ;;  %v1686_v9 = vadd.f32 %v1685_v7, %v1396_v6  ;;  %v1687_v10 = vpop.f32.mrb[67].mxu0 }
 0x1aa   : > { %1842 = vst [vmem:[%s2714_s24 + $0x108] sm:$0xff] %v1686_v9 }
 0x1ac   : > { %v1401_v11 = vpop.f32.mrb[68].mxu1 }
 0x1ad   : > { %v1690_v12 = vpop.f32.mrb[68].mxu0  ;;  %v1403_v13 = vpop.f32.mrb[69].mxu1 }
 0x1ae   : > { %v1691_v14 = vadd.f32 %v1690_v12, %v1401_v11  ;;  %v1692_v15 = vpop.f32.mrb[69].mxu0  ;;  %v1404_v16 = vpop.f32.mrb[70].mxu1 }
 0x1af   : > { %v1693_v17 = vpop.f32.mrb[70].mxu0  ;;  %v1406_v18 = vpop.f32.mrb[71].mxu1 }
 0x1b0   : > { %1843 = vst [vmem:[%s2714_s24 + $0x110] sm:$0xff] %v1691_v14  ;;  %v1694_v19 = vadd.f32 %v1693_v17, %v1404_v16  ;;  %v1695_v20 = vpop.f32.mrb[71].mxu0 }
 0x1b2   : > { %1844 = vst [vmem:[%s2714_s24 + $0x118] sm:$0xff] %v1694_v19 }
 0x1b4   : > { %v1409_v21 = vpop.f32.mrb[72].mxu1 }
 0x1b5   : > { %v1698_v22 = vpop.f32.mrb[72].mxu0  ;;  %v1411_v23 = vpop.f32.mrb[73].mxu1 }
 0x1b6   : > { %v1699_v24 = vadd.f32 %v1698_v22, %v1409_v21  ;;  %v1700_v25 = vpop.f32.mrb[73].mxu0  ;;  %v1412_v26 = vpop.f32.mrb[74].mxu1 }
 0x1b7   : > { %v1701_v27 = vpop.f32.mrb[74].mxu0  ;;  %v1414_v28 = vpop.f32.mrb[75].mxu1 }
 0x1b8   : > { %1845 = vst [vmem:[%s2714_s24 + $0x120] sm:$0xff] %v1699_v24  ;;  %v1702_v29 = vadd.f32 %v1701_v27, %v1412_v26  ;;  %v1703_v30 = vpop.f32.mrb[75].mxu0 }
 0x1ba   : > { %1846 = vst [vmem:[%s2714_s24 + $0x128] sm:$0xff] %v1702_v29 }
 0x1bc   : > { %v1417_v31 = vpop.f32.mrb[76].mxu1 }
 0x1bd   : > { %v1706_v32 = vpop.f32.mrb[76].mxu0  ;;  %v1419_v33 = vpop.f32.mrb[77].mxu1 }
 0x1be   : > { %v1707_v34 = vadd.f32 %v1706_v32, %v1417_v31  ;;  %v1708_v35 = vpop.f32.mrb[77].mxu0  ;;  %v1420_v36 = vpop.f32.mrb[78].mxu1 }
 0x1bf   : > { %v1709_v37 = vpop.f32.mrb[78].mxu0  ;;  %v1422_v38 = vpop.f32.mrb[79].mxu1 }
 0x1c0   : > { %1847 = vst [vmem:[%s2714_s24 + $0x130] sm:$0xff] %v1707_v34  ;;  %v1710_v39 = vadd.f32 %v1709_v37, %v1420_v36  ;;  %v1711_v40 = vpop.f32.mrb[79].mxu0 }
 0x1c2   : > { %1848 = vst [vmem:[%s2714_s24 + $0x138] sm:$0xff] %v1710_v39 }
 0x1c4   : > { %v1425_v41 = vpop.f32.mrb[80].mxu1 }
 0x1c5   : > { %v1714_v42 = vpop.f32.mrb[80].mxu0  ;;  %v1427_v43 = vpop.f32.mrb[81].mxu1 }
 0x1c6   : > { %v1715_v44 = vadd.f32 %v1714_v42, %v1425_v41  ;;  %v1716_v45 = vpop.f32.mrb[81].mxu0  ;;  %v1428_v46 = vpop.f32.mrb[82].mxu1 }
 0x1c7   : > { %v1717_v47 = vpop.f32.mrb[82].mxu0  ;;  %v1430_v48 = vpop.f32.mrb[83].mxu1 }
 0x1c8   : > { %1849 = vst [vmem:[%s2714_s24 + $0x140] sm:$0xff] %v1715_v44  ;;  %v1718_v49 = vadd.f32 %v1717_v47, %v1428_v46  ;;  %v1719_v50 = vpop.f32.mrb[83].mxu0 }
 0x1ca   : > { %1850 = vst [vmem:[%s2714_s24 + $0x148] sm:$0xff] %v1718_v49 }
 0x1cc   : > { %v1433_v51 = vpop.f32.mrb[84].mxu1 }
 0x1cd   : > { %v1722_v52 = vpop.f32.mrb[84].mxu0  ;;  %v1435_v53 = vpop.f32.mrb[85].mxu1 }
 0x1ce   : > { %v1723_v54 = vadd.f32 %v1722_v52, %v1433_v51  ;;  %v1724_v55 = vpop.f32.mrb[85].mxu0  ;;  %v1436_v56 = vpop.f32.mrb[86].mxu1 }
 0x1cf   : > { %v1725_v57 = vpop.f32.mrb[86].mxu0  ;;  %v1438_v58 = vpop.f32.mrb[87].mxu1 }
 0x1d0   : > { %1851 = vst [vmem:[%s2714_s24 + $0x150] sm:$0xff] %v1723_v54  ;;  %v1726_v59 = vadd.f32 %v1725_v57, %v1436_v56  ;;  %v1727_v60 = vpop.f32.mrb[87].mxu0 }
 0x1d2   : > { %1852 = vst [vmem:[%s2714_s24 + $0x158] sm:$0xff] %v1726_v59 }
 0x1d4   : > { %v1441_v61 = vpop.f32.mrb[88].mxu1 }
 0x1d5   : > { %v1730_v62 = vpop.f32.mrb[88].mxu0  ;;  %v1443_v63 = vpop.f32.mrb[89].mxu1 }
 0x1d6   : > { %v1731_v0 = vadd.f32 %v1730_v62, %v1441_v61  ;;  %v1732_v1 = vpop.f32.mrb[89].mxu0  ;;  %v1444_v2 = vpop.f32.mrb[90].mxu1 }
 0x1d7   : > { %v1733_v3 = vpop.f32.mrb[90].mxu0  ;;  %v1446_v4 = vpop.f32.mrb[91].mxu1 }
 0x1d8   : > { %1853 = vst [vmem:[%s2714_s24 + $0x160] sm:$0xff] %v1731_v0  ;;  %v1734_v5 = vadd.f32 %v1733_v3, %v1444_v2  ;;  %v1735_v6 = vpop.f32.mrb[91].mxu0 }
 0x1da   : > { %1854 = vst [vmem:[%s2714_s24 + $0x168] sm:$0xff] %v1734_v5 }
 0x1dc   : > { %v1449_v7 = vpop.f32.mrb[92].mxu1 }
 0x1dd   : > { %v1738_v8 = vpop.f32.mrb[92].mxu0  ;;  %v1451_v9 = vpop.f32.mrb[93].mxu1 }
 0x1de   : > { %v1739_v10 = vadd.f32 %v1738_v8, %v1449_v7  ;;  %v1740_v11 = vpop.f32.mrb[93].mxu0  ;;  %v1452_v12 = vpop.f32.mrb[94].mxu1 }
 0x1df   : > { %v1741_v13 = vpop.f32.mrb[94].mxu0  ;;  %v1454_v14 = vpop.f32.mrb[95].mxu1 }
 0x1e0   : > { %1855 = vst [vmem:[%s2714_s24 + $0x170] sm:$0xff] %v1739_v10  ;;  %v1742_v15 = vadd.f32 %v1741_v13, %v1452_v12  ;;  %v1743_v16 = vpop.f32.mrb[95].mxu0 }
 0x1e2   : > { %1856 = vst [vmem:[%s2714_s24 + $0x178] sm:$0xff] %v1742_v15 }
 0x1e4   : > { %v1457_v17 = vpop.f32.mrb[96].mxu1 }
 0x1e5   : > { %v1746_v18 = vpop.f32.mrb[96].mxu0  ;;  %v1459_v19 = vpop.f32.mrb[97].mxu1 }
 0x1e6   : > { %v1747_v20 = vadd.f32 %v1746_v18, %v1457_v17  ;;  %v1748_v21 = vpop.f32.mrb[97].mxu0  ;;  %v1460_v22 = vpop.f32.mrb[98].mxu1 }
 0x1e7   : > { %v1749_v23 = vpop.f32.mrb[98].mxu0  ;;  %v1462_v24 = vpop.f32.mrb[99].mxu1 }
 0x1e8   : > { %1857 = vst [vmem:[%s2714_s24 + $0x180] sm:$0xff] %v1747_v20  ;;  %v1750_v25 = vadd.f32 %v1749_v23, %v1460_v22  ;;  %v1751_v26 = vpop.f32.mrb[99].mxu0 }
 0x1ea   : > { %1858 = vst [vmem:[%s2714_s24 + $0x188] sm:$0xff] %v1750_v25 }
 0x1ec   : > { %v1465_v27 = vpop.f32.mrb[100].mxu1 }
 0x1ed   : > { %v1754_v28 = vpop.f32.mrb[100].mxu0  ;;  %v1467_v29 = vpop.f32.mrb[101].mxu1 }
 0x1ee   : > { %v1755_v30 = vadd.f32 %v1754_v28, %v1465_v27  ;;  %v1756_v31 = vpop.f32.mrb[101].mxu0  ;;  %v1468_v32 = vpop.f32.mrb[102].mxu1 }
 0x1ef   : > { %v1757_v33 = vpop.f32.mrb[102].mxu0  ;;  %v1470_v34 = vpop.f32.mrb[103].mxu1 }
 0x1f0   : > { %1859 = vst [vmem:[%s2714_s24 + $0x190] sm:$0xff] %v1755_v30  ;;  %v1758_v35 = vadd.f32 %v1757_v33, %v1468_v32  ;;  %v1759_v36 = vpop.f32.mrb[103].mxu0 }
 0x1f2   : > { %1860 = vst [vmem:[%s2714_s24 + $0x198] sm:$0xff] %v1758_v35 }
 0x1f4   : > { %v1473_v37 = vpop.f32.mrb[104].mxu1 }
 0x1f5   : > { %v1762_v38 = vpop.f32.mrb[104].mxu0  ;;  %v1475_v39 = vpop.f32.mrb[105].mxu1 }
 0x1f6   : > { %v1763_v40 = vadd.f32 %v1762_v38, %v1473_v37  ;;  %v1764_v41 = vpop.f32.mrb[105].mxu0  ;;  %v1476_v42 = vpop.f32.mrb[106].mxu1 }
 0x1f7   : > { %v1765_v43 = vpop.f32.mrb[106].mxu0  ;;  %v1478_v44 = vpop.f32.mrb[107].mxu1 }
 0x1f8   : > { %1861 = vst [vmem:[%s2714_s24 + $0x1a0] sm:$0xff] %v1763_v40  ;;  %v1766_v45 = vadd.f32 %v1765_v43, %v1476_v42  ;;  %v1767_v46 = vpop.f32.mrb[107].mxu0 }
 0x1fa   : > { %1862 = vst [vmem:[%s2714_s24 + $0x1a8] sm:$0xff] %v1766_v45 }
 0x1fc   : > { %v1481_v47 = vpop.f32.mrb[108].mxu1 }
 0x1fd   : > { %v1770_v48 = vpop.f32.mrb[108].mxu0  ;;  %v1483_v49 = vpop.f32.mrb[109].mxu1 }
 0x1fe   : > { %v1771_v50 = vadd.f32 %v1770_v48, %v1481_v47  ;;  %v1772_v51 = vpop.f32.mrb[109].mxu0  ;;  %v1484_v52 = vpop.f32.mrb[110].mxu1 }
 0x1ff   : > { %v1773_v53 = vpop.f32.mrb[110].mxu0  ;;  %v1486_v54 = vpop.f32.mrb[111].mxu1 }
 0x200   : > { %1863 = vst [vmem:[%s2714_s24 + $0x1b0] sm:$0xff] %v1771_v50  ;;  %v1774_v55 = vadd.f32 %v1773_v53, %v1484_v52  ;;  %v1775_v56 = vpop.f32.mrb[111].mxu0 }
 0x202   : > { %1864 = vst [vmem:[%s2714_s24 + $0x1b8] sm:$0xff] %v1774_v55 }
 0x204   : > { %v1489_v57 = vpop.f32.mrb[112].mxu1 }
 0x205   : > { %v1778_v58 = vpop.f32.mrb[112].mxu0  ;;  %v1491_v59 = vpop.f32.mrb[113].mxu1 }
 0x206   : > { %v1779_v60 = vadd.f32 %v1778_v58, %v1489_v57  ;;  %v1780_v61 = vpop.f32.mrb[113].mxu0  ;;  %v1492_v62 = vpop.f32.mrb[114].mxu1 }
 0x207   : > { %v1781_v63 = vpop.f32.mrb[114].mxu0  ;;  %v1494_v0 = vpop.f32.mrb[115].mxu1 }
 0x208   : > { %1865 = vst [vmem:[%s2714_s24 + $0x1c0] sm:$0xff] %v1779_v60  ;;  %v1782_v1 = vadd.f32 %v1781_v63, %v1492_v62  ;;  %v1783_v2 = vpop.f32.mrb[115].mxu0 }
 0x20a   : > { %1866 = vst [vmem:[%s2714_s24 + $0x1c8] sm:$0xff] %v1782_v1 }
 0x20c   : > { %v1497_v3 = vpop.f32.mrb[116].mxu1 }
 0x20d   : > { %v1786_v4 = vpop.f32.mrb[116].mxu0  ;;  %v1499_v5 = vpop.f32.mrb[117].mxu1 }
 0x20e   : > { %v1787_v6 = vadd.f32 %v1786_v4, %v1497_v3  ;;  %v1788_v7 = vpop.f32.mrb[117].mxu0  ;;  %v1500_v8 = vpop.f32.mrb[118].mxu1 }
 0x20f   : > { %v1789_v9 = vpop.f32.mrb[118].mxu0  ;;  %v1502_v10 = vpop.f32.mrb[119].mxu1 }
 0x210   : > { %1867 = vst [vmem:[%s2714_s24 + $0x1d0] sm:$0xff] %v1787_v6  ;;  %v1790_v11 = vadd.f32 %v1789_v9, %v1500_v8  ;;  %v1791_v12 = vpop.f32.mrb[119].mxu0 }
 0x212   : > { %1868 = vst [vmem:[%s2714_s24 + $0x1d8] sm:$0xff] %v1790_v11 }
 0x214   : > { %v1505_v13 = vpop.f32.mrb[120].mxu1 }
 0x215   : > { %v1794_v14 = vpop.f32.mrb[120].mxu0  ;;  %v1507_v15 = vpop.f32.mrb[121].mxu1 }
 0x216   : > { %v1795_v16 = vadd.f32 %v1794_v14, %v1505_v13  ;;  %v1796_v17 = vpop.f32.mrb[121].mxu0  ;;  %v1508_v18 = vpop.f32.mrb[122].mxu1 }
 0x217   : > { %v1797_v19 = vpop.f32.mrb[122].mxu0  ;;  %v1510_v20 = vpop.f32.mrb[123].mxu1 }
 0x218   : > { %1869 = vst [vmem:[%s2714_s24 + $0x1e0] sm:$0xff] %v1795_v16  ;;  %v1798_v21 = vadd.f32 %v1797_v19, %v1508_v18  ;;  %v1799_v22 = vpop.f32.mrb[123].mxu0 }
 0x21a   : > { %1870 = vst [vmem:[%s2714_s24 + $0x1e8] sm:$0xff] %v1798_v21 }
 0x21c   : > { %v1513_v23 = vpop.f32.mrb[124].mxu1 }
 0x21d   : > { %v1802_v24 = vpop.f32.mrb[124].mxu0  ;;  %v1515_v25 = vpop.f32.mrb[125].mxu1 }
 0x21e   : > { %v1803_v26 = vadd.f32 %v1802_v24, %v1513_v23  ;;  %v1804_v27 = vpop.f32.mrb[125].mxu0  ;;  %v1516_v28 = vpop.f32.mrb[126].mxu1 }
 0x21f   : > { %v1805_v29 = vpop.f32.mrb[126].mxu0  ;;  %v1518_v30 = vpop.f32.mrb[127].mxu1 }
 0x220   : > { %1871 = vst [vmem:[%s2714_s24 + $0x1f0] sm:$0xff] %v1803_v26  ;;  %v1806_v31 = vadd.f32 %v1805_v29, %v1516_v28  ;;  %v1807_v32 = vpop.f32.mrb[127].mxu0 }
 0x222   : > { %1872 = vst [vmem:[%s2714_s24 + $0x1f8] sm:$0xff] %v1806_v31 }
 0x223 PF: > { %s12_s11 = sadd.s32 1, %s2486_s11   ;;  %s2810_s9 = smov %s2482_s10 }
 0x224   : > { %p9_p5 = scmp.ge.s32.totalorder %s12_s11, 6   ;;  %s2811_s10 = smov %s2813_s12 }
 0x226   :  { %11 = sbr.rel (!%p9_p5) target bundleno = 2 (0x2), region = 61 }

// kernel: dcgan_generator.16
= control target key start
LH: loop header
LB: loop body
LE: loop exit
PB: predicated region body
PF: predicated region fallthrough
CT: control target
= control target key end

     0   :  { %s1081_s12 = smov 0   ;;  %s1083_s13 = smov 0   ;;  %s1929_s0 = inlined_call_operand.vmem [shape: f32[2048,128], index: 0, kind: input, shape index: {}]   ;;  %s1930_s1 = inlined_call_operand.vmem [shape: f32[1,128], index: 1, kind: input, shape index: {}]   ;;  %s1931_s2 = inlined_call_operand.vmem [shape: f32[1,128], index: 2, kind: input, shape index: {}]   ;;  %s1932_s3 = inlined_call_operand.vmem [shape: f32[2048,128], index: 3, kind: output, shape index: {}]  }
   0x1   :  { %s1085_s14 = smov 0   ;;  %s1087_s15 = smov 0  }
   0x2   :  { %s1089_s16 = smov 0  }
   0x3 LB: > { %s22_s17 = sadd.s32 1, %s1050_s14  ;;  %s25_s18 = sadd.s32 1, %s1054_s15  ;;  %s1058_s16 = sphi %s1089_s16, %s13_s16   ;;  %s1054_s15 = sphi %s1087_s15, %s2047_s15   ;;  %s1050_s14 = sphi %s1085_s14, %s2046_s14   ;;  %s1046_s13 = sphi %s1083_s13, %s2045_s13   ;;  %s1042_s12 = sphi %s1081_s12, %s2044_s12  }
   0x4   : > { %p23_p0 = scmp.ge.s32.totalorder %s22_s17, 4  ;;  %p967_p1 = scmp.ge.s32.totalorder %s1058_s16, 1 }
   0x5   : > { %p152_p2 = scmp.lt.s32.totalorder %s1058_s16, 9 }
   0x6   : > { %s2049_s17 = smov (%p23_p0, %s22_s17), 0  ;;  %s2051_s18 = smov (!%p23_p0, %s25_s18), %s1054_s15 }
   0x7   : > { %p153_p3 = pnand %p967_p1, %p152_p2  ;;  %p27_p4 = scmp.ge.s32.totalorder %s2051_s18, 2 }
   0x8   : > { %s968_s19 = sshll.u32 (!%p153_p3), %s1042_s12, 6  ;;  %s183_s20 = smul.u32 (!%p153_p3), %s1042_s12, %s1046_s13 }
   0x9   : > { %s2053_s18 = smov (%p27_p4, %s2051_s18), 0  ;;  %156 = sbr.rel (%p153_p3) target bundleno = 276 (0x114), region = 32 }
   0xa   : > { %p178_p5 = scmp.lt.s32.totalorder (!%p153_p3), %s968_s19, 255  ;;  %p191_p6 = scmp.eq.s32.totalorder (!%p153_p3), %s1046_s13, 0 }
   0xb   : > { %s970_s21 = sshll.u32 (!%p153_p3), %s183_s20, 6  ;;  %p192_p7 = scmp.eq.s32.totalorder (!%p153_p3), %s1042_s12, 0 }
   0xc   : > { %p185_p8 = scmp.lt.s32.totalorder (!%p153_p3), %s970_s21, 255 }
   0xd   : > { %p193_p9 = pnand (!%p153_p3), %p192_p7, %p191_p6 }
  0x10   : > { %s2055_s19 = smov (!%p178_p5, %s968_s19), 255  ;;  %s2057_s21 = smov (!%p185_p8, %s970_s21), 255 }
  0x11   : > { %s969_s22 = sshll.u32 %s2055_s19, 3  ;;  %s971_s26 = sshll.u32 %s2057_s21, 3  ;;  %v1060_v0 = vmov (!%p193_p9), 0.0  }
  0x12   : > { %s1118_s25 = scalar_lea.vmem %s1929_s0, %s969_s22  ;;  %s1123_s29 = scalar_lea.vmem %s1932_s3, %s971_s26  ;;  %197 = vst [vmem:[#allocation2] sm:$0x1] (!%p193_p9), %v1060_v0  ;;  %198 = vst [vmem:[#allocation3] sm:$0x1] (!%p193_p9), %v1060_v0 }
  0x13   : > { %196 = sbr.rel (%p193_p9) target bundleno = 26 (0x1a), region = 36 }
  0x1a PF: > { %p972_p10 = scmp.ne.s32.totalorder %s1046_s13, 0 }
  0x1b   : > { %v202_v1 = vld [vmem:[%s1118_s25] sm:$0xff] (!%p972_p10)  ;;  %v203_v2 = vld [vmem:[%s1118_s25 + $0x8] sm:$0xff] (!%p972_p10)  ;;  %v204_v3 = vld [vmem:[%s1118_s25 + $0x10] sm:$0xff] (!%p972_p10) }
  0x1c   : > { %201 = sbr.rel (%p972_p10) target bundleno = 171 (0xab), region = 40  ;;  %v205_v4 = vld [vmem:[%s1118_s25 + $0x18] sm:$0xff] (!%p972_p10)  ;;  %v267_v5 = vadd.f32 (!%p972_p10), %v203_v2, %v202_v1  ;;  %v339_v6 = vmul.f32 (!%p972_p10), %v202_v1, %v202_v1  ;;  %v340_v7 = vmul.f32 (!%p972_p10), %v203_v2, %v203_v2  ;;  %v341_v8 = vmul.f32 (!%p972_p10), %v204_v3, %v204_v3  ;;  %v206_v9 = vld [vmem:[%s1118_s25 + $0x20] sm:$0xff] (!%p972_p10)  ;;  %v207_v13 = vld [vmem:[%s1118_s25 + $0x28] sm:$0xff] (!%p972_p10) }
  0x1d   : > { %v342_v11 = vmul.f32 (!%p972_p10), %v205_v4, %v205_v4  ;;  %v343_v15 = vmul.f32 (!%p972_p10), %v206_v9, %v206_v9  ;;  %v208_v17 = vld [vmem:[%s1118_s25 + $0x30] sm:$0xff] (!%p972_p10)  ;;  %v344_v19 = vmul.f32 (!%p972_p10), %v207_v13, %v207_v13  ;;  %v209_v21 = vld [vmem:[%s1118_s25 + $0x38] sm:$0xff] (!%p972_p10)  ;;  %v210_v25 = vld [vmem:[%s1118_s25 + $0x40] sm:$0xff] (!%p972_p10) }
  0x1e   : > { %v268_v10 = vadd.f32 (!%p972_p10), %v267_v5, %v204_v3  ;;  %v403_v12 = vadd.f32 (!%p972_p10), %v340_v7, %v339_v6  ;;  %v345_v23 = vmul.f32 (!%p972_p10), %v208_v17, %v208_v17  ;;  %v346_v27 = vmul.f32 (!%p972_p10), %v209_v21, %v209_v21  ;;  %v211_v29 = vld [vmem:[%s1118_s25 + $0x48] sm:$0xff] (!%p972_p10)  ;;  %v212_v33 = vld [vmem:[%s1118_s25 + $0x50] sm:$0xff] (!%p972_p10)  ;;  %v213_v37 = vld [vmem:[%s1118_s25 + $0x58] sm:$0xff] (!%p972_p10) }
  0x1f   : > { %v347_v31 = vmul.f32 (!%p972_p10), %v210_v25, %v210_v25  ;;  %v348_v35 = vmul.f32 (!%p972_p10), %v211_v29, %v211_v29  ;;  %v349_v39 = vmul.f32 (!%p972_p10), %v212_v33, %v212_v33  ;;  %v214_v41 = vld [vmem:[%s1118_s25 + $0x60] sm:$0xff] (!%p972_p10)  ;;  %v350_v43 = vmul.f32 (!%p972_p10), %v213_v37, %v213_v37  ;;  %v215_v45 = vld [vmem:[%s1118_s25 + $0x68] sm:$0xff] (!%p972_p10)  ;;  %v216_v49 = vld [vmem:[%s1118_s25 + $0x70] sm:$0xff] (!%p972_p10) }
  0x20   : > { %v269_v14 = vadd.f32 (!%p972_p10), %v268_v10, %v205_v4  ;;  %v404_v16 = vadd.f32 (!%p972_p10), %v403_v12, %v341_v8  ;;  %v351_v47 = vmul.f32 (!%p972_p10), %v214_v41, %v214_v41  ;;  %v352_v51 = vmul.f32 (!%p972_p10), %v215_v45, %v215_v45  ;;  %v217_v53 = vld [vmem:[%s1118_s25 + $0x78] sm:$0xff] (!%p972_p10)  ;;  %v218_v57 = vld [vmem:[%s1118_s25 + $0x80] sm:$0xff] (!%p972_p10)  ;;  %v219_v61 = vld [vmem:[%s1118_s25 + $0x88] sm:$0xff] (!%p972_p10) }
  0x21   : > { %v353_v55 = vmul.f32 (!%p972_p10), %v216_v49, %v216_v49  ;;  %v354_v59 = vmul.f32 (!%p972_p10), %v217_v53, %v217_v53  ;;  %v355_v63 = vmul.f32 (!%p972_p10), %v218_v57, %v218_v57  ;;  %v220_v1 = vld [vmem:[%s1118_s25 + $0x90] sm:$0xff] (!%p972_p10)  ;;  %v356_v3 = vmul.f32 (!%p972_p10), %v219_v61, %v219_v61  ;;  %v221_v5 = vld [vmem:[%s1118_s25 + $0x98] sm:$0xff] (!%p972_p10) }
  0x22   : > { %v270_v18 = vadd.f32 (!%p972_p10), %v269_v14, %v206_v9  ;;  %v405_v20 = vadd.f32 (!%p972_p10), %v404_v16, %v342_v11  ;;  %v357_v7 = vmul.f32 (!%p972_p10), %v220_v1, %v220_v1  ;;  %v222_v9 = vld [vmem:[%s1118_s25 + $0xa0] sm:$0xff] (!%p972_p10)  ;;  %v358_v11 = vmul.f32 (!%p972_p10), %v221_v5, %v221_v5 }
  0x24   : > { %v271_v22 = vadd.f32 %v270_v18, %v207_v13  ;;  %v406_v24 = vadd.f32 %v405_v20, %v343_v15  ;;  %v223_v13 = vld [vmem:[%s1118_s25 + $0xa8] sm:$0xff]  ;;  %v359_v15 = vmul.f32 %v222_v9, %v222_v9 }
  0x26   : > { %v272_v26 = vadd.f32 %v271_v22, %v208_v17  ;;  %v407_v28 = vadd.f32 %v406_v24, %v344_v19  ;;  %v224_v17 = vld [vmem:[%s1118_s25 + $0xb0] sm:$0xff]  ;;  %v360_v19 = vmul.f32 %v223_v13, %v223_v13 }
  0x28   : > { %v273_v30 = vadd.f32 %v272_v26, %v209_v21  ;;  %v408_v32 = vadd.f32 %v407_v28, %v345_v23  ;;  %v225_v21 = vld [vmem:[%s1118_s25 + $0xb8] sm:$0xff]  ;;  %v361_v23 = vmul.f32 %v224_v17, %v224_v17 }
  0x2a   : > { %v274_v34 = vadd.f32 %v273_v30, %v210_v25  ;;  %v409_v36 = vadd.f32 %v408_v32, %v346_v27  ;;  %v226_v25 = vld [vmem:[%s1118_s25 + $0xc0] sm:$0xff]  ;;  %v362_v27 = vmul.f32 %v225_v21, %v225_v21 }
  0x2c   : > { %v275_v38 = vadd.f32 %v274_v34, %v211_v29  ;;  %v410_v40 = vadd.f32 %v409_v36, %v347_v31  ;;  %v227_v29 = vld [vmem:[%s1118_s25 + $0xc8] sm:$0xff]  ;;  %v363_v31 = vmul.f32 %v226_v25, %v226_v25 }
  0x2e   : > { %v276_v42 = vadd.f32 %v275_v38, %v212_v33  ;;  %v411_v44 = vadd.f32 %v410_v40, %v348_v35  ;;  %v228_v33 = vld [vmem:[%s1118_s25 + $0xd0] sm:$0xff]  ;;  %v364_v35 = vmul.f32 %v227_v29, %v227_v29 }
  0x30   : > { %v277_v46 = vadd.f32 %v276_v42, %v213_v37  ;;  %v412_v48 = vadd.f32 %v411_v44, %v349_v39  ;;  %v229_v37 = vld [vmem:[%s1118_s25 + $0xd8] sm:$0xff]  ;;  %v365_v39 = vmul.f32 %v228_v33, %v228_v33 }
  0x32   : > { %v278_v50 = vadd.f32 %v277_v46, %v214_v41  ;;  %v413_v52 = vadd.f32 %v412_v48, %v350_v43  ;;  %v230_v41 = vld [vmem:[%s1118_s25 + $0xe0] sm:$0xff]  ;;  %v366_v43 = vmul.f32 %v229_v37, %v229_v37 }
  0x34   : > { %v279_v54 = vadd.f32 %v278_v50, %v215_v45  ;;  %v414_v56 = vadd.f32 %v413_v52, %v351_v47  ;;  %v231_v45 = vld [vmem:[%s1118_s25 + $0xe8] sm:$0xff]  ;;  %v367_v47 = vmul.f32 %v230_v41, %v230_v41 }
  0x36   : > { %v280_v58 = vadd.f32 %v279_v54, %v216_v49  ;;  %v415_v60 = vadd.f32 %v414_v56, %v352_v51  ;;  %v232_v49 = vld [vmem:[%s1118_s25 + $0xf0] sm:$0xff]  ;;  %v368_v51 = vmul.f32 %v231_v45, %v231_v45 }
  0x38   : > { %v281_v62 = vadd.f32 %v280_v58, %v217_v53  ;;  %v416_v0 = vadd.f32 %v415_v60, %v353_v55  ;;  %v233_v53 = vld [vmem:[%s1118_s25 + $0xf8] sm:$0xff]  ;;  %v369_v55 = vmul.f32 %v232_v49, %v232_v49 }
  0x3a   : > { %v282_v2 = vadd.f32 %v281_v62, %v218_v57  ;;  %v417_v4 = vadd.f32 %v416_v0, %v354_v59  ;;  %v234_v57 = vld [vmem:[%s1118_s25 + $0x100] sm:$0xff]  ;;  %v370_v59 = vmul.f32 %v233_v53, %v233_v53 }
  0x3c   : > { %v283_v6 = vadd.f32 %v282_v2, %v219_v61  ;;  %v418_v8 = vadd.f32 %v417_v4, %v355_v63  ;;  %v235_v61 = vld [vmem:[%s1118_s25 + $0x108] sm:$0xff]  ;;  %v371_v63 = vmul.f32 %v234_v57, %v234_v57 }
  0x3e   : > { %v284_v10 = vadd.f32 %v283_v6, %v220_v1  ;;  %v419_v12 = vadd.f32 %v418_v8, %v356_v3  ;;  %v236_v1 = vld [vmem:[%s1118_s25 + $0x110] sm:$0xff]  ;;  %v372_v3 = vmul.f32 %v235_v61, %v235_v61 }
  0x40   : > { %v285_v14 = vadd.f32 %v284_v10, %v221_v5  ;;  %v420_v16 = vadd.f32 %v419_v12, %v357_v7  ;;  %v237_v5 = vld [vmem:[%s1118_s25 + $0x118] sm:$0xff]  ;;  %v373_v7 = vmul.f32 %v236_v1, %v236_v1 }
  0x42   : > { %v286_v18 = vadd.f32 %v285_v14, %v222_v9  ;;  %v421_v20 = vadd.f32 %v420_v16, %v358_v11  ;;  %v238_v9 = vld [vmem:[%s1118_s25 + $0x120] sm:$0xff]  ;;  %v374_v11 = vmul.f32 %v237_v5, %v237_v5 }
  0x44   : > { %v287_v22 = vadd.f32 %v286_v18, %v223_v13  ;;  %v422_v24 = vadd.f32 %v421_v20, %v359_v15  ;;  %v239_v13 = vld [vmem:[%s1118_s25 + $0x128] sm:$0xff]  ;;  %v375_v15 = vmul.f32 %v238_v9, %v238_v9 }
  0x46   : > { %v288_v26 = vadd.f32 %v287_v22, %v224_v17  ;;  %v423_v28 = vadd.f32 %v422_v24, %v360_v19  ;;  %v240_v17 = vld [vmem:[%s1118_s25 + $0x130] sm:$0xff]  ;;  %v376_v19 = vmul.f32 %v239_v13, %v239_v13 }
  0x48   : > { %v289_v30 = vadd.f32 %v288_v26, %v225_v21  ;;  %v424_v32 = vadd.f32 %v423_v28, %v361_v23  ;;  %v241_v21 = vld [vmem:[%s1118_s25 + $0x138] sm:$0xff]  ;;  %v377_v23 = vmul.f32 %v240_v17, %v240_v17 }
  0x4a   : > { %v290_v34 = vadd.f32 %v289_v30, %v226_v25  ;;  %v425_v36 = vadd.f32 %v424_v32, %v362_v27  ;;  %v242_v25 = vld [vmem:[%s1118_s25 + $0x140] sm:$0xff]  ;;  %v378_v27 = vmul.f32 %v241_v21, %v241_v21 }
  0x4c   : > { %v291_v38 = vadd.f32 %v290_v34, %v227_v29  ;;  %v426_v40 = vadd.f32 %v425_v36, %v363_v31  ;;  %v243_v29 = vld [vmem:[%s1118_s25 + $0x148] sm:$0xff]  ;;  %v379_v31 = vmul.f32 %v242_v25, %v242_v25 }
  0x4e   : > { %v292_v42 = vadd.f32 %v291_v38, %v228_v33  ;;  %v427_v44 = vadd.f32 %v426_v40, %v364_v35  ;;  %v244_v33 = vld [vmem:[%s1118_s25 + $0x150] sm:$0xff]  ;;  %v380_v35 = vmul.f32 %v243_v29, %v243_v29 }
  0x50   : > { %v293_v46 = vadd.f32 %v292_v42, %v229_v37  ;;  %v428_v48 = vadd.f32 %v427_v44, %v365_v39  ;;  %v245_v37 = vld [vmem:[%s1118_s25 + $0x158] sm:$0xff]  ;;  %v381_v39 = vmul.f32 %v244_v33, %v244_v33 }
  0x52   : > { %v294_v50 = vadd.f32 %v293_v46, %v230_v41  ;;  %v429_v52 = vadd.f32 %v428_v48, %v366_v43  ;;  %v246_v41 = vld [vmem:[%s1118_s25 + $0x160] sm:$0xff]  ;;  %v382_v43 = vmul.f32 %v245_v37, %v245_v37 }
  0x54   : > { %v295_v54 = vadd.f32 %v294_v50, %v231_v45  ;;  %v430_v56 = vadd.f32 %v429_v52, %v367_v47  ;;  %v247_v45 = vld [vmem:[%s1118_s25 + $0x168] sm:$0xff]  ;;  %v383_v47 = vmul.f32 %v246_v41, %v246_v41 }
  0x56   : > { %v296_v58 = vadd.f32 %v295_v54, %v232_v49  ;;  %v431_v60 = vadd.f32 %v430_v56, %v368_v51  ;;  %v248_v49 = vld [vmem:[%s1118_s25 + $0x170] sm:$0xff]  ;;  %v384_v51 = vmul.f32 %v247_v45, %v247_v45 }
  0x58   : > { %v297_v62 = vadd.f32 %v296_v58, %v233_v53  ;;  %v432_v0 = vadd.f32 %v431_v60, %v369_v55  ;;  %v249_v53 = vld [vmem:[%s1118_s25 + $0x178] sm:$0xff]  ;;  %v385_v55 = vmul.f32 %v248_v49, %v248_v49 }
  0x5a   : > { %v298_v2 = vadd.f32 %v297_v62, %v234_v57  ;;  %v433_v4 = vadd.f32 %v432_v0, %v370_v59  ;;  %v250_v57 = vld [vmem:[%s1118_s25 + $0x180] sm:$0xff]  ;;  %v386_v59 = vmul.f32 %v249_v53, %v249_v53 }
  0x5c   : > { %v299_v6 = vadd.f32 %v298_v2, %v235_v61  ;;  %v434_v8 = vadd.f32 %v433_v4, %v371_v63  ;;  %v251_v61 = vld [vmem:[%s1118_s25 + $0x188] sm:$0xff]  ;;  %v387_v63 = vmul.f32 %v250_v57, %v250_v57 }
  0x5e   : > { %v300_v10 = vadd.f32 %v299_v6, %v236_v1  ;;  %v435_v12 = vadd.f32 %v434_v8, %v372_v3  ;;  %v252_v1 = vld [vmem:[%s1118_s25 + $0x190] sm:$0xff]  ;;  %v388_v3 = vmul.f32 %v251_v61, %v251_v61 }
  0x60   : > { %v301_v14 = vadd.f32 %v300_v10, %v237_v5  ;;  %v436_v16 = vadd.f32 %v435_v12, %v373_v7  ;;  %v253_v5 = vld [vmem:[%s1118_s25 + $0x198] sm:$0xff]  ;;  %v389_v7 = vmul.f32 %v252_v1, %v252_v1 }
  0x62   : > { %v302_v18 = vadd.f32 %v301_v14, %v238_v9  ;;  %v437_v20 = vadd.f32 %v436_v16, %v374_v11  ;;  %v254_v9 = vld [vmem:[%s1118_s25 + $0x1a0] sm:$0xff]  ;;  %v390_v11 = vmul.f32 %v253_v5, %v253_v5 }
  0x64   : > { %v303_v22 = vadd.f32 %v302_v18, %v239_v13  ;;  %v438_v24 = vadd.f32 %v437_v20, %v375_v15  ;;  %v255_v13 = vld [vmem:[%s1118_s25 + $0x1a8] sm:$0xff]  ;;  %v391_v15 = vmul.f32 %v254_v9, %v254_v9 }
  0x66   : > { %v304_v26 = vadd.f32 %v303_v22, %v240_v17  ;;  %v439_v28 = vadd.f32 %v438_v24, %v376_v19  ;;  %v256_v17 = vld [vmem:[%s1118_s25 + $0x1b0] sm:$0xff]  ;;  %v392_v19 = vmul.f32 %v255_v13, %v255_v13 }
  0x68   : > { %v305_v30 = vadd.f32 %v304_v26, %v241_v21  ;;  %v440_v32 = vadd.f32 %v439_v28, %v377_v23  ;;  %v257_v21 = vld [vmem:[%s1118_s25 + $0x1b8] sm:$0xff]  ;;  %v393_v23 = vmul.f32 %v256_v17, %v256_v17 }
  0x6a   : > { %v306_v34 = vadd.f32 %v305_v30, %v242_v25  ;;  %v441_v36 = vadd.f32 %v440_v32, %v378_v27  ;;  %v258_v25 = vld [vmem:[%s1118_s25 + $0x1c0] sm:$0xff]  ;;  %v394_v27 = vmul.f32 %v257_v21, %v257_v21 }
  0x6c   : > { %v307_v38 = vadd.f32 %v306_v34, %v243_v29  ;;  %v442_v40 = vadd.f32 %v441_v36, %v379_v31  ;;  %v259_v29 = vld [vmem:[%s1118_s25 + $0x1c8] sm:$0xff]  ;;  %v395_v31 = vmul.f32 %v258_v25, %v258_v25 }
  0x6e   : > { %v308_v42 = vadd.f32 %v307_v38, %v244_v33  ;;  %v443_v44 = vadd.f32 %v442_v40, %v380_v35  ;;  %v260_v33 = vld [vmem:[%s1118_s25 + $0x1d0] sm:$0xff]  ;;  %v396_v35 = vmul.f32 %v259_v29, %v259_v29 }
  0x70   : > { %v309_v46 = vadd.f32 %v308_v42, %v245_v37  ;;  %v444_v48 = vadd.f32 %v443_v44, %v381_v39  ;;  %v261_v37 = vld [vmem:[%s1118_s25 + $0x1d8] sm:$0xff]  ;;  %v397_v39 = vmul.f32 %v260_v33, %v260_v33 }
  0x72   : > { %v310_v50 = vadd.f32 %v309_v46, %v246_v41  ;;  %v445_v52 = vadd.f32 %v444_v48, %v382_v43  ;;  %v262_v41 = vld [vmem:[%s1118_s25 + $0x1e0] sm:$0xff]  ;;  %v398_v43 = vmul.f32 %v261_v37, %v261_v37 }
  0x74   : > { %v311_v54 = vadd.f32 %v310_v50, %v247_v45  ;;  %v446_v56 = vadd.f32 %v445_v52, %v383_v47  ;;  %v263_v45 = vld [vmem:[%s1118_s25 + $0x1e8] sm:$0xff]  ;;  %v399_v47 = vmul.f32 %v262_v41, %v262_v41 }
  0x76   : > { %v312_v58 = vadd.f32 %v311_v54, %v248_v49  ;;  %v447_v60 = vadd.f32 %v446_v56, %v384_v51  ;;  %v264_v49 = vld [vmem:[%s1118_s25 + $0x1f0] sm:$0xff]  ;;  %v400_v51 = vmul.f32 %v263_v45, %v263_v45 }
  0x78   : > { %v313_v62 = vadd.f32 %v312_v58, %v249_v53  ;;  %v448_v0 = vadd.f32 %v447_v60, %v385_v55  ;;  %v265_v53 = vld [vmem:[%s1118_s25 + $0x1f8] sm:$0xff]  ;;  %v401_v55 = vmul.f32 %v264_v49, %v264_v49 }
  0x79   : > { %v402_v58 = vmul.f32 %v265_v53, %v265_v53 }
  0x7a   : > { %v314_v2 = vadd.f32 %v313_v62, %v250_v57  ;;  %v449_v4 = vadd.f32 %v448_v0, %v386_v59 }
  0x7c   : > { %v315_v6 = vadd.f32 %v314_v2, %v251_v61  ;;  %v450_v8 = vadd.f32 %v449_v4, %v387_v63 }
  0x7e   : > { %v316_v10 = vadd.f32 %v315_v6, %v252_v1  ;;  %v451_v12 = vadd.f32 %v450_v8, %v388_v3 }
  0x80   : > { %v317_v14 = vadd.f32 %v316_v10, %v253_v5  ;;  %v452_v16 = vadd.f32 %v451_v12, %v389_v7  ;;  %v266_v7 = vld [vmem:[#allocation2] sm:$0x1]  ;;  %v338_v12 = vld [vmem:[#allocation3] sm:$0x1] }
  0x82   : > { %v318_v18 = vadd.f32 %v317_v14, %v254_v9  ;;  %v453_v20 = vadd.f32 %v452_v16, %v390_v11 }
  0x84   : > { %v319_v22 = vadd.f32 %v318_v18, %v255_v13  ;;  %v454_v24 = vadd.f32 %v453_v20, %v391_v15 }
  0x86   : > { %v320_v26 = vadd.f32 %v319_v22, %v256_v17  ;;  %v455_v28 = vadd.f32 %v454_v24, %v392_v19 }
  0x88   : > { %v321_v30 = vadd.f32 %v320_v26, %v257_v21  ;;  %v456_v32 = vadd.f32 %v455_v28, %v393_v23 }
  0x8a   : > { %v322_v34 = vadd.f32 %v321_v30, %v258_v25  ;;  %v457_v36 = vadd.f32 %v456_v32, %v394_v27 }
  0x8c   : > { %v323_v38 = vadd.f32 %v322_v34, %v259_v29  ;;  %v458_v40 = vadd.f32 %v457_v36, %v395_v31 }
  0x8e   : > { %v324_v42 = vadd.f32 %v323_v38, %v260_v33  ;;  %v459_v44 = vadd.f32 %v458_v40, %v396_v35 }
  0x90   : > { %v325_v46 = vadd.f32 %v324_v42, %v261_v37  ;;  %v460_v48 = vadd.f32 %v459_v44, %v397_v39 }
  0x92   : > { %v326_v50 = vadd.f32 %v325_v46, %v262_v41  ;;  %v461_v52 = vadd.f32 %v460_v48, %v398_v43 }
  0x94   : > { %v327_v54 = vadd.f32 %v326_v50, %v263_v45  ;;  %v462_v56 = vadd.f32 %v461_v52, %v399_v47 }
  0x96   : > { %v328_v57 = vadd.f32 %v327_v54, %v264_v49  ;;  %v463_v59 = vadd.f32 %v462_v56, %v400_v51 }
  0x98   : > { %v329_v60 = vadd.f32 %v328_v57, %v265_v53  ;;  %v464_v61 = vadd.f32 %v463_v59, %v401_v55 }
  0x9a   : > { %v330_v62 = vrot.slane %v329_v60, 4  ;;  %v465_v63 = vadd.f32 %v464_v61, %v402_v58 }
  0x9c   : > { %v331_v0 = vadd.f32 %v330_v62, %v329_v60  ;;  %v466_v1 = vrot.slane %v465_v63, 4 }
  0x9e   : > { %v332_v2 = vrot.slane %v331_v0, 2  ;;  %v467_v3 = vadd.f32 %v466_v1, %v465_v63 }
  0xa0   : > { %v333_v4 = vadd.f32 %v332_v2, %v331_v0  ;;  %v468_v5 = vrot.slane %v467_v3, 2 }
  0xa2   : > { %v334_v6 = vrot.slane %v333_v4, 1  ;;  %v469_v8 = vadd.f32 %v468_v5, %v467_v3 }
  0xa4   : > { %v335_v9 = vadd.f32 %v334_v6, %v333_v4  ;;  %v470_v10 = vrot.slane %v469_v8, 1 }
  0xa6   : > { %v336_v11 = vadd.f32 %v335_v9, %v266_v7  ;;  %v471_v13 = vadd.f32 %v470_v10, %v469_v8 }
  0xa8   : > { %337 = vst [vmem:[#allocation2] sm:$0x1] %v336_v11  ;;  %v472_v14 = vadd.f32 %v471_v13, %v338_v12 }
  0xaa   : > { %473 = vst [vmem:[#allocation3] sm:$0x1] %v472_v14 }
  0xab PF: > { %p973_p11 = scmp.ne.s32.totalorder %s1046_s13, 1 }
  0xad   : > { %477 = sbr.rel (%p973_p11) target bundleno = 276 (0x114), region = 44 }
  0xb4   : > { %v542_v15 = vld [vmem:[#allocation2] sm:$0x1]  ;;  %v544_v16 = vld [vmem:[#allocation3] sm:$0x1]  ;;  %v554_v17 = vlaneseq  ;;  %v1198_v24 = vld [vmem:[%s1118_s25 + $0x8] sm:$0xff] }
  0xb5   : > { %v543_v18 = vmul.f32 0.00048828125, %v542_v15  ;;  %v545_v19 = vmul.f32 0.00048828125, %v544_v16  ;;  %v1194_v22 = vld [vmem:[%s1118_s25] sm:$0xff]  ;;  %v1201_v25 = vld [vmem:[%s1118_s25 + $0x10] sm:$0xff]  ;;  %v1204_v27 = vld [vmem:[%s1118_s25 + $0x18] sm:$0xff] }
  0xb6   : > { %v1191_v20 = vshrl.u32 %v554_v17, 7  ;;  %v1207_v28 = vld [vmem:[%s1118_s25 + $0x20] sm:$0xff]  ;;  %v1210_v29 = vld [vmem:[%s1118_s25 + $0x28] sm:$0xff]  ;;  %v1213_v30 = vld [vmem:[%s1118_s25 + $0x30] sm:$0xff] }
  0xb7   : > { %v546_v21 = vmul.f32 %v543_v18, %v543_v18  ;;  %v1220_v32 = vld [vmem:[%s1118_s25 + $0x38] sm:$0xff]  ;;  %v1223_v33 = vld [vmem:[%s1118_s25 + $0x40] sm:$0xff]  ;;  %v1226_v34 = vld [vmem:[%s1118_s25 + $0x48] sm:$0xff] }
  0xb8   : > { %v1933_v23 = vsub.s32 0, %v1191_v20  ;;  %v1229_v36 = vld [vmem:[%s1118_s25 + $0x50] sm:$0xff]  ;;  %v1232_v37 = vld [vmem:[%s1118_s25 + $0x58] sm:$0xff]  ;;  %v1235_v38 = vld [vmem:[%s1118_s25 + $0x60] sm:$0xff] }
  0xb9   : > { %v547_v26 = vsub.f32 %v545_v19, %v546_v21  ;;  %v1238_v39 = vld [vmem:[%s1118_s25 + $0x68] sm:$0xff]  ;;  %v1241_v40 = vld [vmem:[%s1118_s25 + $0x70] sm:$0xff]  ;;  %v1244_v41 = vld [vmem:[%s1118_s25 + $0x78] sm:$0xff]  ;;  %v1964_v21 = vsub.s32 0, %v1191_v20 }
  0xba   : > { %v1217_v31 = vrot.slane %v543_v18, %v1933_v23  ;;  %v1247_v42 = vld [vmem:[%s1118_s25 + $0x80] sm:$0xff]  ;;  %v1250_v43 = vld [vmem:[%s1118_s25 + $0x88] sm:$0xff]  ;;  %v1259_v48 = vld [vmem:[%s1118_s25 + $0x90] sm:$0xff] }
  0xbb   : > { %v548_v35 = vmax.f32 %v547_v26, 0.0  ;;  %v1262_v49 = vld [vmem:[%s1118_s25 + $0x98] sm:$0xff]  ;;  %v1265_v50 = vld [vmem:[%s1118_s25 + $0xa0] sm:$0xff]  ;;  %v1268_v51 = vld [vmem:[%s1118_s25 + $0xa8] sm:$0xff] }
  0xbc   : > { %v1279_v56 = vld [vmem:[%s1118_s25 + $0xb0] sm:$0xff]  ;;  %v1282_v57 = vld [vmem:[%s1118_s25 + $0xb8] sm:$0xff]  ;;  %v1285_v58 = vld [vmem:[%s1118_s25 + $0xc0] sm:$0xff]  ;;  %v1967_v19 = vsub.f32 %v1201_v25, %v1217_v31  ;;  %v1971_v25 = vsub.f32 %v1213_v30, %v1217_v31 }
  0xbd   : > { %v549_v44 = vadd.f32 1e-05, %v548_v35  ;;  %v1288_v59 = vld [vmem:[%s1118_s25 + $0xc8] sm:$0xff]  ;;  %v1297_v63 = vld [vmem:[%s1118_s25 + $0xd0] sm:$0xff]  ;;  %v1300_v0 = vld [vmem:[%s1118_s25 + $0xd8] sm:$0xff] }
  0xbe   : > { %v1303_v1 = vld [vmem:[%s1118_s25 + $0xe0] sm:$0xff]  ;;  %v1306_v2 = vld [vmem:[%s1118_s25 + $0xe8] sm:$0xff]  ;;  %v1317_v7 = vld [vmem:[%s1118_s25 + $0xf0] sm:$0xff] }
  0xbf   : > { %1018 = vrsqrt.f32 %v549_v44  ;;  %v1320_v8 = vld [vmem:[%s1118_s25 + $0xf8] sm:$0xff]  ;;  %v1323_v9 = vld [vmem:[%s1118_s25 + $0x100] sm:$0xff]  ;;  %v1326_v10 = vld [vmem:[%s1118_s25 + $0x108] sm:$0xff] }
  0xc0   : > { %v1337_v15 = vld [vmem:[%s1118_s25 + $0x110] sm:$0xff]  ;;  %v1340_v16 = vld [vmem:[%s1118_s25 + $0x118] sm:$0xff]  ;;  %v1343_v17 = vld [vmem:[%s1118_s25 + $0x120] sm:$0xff] }
  0xc1   : > { %v1354_v35 = vld [vmem:[%s1118_s25 + $0x128] sm:$0xff]  ;;  %v1357_v44 = vld [vmem:[%s1118_s25 + $0x130] sm:$0xff]  ;;  %v1360_v14 = vld [vmem:[%s1118_s25 + $0x138] sm:$0xff] }
  0xc2   : > { %1949 = vst [vmem:[#allocation4_spill] sm:$0xff] %v1360_v14  ;;  %v1371_v13 = vld [vmem:[%s1118_s25 + $0x140] sm:$0xff]  ;;  %v1374_v12 = vld [vmem:[%s1118_s25 + $0x148] sm:$0xff]  ;;  %v1377_v11 = vld [vmem:[%s1118_s25 + $0x150] sm:$0xff] }
  0xc3   : > { %1950 = vst [vmem:[#allocation5_spill] sm:$0xff] %v1371_v13  ;;  %1951 = vst [vmem:[#allocation6_spill] sm:$0xff] %v1374_v12  ;;  %v1388_v6 = vld [vmem:[%s1118_s25 + $0x158] sm:$0xff]  ;;  %v1391_v5 = vld [vmem:[%s1118_s25 + $0x160] sm:$0xff] }
  0xc4   : > { %1952 = vst [vmem:[#allocation7_spill] sm:$0xff] %v1377_v11  ;;  %1953 = vst [vmem:[#allocation8_spill] sm:$0xff] %v1388_v6  ;;  %v1394_v4 = vld [vmem:[%s1118_s25 + $0x168] sm:$0xff]  ;;  %v551_v18 = vld [vmem:[%s1930_s1] sm:$0x1] }
  0xc5   : > { %1954 = vst [vmem:[#allocation9_spill] sm:$0xff] %v1391_v5  ;;  %1955 = vst [vmem:[#allocation10_spill] sm:$0xff] %v1394_v4  ;;  %v1408_v62 = vld [vmem:[%s1118_s25 + $0x170] sm:$0xff]  ;;  %v1411_v61 = vld [vmem:[%s1118_s25 + $0x178] sm:$0xff] }
  0xc6   : > { %v1414_v60 = vld [vmem:[%s1118_s25 + $0x180] sm:$0xff]  ;;  %v1425_v55 = vld [vmem:[%s1118_s25 + $0x188] sm:$0xff]  ;;  %v1428_v54 = vld [vmem:[%s1118_s25 + $0x190] sm:$0xff] }
  0xc7   : > { %1956 = vst [vmem:[#allocation11_spill] sm:$0xff] %v1414_v60  ;;  %1957 = vst [vmem:[#allocation12_spill] sm:$0xff] %v1425_v55  ;;  %v1431_v53 = vld [vmem:[%s1118_s25 + $0x198] sm:$0xff]  ;;  %v1442_v52 = vld [vmem:[%s1118_s25 + $0x1a0] sm:$0xff]  ;;  %v1965_v55 = vsub.f32 %v1194_v22, %v1217_v31  ;;  %v1969_v22 = vsub.f32 %v1207_v28, %v1217_v31 }
  0xc8   : > { %1958 = vst [vmem:[#allocation13_spill] sm:$0xff] %v1431_v53  ;;  %1959 = vst [vmem:[#allocation14_spill] sm:$0xff] %v1442_v52  ;;  %v1445_v47 = vld [vmem:[%s1118_s25 + $0x1a8] sm:$0xff]  ;;  %v1448_v46 = vld [vmem:[%s1118_s25 + $0x1b0] sm:$0xff]  ;;  %v1966_v52 = vsub.f32 %v1198_v24, %v1217_v31  ;;  %v1970_v24 = vsub.f32 %v1210_v29, %v1217_v31 }
  0xc9   : > { %v1459_v45 = vld [vmem:[%s1118_s25 + $0x1b8] sm:$0xff]  ;;  %v1462_v23 = vld [vmem:[%s1118_s25 + $0x1c0] sm:$0xff]  ;;  %v1465_v12 = vld [vmem:[%s1118_s25 + $0x1c8] sm:$0xff]  ;;  %v1019_v13 = vpop.eup %1018 }
  0xca   : > { %v1476_v4 = vld [vmem:[%s1118_s25 + $0x1d0] sm:$0xff]  ;;  %v1479_v5 = vld [vmem:[%s1118_s25 + $0x1d8] sm:$0xff]  ;;  %v1482_v6 = vld [vmem:[%s1118_s25 + $0x1e0] sm:$0xff]  ;;  %v552_v11 = vmul.f32 %v1019_v13, %v551_v18 }
  0xcb   : > { %1960 = vst [vmem:[#allocation15_spill] sm:$0xff] %v1482_v6  ;;  %v1491_v26 = vld [vmem:[%s1118_s25 + $0x1e8] sm:$0xff]  ;;  %v1494_v60 = vld [vmem:[%s1118_s25 + $0x1f0] sm:$0xff]  ;;  %v1497_v3 = vld [vmem:[%s1118_s25 + $0x1f8] sm:$0xff] }
  0xcc   : > { %1961 = vst [vmem:[#allocation16_spill] sm:$0xff] %v1491_v26  ;;  %1962 = vst [vmem:[#allocation17_spill] sm:$0xff] %v1494_v60  ;;  %v1509_v14 = vrot.slane %v552_v11, %v1964_v21  ;;  %v1520_v18 = vld [vmem:[%s1931_s2] ss:$0 sm:$0xff]  ;;  %v1968_v11 = vsub.f32 %v1204_v27, %v1217_v31  ;;  %v1972_v27 = vsub.f32 %v1220_v32, %v1217_v31 }
  0xcd   : > { %1963 = vst [vmem:[#allocation18_spill] sm:$0xff] %v1497_v3 }
  0xce   : > { %v629_v53 = vmul.f32 %v1509_v14, %v1965_v55  ;;  %v630_v13 = vmul.f32 %v1509_v14, %v1966_v52  ;;  %v631_v20 = vmul.f32 %v1509_v14, %v1967_v19  ;;  %v632_v21 = vmul.f32 %v1509_v14, %v1968_v11 }
  0xcf   : > { %v633_v55 = vmul.f32 %v1509_v14, %v1969_v22  ;;  %v634_v52 = vmul.f32 %v1509_v14, %v1970_v24  ;;  %v635_v19 = vmul.f32 %v1509_v14, %v1971_v25  ;;  %v636_v11 = vmul.f32 %v1509_v14, %v1972_v27 }
  0xd0   : > { %v700_v3 = vadd.f32 %v1520_v18, %v629_v53  ;;  %v701_v28 = vadd.f32 %v1520_v18, %v630_v13  ;;  %v702_v29 = vadd.f32 %v1520_v18, %v631_v20  ;;  %v703_v22 = vadd.f32 %v1520_v18, %v632_v21 }
  0xd1   : > { %v704_v30 = vadd.f32 %v1520_v18, %v633_v55  ;;  %v705_v24 = vadd.f32 %v1520_v18, %v634_v52  ;;  %v706_v32 = vadd.f32 %v1520_v18, %v635_v19  ;;  %v707_v25 = vadd.f32 %v1520_v18, %v636_v11 }
  0xd2   : > { %v764_v27 = vmax.f32 %v700_v3, 0.0  ;;  %v765_v53 = vmax.f32 %v701_v28, 0.0  ;;  %v766_v13 = vmax.f32 %v702_v29, 0.0  ;;  %v767_v60 = vmax.f32 %v703_v22, 0.0 }
  0xd3   : > { %v768_v20 = vmax.f32 %v704_v30, 0.0  ;;  %v769_v26 = vmax.f32 %v705_v24, 0.0  ;;  %v770_v21 = vmax.f32 %v706_v32, 0.0  ;;  %v771_v6 = vmax.f32 %v707_v25, 0.0 }
  0xd4   : > { %828 = vst [vmem:[%s1123_s29] sm:$0xff] %v764_v27  ;;  %829 = vst [vmem:[%s1123_s29 + $0x8] sm:$0xff] %v765_v53  ;;  %v1973_v55 = vsub.f32 %v1223_v33, %v1217_v31  ;;  %v1974_v52 = vsub.f32 %v1226_v34, %v1217_v31  ;;  %v1975_v11 = vsub.f32 %v1229_v36, %v1217_v31 }
  0xd5   : > { %830 = vst [vmem:[%s1123_s29 + $0x10] sm:$0xff] %v766_v13  ;;  %831 = vst [vmem:[%s1123_s29 + $0x18] sm:$0xff] %v767_v60  ;;  %v1976_v29 = vsub.f32 %v1232_v37, %v1217_v31  ;;  %v1977_v33 = vsub.f32 %v1235_v38, %v1217_v31  ;;  %v1978_v22 = vsub.f32 %v1238_v39, %v1217_v31 }
  0xd6   : > { %v637_v3 = vmul.f32 %v1509_v14, %v1973_v55  ;;  %v638_v19 = vmul.f32 %v1509_v14, %v1974_v52  ;;  %v639_v28 = vmul.f32 %v1509_v14, %v1975_v11  ;;  %832 = vst [vmem:[%s1123_s29 + $0x20] sm:$0xff] %v768_v20  ;;  %833 = vst [vmem:[%s1123_s29 + $0x28] sm:$0xff] %v769_v26 }
  0xd7   : > { %v640_v60 = vmul.f32 %v1509_v14, %v1976_v29  ;;  %834 = vst [vmem:[%s1123_s29 + $0x30] sm:$0xff] %v770_v21  ;;  %835 = vst [vmem:[%s1123_s29 + $0x38] sm:$0xff] %v771_v6  ;;  %v641_v34 = vmul.f32 %v1509_v14, %v1977_v33  ;;  %v642_v36 = vmul.f32 %v1509_v14, %v1978_v22 }
  0xd8   : > { %v1979_v30 = vsub.f32 %v1241_v40, %v1217_v31  ;;  %v1980_v26 = vsub.f32 %v1244_v41, %v1217_v31  ;;  %v708_v24 = vadd.f32 %v1520_v18, %v637_v3  ;;  %v709_v38 = vadd.f32 %v1520_v18, %v638_v19 }
  0xd9   : > { %v710_v39 = vadd.f32 %v1520_v18, %v639_v28  ;;  %v711_v32 = vadd.f32 %v1520_v18, %v640_v60  ;;  %v712_v40 = vadd.f32 %v1520_v18, %v641_v34  ;;  %v713_v25 = vadd.f32 %v1520_v18, %v642_v36 }
  0xda   : > { %v643_v37 = vmul.f32 %v1509_v14, %v1979_v30  ;;  %v644_v6 = vmul.f32 %v1509_v14, %v1980_v26  ;;  %v772_v53 = vmax.f32 %v708_v24, 0.0  ;;  %v773_v13 = vmax.f32 %v709_v38, 0.0 }
  0xdb   : > { %v774_v20 = vmax.f32 %v710_v39, 0.0  ;;  %v775_v21 = vmax.f32 %v711_v32, 0.0  ;;  %v776_v55 = vmax.f32 %v712_v40, 0.0  ;;  %v777_v3 = vmax.f32 %v713_v25, 0.0 }
  0xdc   : > { %v714_v41 = vadd.f32 %v1520_v18, %v643_v37  ;;  %v715_v27 = vadd.f32 %v1520_v18, %v644_v6  ;;  %836 = vst [vmem:[%s1123_s29 + $0x40] sm:$0xff] %v772_v53  ;;  %837 = vst [vmem:[%s1123_s29 + $0x48] sm:$0xff] %v773_v13  ;;  %v1981_v11 = vsub.f32 %v1247_v42, %v1217_v31 }
  0xdd   : > { %838 = vst [vmem:[%s1123_s29 + $0x50] sm:$0xff] %v774_v20  ;;  %839 = vst [vmem:[%s1123_s29 + $0x58] sm:$0xff] %v775_v21  ;;  %v1982_v29 = vsub.f32 %v1250_v43, %v1217_v31  ;;  %v1983_v33 = vsub.f32 %v1259_v48, %v1217_v31  ;;  %v1984_v22 = vsub.f32 %v1262_v49, %v1217_v31 }
  0xde   : > { %v778_v52 = vmax.f32 %v714_v41, 0.0  ;;  %v779_v19 = vmax.f32 %v715_v27, 0.0  ;;  %v645_v28 = vmul.f32 %v1509_v14, %v1981_v11  ;;  %840 = vst [vmem:[%s1123_s29 + $0x60] sm:$0xff] %v776_v55  ;;  %841 = vst [vmem:[%s1123_s29 + $0x68] sm:$0xff] %v777_v3  ;;  %v1985_v42 = vsub.f32 %v1265_v50, %v1217_v31 }
  0xdf   : > { %v646_v60 = vmul.f32 %v1509_v14, %v1982_v29  ;;  %v647_v34 = vmul.f32 %v1509_v14, %v1983_v33  ;;  %v648_v36 = vmul.f32 %v1509_v14, %v1984_v22  ;;  %v1986_v30 = vsub.f32 %v1268_v51, %v1217_v31 }
  0xe0   : > { %842 = vst [vmem:[%s1123_s29 + $0x70] sm:$0xff] %v778_v52  ;;  %843 = vst [vmem:[%s1123_s29 + $0x78] sm:$0xff] %v779_v19  ;;  %v649_v43 = vmul.f32 %v1509_v14, %v1985_v42  ;;  %v1987_v37 = vsub.f32 %v1279_v56, %v1217_v31  ;;  %v1988_v26 = vsub.f32 %v1282_v57, %v1217_v31 }
  0xe1   : > { %v650_v48 = vmul.f32 %v1509_v14, %v1986_v30  ;;  %v716_v24 = vadd.f32 %v1520_v18, %v645_v28  ;;  %v717_v50 = vadd.f32 %v1520_v18, %v646_v60  ;;  %v718_v51 = vadd.f32 %v1520_v18, %v647_v34 }
  0xe2   : > { %v651_v49 = vmul.f32 %v1509_v14, %v1987_v37  ;;  %v652_v6 = vmul.f32 %v1509_v14, %v1988_v26  ;;  %v719_v38 = vadd.f32 %v1520_v18, %v648_v36  ;;  %v720_v56 = vadd.f32 %v1520_v18, %v649_v43 }
  0xe3   : > { %v721_v39 = vadd.f32 %v1520_v18, %v650_v48  ;;  %v780_v40 = vmax.f32 %v716_v24, 0.0  ;;  %v781_v25 = vmax.f32 %v717_v50, 0.0  ;;  %v782_v41 = vmax.f32 %v718_v51, 0.0 }
  0xe4   : > { %v722_v57 = vadd.f32 %v1520_v18, %v651_v49  ;;  %v723_v32 = vadd.f32 %v1520_v18, %v652_v6  ;;  %v783_v27 = vmax.f32 %v719_v38, 0.0  ;;  %v784_v53 = vmax.f32 %v720_v56, 0.0 }
  0xe5   : > { %v785_v13 = vmax.f32 %v721_v39, 0.0  ;;  %844 = vst [vmem:[%s1123_s29 + $0x80] sm:$0xff] %v780_v40  ;;  %845 = vst [vmem:[%s1123_s29 + $0x88] sm:$0xff] %v781_v25  ;;  %v1989_v55 = vsub.f32 %v1285_v58, %v1217_v31  ;;  %v1990_v52 = vsub.f32 %v1288_v59, %v1217_v31  ;;  %v1991_v11 = vsub.f32 %v1297_v63, %v1217_v31 }
  0xe6   : > { %v786_v20 = vmax.f32 %v722_v57, 0.0  ;;  %v787_v21 = vmax.f32 %v723_v32, 0.0  ;;  %846 = vst [vmem:[%s1123_s29 + $0x90] sm:$0xff] %v782_v41  ;;  %847 = vst [vmem:[%s1123_s29 + $0x98] sm:$0xff] %v783_v27  ;;  %v1992_v29 = vsub.f32 %v1300_v0, %v1217_v31  ;;  %v1993_v58 = vsub.f32 %v1303_v1, %v1217_v31 }
  0xe7   : > { %v653_v3 = vmul.f32 %v1509_v14, %v1989_v55  ;;  %v654_v19 = vmul.f32 %v1509_v14, %v1990_v52  ;;  %v655_v28 = vmul.f32 %v1509_v14, %v1991_v11  ;;  %848 = vst [vmem:[%s1123_s29 + $0xa0] sm:$0xff] %v784_v53  ;;  %849 = vst [vmem:[%s1123_s29 + $0xa8] sm:$0xff] %v785_v13 }
  0xe8   : > { %v656_v60 = vmul.f32 %v1509_v14, %v1992_v29  ;;  %850 = vst [vmem:[%s1123_s29 + $0xb0] sm:$0xff] %v786_v20  ;;  %851 = vst [vmem:[%s1123_s29 + $0xb8] sm:$0xff] %v787_v21  ;;  %v657_v59 = vmul.f32 %v1509_v14, %v1993_v58  ;;  %v1994_v33 = vsub.f32 %v1306_v2, %v1217_v31  ;;  %v2004_v20 = vld [vmem:[#allocation4_spill] sm:$0xff] }
  0xe9   : > { %v1995_v34 = vsub.f32 %v1317_v7, %v1217_v31  ;;  %v1996_v22 = vsub.f32 %v1320_v8, %v1217_v31  ;;  %v724_v42 = vadd.f32 %v1520_v18, %v653_v3  ;;  %v725_v1 = vadd.f32 %v1520_v18, %v654_v19 }
  0xea   : > { %v658_v63 = vmul.f32 %v1509_v14, %v1994_v33  ;;  %v726_v2 = vadd.f32 %v1520_v18, %v655_v28  ;;  %v727_v43 = vadd.f32 %v1520_v18, %v656_v60  ;;  %v728_v7 = vadd.f32 %v1520_v18, %v657_v59 }
  0xeb   : > { %v659_v0 = vmul.f32 %v1509_v14, %v1995_v34  ;;  %v660_v36 = vmul.f32 %v1509_v14, %v1996_v22  ;;  %v788_v37 = vmax.f32 %v724_v42, 0.0  ;;  %v789_v49 = vmax.f32 %v725_v1, 0.0  ;;  %v2006_v22 = vld [vmem:[#allocation5_spill] sm:$0xff]  ;;  %v2008_v1 = vld [vmem:[#allocation6_spill] sm:$0xff] }
  0xec   : > { %v729_v30 = vadd.f32 %v1520_v18, %v658_v63  ;;  %v790_v26 = vmax.f32 %v726_v2, 0.0  ;;  %v791_v6 = vmax.f32 %v727_v43, 0.0  ;;  %v792_v24 = vmax.f32 %v728_v7, 0.0  ;;  %v2010_v7 = vld [vmem:[#allocation7_spill] sm:$0xff] }
  0xed   : > { %v730_v8 = vadd.f32 %v1520_v18, %v659_v0  ;;  %v731_v48 = vadd.f32 %v1520_v18, %v660_v36  ;;  %852 = vst [vmem:[%s1123_s29 + $0xc0] sm:$0xff] %v788_v37  ;;  %853 = vst [vmem:[%s1123_s29 + $0xc8] sm:$0xff] %v789_v49  ;;  %v1997_v56 = vsub.f32 %v1323_v9, %v1217_v31 }
  0xee   : > { %v793_v50 = vmax.f32 %v729_v30, 0.0  ;;  %854 = vst [vmem:[%s1123_s29 + $0xd0] sm:$0xff] %v790_v26  ;;  %855 = vst [vmem:[%s1123_s29 + $0xd8] sm:$0xff] %v791_v6  ;;  %v1998_v57 = vsub.f32 %v1326_v10, %v1217_v31  ;;  %v1999_v40 = vsub.f32 %v1337_v15, %v1217_v31  ;;  %v2000_v41 = vsub.f32 %v1340_v16, %v1217_v31  ;;  %v2014_v26 = vld [vmem:[#allocation9_spill] sm:$0xff] }
  0xef   : > { %v794_v51 = vmax.f32 %v730_v8, 0.0  ;;  %v795_v38 = vmax.f32 %v731_v48, 0.0  ;;  %v661_v39 = vmul.f32 %v1509_v14, %v1997_v56  ;;  %856 = vst [vmem:[%s1123_s29 + $0xe0] sm:$0xff] %v792_v24  ;;  %v2001_v9 = vsub.f32 %v1343_v17, %v1217_v31  ;;  %v2012_v48 = vld [vmem:[#allocation8_spill] sm:$0xff] }
  0xf0   : > { %v662_v32 = vmul.f32 %v1509_v14, %v1998_v57  ;;  %v663_v25 = vmul.f32 %v1509_v14, %v1999_v40  ;;  %v664_v27 = vmul.f32 %v1509_v14, %v2000_v41  ;;  %857 = vst [vmem:[%s1123_s29 + $0xe8] sm:$0xff] %v793_v50  ;;  %v2002_v53 = vsub.f32 %v1354_v35, %v1217_v31  ;;  %v2016_v50 = vld [vmem:[#allocation10_spill] sm:$0xff] }
  0xf1   : > { %858 = vst [vmem:[%s1123_s29 + $0xf0] sm:$0xff] %v794_v51  ;;  %859 = vst [vmem:[%s1123_s29 + $0xf8] sm:$0xff] %v795_v38  ;;  %v665_v10 = vmul.f32 %v1509_v14, %v2001_v9  ;;  %v2003_v13 = vsub.f32 %v1357_v44, %v1217_v31  ;;  %v2005_v21 = vsub.f32 %v2004_v20, %v1217_v31 }
  0xf2   : > { %v666_v15 = vmul.f32 %v1509_v14, %v2002_v53  ;;  %v732_v3 = vadd.f32 %v1520_v18, %v661_v39  ;;  %v733_v17 = vadd.f32 %v1520_v18, %v662_v32  ;;  %v734_v35 = vadd.f32 %v1520_v18, %v663_v25 }
  0xf3   : > { %v667_v16 = vmul.f32 %v1509_v14, %v2003_v13  ;;  %v668_v55 = vmul.f32 %v1509_v14, %v2005_v21  ;;  %v735_v52 = vadd.f32 %v1520_v18, %v664_v27  ;;  %v736_v44 = vadd.f32 %v1520_v18, %v665_v10 }
  0xf4   : > { %v737_v19 = vadd.f32 %v1520_v18, %v666_v15  ;;  %v796_v29 = vmax.f32 %v732_v3, 0.0  ;;  %v797_v60 = vmax.f32 %v733_v17, 0.0  ;;  %v798_v58 = vmax.f32 %v734_v35, 0.0  ;;  %v2020_v17 = vld [vmem:[#allocation11_spill] sm:$0xff] }
  0xf5   : > { %v738_v11 = vadd.f32 %v1520_v18, %v667_v16  ;;  %v739_v28 = vadd.f32 %v1520_v18, %v668_v55  ;;  %v799_v59 = vmax.f32 %v735_v52, 0.0  ;;  %v800_v33 = vmax.f32 %v736_v44, 0.0  ;;  %v2022_v44 = vld [vmem:[#allocation12_spill] sm:$0xff] }
  0xf6   : > { %v801_v63 = vmax.f32 %v737_v19, 0.0  ;;  %860 = vst [vmem:[%s1123_s29 + $0x100] sm:$0xff] %v796_v29  ;;  %861 = vst [vmem:[%s1123_s29 + $0x108] sm:$0xff] %v797_v60  ;;  %v2007_v36 = vsub.f32 %v2006_v22, %v1217_v31  ;;  %v2009_v2 = vsub.f32 %v2008_v1, %v1217_v31  ;;  %v2011_v30 = vsub.f32 %v2010_v7, %v1217_v31  ;;  %v2025_v60 = vld [vmem:[#allocation13_spill] sm:$0xff] }
  0xf7   : > { %v802_v34 = vmax.f32 %v738_v11, 0.0  ;;  %v803_v0 = vmax.f32 %v739_v28, 0.0  ;;  %862 = vst [vmem:[%s1123_s29 + $0x110] sm:$0xff] %v798_v58  ;;  %863 = vst [vmem:[%s1123_s29 + $0x118] sm:$0xff] %v799_v59  ;;  %v2013_v37 = vsub.f32 %v2012_v48, %v1217_v31  ;;  %v2015_v6 = vsub.f32 %v2014_v26, %v1217_v31 }
  0xf8   : > { %v669_v42 = vmul.f32 %v1509_v14, %v2007_v36  ;;  %v670_v43 = vmul.f32 %v1509_v14, %v2009_v2  ;;  %v671_v8 = vmul.f32 %v1509_v14, %v2011_v30  ;;  %864 = vst [vmem:[%s1123_s29 + $0x120] sm:$0xff] %v800_v33  ;;  %865 = vst [vmem:[%s1123_s29 + $0x128] sm:$0xff] %v801_v63  ;;  %v2027_v33 = vld [vmem:[#allocation14_spill] sm:$0xff] }
  0xf9   : > { %v672_v49 = vmul.f32 %v1509_v14, %v2013_v37  ;;  %866 = vst [vmem:[%s1123_s29 + $0x130] sm:$0xff] %v802_v34  ;;  %867 = vst [vmem:[%s1123_s29 + $0x138] sm:$0xff] %v803_v0  ;;  %v673_v24 = vmul.f32 %v1509_v14, %v2015_v6  ;;  %v2017_v51 = vsub.f32 %v2016_v50, %v1217_v31 }
  0xfa   : > { %v2018_v56 = vsub.f32 %v1408_v62, %v1217_v31  ;;  %v2019_v57 = vsub.f32 %v1411_v61, %v1217_v31  ;;  %v740_v40 = vadd.f32 %v1520_v18, %v669_v42  ;;  %v741_v25 = vadd.f32 %v1520_v18, %v670_v43 }
  0xfb   : > { %v674_v38 = vmul.f32 %v1509_v14, %v2017_v51  ;;  %v742_v41 = vadd.f32 %v1520_v18, %v671_v8  ;;  %v743_v27 = vadd.f32 %v1520_v18, %v672_v49  ;;  %v744_v62 = vadd.f32 %v1520_v18, %v673_v24 }
  0xfc   : > { %v675_v39 = vmul.f32 %v1509_v14, %v2018_v56  ;;  %v676_v32 = vmul.f32 %v1509_v14, %v2019_v57  ;;  %v804_v53 = vmax.f32 %v740_v40, 0.0  ;;  %v805_v15 = vmax.f32 %v741_v25, 0.0 }
  0xfd   : > { %v745_v9 = vadd.f32 %v1520_v18, %v674_v38  ;;  %v806_v13 = vmax.f32 %v742_v41, 0.0  ;;  %v807_v16 = vmax.f32 %v743_v27, 0.0  ;;  %v808_v20 = vmax.f32 %v744_v62, 0.0  ;;  %v2038_v62 = vld [vmem:[#allocation16_spill] sm:$0xff] }
  0xfe   : > { %v746_v61 = vadd.f32 %v1520_v18, %v675_v39  ;;  %v747_v10 = vadd.f32 %v1520_v18, %v676_v32  ;;  %868 = vst [vmem:[%s1123_s29 + $0x140] sm:$0xff] %v804_v53  ;;  %869 = vst [vmem:[%s1123_s29 + $0x148] sm:$0xff] %v805_v15  ;;  %v2021_v35 = vsub.f32 %v2020_v17, %v1217_v31  ;;  %v2042_v53 = vld [vmem:[#allocation18_spill] sm:$0xff] }
  0xff   : > { %v809_v21 = vmax.f32 %v745_v9, 0.0  ;;  %870 = vst [vmem:[%s1123_s29 + $0x150] sm:$0xff] %v806_v13  ;;  %871 = vst [vmem:[%s1123_s29 + $0x158] sm:$0xff] %v807_v16  ;;  %v2023_v19 = vsub.f32 %v2022_v44, %v1217_v31  ;;  %v2024_v28 = vsub.f32 %v1428_v54, %v1217_v31  ;;  %v2026_v58 = vsub.f32 %v2025_v60, %v1217_v31 }
 0x100   : > { %v810_v55 = vmax.f32 %v746_v61, 0.0  ;;  %v811_v3 = vmax.f32 %v747_v10, 0.0  ;;  %v677_v52 = vmul.f32 %v1509_v14, %v2021_v35  ;;  %872 = vst [vmem:[%s1123_s29 + $0x160] sm:$0xff] %v808_v20  ;;  %v2028_v63 = vsub.f32 %v2027_v33, %v1217_v31  ;;  %v2040_v61 = vld [vmem:[#allocation17_spill] sm:$0xff] }
 0x101   : > { %v678_v11 = vmul.f32 %v1509_v14, %v2023_v19  ;;  %v679_v29 = vmul.f32 %v1509_v14, %v2024_v28  ;;  %v680_v59 = vmul.f32 %v1509_v14, %v2026_v58  ;;  %873 = vst [vmem:[%s1123_s29 + $0x168] sm:$0xff] %v809_v21  ;;  %v2029_v0 = vsub.f32 %v1445_v47, %v1217_v31 }
 0x102   : > { %874 = vst [vmem:[%s1123_s29 + $0x170] sm:$0xff] %v810_v55  ;;  %875 = vst [vmem:[%s1123_s29 + $0x178] sm:$0xff] %v811_v3  ;;  %v681_v34 = vmul.f32 %v1509_v14, %v2028_v63  ;;  %v2030_v22 = vsub.f32 %v1448_v46, %v1217_v31  ;;  %v2031_v42 = vsub.f32 %v1459_v45, %v1217_v31 }
 0x103   : > { %v682_v54 = vmul.f32 %v1509_v14, %v2029_v0  ;;  %v748_v2 = vadd.f32 %v1520_v18, %v677_v52  ;;  %v749_v43 = vadd.f32 %v1520_v18, %v678_v11  ;;  %v750_v47 = vadd.f32 %v1520_v18, %v679_v29 }
 0x104   : > { %v683_v36 = vmul.f32 %v1509_v14, %v2030_v22  ;;  %v684_v1 = vmul.f32 %v1509_v14, %v2031_v42  ;;  %v751_v7 = vadd.f32 %v1520_v18, %v680_v59  ;;  %v752_v46 = vadd.f32 %v1520_v18, %v681_v34 }
 0x105   : > { %v753_v30 = vadd.f32 %v1520_v18, %v682_v54  ;;  %v812_v48 = vmax.f32 %v748_v2, 0.0  ;;  %v813_v37 = vmax.f32 %v749_v43, 0.0  ;;  %v814_v49 = vmax.f32 %v750_v47, 0.0 }
 0x106   : > { %v754_v45 = vadd.f32 %v1520_v18, %v683_v36  ;;  %v755_v8 = vadd.f32 %v1520_v18, %v684_v1  ;;  %v815_v26 = vmax.f32 %v751_v7, 0.0  ;;  %v816_v6 = vmax.f32 %v752_v46, 0.0 }
 0x107   : > { %v817_v24 = vmax.f32 %v753_v30, 0.0  ;;  %876 = vst [vmem:[%s1123_s29 + $0x180] sm:$0xff] %v812_v48  ;;  %877 = vst [vmem:[%s1123_s29 + $0x188] sm:$0xff] %v813_v37  ;;  %v2032_v38 = vsub.f32 %v1462_v23, %v1217_v31  ;;  %v2033_v39 = vsub.f32 %v1465_v12, %v1217_v31  ;;  %v2034_v32 = vsub.f32 %v1476_v4, %v1217_v31  ;;  %v2036_v23 = vld [vmem:[#allocation15_spill] sm:$0xff] }
 0x108   : > { %v818_v50 = vmax.f32 %v754_v45, 0.0  ;;  %v819_v51 = vmax.f32 %v755_v8, 0.0  ;;  %878 = vst [vmem:[%s1123_s29 + $0x190] sm:$0xff] %v814_v49  ;;  %879 = vst [vmem:[%s1123_s29 + $0x198] sm:$0xff] %v815_v26  ;;  %v2035_v25 = vsub.f32 %v1479_v5, %v1217_v31  ;;  %v2037_v27 = vsub.f32 %v2036_v23, %v1217_v31 }
 0x109   : > { %v685_v56 = vmul.f32 %v1509_v14, %v2032_v38  ;;  %v686_v57 = vmul.f32 %v1509_v14, %v2033_v39  ;;  %v687_v40 = vmul.f32 %v1509_v14, %v2034_v32  ;;  %880 = vst [vmem:[%s1123_s29 + $0x1a0] sm:$0xff] %v816_v6  ;;  %881 = vst [vmem:[%s1123_s29 + $0x1a8] sm:$0xff] %v817_v24 }
 0x10a   : > { %v688_v41 = vmul.f32 %v1509_v14, %v2035_v25  ;;  %882 = vst [vmem:[%s1123_s29 + $0x1b0] sm:$0xff] %v818_v50  ;;  %883 = vst [vmem:[%s1123_s29 + $0x1b8] sm:$0xff] %v819_v51  ;;  %v689_v12 = vmul.f32 %v1509_v14, %v2037_v27  ;;  %v2039_v9 = vsub.f32 %v2038_v62, %v1217_v31 }
 0x10b   : > { %v2041_v10 = vsub.f32 %v2040_v61, %v1217_v31  ;;  %v2043_v15 = vsub.f32 %v2042_v53, %v1217_v31  ;;  %v756_v16 = vadd.f32 %v1520_v18, %v685_v56  ;;  %v757_v20 = vadd.f32 %v1520_v18, %v686_v57 }
 0x10c   : > { %v690_v4 = vmul.f32 %v1509_v14, %v2039_v9  ;;  %v758_v21 = vadd.f32 %v1520_v18, %v687_v40  ;;  %v759_v55 = vadd.f32 %v1520_v18, %v688_v41  ;;  %v760_v3 = vadd.f32 %v1520_v18, %v689_v12 }
 0x10d   : > { %v691_v5 = vmul.f32 %v1509_v14, %v2041_v10  ;;  %v692_v13 = vmul.f32 %v1509_v14, %v2043_v15  ;;  %v820_v35 = vmax.f32 %v756_v16, 0.0  ;;  %v821_v52 = vmax.f32 %v757_v20, 0.0 }
 0x10e   : > { %v761_v17 = vadd.f32 %v1520_v18, %v690_v4  ;;  %v822_v44 = vmax.f32 %v758_v21, 0.0  ;;  %v823_v19 = vmax.f32 %v759_v55, 0.0  ;;  %v824_v11 = vmax.f32 %v760_v3, 0.0 }
 0x10f   : > { %v762_v31 = vadd.f32 %v1520_v18, %v691_v5  ;;  %v763_v14 = vadd.f32 %v1520_v18, %v692_v13  ;;  %884 = vst [vmem:[%s1123_s29 + $0x1c0] sm:$0xff] %v820_v35  ;;  %885 = vst [vmem:[%s1123_s29 + $0x1c8] sm:$0xff] %v821_v52 }
 0x110   : > { %v825_v28 = vmax.f32 %v761_v17, 0.0  ;;  %886 = vst [vmem:[%s1123_s29 + $0x1d0] sm:$0xff] %v822_v44  ;;  %887 = vst [vmem:[%s1123_s29 + $0x1d8] sm:$0xff] %v823_v19 }
 0x111   : > { %v826_v29 = vmax.f32 %v762_v31, 0.0  ;;  %v827_v60 = vmax.f32 %v763_v14, 0.0  ;;  %888 = vst [vmem:[%s1123_s29 + $0x1e0] sm:$0xff] %v824_v11 }
 0x112   : > { %889 = vst [vmem:[%s1123_s29 + $0x1e8] sm:$0xff] %v825_v28 }
 0x113   : > { %890 = vst [vmem:[%s1123_s29 + $0x1f0] sm:$0xff] %v826_v29  ;;  %891 = vst [vmem:[%s1123_s29 + $0x1f8] sm:$0xff] %v827_v60 }
 0x114 PF: > { %s13_s16 = sadd.s32 1, %s1058_s16   ;;  %s2044_s12 = smov %s1050_s14 }
 0x115   : > { %p10_p12 = scmp.ge.s32.totalorder %s13_s16, 10   ;;  %s2045_s13 = smov %s1054_s15 }
 0x116   : > { %s2046_s14 = smov %s2049_s17  ;;  %s2047_s15 = smov %s2053_s18 }
 0x117   :  { %12 = sbr.rel (!%p10_p12) target bundleno = 3 (0x3), region = 74 }

// kernel: dcgan_generator.17
= control target key start
LH: loop header
LB: loop body
LE: loop exit
PB: predicated region body
PF: predicated region fallthrough
CT: control target
= control target key end

     0   :  { %s2732_s9 = smov 0   ;;  %s2734_s10 = smov 0   ;;  %s3063_s0 = inlined_call_operand.vmem [shape: bf16[4,2048,512], index: 0, kind: input, shape index: {}]   ;;  %s3064_s1 = inlined_call_operand.vmem [shape: bf16[4,512,128], index: 1, kind: input, shape index: {}]   ;;  %s3065_s2 = inlined_call_operand.vmem [shape: f32[4,2048,128], index: 2, kind: output, shape index: {}]  }
   0x1   :  { %s2736_s11 = smov 0   ;;  %s2738_s12 = smov 0  }
   0x2   :  { %s2740_s13 = smov 0  }
   0x3 LB: > { %s21_s14 = sadd.s32 1, %s2706_s11  ;;  %s24_s15 = sadd.s32 1, %s2710_s12  ;;  %s2714_s13 = sphi %s2740_s13, %s12_s13   ;;  %s2710_s12 = sphi %s2738_s12, %s3069_s12   ;;  %s2706_s11 = sphi %s2736_s11, %s3068_s11   ;;  %s2702_s10 = sphi %s2734_s10, %s3067_s10   ;;  %s2698_s9 = sphi %s2732_s9, %s3066_s9  }
   0x4   : > { %p22_p0 = scmp.ge.s32.totalorder %s21_s14, 4  ;;  %p2046_p1 = scmp.ge.s32.totalorder %s2714_s13, 1 }
   0x5   : > { %p144_p2 = scmp.lt.s32.totalorder %s2714_s13, 17 }
   0x6   : > { %s3071_s14 = smov (%p22_p0, %s21_s14), 0  ;;  %s3073_s15 = smov (!%p22_p0, %s24_s15), %s2710_s12 }
   0x7   : > { %p145_p3 = pnand %p2046_p1, %p144_p2  ;;  %p26_p4 = scmp.ge.s32.totalorder %s3073_s15, 4 }
   0x8   : > { %p181_p5 = scmp.lt.s32.totalorder (!%p145_p3), %s2702_s10, 3  ;;  %v2716_v0 = vmov (!%p145_p3), 0   ;;  %s2047_s20 = sshll.u32 (!%p145_p3), %s2698_s9, 6 }
   0x9   : > { %s3075_s15 = smov (%p26_p4, %s3073_s15), 0  ;;  %148 = sbr.rel (%p145_p3) target bundleno = 560 (0x230), region = 28 }
   0xa   : > { %1231 = vmatprep.subr.bf16.mxu1 (!%p145_p3), %v2716_v0  ;;  %1520 = vmatprep.subr.bf16.mxu0 (!%p145_p3), %v2716_v0  ;;  %p183_p6 = scmp.lt.s32.totalorder (!%p145_p3), %s2047_s20, 255 }
  0x10   : > { %s3077_s10 = smov (!%p181_p5, %s2702_s10), 3  ;;  %s3079_s20 = smov (!%p183_p6, %s2047_s20), 255 }
  0x11   : > { %s2218_s16 = sshll.u32 %s3077_s10, 8  ;;  %s2048_s21 = sshll.u32 %s3079_s20, 2 }
  0x12   : > { %s2774_s19 = scalar_lea.vmem %s3064_s1, %s2218_s16  ;;  %s2049_s22 = sshll.u32 %s3077_s10, 10 }
  0x13   : > { %v2324_v1 = vld [vmem:[%s2774_s19] sm:$0xff]   ;;  %v2326_v3 = vld [vmem:[%s2774_s19 + $0x8] sm:$0xff]   ;;  %v2328_v5 = vld [vmem:[%s2774_s19 + $0x10] sm:$0xff]   ;;  %s187_s23 = sadd.s32 %s2049_s22, %s2048_s21  ;;  %s202_s28 = sadd.s32 %s2218_s16, %s3079_s20 }
  0x14   : > { %v2325_v2 = vld [vmem:[%s2774_s19 + $0x80] sm:$0xff]   ;;  %1232 = vmatpush1.bf16.msra.mxu1 %v2324_v1  ;;  %v2327_v4 = vld [vmem:[%s2774_s19 + $0x88] sm:$0xff]   ;;  %v2329_v6 = vld [vmem:[%s2774_s19 + $0x90] sm:$0xff]   ;;  %s2050_s24 = sshll.u32 %s187_s23, 2  ;;  %s2055_s29 = sshll.u32 %s202_s28, 3 }
  0x15   : > { %1521 = vmatpush1.bf16.msra.mxu0 %v2325_v2  ;;  %1233 = vmatprep.subr.bf16.mxu1 %v2716_v0  ;;  %v2330_v7 = vld [vmem:[%s2774_s19 + $0x18] sm:$0xff]   ;;  %v2332_v9 = vld [vmem:[%s2774_s19 + $0x20] sm:$0xff]   ;;  %v2334_v11 = vld [vmem:[%s2774_s19 + $0x28] sm:$0xff]   ;;  %s2814_s27 = scalar_lea.vmem %s3063_s0, %s2050_s24  ;;  %s2972_s4 = scalar_lea.vmem %s3065_s2, %s2055_s29 }
  0x16   : > { %1522 = vmatprep.subr.bf16.mxu0 %v2716_v0  ;;  %v2331_v8 = vld [vmem:[%s2774_s19 + $0x98] sm:$0xff]   ;;  %v2333_v10 = vld [vmem:[%s2774_s19 + $0xa0] sm:$0xff]   ;;  %v2335_v12 = vld [vmem:[%s2774_s19 + $0xa8] sm:$0xff]  }
  0x17   : > { %v2336_v13 = vld [vmem:[%s2774_s19 + $0x30] sm:$0xff]   ;;  %v2338_v15 = vld [vmem:[%s2774_s19 + $0x38] sm:$0xff]   ;;  %v2340_v17 = vld [vmem:[%s2774_s19 + $0x40] sm:$0xff]  }
  0x18   : > { %1234 = vmatpush1.bf16.msra.mxu1 %v2326_v3  ;;  %v2337_v14 = vld [vmem:[%s2774_s19 + $0xb0] sm:$0xff]   ;;  %v2339_v16 = vld [vmem:[%s2774_s19 + $0xb8] sm:$0xff]   ;;  %v2341_v18 = vld [vmem:[%s2774_s19 + $0xc0] sm:$0xff]  }
  0x19   : > { %1523 = vmatpush1.bf16.msra.mxu0 %v2327_v4  ;;  %1235 = vmatprep.subr.bf16.mxu1 %v2716_v0  ;;  %v2358_v19 = vld [vmem:[%s2814_s27 + $0x4] ss:$16 sps:$4 sm:$0xff]   ;;  %v2342_v20 = vld [vmem:[%s2774_s19 + $0x48] sm:$0xff]   ;;  %v2346_v25 = vld [vmem:[%s2774_s19 + $0x58] sm:$0xff]  }
  0x1a   : > { %1524 = vmatprep.subr.bf16.mxu0 %v2716_v0  ;;  %v2361_v21 = vld [vmem:[%s2814_s27 + $0xc] ss:$16 sps:$4 sm:$0xff]   ;;  %1263 = vmatprep.mubr.bf16.mxu1 %v2358_v19  ;;  %v2344_v23 = vld [vmem:[%s2774_s19 + $0x50] sm:$0xff]   ;;  %v2348_v27 = vld [vmem:[%s2774_s19 + $0x60] sm:$0xff]  }
  0x1b   : > { %v2343_v22 = vld [vmem:[%s2774_s19 + $0xc8] sm:$0xff]   ;;  %1552 = vmatprep.mubr.bf16.mxu0 %v2361_v21  ;;  %v2345_v24 = vld [vmem:[%s2774_s19 + $0xd0] sm:$0xff]   ;;  %v2347_v26 = vld [vmem:[%s2774_s19 + $0xd8] sm:$0xff]  }
  0x1c   : > { %1236 = vmatpush1.bf16.msra.mxu1 %v2328_v5  ;;  %v2349_v28 = vld [vmem:[%s2774_s19 + $0xe0] sm:$0xff]   ;;  %v2350_v29 = vld [vmem:[%s2774_s19 + $0x68] sm:$0xff]   ;;  %v2352_v31 = vld [vmem:[%s2774_s19 + $0x70] sm:$0xff]  }
  0x1d   : > { %1525 = vmatpush1.bf16.msra.mxu0 %v2329_v6  ;;  %1237 = vmatprep.subr.bf16.mxu1 %v2716_v0  ;;  %v2351_v30 = vld [vmem:[%s2774_s19 + $0xe8] sm:$0xff]   ;;  %v2353_v32 = vld [vmem:[%s2774_s19 + $0xf0] sm:$0xff]   ;;  %v2354_v33 = vld [vmem:[%s2774_s19 + $0x78] sm:$0xff]  }
  0x1e   : > { %1526 = vmatprep.subr.bf16.mxu0 %v2716_v0  ;;  %v2355_v34 = vld [vmem:[%s2774_s19 + $0xf8] sm:$0xff]   ;;  %v2356_v35 = vld [vmem:[%s2814_s27] ss:$16 sps:$4 sm:$0xff]   ;;  %v2362_v37 = vld [vmem:[%s2814_s27 + $0x24] ss:$16 sps:$4 sm:$0xff]  }
  0x1f   : > { %v2359_v36 = vld [vmem:[%s2814_s27 + $0x8] ss:$16 sps:$4 sm:$0xff]   ;;  %v2364_v38 = vld [vmem:[%s2814_s27 + $0x2c] ss:$16 sps:$4 sm:$0xff]   ;;  %v2366_v39 = vld [vmem:[%s2814_s27 + $0x20] ss:$16 sps:$4 sm:$0xff]  }
  0x20   : > { %1238 = vmatpush1.bf16.msra.mxu1 %v2330_v7  ;;  %v2367_v40 = vld [vmem:[%s2814_s27 + $0x28] ss:$16 sps:$4 sm:$0xff]   ;;  %v2368_v41 = vld [vmem:[%s2814_s27 + $0x44] ss:$16 sps:$4 sm:$0xff]   ;;  %v2370_v42 = vld [vmem:[%s2814_s27 + $0x4c] ss:$16 sps:$4 sm:$0xff]  }
  0x21   : > { %1527 = vmatpush1.bf16.msra.mxu0 %v2331_v8  ;;  %1239 = vmatprep.subr.bf16.mxu1 %v2716_v0  ;;  %v2372_v43 = vld [vmem:[%s2814_s27 + $0x40] ss:$16 sps:$4 sm:$0xff]   ;;  %v2373_v44 = vld [vmem:[%s2814_s27 + $0x48] ss:$16 sps:$4 sm:$0xff]   ;;  %v2374_v45 = vld [vmem:[%s2814_s27 + $0x64] ss:$16 sps:$4 sm:$0xff]  }
  0x22   : > { %1528 = vmatprep.subr.bf16.mxu0 %v2716_v0  ;;  %v2376_v46 = vld [vmem:[%s2814_s27 + $0x6c] ss:$16 sps:$4 sm:$0xff]   ;;  %v2378_v47 = vld [vmem:[%s2814_s27 + $0x60] ss:$16 sps:$4 sm:$0xff]   ;;  %v2379_v48 = vld [vmem:[%s2814_s27 + $0x68] ss:$16 sps:$4 sm:$0xff]  }
  0x23   : > { %v2380_v49 = vld [vmem:[%s2814_s27 + $0x84] ss:$16 sps:$4 sm:$0xff]   ;;  %v2382_v50 = vld [vmem:[%s2814_s27 + $0x8c] ss:$16 sps:$4 sm:$0xff]   ;;  %v2384_v51 = vld [vmem:[%s2814_s27 + $0x80] ss:$16 sps:$4 sm:$0xff]  }
  0x24   : > { %1240 = vmatpush1.bf16.msra.mxu1 %v2332_v9  ;;  %v2385_v52 = vld [vmem:[%s2814_s27 + $0x88] ss:$16 sps:$4 sm:$0xff]   ;;  %v2386_v53 = vld [vmem:[%s2814_s27 + $0xa4] ss:$16 sps:$4 sm:$0xff]   ;;  %v2388_v54 = vld [vmem:[%s2814_s27 + $0xac] ss:$16 sps:$4 sm:$0xff]  }
  0x25   : > { %1529 = vmatpush1.bf16.msra.mxu0 %v2333_v10  ;;  %1241 = vmatprep.subr.bf16.mxu1 %v2716_v0  ;;  %v2390_v55 = vld [vmem:[%s2814_s27 + $0xa0] ss:$16 sps:$4 sm:$0xff]   ;;  %v2391_v56 = vld [vmem:[%s2814_s27 + $0xa8] ss:$16 sps:$4 sm:$0xff]   ;;  %v2392_v57 = vld [vmem:[%s2814_s27 + $0xc4] ss:$16 sps:$4 sm:$0xff]  }
  0x26   : > { %1530 = vmatprep.subr.bf16.mxu0 %v2716_v0  ;;  %v2394_v58 = vld [vmem:[%s2814_s27 + $0xcc] ss:$16 sps:$4 sm:$0xff]   ;;  %v2396_v59 = vld [vmem:[%s2814_s27 + $0xc0] ss:$16 sps:$4 sm:$0xff]   ;;  %v2397_v60 = vld [vmem:[%s2814_s27 + $0xc8] ss:$16 sps:$4 sm:$0xff]  }
  0x27   : > { %v2398_v61 = vld [vmem:[%s2814_s27 + $0xe4] ss:$16 sps:$4 sm:$0xff]   ;;  %v2400_v62 = vld [vmem:[%s2814_s27 + $0xec] ss:$16 sps:$4 sm:$0xff]   ;;  %v2402_v63 = vld [vmem:[%s2814_s27 + $0xe0] ss:$16 sps:$4 sm:$0xff]  }
  0x28   : > { %1242 = vmatpush1.bf16.msra.mxu1 %v2334_v11  ;;  %v2404_v1 = vld [vmem:[%s2814_s27 + $0x104] ss:$16 sps:$4 sm:$0xff]   ;;  %v2406_v2 = vld [vmem:[%s2814_s27 + $0x10c] ss:$16 sps:$4 sm:$0xff]   ;;  %v2408_v3 = vld [vmem:[%s2814_s27 + $0x100] ss:$16 sps:$4 sm:$0xff]  }
  0x29   : > { %1531 = vmatpush1.bf16.msra.mxu0 %v2335_v12  ;;  %1243 = vmatprep.subr.bf16.mxu1 %v2716_v0  ;;  %v2409_v4 = vld [vmem:[%s2814_s27 + $0x108] ss:$16 sps:$4 sm:$0xff]   ;;  %v2410_v5 = vld [vmem:[%s2814_s27 + $0x124] ss:$16 sps:$4 sm:$0xff]   ;;  %v2412_v6 = vld [vmem:[%s2814_s27 + $0x12c] ss:$16 sps:$4 sm:$0xff]  }
  0x2a   : > { %1532 = vmatprep.subr.bf16.mxu0 %v2716_v0  ;;  %v2414_v7 = vld [vmem:[%s2814_s27 + $0x120] ss:$16 sps:$4 sm:$0xff]   ;;  %v2415_v8 = vld [vmem:[%s2814_s27 + $0x128] ss:$16 sps:$4 sm:$0xff]   ;;  %v2416_v9 = vld [vmem:[%s2814_s27 + $0x144] ss:$16 sps:$4 sm:$0xff]  }
  0x2b   : > { %v2418_v10 = vld [vmem:[%s2814_s27 + $0x14c] ss:$16 sps:$4 sm:$0xff]   ;;  %v2420_v11 = vld [vmem:[%s2814_s27 + $0x140] ss:$16 sps:$4 sm:$0xff]   ;;  %v2421_v12 = vld [vmem:[%s2814_s27 + $0x148] ss:$16 sps:$4 sm:$0xff]  }
  0x2c   : > { %1244 = vmatpush1.bf16.msra.mxu1 %v2336_v13  ;;  %v2422_v13 = vld [vmem:[%s2814_s27 + $0x164] ss:$16 sps:$4 sm:$0xff]   ;;  %v2432_v19 = vld [vmem:[%s2814_s27 + $0x180] ss:$16 sps:$4 sm:$0xff]  }
  0x2d   : > { %1533 = vmatpush1.bf16.msra.mxu0 %v2337_v14  ;;  %1245 = vmatprep.subr.bf16.mxu1 %v2716_v0  ;;  %v2424_v14 = vld [vmem:[%s2814_s27 + $0x16c] ss:$16 sps:$4 sm:$0xff]   ;;  %v2434_v21 = vld [vmem:[%s2814_s27 + $0x1a4] ss:$16 sps:$4 sm:$0xff]  }
  0x2e   : > { %1534 = vmatprep.subr.bf16.mxu0 %v2716_v0 }
  0x30   : > { %1246 = vmatpush1.bf16.msra.mxu1 %v2338_v15  ;;  %v2426_v15 = vld [vmem:[%s2814_s27 + $0x160] ss:$16 sps:$4 sm:$0xff]  }
  0x31   : > { %1535 = vmatpush1.bf16.msra.mxu0 %v2339_v16  ;;  %1247 = vmatprep.subr.bf16.mxu1 %v2716_v0  ;;  %v2427_v16 = vld [vmem:[%s2814_s27 + $0x168] ss:$16 sps:$4 sm:$0xff]  }
  0x32   : > { %1536 = vmatprep.subr.bf16.mxu0 %v2716_v0 }
  0x34   : > { %1248 = vmatpush1.bf16.msra.mxu1 %v2340_v17  ;;  %v2428_v17 = vld [vmem:[%s2814_s27 + $0x184] ss:$16 sps:$4 sm:$0xff]  }
  0x35   : > { %1537 = vmatpush1.bf16.msra.mxu0 %v2341_v18  ;;  %1249 = vmatprep.subr.bf16.mxu1 %v2716_v0  ;;  %v2430_v18 = vld [vmem:[%s2814_s27 + $0x18c] ss:$16 sps:$4 sm:$0xff]  }
  0x36   : > { %1538 = vmatprep.subr.bf16.mxu0 %v2716_v0 }
  0x38   : > { %1250 = vmatpush1.bf16.msra.mxu1 %v2342_v20  ;;  %v2433_v20 = vld [vmem:[%s2814_s27 + $0x188] ss:$16 sps:$4 sm:$0xff]  }
  0x39   : > { %1539 = vmatpush1.bf16.msra.mxu0 %v2343_v22  ;;  %1251 = vmatprep.subr.bf16.mxu1 %v2716_v0  ;;  %v2436_v22 = vld [vmem:[%s2814_s27 + $0x1ac] ss:$16 sps:$4 sm:$0xff]  }
  0x3a   : > { %1540 = vmatprep.subr.bf16.mxu0 %v2716_v0 }
  0x3c   : > { %1252 = vmatpush1.bf16.msra.mxu1 %v2344_v23  ;;  %v2438_v23 = vld [vmem:[%s2814_s27 + $0x1a0] ss:$16 sps:$4 sm:$0xff]  }
  0x3d   : > { %1541 = vmatpush1.bf16.msra.mxu0 %v2345_v24  ;;  %1253 = vmatprep.subr.bf16.mxu1 %v2716_v0  ;;  %v2439_v24 = vld [vmem:[%s2814_s27 + $0x1a8] ss:$16 sps:$4 sm:$0xff]  }
  0x3e   : > { %1542 = vmatprep.subr.bf16.mxu0 %v2716_v0 }
  0x40   : > { %1254 = vmatpush1.bf16.msra.mxu1 %v2346_v25  ;;  %v2440_v25 = vld [vmem:[%s2814_s27 + $0x1c4] ss:$16 sps:$4 sm:$0xff]  }
  0x41   : > { %1543 = vmatpush1.bf16.msra.mxu0 %v2347_v26  ;;  %1255 = vmatprep.subr.bf16.mxu1 %v2716_v0  ;;  %v2442_v26 = vld [vmem:[%s2814_s27 + $0x1cc] ss:$16 sps:$4 sm:$0xff]  }
  0x42   : > { %1544 = vmatprep.subr.bf16.mxu0 %v2716_v0 }
  0x44   : > { %1256 = vmatpush1.bf16.msra.mxu1 %v2348_v27  ;;  %v2444_v27 = vld [vmem:[%s2814_s27 + $0x1c0] ss:$16 sps:$4 sm:$0xff]  }
  0x45   : > { %1545 = vmatpush1.bf16.msra.mxu0 %v2349_v28  ;;  %1257 = vmatprep.subr.bf16.mxu1 %v2716_v0  ;;  %v2445_v28 = vld [vmem:[%s2814_s27 + $0x1c8] ss:$16 sps:$4 sm:$0xff]  }
  0x46   : > { %1546 = vmatprep.subr.bf16.mxu0 %v2716_v0 }
  0x48   : > { %1258 = vmatpush1.bf16.msra.mxu1 %v2350_v29  ;;  %v2446_v29 = vld [vmem:[%s2814_s27 + $0x1e4] ss:$16 sps:$4 sm:$0xff]  }
  0x49   : > { %1547 = vmatpush1.bf16.msra.mxu0 %v2351_v30  ;;  %1259 = vmatprep.subr.bf16.mxu1 %v2716_v0  ;;  %v2448_v30 = vld [vmem:[%s2814_s27 + $0x1ec] ss:$16 sps:$4 sm:$0xff]  }
  0x4a   : > { %1548 = vmatprep.subr.bf16.mxu0 %v2716_v0 }
  0x4c   : > { %1260 = vmatpush1.bf16.msra.mxu1 %v2352_v31  ;;  %v2450_v31 = vld [vmem:[%s2814_s27 + $0x1e0] ss:$16 sps:$4 sm:$0xff]  }
  0x4d   : > { %1549 = vmatpush1.bf16.msra.mxu0 %v2353_v32  ;;  %1261 = vmatprep.subr.bf16.mxu1 %v2716_v0  ;;  %v2451_v32 = vld [vmem:[%s2814_s27 + $0x1e8] ss:$16 sps:$4 sm:$0xff]  }
  0x4e   : > { %1550 = vmatprep.subr.bf16.mxu0 %v2716_v0  ;;  %v2403_v0 = vld [vmem:[%s2814_s27 + $0xe8] ss:$16 sps:$4 sm:$0xff]  }
  0x50   : > { %1262 = vmatpush1.bf16.msra.mxu1 %v2354_v33  ;;  %v2452_v33 = vld [vmem:[%s2814_s27 + $0x204] ss:$16 sps:$4 sm:$0xff]  }
  0x51   : > { %1551 = vmatpush1.bf16.msra.mxu0 %v2355_v34  ;;  %v2454_v34 = vld [vmem:[%s2814_s27 + $0x20c] ss:$16 sps:$4 sm:$0xff]  }
  0x53   : > { %1264 = vmatmul.mubr.bf16.vlgmr.msra.gmra.mrb[0].mxu1 %v2356_v35  ;;  %v2456_v35 = vld [vmem:[%s2814_s27 + $0x200] ss:$16 sps:$4 sm:$0xff]  }
  0x54   : > { %1553 = vmatmul.mubr.bf16.vlgmr.msra.gmra.mrb[0].mxu0 %v2359_v36  ;;  %1271 = vmatprep.mubr.bf16.mxu1 %v2362_v37  ;;  %v2457_v36 = vld [vmem:[%s2814_s27 + $0x208] ss:$16 sps:$4 sm:$0xff]   ;;  %v2458_v37 = vld [vmem:[%s2814_s27 + $0x224] ss:$16 sps:$4 sm:$0xff]  }
  0x55   : > { %1560 = vmatprep.mubr.bf16.mxu0 %v2364_v38  ;;  %v2460_v38 = vld [vmem:[%s2814_s27 + $0x22c] ss:$16 sps:$4 sm:$0xff]  }
  0x5b   : > { %1272 = vmatmul.mubr.bf16.gmra.mrb[4].mxu1 %v2366_v39  ;;  %v2462_v39 = vld [vmem:[%s2814_s27 + $0x220] ss:$16 sps:$4 sm:$0xff]  }
  0x5c   : > { %1561 = vmatmul.mubr.bf16.gmra.mrb[4].mxu0 %v2367_v40  ;;  %1279 = vmatprep.mubr.bf16.mxu1 %v2368_v41  ;;  %v2463_v40 = vld [vmem:[%s2814_s27 + $0x228] ss:$16 sps:$4 sm:$0xff]   ;;  %v2464_v41 = vld [vmem:[%s2814_s27 + $0x244] ss:$16 sps:$4 sm:$0xff]  }
  0x5d   : > { %1568 = vmatprep.mubr.bf16.mxu0 %v2370_v42  ;;  %v2466_v42 = vld [vmem:[%s2814_s27 + $0x24c] ss:$16 sps:$4 sm:$0xff]  }
  0x63   : > { %1280 = vmatmul.mubr.bf16.gmra.mrb[8].mxu1 %v2372_v43  ;;  %v2468_v43 = vld [vmem:[%s2814_s27 + $0x240] ss:$16 sps:$4 sm:$0xff]  }
  0x64   : > { %1569 = vmatmul.mubr.bf16.gmra.mrb[8].mxu0 %v2373_v44  ;;  %1287 = vmatprep.mubr.bf16.mxu1 %v2374_v45  ;;  %v2469_v44 = vld [vmem:[%s2814_s27 + $0x248] ss:$16 sps:$4 sm:$0xff]   ;;  %v2470_v45 = vld [vmem:[%s2814_s27 + $0x264] ss:$16 sps:$4 sm:$0xff]  }
  0x65   : > { %1576 = vmatprep.mubr.bf16.mxu0 %v2376_v46  ;;  %v2472_v46 = vld [vmem:[%s2814_s27 + $0x26c] ss:$16 sps:$4 sm:$0xff]  }
  0x6b   : > { %1288 = vmatmul.mubr.bf16.gmra.mrb[12].mxu1 %v2378_v47  ;;  %v2474_v47 = vld [vmem:[%s2814_s27 + $0x260] ss:$16 sps:$4 sm:$0xff]  }
  0x6c   : > { %1577 = vmatmul.mubr.bf16.gmra.mrb[12].mxu0 %v2379_v48  ;;  %1295 = vmatprep.mubr.bf16.mxu1 %v2380_v49  ;;  %v2475_v48 = vld [vmem:[%s2814_s27 + $0x268] ss:$16 sps:$4 sm:$0xff]   ;;  %v2476_v49 = vld [vmem:[%s2814_s27 + $0x284] ss:$16 sps:$4 sm:$0xff]  }
  0x6d   : > { %1584 = vmatprep.mubr.bf16.mxu0 %v2382_v50  ;;  %v2478_v50 = vld [vmem:[%s2814_s27 + $0x28c] ss:$16 sps:$4 sm:$0xff]  }
  0x73   : > { %1296 = vmatmul.mubr.bf16.gmra.mrb[16].mxu1 %v2384_v51  ;;  %v2480_v51 = vld [vmem:[%s2814_s27 + $0x280] ss:$16 sps:$4 sm:$0xff]  }
  0x74   : > { %1585 = vmatmul.mubr.bf16.gmra.mrb[16].mxu0 %v2385_v52  ;;  %1303 = vmatprep.mubr.bf16.mxu1 %v2386_v53  ;;  %v2481_v52 = vld [vmem:[%s2814_s27 + $0x288] ss:$16 sps:$4 sm:$0xff]   ;;  %v2482_v53 = vld [vmem:[%s2814_s27 + $0x2a4] ss:$16 sps:$4 sm:$0xff]  }
  0x75   : > { %1592 = vmatprep.mubr.bf16.mxu0 %v2388_v54  ;;  %v2484_v54 = vld [vmem:[%s2814_s27 + $0x2ac] ss:$16 sps:$4 sm:$0xff]  }
  0x7b   : > { %1304 = vmatmul.mubr.bf16.gmra.mrb[20].mxu1 %v2390_v55  ;;  %v2486_v55 = vld [vmem:[%s2814_s27 + $0x2a0] ss:$16 sps:$4 sm:$0xff]  }
  0x7c   : > { %1593 = vmatmul.mubr.bf16.gmra.mrb[20].mxu0 %v2391_v56  ;;  %1311 = vmatprep.mubr.bf16.mxu1 %v2392_v57  ;;  %v2487_v56 = vld [vmem:[%s2814_s27 + $0x2a8] ss:$16 sps:$4 sm:$0xff]   ;;  %v2488_v57 = vld [vmem:[%s2814_s27 + $0x2c4] ss:$16 sps:$4 sm:$0xff]  }
  0x7d   : > { %1600 = vmatprep.mubr.bf16.mxu0 %v2394_v58  ;;  %v2490_v58 = vld [vmem:[%s2814_s27 + $0x2cc] ss:$16 sps:$4 sm:$0xff]  }
  0x83   : > { %1312 = vmatmul.mubr.bf16.gmra.mrb[24].mxu1 %v2396_v59  ;;  %v2492_v59 = vld [vmem:[%s2814_s27 + $0x2c0] ss:$16 sps:$4 sm:$0xff]  }
  0x84   : > { %1601 = vmatmul.mubr.bf16.gmra.mrb[24].mxu0 %v2397_v60  ;;  %1319 = vmatprep.mubr.bf16.mxu1 %v2398_v61  ;;  %v2493_v60 = vld [vmem:[%s2814_s27 + $0x2c8] ss:$16 sps:$4 sm:$0xff]   ;;  %v2494_v61 = vld [vmem:[%s2814_s27 + $0x2e4] ss:$16 sps:$4 sm:$0xff]  }
  0x85   : > { %1608 = vmatprep.mubr.bf16.mxu0 %v2400_v62  ;;  %v2496_v62 = vld [vmem:[%s2814_s27 + $0x2ec] ss:$16 sps:$4 sm:$0xff]  }
  0x8b   : > { %1320 = vmatmul.mubr.bf16.gmra.mrb[28].mxu1 %v2402_v63  ;;  %v2498_v63 = vld [vmem:[%s2814_s27 + $0x2e0] ss:$16 sps:$4 sm:$0xff]  }
  0x8c   : > { %1609 = vmatmul.mubr.bf16.gmra.mrb[28].mxu0 %v2403_v0  ;;  %1327 = vmatprep.mubr.bf16.mxu1 %v2404_v1  ;;  %v2499_v0 = vld [vmem:[%s2814_s27 + $0x2e8] ss:$16 sps:$4 sm:$0xff]   ;;  %v2500_v1 = vld [vmem:[%s2814_s27 + $0x304] ss:$16 sps:$4 sm:$0xff]  }
  0x8d   : > { %1616 = vmatprep.mubr.bf16.mxu0 %v2406_v2  ;;  %v2502_v2 = vld [vmem:[%s2814_s27 + $0x30c] ss:$16 sps:$4 sm:$0xff]  }
  0x93   : > { %1328 = vmatmul.mubr.bf16.gmra.mrb[32].mxu1 %v2408_v3  ;;  %v2504_v3 = vld [vmem:[%s2814_s27 + $0x300] ss:$16 sps:$4 sm:$0xff]  }
  0x94   : > { %1617 = vmatmul.mubr.bf16.gmra.mrb[32].mxu0 %v2409_v4  ;;  %1335 = vmatprep.mubr.bf16.mxu1 %v2410_v5  ;;  %v2505_v4 = vld [vmem:[%s2814_s27 + $0x308] ss:$16 sps:$4 sm:$0xff]   ;;  %v2506_v5 = vld [vmem:[%s2814_s27 + $0x324] ss:$16 sps:$4 sm:$0xff]  }
  0x95   : > { %1624 = vmatprep.mubr.bf16.mxu0 %v2412_v6  ;;  %v2508_v6 = vld [vmem:[%s2814_s27 + $0x32c] ss:$16 sps:$4 sm:$0xff]  }
  0x9b   : > { %1336 = vmatmul.mubr.bf16.gmra.mrb[36].mxu1 %v2414_v7  ;;  %v2510_v7 = vld [vmem:[%s2814_s27 + $0x320] ss:$16 sps:$4 sm:$0xff]  }
  0x9c   : > { %1625 = vmatmul.mubr.bf16.gmra.mrb[36].mxu0 %v2415_v8  ;;  %1343 = vmatprep.mubr.bf16.mxu1 %v2416_v9  ;;  %v2511_v8 = vld [vmem:[%s2814_s27 + $0x328] ss:$16 sps:$4 sm:$0xff]   ;;  %v2512_v9 = vld [vmem:[%s2814_s27 + $0x344] ss:$16 sps:$4 sm:$0xff]  }
  0x9d   : > { %1632 = vmatprep.mubr.bf16.mxu0 %v2418_v10  ;;  %v2514_v10 = vld [vmem:[%s2814_s27 + $0x34c] ss:$16 sps:$4 sm:$0xff]  }
  0xa3   : > { %1344 = vmatmul.mubr.bf16.gmra.mrb[40].mxu1 %v2420_v11  ;;  %v2516_v11 = vld [vmem:[%s2814_s27 + $0x340] ss:$16 sps:$4 sm:$0xff]  }
  0xa4   : > { %1633 = vmatmul.mubr.bf16.gmra.mrb[40].mxu0 %v2421_v12  ;;  %1351 = vmatprep.mubr.bf16.mxu1 %v2422_v13  ;;  %v2517_v12 = vld [vmem:[%s2814_s27 + $0x348] ss:$16 sps:$4 sm:$0xff]   ;;  %v2518_v13 = vld [vmem:[%s2814_s27 + $0x364] ss:$16 sps:$4 sm:$0xff]  }
  0xa5   : > { %1640 = vmatprep.mubr.bf16.mxu0 %v2424_v14  ;;  %v2520_v14 = vld [vmem:[%s2814_s27 + $0x36c] ss:$16 sps:$4 sm:$0xff]  }
  0xab   : > { %1352 = vmatmul.mubr.bf16.gmra.mrb[44].mxu1 %v2426_v15 }
  0xac   : > { %1641 = vmatmul.mubr.bf16.gmra.mrb[44].mxu0 %v2427_v16  ;;  %1359 = vmatprep.mubr.bf16.mxu1 %v2428_v17 }
  0xad   : > { %1648 = vmatprep.mubr.bf16.mxu0 %v2430_v18  ;;  %v2522_v18 = vld [vmem:[%s2814_s27 + $0x360] ss:$16 sps:$4 sm:$0xff]  }
  0xb3   : > { %1360 = vmatmul.mubr.bf16.gmra.mrb[48].mxu1 %v2432_v19 }
  0xb4   : > { %1649 = vmatmul.mubr.bf16.gmra.mrb[48].mxu0 %v2433_v20  ;;  %1367 = vmatprep.mubr.bf16.mxu1 %v2434_v21 }
  0xb5   : > { %1656 = vmatprep.mubr.bf16.mxu0 %v2436_v22  ;;  %v2523_v22 = vld [vmem:[%s2814_s27 + $0x368] ss:$16 sps:$4 sm:$0xff]  }
  0xbb   : > { %1368 = vmatmul.mubr.bf16.gmra.mrb[52].mxu1 %v2438_v23  ;;  %v2524_v23 = vld [vmem:[%s2814_s27 + $0x384] ss:$16 sps:$4 sm:$0xff]  }
  0xbc   : > { %1657 = vmatmul.mubr.bf16.gmra.mrb[52].mxu0 %v2439_v24  ;;  %1375 = vmatprep.mubr.bf16.mxu1 %v2440_v25 }
  0xbd   : > { %1664 = vmatprep.mubr.bf16.mxu0 %v2442_v26  ;;  %v2526_v26 = vld [vmem:[%s2814_s27 + $0x38c] ss:$16 sps:$4 sm:$0xff]  }
  0xc3   : > { %1376 = vmatmul.mubr.bf16.gmra.mrb[56].mxu1 %v2444_v27 }
  0xc4   : > { %1665 = vmatmul.mubr.bf16.gmra.mrb[56].mxu0 %v2445_v28  ;;  %1383 = vmatprep.mubr.bf16.mxu1 %v2446_v29 }
  0xc5   : > { %1672 = vmatprep.mubr.bf16.mxu0 %v2448_v30 }
  0xcb   : > { %1384 = vmatmul.mubr.bf16.gmra.mrb[60].mxu1 %v2450_v31 }
  0xcc   : > { %1673 = vmatmul.mubr.bf16.gmra.mrb[60].mxu0 %v2451_v32  ;;  %1391 = vmatprep.mubr.bf16.mxu1 %v2452_v33  ;;  %v2528_v32 = vld [vmem:[%s2814_s27 + $0x380] ss:$16 sps:$4 sm:$0xff]  }
  0xcd   : > { %1680 = vmatprep.mubr.bf16.mxu0 %v2454_v34 }
  0xd3   : > { %1392 = vmatmul.mubr.bf16.gmra.mrb[64].mxu1 %v2456_v35 }
  0xd4   : > { %1681 = vmatmul.mubr.bf16.gmra.mrb[64].mxu0 %v2457_v36  ;;  %1399 = vmatprep.mubr.bf16.mxu1 %v2458_v37  ;;  %v2529_v36 = vld [vmem:[%s2814_s27 + $0x388] ss:$16 sps:$4 sm:$0xff]   ;;  %v2530_v37 = vld [vmem:[%s2814_s27 + $0x3a4] ss:$16 sps:$4 sm:$0xff]  }
  0xd5   : > { %1688 = vmatprep.mubr.bf16.mxu0 %v2460_v38 }
  0xdb   : > { %1400 = vmatmul.mubr.bf16.gmra.mrb[68].mxu1 %v2462_v39 }
  0xdc   : > { %1689 = vmatmul.mubr.bf16.gmra.mrb[68].mxu0 %v2463_v40  ;;  %1407 = vmatprep.mubr.bf16.mxu1 %v2464_v41  ;;  %v2532_v40 = vld [vmem:[%s2814_s27 + $0x3ac] ss:$16 sps:$4 sm:$0xff]  }
  0xdd   : > { %1696 = vmatprep.mubr.bf16.mxu0 %v2466_v42 }
  0xe3   : > { %1408 = vmatmul.mubr.bf16.gmra.mrb[72].mxu1 %v2468_v43 }
  0xe4   : > { %1697 = vmatmul.mubr.bf16.gmra.mrb[72].mxu0 %v2469_v44  ;;  %1415 = vmatprep.mubr.bf16.mxu1 %v2470_v45 }
  0xe5   : > { %1704 = vmatprep.mubr.bf16.mxu0 %v2472_v46 }
  0xeb   : > { %1416 = vmatmul.mubr.bf16.gmra.mrb[76].mxu1 %v2474_v47 }
  0xec   : > { %1705 = vmatmul.mubr.bf16.gmra.mrb[76].mxu0 %v2475_v48  ;;  %1423 = vmatprep.mubr.bf16.mxu1 %v2476_v49  ;;  %v2534_v48 = vld [vmem:[%s2814_s27 + $0x3a0] ss:$16 sps:$4 sm:$0xff]  }
  0xed   : > { %1712 = vmatprep.mubr.bf16.mxu0 %v2478_v50 }
  0xf3   : > { %1424 = vmatmul.mubr.bf16.gmra.mrb[80].mxu1 %v2480_v51 }
  0xf4   : > { %1713 = vmatmul.mubr.bf16.gmra.mrb[80].mxu0 %v2481_v52  ;;  %1431 = vmatprep.mubr.bf16.mxu1 %v2482_v53  ;;  %v2535_v52 = vld [vmem:[%s2814_s27 + $0x3a8] ss:$16 sps:$4 sm:$0xff]   ;;  %v2536_v53 = vld [vmem:[%s2814_s27 + $0x3c4] ss:$16 sps:$4 sm:$0xff]  }
  0xf5   : > { %1720 = vmatprep.mubr.bf16.mxu0 %v2484_v54 }
  0xfb   : > { %1432 = vmatmul.mubr.bf16.gmra.mrb[84].mxu1 %v2486_v55 }
  0xfc   : > { %1721 = vmatmul.mubr.bf16.gmra.mrb[84].mxu0 %v2487_v56  ;;  %1439 = vmatprep.mubr.bf16.mxu1 %v2488_v57  ;;  %v2538_v56 = vld [vmem:[%s2814_s27 + $0x3cc] ss:$16 sps:$4 sm:$0xff]  }
  0xfd   : > { %1728 = vmatprep.mubr.bf16.mxu0 %v2490_v58 }
 0x103   : > { %1440 = vmatmul.mubr.bf16.gmra.mrb[88].mxu1 %v2492_v59 }
 0x104   : > { %1729 = vmatmul.mubr.bf16.gmra.mrb[88].mxu0 %v2493_v60  ;;  %1447 = vmatprep.mubr.bf16.mxu1 %v2494_v61 }
 0x105   : > { %1736 = vmatprep.mubr.bf16.mxu0 %v2496_v62 }
 0x10b   : > { %1448 = vmatmul.mubr.bf16.gmra.mrb[92].mxu1 %v2498_v63 }
 0x10c   : > { %1737 = vmatmul.mubr.bf16.gmra.mrb[92].mxu0 %v2499_v0  ;;  %1455 = vmatprep.mubr.bf16.mxu1 %v2500_v1  ;;  %v2540_v0 = vld [vmem:[%s2814_s27 + $0x3c0] ss:$16 sps:$4 sm:$0xff]  }
 0x10d   : > { %1744 = vmatprep.mubr.bf16.mxu0 %v2502_v2 }
 0x113   : > { %1456 = vmatmul.mubr.bf16.gmra.mrb[96].mxu1 %v2504_v3 }
 0x114   : > { %1745 = vmatmul.mubr.bf16.gmra.mrb[96].mxu0 %v2505_v4  ;;  %1463 = vmatprep.mubr.bf16.mxu1 %v2506_v5  ;;  %v2541_v4 = vld [vmem:[%s2814_s27 + $0x3c8] ss:$16 sps:$4 sm:$0xff]   ;;  %v2542_v5 = vld [vmem:[%s2814_s27 + $0x3e4] ss:$16 sps:$4 sm:$0xff]  }
 0x115   : > { %1752 = vmatprep.mubr.bf16.mxu0 %v2508_v6 }
 0x11b   : > { %1464 = vmatmul.mubr.bf16.gmra.mrb[100].mxu1 %v2510_v7 }
 0x11c   : > { %1753 = vmatmul.mubr.bf16.gmra.mrb[100].mxu0 %v2511_v8  ;;  %1471 = vmatprep.mubr.bf16.mxu1 %v2512_v9  ;;  %v2544_v8 = vld [vmem:[%s2814_s27 + $0x3ec] ss:$16 sps:$4 sm:$0xff]  }
 0x11d   : > { %1760 = vmatprep.mubr.bf16.mxu0 %v2514_v10 }
 0x123   : > { %1472 = vmatmul.mubr.bf16.gmra.mrb[104].mxu1 %v2516_v11 }
 0x124   : > { %1761 = vmatmul.mubr.bf16.gmra.mrb[104].mxu0 %v2517_v12  ;;  %1479 = vmatprep.mubr.bf16.mxu1 %v2518_v13 }
 0x125   : > { %1768 = vmatprep.mubr.bf16.mxu0 %v2520_v14 }
 0x126   : > { %v1265_v15 = vpop.f32.mrb[0].mxu1 }
 0x127   : > { %v1554_v16 = vpop.f32.mrb[0].mxu0  ;;  %v1267_v17 = vpop.f32.mrb[1].mxu1 }
 0x128   : > { %v1555_v19 = vadd.f32 %v1554_v16, %v1265_v15  ;;  %v1556_v20 = vpop.f32.mrb[1].mxu0  ;;  %v1268_v21 = vpop.f32.mrb[2].mxu1  ;;  %v2546_v16 = vld [vmem:[%s2814_s27 + $0x3e0] ss:$16 sps:$4 sm:$0xff]  }
 0x129   : > { %v1557_v24 = vpop.f32.mrb[2].mxu0  ;;  %v1270_v25 = vpop.f32.mrb[3].mxu1  ;;  %v2547_v20 = vld [vmem:[%s2814_s27 + $0x3e8] ss:$16 sps:$4 sm:$0xff]  }
 0x12a   : > { %2548 = vtanh.f32 %v1555_v19  ;;  %v1558_v27 = vadd.f32 %v1557_v24, %v1268_v21  ;;  %v1559_v28 = vpop.f32.mrb[3].mxu0 }
 0x12b   : > { %1480 = vmatmul.mubr.bf16.gmra.mrb[108].mxu1 %v2522_v18 }
 0x12c   : > { %2550 = vtanh.f32 %v1558_v27  ;;  %1769 = vmatmul.mubr.bf16.gmra.mrb[108].mxu0 %v2523_v22  ;;  %1487 = vmatprep.mubr.bf16.mxu1 %v2524_v23 }
 0x12d   : > { %1776 = vmatprep.mubr.bf16.mxu0 %v2526_v26 }
 0x12e   : > { %v1273_v29 = vpop.f32.mrb[4].mxu1 }
 0x12f   : > { %v1562_v30 = vpop.f32.mrb[4].mxu0  ;;  %v1275_v31 = vpop.f32.mrb[5].mxu1 }
 0x130   : > { %v1563_v33 = vadd.f32 %v1562_v30, %v1273_v29  ;;  %v1564_v34 = vpop.f32.mrb[5].mxu0  ;;  %v1276_v35 = vpop.f32.mrb[6].mxu1 }
 0x131   : > { %v1565_v38 = vpop.f32.mrb[6].mxu0  ;;  %v1278_v39 = vpop.f32.mrb[7].mxu1 }
 0x132   : > { %2552 = vtanh.f32 %v1563_v33  ;;  %v1566_v41 = vadd.f32 %v1565_v38, %v1276_v35  ;;  %v1567_v42 = vpop.f32.mrb[7].mxu0 }
 0x133   : > { %1488 = vmatmul.mubr.bf16.gmra.mrb[112].mxu1 %v2528_v32 }
 0x134   : > { %v2549_v43 = vpop.eup %2548  ;;  %2554 = vtanh.f32 %v1566_v41  ;;  %1777 = vmatmul.mubr.bf16.gmra.mrb[112].mxu0 %v2529_v36  ;;  %1495 = vmatprep.mubr.bf16.mxu1 %v2530_v37 }
 0x135   : > { %1873 = vst [vmem:[%s2972_s4] sm:$0xff] %v2549_v43  ;;  %1784 = vmatprep.mubr.bf16.mxu0 %v2532_v40 }
 0x136   : > { %v2551_v44 = vpop.eup %2550  ;;  %v1281_v45 = vpop.f32.mrb[8].mxu1 }
 0x137   : > { %1874 = vst [vmem:[%s2972_s4 + $0x8] sm:$0xff] %v2551_v44  ;;  %v1570_v46 = vpop.f32.mrb[8].mxu0  ;;  %v1283_v47 = vpop.f32.mrb[9].mxu1 }
 0x138   : > { %v1571_v49 = vadd.f32 %v1570_v46, %v1281_v45  ;;  %v1572_v50 = vpop.f32.mrb[9].mxu0  ;;  %v1284_v51 = vpop.f32.mrb[10].mxu1 }
 0x139   : > { %v1573_v54 = vpop.f32.mrb[10].mxu0  ;;  %v1286_v55 = vpop.f32.mrb[11].mxu1 }
 0x13a   : > { %2556 = vtanh.f32 %v1571_v49  ;;  %v1574_v57 = vadd.f32 %v1573_v54, %v1284_v51  ;;  %v1575_v58 = vpop.f32.mrb[11].mxu0 }
 0x13b   : > { %1496 = vmatmul.mubr.bf16.gmra.mrb[116].mxu1 %v2534_v48 }
 0x13c   : > { %v2553_v59 = vpop.eup %2552  ;;  %2558 = vtanh.f32 %v1574_v57  ;;  %1785 = vmatmul.mubr.bf16.gmra.mrb[116].mxu0 %v2535_v52  ;;  %1503 = vmatprep.mubr.bf16.mxu1 %v2536_v53 }
 0x13d   : > { %1875 = vst [vmem:[%s2972_s4 + $0x10] sm:$0xff] %v2553_v59  ;;  %1792 = vmatprep.mubr.bf16.mxu0 %v2538_v56 }
 0x13e   : > { %v2555_v60 = vpop.eup %2554  ;;  %v1289_v61 = vpop.f32.mrb[12].mxu1 }
 0x13f   : > { %1876 = vst [vmem:[%s2972_s4 + $0x18] sm:$0xff] %v2555_v60  ;;  %v1578_v62 = vpop.f32.mrb[12].mxu0  ;;  %v1291_v63 = vpop.f32.mrb[13].mxu1 }
 0x140   : > { %v1579_v1 = vadd.f32 %v1578_v62, %v1289_v61  ;;  %v1580_v2 = vpop.f32.mrb[13].mxu0  ;;  %v1292_v3 = vpop.f32.mrb[14].mxu1 }
 0x141   : > { %v1581_v6 = vpop.f32.mrb[14].mxu0  ;;  %v1294_v7 = vpop.f32.mrb[15].mxu1 }
 0x142   : > { %2560 = vtanh.f32 %v1579_v1  ;;  %v1582_v9 = vadd.f32 %v1581_v6, %v1292_v3  ;;  %v1583_v10 = vpop.f32.mrb[15].mxu0 }
 0x143   : > { %1504 = vmatmul.mubr.bf16.gmra.mrb[120].mxu1 %v2540_v0 }
 0x144   : > { %v2557_v11 = vpop.eup %2556  ;;  %2562 = vtanh.f32 %v1582_v9  ;;  %1793 = vmatmul.mubr.bf16.gmra.mrb[120].mxu0 %v2541_v4  ;;  %1511 = vmatprep.mubr.bf16.mxu1 %v2542_v5 }
 0x145   : > { %1877 = vst [vmem:[%s2972_s4 + $0x20] sm:$0xff] %v2557_v11  ;;  %1800 = vmatprep.mubr.bf16.mxu0 %v2544_v8 }
 0x146   : > { %v2559_v12 = vpop.eup %2558  ;;  %v1297_v13 = vpop.f32.mrb[16].mxu1 }
 0x147   : > { %1878 = vst [vmem:[%s2972_s4 + $0x28] sm:$0xff] %v2559_v12  ;;  %v1586_v14 = vpop.f32.mrb[16].mxu0  ;;  %v1299_v15 = vpop.f32.mrb[17].mxu1 }
 0x148   : > { %v1587_v17 = vadd.f32 %v1586_v14, %v1297_v13  ;;  %v1588_v18 = vpop.f32.mrb[17].mxu0  ;;  %v1300_v19 = vpop.f32.mrb[18].mxu1 }
 0x149   : > { %v1589_v21 = vpop.f32.mrb[18].mxu0  ;;  %v1302_v22 = vpop.f32.mrb[19].mxu1 }
 0x14a   : > { %2564 = vtanh.f32 %v1587_v17  ;;  %v1590_v23 = vadd.f32 %v1589_v21, %v1300_v19  ;;  %v1591_v24 = vpop.f32.mrb[19].mxu0 }
 0x14b   : > { %1512 = vmatmul.mubr.bf16.gmra.mrb[124].mxu1 %v2546_v16 }
 0x14c   : > { %v2561_v25 = vpop.eup %2560  ;;  %2566 = vtanh.f32 %v1590_v23  ;;  %1801 = vmatmul.mubr.bf16.gmra.mrb[124].mxu0 %v2547_v20 }
 0x14d   : > { %1879 = vst [vmem:[%s2972_s4 + $0x30] sm:$0xff] %v2561_v25 }
 0x14e   : > { %v2563_v26 = vpop.eup %2562  ;;  %v1305_v27 = vpop.f32.mrb[20].mxu1 }
 0x14f   : > { %1880 = vst [vmem:[%s2972_s4 + $0x38] sm:$0xff] %v2563_v26  ;;  %v1594_v28 = vpop.f32.mrb[20].mxu0  ;;  %v1307_v29 = vpop.f32.mrb[21].mxu1 }
 0x150   : > { %v1595_v30 = vadd.f32 %v1594_v28, %v1305_v27  ;;  %v1596_v31 = vpop.f32.mrb[21].mxu0  ;;  %v1308_v32 = vpop.f32.mrb[22].mxu1 }
 0x151   : > { %v1597_v33 = vpop.f32.mrb[22].mxu0  ;;  %v1310_v34 = vpop.f32.mrb[23].mxu1 }
 0x152   : > { %2568 = vtanh.f32 %v1595_v30  ;;  %v1598_v35 = vadd.f32 %v1597_v33, %v1308_v32  ;;  %v1599_v36 = vpop.f32.mrb[23].mxu0 }
 0x154   : > { %v2565_v37 = vpop.eup %2564  ;;  %2570 = vtanh.f32 %v1598_v35 }
 0x155   : > { %1881 = vst [vmem:[%s2972_s4 + $0x40] sm:$0xff] %v2565_v37 }
 0x156   : > { %v2567_v38 = vpop.eup %2566  ;;  %v1313_v39 = vpop.f32.mrb[24].mxu1 }
 0x157   : > { %1882 = vst [vmem:[%s2972_s4 + $0x48] sm:$0xff] %v2567_v38  ;;  %v1602_v40 = vpop.f32.mrb[24].mxu0  ;;  %v1315_v41 = vpop.f32.mrb[25].mxu1 }
 0x158   : > { %v1603_v42 = vadd.f32 %v1602_v40, %v1313_v39  ;;  %v1604_v43 = vpop.f32.mrb[25].mxu0  ;;  %v1316_v44 = vpop.f32.mrb[26].mxu1 }
 0x159   : > { %v1605_v45 = vpop.f32.mrb[26].mxu0  ;;  %v1318_v46 = vpop.f32.mrb[27].mxu1 }
 0x15a   : > { %2572 = vtanh.f32 %v1603_v42  ;;  %v1606_v47 = vadd.f32 %v1605_v45, %v1316_v44  ;;  %v1607_v48 = vpop.f32.mrb[27].mxu0 }
 0x15c   : > { %v2569_v49 = vpop.eup %2568  ;;  %2574 = vtanh.f32 %v1606_v47 }
 0x15d   : > { %1883 = vst [vmem:[%s2972_s4 + $0x50] sm:$0xff] %v2569_v49 }
 0x15e   : > { %v2571_v50 = vpop.eup %2570  ;;  %v1321_v51 = vpop.f32.mrb[28].mxu1 }
 0x15f   : > { %1884 = vst [vmem:[%s2972_s4 + $0x58] sm:$0xff] %v2571_v50  ;;  %v1610_v52 = vpop.f32.mrb[28].mxu0  ;;  %v1323_v53 = vpop.f32.mrb[29].mxu1 }
 0x160   : > { %v1611_v54 = vadd.f32 %v1610_v52, %v1321_v51  ;;  %v1612_v55 = vpop.f32.mrb[29].mxu0  ;;  %v1324_v56 = vpop.f32.mrb[30].mxu1 }
 0x161   : > { %v1613_v57 = vpop.f32.mrb[30].mxu0  ;;  %v1326_v58 = vpop.f32.mrb[31].mxu1 }
 0x162   : > { %2576 = vtanh.f32 %v1611_v54  ;;  %v1614_v59 = vadd.f32 %v1613_v57, %v1324_v56  ;;  %v1615_v60 = vpop.f32.mrb[31].mxu0 }
 0x164   : > { %v2573_v61 = vpop.eup %2572  ;;  %2578 = vtanh.f32 %v1614_v59 }
 0x165   : > { %1885 = vst [vmem:[%s2972_s4 + $0x60] sm:$0xff] %v2573_v61 }
 0x166   : > { %v2575_v62 = vpop.eup %2574  ;;  %v1329_v63 = vpop.f32.mrb[32].mxu1 }
 0x167   : > { %1886 = vst [vmem:[%s2972_s4 + $0x68] sm:$0xff] %v2575_v62  ;;  %v1618_v0 = vpop.f32.mrb[32].mxu0  ;;  %v1331_v1 = vpop.f32.mrb[33].mxu1 }
 0x168   : > { %v1619_v2 = vadd.f32 %v1618_v0, %v1329_v63  ;;  %v1620_v3 = vpop.f32.mrb[33].mxu0  ;;  %v1332_v4 = vpop.f32.mrb[34].mxu1 }
 0x169   : > { %v1621_v5 = vpop.f32.mrb[34].mxu0  ;;  %v1334_v6 = vpop.f32.mrb[35].mxu1 }
 0x16a   : > { %2580 = vtanh.f32 %v1619_v2  ;;  %v1622_v7 = vadd.f32 %v1621_v5, %v1332_v4  ;;  %v1623_v8 = vpop.f32.mrb[35].mxu0 }
 0x16c   : > { %v2577_v9 = vpop.eup %2576  ;;  %2582 = vtanh.f32 %v1622_v7 }
 0x16d   : > { %1887 = vst [vmem:[%s2972_s4 + $0x70] sm:$0xff] %v2577_v9 }
 0x16e   : > { %v2579_v10 = vpop.eup %2578  ;;  %v1337_v11 = vpop.f32.mrb[36].mxu1 }
 0x16f   : > { %1888 = vst [vmem:[%s2972_s4 + $0x78] sm:$0xff] %v2579_v10  ;;  %v1626_v12 = vpop.f32.mrb[36].mxu0  ;;  %v1339_v13 = vpop.f32.mrb[37].mxu1 }
 0x170   : > { %v1627_v14 = vadd.f32 %v1626_v12, %v1337_v11  ;;  %v1628_v15 = vpop.f32.mrb[37].mxu0  ;;  %v1340_v16 = vpop.f32.mrb[38].mxu1 }
 0x171   : > { %v1629_v17 = vpop.f32.mrb[38].mxu0  ;;  %v1342_v18 = vpop.f32.mrb[39].mxu1 }
 0x172   : > { %2584 = vtanh.f32 %v1627_v14  ;;  %v1630_v19 = vadd.f32 %v1629_v17, %v1340_v16  ;;  %v1631_v20 = vpop.f32.mrb[39].mxu0 }
 0x174   : > { %v2581_v21 = vpop.eup %2580  ;;  %2586 = vtanh.f32 %v1630_v19 }
 0x175   : > { %1889 = vst [vmem:[%s2972_s4 + $0x80] sm:$0xff] %v2581_v21 }
 0x176   : > { %v2583_v22 = vpop.eup %2582  ;;  %v1345_v23 = vpop.f32.mrb[40].mxu1 }
 0x177   : > { %1890 = vst [vmem:[%s2972_s4 + $0x88] sm:$0xff] %v2583_v22  ;;  %v1634_v24 = vpop.f32.mrb[40].mxu0  ;;  %v1347_v25 = vpop.f32.mrb[41].mxu1 }
 0x178   : > { %v1635_v26 = vadd.f32 %v1634_v24, %v1345_v23  ;;  %v1636_v27 = vpop.f32.mrb[41].mxu0  ;;  %v1348_v28 = vpop.f32.mrb[42].mxu1 }
 0x179   : > { %v1637_v29 = vpop.f32.mrb[42].mxu0  ;;  %v1350_v30 = vpop.f32.mrb[43].mxu1 }
 0x17a   : > { %2588 = vtanh.f32 %v1635_v26  ;;  %v1638_v31 = vadd.f32 %v1637_v29, %v1348_v28  ;;  %v1639_v32 = vpop.f32.mrb[43].mxu0 }
 0x17c   : > { %v2585_v33 = vpop.eup %2584  ;;  %2590 = vtanh.f32 %v1638_v31 }
 0x17d   : > { %1891 = vst [vmem:[%s2972_s4 + $0x90] sm:$0xff] %v2585_v33 }
 0x17e   : > { %v2587_v34 = vpop.eup %2586  ;;  %v1353_v35 = vpop.f32.mrb[44].mxu1 }
 0x17f   : > { %1892 = vst [vmem:[%s2972_s4 + $0x98] sm:$0xff] %v2587_v34  ;;  %v1642_v36 = vpop.f32.mrb[44].mxu0  ;;  %v1355_v37 = vpop.f32.mrb[45].mxu1 }
 0x180   : > { %v1643_v38 = vadd.f32 %v1642_v36, %v1353_v35  ;;  %v1644_v39 = vpop.f32.mrb[45].mxu0  ;;  %v1356_v40 = vpop.f32.mrb[46].mxu1 }
 0x181   : > { %v1645_v41 = vpop.f32.mrb[46].mxu0  ;;  %v1358_v42 = vpop.f32.mrb[47].mxu1 }
 0x182   : > { %2592 = vtanh.f32 %v1643_v38  ;;  %v1646_v43 = vadd.f32 %v1645_v41, %v1356_v40  ;;  %v1647_v44 = vpop.f32.mrb[47].mxu0 }
 0x184   : > { %v2589_v45 = vpop.eup %2588  ;;  %2594 = vtanh.f32 %v1646_v43 }
 0x185   : > { %1893 = vst [vmem:[%s2972_s4 + $0xa0] sm:$0xff] %v2589_v45 }
 0x186   : > { %v2591_v46 = vpop.eup %2590  ;;  %v1361_v47 = vpop.f32.mrb[48].mxu1 }
 0x187   : > { %1894 = vst [vmem:[%s2972_s4 + $0xa8] sm:$0xff] %v2591_v46  ;;  %v1650_v48 = vpop.f32.mrb[48].mxu0  ;;  %v1363_v49 = vpop.f32.mrb[49].mxu1 }
 0x188   : > { %v1651_v50 = vadd.f32 %v1650_v48, %v1361_v47  ;;  %v1652_v51 = vpop.f32.mrb[49].mxu0  ;;  %v1364_v52 = vpop.f32.mrb[50].mxu1 }
 0x189   : > { %v1653_v53 = vpop.f32.mrb[50].mxu0  ;;  %v1366_v54 = vpop.f32.mrb[51].mxu1 }
 0x18a   : > { %2596 = vtanh.f32 %v1651_v50  ;;  %v1654_v55 = vadd.f32 %v1653_v53, %v1364_v52  ;;  %v1655_v56 = vpop.f32.mrb[51].mxu0 }
 0x18c   : > { %v2593_v57 = vpop.eup %2592  ;;  %2598 = vtanh.f32 %v1654_v55 }
 0x18d   : > { %1895 = vst [vmem:[%s2972_s4 + $0xb0] sm:$0xff] %v2593_v57 }
 0x18e   : > { %v2595_v58 = vpop.eup %2594  ;;  %v1369_v59 = vpop.f32.mrb[52].mxu1 }
 0x18f   : > { %1896 = vst [vmem:[%s2972_s4 + $0xb8] sm:$0xff] %v2595_v58  ;;  %v1658_v60 = vpop.f32.mrb[52].mxu0  ;;  %v1371_v61 = vpop.f32.mrb[53].mxu1 }
 0x190   : > { %v1659_v62 = vadd.f32 %v1658_v60, %v1369_v59  ;;  %v1660_v63 = vpop.f32.mrb[53].mxu0  ;;  %v1372_v0 = vpop.f32.mrb[54].mxu1 }
 0x191   : > { %v1661_v1 = vpop.f32.mrb[54].mxu0  ;;  %v1374_v2 = vpop.f32.mrb[55].mxu1 }
 0x192   : > { %2600 = vtanh.f32 %v1659_v62  ;;  %v1662_v3 = vadd.f32 %v1661_v1, %v1372_v0  ;;  %v1663_v4 = vpop.f32.mrb[55].mxu0 }
 0x194   : > { %v2597_v5 = vpop.eup %2596  ;;  %2602 = vtanh.f32 %v1662_v3 }
 0x195   : > { %1897 = vst [vmem:[%s2972_s4 + $0xc0] sm:$0xff] %v2597_v5 }
 0x196   : > { %v2599_v6 = vpop.eup %2598  ;;  %v1377_v7 = vpop.f32.mrb[56].mxu1 }
 0x197   : > { %1898 = vst [vmem:[%s2972_s4 + $0xc8] sm:$0xff] %v2599_v6  ;;  %v1666_v8 = vpop.f32.mrb[56].mxu0  ;;  %v1379_v9 = vpop.f32.mrb[57].mxu1 }
 0x198   : > { %v1667_v10 = vadd.f32 %v1666_v8, %v1377_v7  ;;  %v1668_v11 = vpop.f32.mrb[57].mxu0  ;;  %v1380_v12 = vpop.f32.mrb[58].mxu1 }
 0x199   : > { %v1669_v13 = vpop.f32.mrb[58].mxu0  ;;  %v1382_v14 = vpop.f32.mrb[59].mxu1 }
 0x19a   : > { %2604 = vtanh.f32 %v1667_v10  ;;  %v1670_v15 = vadd.f32 %v1669_v13, %v1380_v12  ;;  %v1671_v16 = vpop.f32.mrb[59].mxu0 }
 0x19c   : > { %v2601_v17 = vpop.eup %2600  ;;  %2606 = vtanh.f32 %v1670_v15 }
 0x19d   : > { %1899 = vst [vmem:[%s2972_s4 + $0xd0] sm:$0xff] %v2601_v17 }
 0x19e   : > { %v2603_v18 = vpop.eup %2602  ;;  %v1385_v19 = vpop.f32.mrb[60].mxu1 }
 0x19f   : > { %1900 = vst [vmem:[%s2972_s4 + $0xd8] sm:$0xff] %v2603_v18  ;;  %v1674_v20 = vpop.f32.mrb[60].mxu0  ;;  %v1387_v21 = vpop.f32.mrb[61].mxu1 }
 0x1a0   : > { %v1675_v22 = vadd.f32 %v1674_v20, %v1385_v19  ;;  %v1676_v23 = vpop.f32.mrb[61].mxu0  ;;  %v1388_v24 = vpop.f32.mrb[62].mxu1 }
 0x1a1   : > { %v1677_v25 = vpop.f32.mrb[62].mxu0  ;;  %v1390_v26 = vpop.f32.mrb[63].mxu1 }
 0x1a2   : > { %2608 = vtanh.f32 %v1675_v22  ;;  %v1678_v27 = vadd.f32 %v1677_v25, %v1388_v24  ;;  %v1679_v28 = vpop.f32.mrb[63].mxu0 }
 0x1a4   : > { %v2605_v29 = vpop.eup %2604  ;;  %2610 = vtanh.f32 %v1678_v27 }
 0x1a5   : > { %1901 = vst [vmem:[%s2972_s4 + $0xe0] sm:$0xff] %v2605_v29 }
 0x1a6   : > { %v2607_v30 = vpop.eup %2606  ;;  %v1393_v31 = vpop.f32.mrb[64].mxu1 }
 0x1a7   : > { %1902 = vst [vmem:[%s2972_s4 + $0xe8] sm:$0xff] %v2607_v30  ;;  %v1682_v32 = vpop.f32.mrb[64].mxu0  ;;  %v1395_v33 = vpop.f32.mrb[65].mxu1 }
 0x1a8   : > { %v1683_v34 = vadd.f32 %v1682_v32, %v1393_v31  ;;  %v1684_v35 = vpop.f32.mrb[65].mxu0  ;;  %v1396_v36 = vpop.f32.mrb[66].mxu1 }
 0x1a9   : > { %v1685_v37 = vpop.f32.mrb[66].mxu0  ;;  %v1398_v38 = vpop.f32.mrb[67].mxu1 }
 0x1aa   : > { %2612 = vtanh.f32 %v1683_v34  ;;  %v1686_v39 = vadd.f32 %v1685_v37, %v1396_v36  ;;  %v1687_v40 = vpop.f32.mrb[67].mxu0 }
 0x1ac   : > { %v2609_v41 = vpop.eup %2608  ;;  %2614 = vtanh.f32 %v1686_v39 }
 0x1ad   : > { %1903 = vst [vmem:[%s2972_s4 + $0xf0] sm:$0xff] %v2609_v41 }
 0x1ae   : > { %v2611_v42 = vpop.eup %2610  ;;  %v1401_v43 = vpop.f32.mrb[68].mxu1 }
 0x1af   : > { %1904 = vst [vmem:[%s2972_s4 + $0xf8] sm:$0xff] %v2611_v42  ;;  %v1690_v44 = vpop.f32.mrb[68].mxu0  ;;  %v1403_v45 = vpop.f32.mrb[69].mxu1 }
 0x1b0   : > { %v1691_v46 = vadd.f32 %v1690_v44, %v1401_v43  ;;  %v1692_v47 = vpop.f32.mrb[69].mxu0  ;;  %v1404_v48 = vpop.f32.mrb[70].mxu1 }
 0x1b1   : > { %v1693_v49 = vpop.f32.mrb[70].mxu0  ;;  %v1406_v50 = vpop.f32.mrb[71].mxu1 }
 0x1b2   : > { %2616 = vtanh.f32 %v1691_v46  ;;  %v1694_v51 = vadd.f32 %v1693_v49, %v1404_v48  ;;  %v1695_v52 = vpop.f32.mrb[71].mxu0 }
 0x1b4   : > { %v2613_v53 = vpop.eup %2612  ;;  %2618 = vtanh.f32 %v1694_v51 }
 0x1b5   : > { %1905 = vst [vmem:[%s2972_s4 + $0x100] sm:$0xff] %v2613_v53 }
 0x1b6   : > { %v2615_v54 = vpop.eup %2614  ;;  %v1409_v55 = vpop.f32.mrb[72].mxu1 }
 0x1b7   : > { %1906 = vst [vmem:[%s2972_s4 + $0x108] sm:$0xff] %v2615_v54  ;;  %v1698_v56 = vpop.f32.mrb[72].mxu0  ;;  %v1411_v57 = vpop.f32.mrb[73].mxu1 }
 0x1b8   : > { %v1699_v58 = vadd.f32 %v1698_v56, %v1409_v55  ;;  %v1700_v59 = vpop.f32.mrb[73].mxu0  ;;  %v1412_v60 = vpop.f32.mrb[74].mxu1 }
 0x1b9   : > { %v1701_v61 = vpop.f32.mrb[74].mxu0  ;;  %v1414_v62 = vpop.f32.mrb[75].mxu1 }
 0x1ba   : > { %2620 = vtanh.f32 %v1699_v58  ;;  %v1702_v63 = vadd.f32 %v1701_v61, %v1412_v60  ;;  %v1703_v0 = vpop.f32.mrb[75].mxu0 }
 0x1bc   : > { %v2617_v1 = vpop.eup %2616  ;;  %2622 = vtanh.f32 %v1702_v63 }
 0x1bd   : > { %1907 = vst [vmem:[%s2972_s4 + $0x110] sm:$0xff] %v2617_v1 }
 0x1be   : > { %v2619_v2 = vpop.eup %2618  ;;  %v1417_v3 = vpop.f32.mrb[76].mxu1 }
 0x1bf   : > { %1908 = vst [vmem:[%s2972_s4 + $0x118] sm:$0xff] %v2619_v2  ;;  %v1706_v4 = vpop.f32.mrb[76].mxu0  ;;  %v1419_v5 = vpop.f32.mrb[77].mxu1 }
 0x1c0   : > { %v1707_v6 = vadd.f32 %v1706_v4, %v1417_v3  ;;  %v1708_v7 = vpop.f32.mrb[77].mxu0  ;;  %v1420_v8 = vpop.f32.mrb[78].mxu1 }
 0x1c1   : > { %v1709_v9 = vpop.f32.mrb[78].mxu0  ;;  %v1422_v10 = vpop.f32.mrb[79].mxu1 }
 0x1c2   : > { %2624 = vtanh.f32 %v1707_v6  ;;  %v1710_v11 = vadd.f32 %v1709_v9, %v1420_v8  ;;  %v1711_v12 = vpop.f32.mrb[79].mxu0 }
 0x1c4   : > { %v2621_v13 = vpop.eup %2620  ;;  %2626 = vtanh.f32 %v1710_v11 }
 0x1c5   : > { %1909 = vst [vmem:[%s2972_s4 + $0x120] sm:$0xff] %v2621_v13 }
 0x1c6   : > { %v2623_v14 = vpop.eup %2622  ;;  %v1425_v15 = vpop.f32.mrb[80].mxu1 }
 0x1c7   : > { %1910 = vst [vmem:[%s2972_s4 + $0x128] sm:$0xff] %v2623_v14  ;;  %v1714_v16 = vpop.f32.mrb[80].mxu0  ;;  %v1427_v17 = vpop.f32.mrb[81].mxu1 }
 0x1c8   : > { %v1715_v18 = vadd.f32 %v1714_v16, %v1425_v15  ;;  %v1716_v19 = vpop.f32.mrb[81].mxu0  ;;  %v1428_v20 = vpop.f32.mrb[82].mxu1 }
 0x1c9   : > { %v1717_v21 = vpop.f32.mrb[82].mxu0  ;;  %v1430_v22 = vpop.f32.mrb[83].mxu1 }
 0x1ca   : > { %2628 = vtanh.f32 %v1715_v18  ;;  %v1718_v23 = vadd.f32 %v1717_v21, %v1428_v20  ;;  %v1719_v24 = vpop.f32.mrb[83].mxu0 }
 0x1cc   : > { %v2625_v25 = vpop.eup %2624  ;;  %2630 = vtanh.f32 %v1718_v23 }
 0x1cd   : > { %1911 = vst [vmem:[%s2972_s4 + $0x130] sm:$0xff] %v2625_v25 }
 0x1ce   : > { %v2627_v26 = vpop.eup %2626  ;;  %v1433_v27 = vpop.f32.mrb[84].mxu1 }
 0x1cf   : > { %1912 = vst [vmem:[%s2972_s4 + $0x138] sm:$0xff] %v2627_v26  ;;  %v1722_v28 = vpop.f32.mrb[84].mxu0  ;;  %v1435_v29 = vpop.f32.mrb[85].mxu1 }
 0x1d0   : > { %v1723_v30 = vadd.f32 %v1722_v28, %v1433_v27  ;;  %v1724_v31 = vpop.f32.mrb[85].mxu0  ;;  %v1436_v32 = vpop.f32.mrb[86].mxu1 }
 0x1d1   : > { %v1725_v33 = vpop.f32.mrb[86].mxu0  ;;  %v1438_v34 = vpop.f32.mrb[87].mxu1 }
 0x1d2   : > { %2632 = vtanh.f32 %v1723_v30  ;;  %v1726_v35 = vadd.f32 %v1725_v33, %v1436_v32  ;;  %v1727_v36 = vpop.f32.mrb[87].mxu0 }
 0x1d4   : > { %v2629_v37 = vpop.eup %2628  ;;  %2634 = vtanh.f32 %v1726_v35 }
 0x1d5   : > { %1913 = vst [vmem:[%s2972_s4 + $0x140] sm:$0xff] %v2629_v37 }
 0x1d6   : > { %v2631_v38 = vpop.eup %2630  ;;  %v1441_v39 = vpop.f32.mrb[88].mxu1 }
 0x1d7   : > { %1914 = vst [vmem:[%s2972_s4 + $0x148] sm:$0xff] %v2631_v38  ;;  %v1730_v40 = vpop.f32.mrb[88].mxu0  ;;  %v1443_v41 = vpop.f32.mrb[89].mxu1 }
 0x1d8   : > { %v1731_v42 = vadd.f32 %v1730_v40, %v1441_v39  ;;  %v1732_v43 = vpop.f32.mrb[89].mxu0  ;;  %v1444_v44 = vpop.f32.mrb[90].mxu1 }
 0x1d9   : > { %v1733_v45 = vpop.f32.mrb[90].mxu0  ;;  %v1446_v46 = vpop.f32.mrb[91].mxu1 }
 0x1da   : > { %2636 = vtanh.f32 %v1731_v42  ;;  %v1734_v47 = vadd.f32 %v1733_v45, %v1444_v44  ;;  %v1735_v48 = vpop.f32.mrb[91].mxu0 }
 0x1dc   : > { %v2633_v49 = vpop.eup %2632  ;;  %2638 = vtanh.f32 %v1734_v47 }
 0x1dd   : > { %1915 = vst [vmem:[%s2972_s4 + $0x150] sm:$0xff] %v2633_v49 }
 0x1de   : > { %v2635_v50 = vpop.eup %2634  ;;  %v1449_v51 = vpop.f32.mrb[92].mxu1 }
 0x1df   : > { %1916 = vst [vmem:[%s2972_s4 + $0x158] sm:$0xff] %v2635_v50  ;;  %v1738_v52 = vpop.f32.mrb[92].mxu0  ;;  %v1451_v53 = vpop.f32.mrb[93].mxu1 }
 0x1e0   : > { %v1739_v54 = vadd.f32 %v1738_v52, %v1449_v51  ;;  %v1740_v55 = vpop.f32.mrb[93].mxu0  ;;  %v1452_v56 = vpop.f32.mrb[94].mxu1 }
 0x1e1   : > { %v1741_v57 = vpop.f32.mrb[94].mxu0  ;;  %v1454_v58 = vpop.f32.mrb[95].mxu1 }
 0x1e2   : > { %2640 = vtanh.f32 %v1739_v54  ;;  %v1742_v59 = vadd.f32 %v1741_v57, %v1452_v56  ;;  %v1743_v60 = vpop.f32.mrb[95].mxu0 }
 0x1e4   : > { %v2637_v61 = vpop.eup %2636  ;;  %2642 = vtanh.f32 %v1742_v59 }
 0x1e5   : > { %1917 = vst [vmem:[%s2972_s4 + $0x160] sm:$0xff] %v2637_v61 }
 0x1e6   : > { %v2639_v62 = vpop.eup %2638  ;;  %v1457_v63 = vpop.f32.mrb[96].mxu1 }
 0x1e7   : > { %1918 = vst [vmem:[%s2972_s4 + $0x168] sm:$0xff] %v2639_v62  ;;  %v1746_v0 = vpop.f32.mrb[96].mxu0  ;;  %v1459_v1 = vpop.f32.mrb[97].mxu1 }
 0x1e8   : > { %v1747_v2 = vadd.f32 %v1746_v0, %v1457_v63  ;;  %v1748_v3 = vpop.f32.mrb[97].mxu0  ;;  %v1460_v4 = vpop.f32.mrb[98].mxu1 }
 0x1e9   : > { %v1749_v5 = vpop.f32.mrb[98].mxu0  ;;  %v1462_v6 = vpop.f32.mrb[99].mxu1 }
 0x1ea   : > { %2644 = vtanh.f32 %v1747_v2  ;;  %v1750_v7 = vadd.f32 %v1749_v5, %v1460_v4  ;;  %v1751_v8 = vpop.f32.mrb[99].mxu0 }
 0x1ec   : > { %v2641_v9 = vpop.eup %2640  ;;  %2646 = vtanh.f32 %v1750_v7 }
 0x1ed   : > { %1919 = vst [vmem:[%s2972_s4 + $0x170] sm:$0xff] %v2641_v9 }
 0x1ee   : > { %v2643_v10 = vpop.eup %2642  ;;  %v1465_v11 = vpop.f32.mrb[100].mxu1 }
 0x1ef   : > { %1920 = vst [vmem:[%s2972_s4 + $0x178] sm:$0xff] %v2643_v10  ;;  %v1754_v12 = vpop.f32.mrb[100].mxu0  ;;  %v1467_v13 = vpop.f32.mrb[101].mxu1 }
 0x1f0   : > { %v1755_v14 = vadd.f32 %v1754_v12, %v1465_v11  ;;  %v1756_v15 = vpop.f32.mrb[101].mxu0  ;;  %v1468_v16 = vpop.f32.mrb[102].mxu1 }
 0x1f1   : > { %v1757_v17 = vpop.f32.mrb[102].mxu0  ;;  %v1470_v18 = vpop.f32.mrb[103].mxu1 }
 0x1f2   : > { %2648 = vtanh.f32 %v1755_v14  ;;  %v1758_v19 = vadd.f32 %v1757_v17, %v1468_v16  ;;  %v1759_v20 = vpop.f32.mrb[103].mxu0 }
 0x1f4   : > { %v2645_v21 = vpop.eup %2644  ;;  %2650 = vtanh.f32 %v1758_v19 }
 0x1f5   : > { %1921 = vst [vmem:[%s2972_s4 + $0x180] sm:$0xff] %v2645_v21 }
 0x1f6   : > { %v2647_v22 = vpop.eup %2646  ;;  %v1473_v23 = vpop.f32.mrb[104].mxu1 }
 0x1f7   : > { %1922 = vst [vmem:[%s2972_s4 + $0x188] sm:$0xff] %v2647_v22  ;;  %v1762_v24 = vpop.f32.mrb[104].mxu0  ;;  %v1475_v25 = vpop.f32.mrb[105].mxu1 }
 0x1f8   : > { %v1763_v26 = vadd.f32 %v1762_v24, %v1473_v23  ;;  %v1764_v27 = vpop.f32.mrb[105].mxu0  ;;  %v1476_v28 = vpop.f32.mrb[106].mxu1 }
 0x1f9   : > { %v1765_v29 = vpop.f32.mrb[106].mxu0  ;;  %v1478_v30 = vpop.f32.mrb[107].mxu1 }
 0x1fa   : > { %2652 = vtanh.f32 %v1763_v26  ;;  %v1766_v31 = vadd.f32 %v1765_v29, %v1476_v28  ;;  %v1767_v32 = vpop.f32.mrb[107].mxu0 }
 0x1fc   : > { %v2649_v33 = vpop.eup %2648  ;;  %2654 = vtanh.f32 %v1766_v31 }
 0x1fd   : > { %1923 = vst [vmem:[%s2972_s4 + $0x190] sm:$0xff] %v2649_v33 }
 0x1fe   : > { %v2651_v34 = vpop.eup %2650  ;;  %v1481_v35 = vpop.f32.mrb[108].mxu1 }
 0x1ff   : > { %1924 = vst [vmem:[%s2972_s4 + $0x198] sm:$0xff] %v2651_v34  ;;  %v1770_v36 = vpop.f32.mrb[108].mxu0  ;;  %v1483_v37 = vpop.f32.mrb[109].mxu1 }
 0x200   : > { %v1771_v38 = vadd.f32 %v1770_v36, %v1481_v35  ;;  %v1772_v39 = vpop.f32.mrb[109].mxu0  ;;  %v1484_v40 = vpop.f32.mrb[110].mxu1 }
 0x201   : > { %v1773_v41 = vpop.f32.mrb[110].mxu0  ;;  %v1486_v42 = vpop.f32.mrb[111].mxu1 }
 0x202   : > { %2656 = vtanh.f32 %v1771_v38  ;;  %v1774_v43 = vadd.f32 %v1773_v41, %v1484_v40  ;;  %v1775_v44 = vpop.f32.mrb[111].mxu0 }
 0x204   : > { %v2653_v45 = vpop.eup %2652  ;;  %2658 = vtanh.f32 %v1774_v43 }
 0x205   : > { %1925 = vst [vmem:[%s2972_s4 + $0x1a0] sm:$0xff] %v2653_v45 }
 0x206   : > { %v2655_v46 = vpop.eup %2654  ;;  %v1489_v47 = vpop.f32.mrb[112].mxu1 }
 0x207   : > { %1926 = vst [vmem:[%s2972_s4 + $0x1a8] sm:$0xff] %v2655_v46  ;;  %v1778_v48 = vpop.f32.mrb[112].mxu0  ;;  %v1491_v49 = vpop.f32.mrb[113].mxu1 }
 0x208   : > { %v1779_v50 = vadd.f32 %v1778_v48, %v1489_v47  ;;  %v1780_v51 = vpop.f32.mrb[113].mxu0  ;;  %v1492_v52 = vpop.f32.mrb[114].mxu1 }
 0x209   : > { %v1781_v53 = vpop.f32.mrb[114].mxu0  ;;  %v1494_v54 = vpop.f32.mrb[115].mxu1 }
 0x20a   : > { %2660 = vtanh.f32 %v1779_v50  ;;  %v1782_v55 = vadd.f32 %v1781_v53, %v1492_v52  ;;  %v1783_v56 = vpop.f32.mrb[115].mxu0 }
 0x20c   : > { %v2657_v57 = vpop.eup %2656  ;;  %2662 = vtanh.f32 %v1782_v55 }
 0x20d   : > { %1927 = vst [vmem:[%s2972_s4 + $0x1b0] sm:$0xff] %v2657_v57 }
 0x20e   : > { %v2659_v58 = vpop.eup %2658  ;;  %v1497_v59 = vpop.f32.mrb[116].mxu1 }
 0x20f   : > { %1928 = vst [vmem:[%s2972_s4 + $0x1b8] sm:$0xff] %v2659_v58  ;;  %v1786_v60 = vpop.f32.mrb[116].mxu0  ;;  %v1499_v61 = vpop.f32.mrb[117].mxu1 }
 0x210   : > { %v1787_v62 = vadd.f32 %v1786_v60, %v1497_v59  ;;  %v1788_v63 = vpop.f32.mrb[117].mxu0  ;;  %v1500_v0 = vpop.f32.mrb[118].mxu1 }
 0x211   : > { %v1789_v1 = vpop.f32.mrb[118].mxu0  ;;  %v1502_v2 = vpop.f32.mrb[119].mxu1 }
 0x212   : > { %2664 = vtanh.f32 %v1787_v62  ;;  %v1790_v3 = vadd.f32 %v1789_v1, %v1500_v0  ;;  %v1791_v4 = vpop.f32.mrb[119].mxu0 }
 0x214   : > { %v2661_v5 = vpop.eup %2660  ;;  %2666 = vtanh.f32 %v1790_v3 }
 0x215   : > { %1929 = vst [vmem:[%s2972_s4 + $0x1c0] sm:$0xff] %v2661_v5 }
 0x216   : > { %v2663_v6 = vpop.eup %2662  ;;  %v1505_v7 = vpop.f32.mrb[120].mxu1 }
 0x217   : > { %1930 = vst [vmem:[%s2972_s4 + $0x1c8] sm:$0xff] %v2663_v6  ;;  %v1794_v8 = vpop.f32.mrb[120].mxu0  ;;  %v1507_v9 = vpop.f32.mrb[121].mxu1 }
 0x218   : > { %v1795_v10 = vadd.f32 %v1794_v8, %v1505_v7  ;;  %v1796_v11 = vpop.f32.mrb[121].mxu0  ;;  %v1508_v12 = vpop.f32.mrb[122].mxu1 }
 0x219   : > { %v1797_v13 = vpop.f32.mrb[122].mxu0  ;;  %v1510_v14 = vpop.f32.mrb[123].mxu1 }
 0x21a   : > { %2668 = vtanh.f32 %v1795_v10  ;;  %v1798_v15 = vadd.f32 %v1797_v13, %v1508_v12  ;;  %v1799_v16 = vpop.f32.mrb[123].mxu0 }
 0x21c   : > { %v2665_v17 = vpop.eup %2664  ;;  %2670 = vtanh.f32 %v1798_v15 }
 0x21d   : > { %1931 = vst [vmem:[%s2972_s4 + $0x1d0] sm:$0xff] %v2665_v17 }
 0x21e   : > { %v2667_v18 = vpop.eup %2666  ;;  %v1513_v19 = vpop.f32.mrb[124].mxu1 }
 0x21f   : > { %1932 = vst [vmem:[%s2972_s4 + $0x1d8] sm:$0xff] %v2667_v18  ;;  %v1802_v20 = vpop.f32.mrb[124].mxu0  ;;  %v1515_v21 = vpop.f32.mrb[125].mxu1 }
 0x220   : > { %v1803_v22 = vadd.f32 %v1802_v20, %v1513_v19  ;;  %v1804_v23 = vpop.f32.mrb[125].mxu0  ;;  %v1516_v24 = vpop.f32.mrb[126].mxu1 }
 0x221   : > { %v1805_v25 = vpop.f32.mrb[126].mxu0  ;;  %v1518_v26 = vpop.f32.mrb[127].mxu1 }
 0x222   : > { %2672 = vtanh.f32 %v1803_v22  ;;  %v1806_v27 = vadd.f32 %v1805_v25, %v1516_v24  ;;  %v1807_v28 = vpop.f32.mrb[127].mxu0 }
 0x224   : > { %v2669_v29 = vpop.eup %2668  ;;  %2674 = vtanh.f32 %v1806_v27 }
 0x225   : > { %1933 = vst [vmem:[%s2972_s4 + $0x1e0] sm:$0xff] %v2669_v29 }
 0x226   : > { %v2671_v30 = vpop.eup %2670 }
 0x227   : > { %1934 = vst [vmem:[%s2972_s4 + $0x1e8] sm:$0xff] %v2671_v30 }
 0x22c   : > { %v2673_v31 = vpop.eup %2672 }
 0x22d   : > { %1935 = vst [vmem:[%s2972_s4 + $0x1f0] sm:$0xff] %v2673_v31 }
 0x22e   : > { %v2675_v32 = vpop.eup %2674 }
 0x22f   : > { %1936 = vst [vmem:[%s2972_s4 + $0x1f8] sm:$0xff] %v2675_v32 }
 0x230 PF: > { %s12_s13 = sadd.s32 1, %s2714_s13   ;;  %s3066_s9 = smov %s2706_s11 }
 0x231   : > { %p9_p7 = scmp.ge.s32.totalorder %s12_s13, 18   ;;  %s3067_s10 = smov %s2710_s12 }
 0x232   : > { %s3068_s11 = smov %s3071_s14  ;;  %s3069_s12 = smov %s3075_s15 }
 0x233   :  { %11 = sbr.rel (!%p9_p7) target bundleno = 3 (0x3), region = 61 }

</bundles_post_ra>
